<compile_context>
chip_gen: v5e
topology: v5e:2x2
jax: 0.10.0
libtpu: 0.0.40
codegen_flags: <defaults>
</compile_context>

<pallas_src>
import functools
import math

import jax
import jax.numpy as jnp
from jax import lax
from jax.experimental import pallas as pl
from jax.experimental.pallas import tpu as pltpu

# ----------------------------- configuration -------------------------------
SETTINGS = dict(
    input_dim=32,           # patch-embed dim (feature dim fed to Conv2dSubsampling)
    lstm_dim=32,            # encoder_dim / output_dim
    patch_size=4,
    layer_num=1,
    num_attention_heads=4,
    conv_kernel_size=7,
)
IN_CHANS = 2
HEADS = {"hm": 3, "reg": 2}
HEAD_CONV = 32
FINAL_KERNEL = 1

_LN_EPS = 1e-5
_BN_EPS = 1e-5


# ------------------------------ in-kernel helpers ---------------------------
def _sigmoid(x):
    # numerically-stable logistic that lowers to the EUP tanh slot
    return 0.5 * (jnp.tanh(0.5 * x) + 1.0)


def _layer_norm_2d(x, g, b, eps=_LN_EPS):
    mu = jnp.mean(x, axis=-1, keepdims=True)
    var = jnp.mean((x - mu) * (x - mu), axis=-1, keepdims=True)
    return (x - mu) * lax.rsqrt(var + eps) * g + b


# ------------------------- generic matmul (stem only) -----------------------
def _matmul_kernel(a_ref, b_ref, bias_ref, o_ref, *, activation):
    y = jnp.dot(a_ref[...], b_ref[...], preferred_element_type=jnp.float32)
    y = y + bias_ref[...]
    if activation == "relu":
        y = jnp.maximum(y, 0.0)
    elif activation == "swish":
        y = y * _sigmoid(y)
    o_ref[...] = y


def matmul(a, b, bias=None, activation=None, block_m=128):
    """a: (M, K) @ b: (K, N) -> (M, N) with fused bias/activation; M-tiled grid."""
    a = a.astype(jnp.float32)
    b = b.astype(jnp.float32)
    M, K = a.shape
    N = b.shape[1]
    if bias is None:
        bias = jnp.zeros((N,), jnp.float32)
    bias2 = bias.reshape(1, N).astype(jnp.float32)
    tm = M if M <= block_m else block_m
    grid = (pl.cdiv(M, tm),)
    return pl.pallas_call(
        functools.partial(_matmul_kernel, activation=activation),
        grid=grid,
        in_specs=[
            pl.BlockSpec((tm, K), lambda i: (i, 0)),
            pl.BlockSpec((K, N), lambda i: (0, 0)),
            pl.BlockSpec((1, N), lambda i: (0, 0)),
        ],
        out_specs=pl.BlockSpec((tm, N), lambda i: (i, 0)),
        out_shape=jax.ShapeDtypeStruct((M, N), jnp.float32),
        compiler_params=pltpu.CompilerParams(dimension_semantics=("parallel",)),
    )(a, b, bias2)


# ----------------------- fused FeedForward (+residual) ----------------------
def _ff_kernel(x_ref, lng_ref, lnb_ref, w1_ref, b1_ref, w2_ref, b2_ref,
               *rest, final_ln):
    if final_ln:
        fg_ref, fb_ref, o_ref = rest
    else:
        (o_ref,) = rest
    x = x_ref[...]
    h = _layer_norm_2d(x, lng_ref[...], lnb_ref[...])
    h = jnp.dot(h, w1_ref[...], preferred_element_type=jnp.float32) + b1_ref[...]
    h = h * _sigmoid(h)                                      # Swish
    y = jnp.dot(h, w2_ref[...], preferred_element_type=jnp.float32) + b2_ref[...]
    out = x + 0.5 * y                                        # half-step residual
    if final_ln:
        out = _layer_norm_2d(out, fg_ref[...], fb_ref[...])  # block's final LayerNorm
    o_ref[...] = out


def ff_block(x, p, final_ln=None):
    B, T, D = x.shape
    H4 = p["w1"].shape[0]
    args = [x, p["ln_g"].reshape(1, D), p["ln_b"].reshape(1, D),
            p["w1"].T, p["b1"].reshape(1, H4),
            p["w2"].T, p["b2"].reshape(1, D)]
    in_specs = [pl.BlockSpec((None, T, D), lambda b: (b, 0, 0))] + \
               [pl.BlockSpec(a.shape, lambda b: (0, 0)) for a in args[1:]]
    if final_ln is not None:
        extra = [final_ln[0].reshape(1, D), final_ln[1].reshape(1, D)]
        args += extra
        in_specs += [pl.BlockSpec(a.shape, lambda b: (0, 0)) for a in extra]
    return pl.pallas_call(
        functools.partial(_ff_kernel, final_ln=final_ln is not None),
        grid=(B,),
        in_specs=in_specs,
        out_specs=pl.BlockSpec((None, T, D), lambda b: (b, 0, 0)),
        out_shape=jax.ShapeDtypeStruct((B, T, D), jnp.float32),
        compiler_params=pltpu.CompilerParams(dimension_semantics=("parallel",)),
    )(*[a.astype(jnp.float32) for a in args])


# -------------------- fused Conformer conv module (+residual) ---------------
def _conv_kernel(x_ref, lng_ref, lnb_ref, pw1_ref, b1_ref, dw_ref,
                 pw2_ref, b2_ref, o_ref, pad_sc, *, ksize):
    T, D = x_ref.shape
    pad = (ksize - 1) // 2
    x = x_ref[...]
    h = _layer_norm_2d(x, lng_ref[...], lnb_ref[...])
    h = jnp.dot(h, pw1_ref[...], preferred_element_type=jnp.float32) + b1_ref[...]
    glu = h[:, :D] * _sigmoid(h[:, D:])                      # GLU over channels
    # depthwise conv along time; D stays on the lane axis
    pad_sc[...] = jnp.zeros_like(pad_sc)
    pad_sc[pad:pad + T, :] = glu
    acc = jnp.zeros((T, D), jnp.float32)
    for j in range(ksize):
        acc = acc + pad_sc[j:j + T, :] * dw_ref[j:j + 1, :]
    # BatchNorm1d (eval mode, default running stats / affine)
    # TODO(synk): fold trained BatchNorm running stats/affine here for real checkpoints.
    acc = acc * (1.0 / math.sqrt(1.0 + _BN_EPS))
    acc = acc * _sigmoid(acc)                                # Swish
    y = jnp.dot(acc, pw2_ref[...], preferred_element_type=jnp.float32) + b2_ref[...]
    o_ref[...] = x + y


def conv_block(x, p, ksize):
    B, T, D = x.shape
    pad = (ksize - 1) // 2
    args = [x, p["ln_g"].reshape(1, D), p["ln_b"].reshape(1, D),
            p["pw1_w"].reshape(2 * D, D).T, p["pw1_b"].reshape(1, 2 * D),
            p["dw_w"].reshape(D, ksize).T,                    # (K, D)
            p["pw2_w"].reshape(D, D).T, p["pw2_b"].reshape(1, D)]
    in_specs = [pl.BlockSpec((None, T, D), lambda b: (b, 0, 0))] + \
               [pl.BlockSpec(a.shape, lambda b: (0, 0)) for a in args[1:]]
    return pl.pallas_call(
        functools.partial(_conv_kernel, ksize=ksize),
        grid=(B,),
        in_specs=in_specs,
        out_specs=pl.BlockSpec((None, T, D), lambda b: (b, 0, 0)),
        out_shape=jax.ShapeDtypeStruct((B, T, D), jnp.float32),
        scratch_shapes=[pltpu.VMEM((T + 2 * pad, D), jnp.float32)],
        compiler_params=pltpu.CompilerParams(dimension_semantics=("parallel",)),
    )(*[a.astype(jnp.float32) for a in args])


# -------------- fused BiLSTM + relative self-attention (+residual) ----------
def _mhsa_kernel(x_ref, lng_ref, lnb_ref, wih_ref, bih_ref, whhf_ref, whhr_ref,
                 wqkv_ref, bqkv_ref, pos_ref, wp_ref, ub_ref, vb_ref,
                 wo_ref, bo_ref, wfc_ref, bfc_ref, o_ref,
                 xg_sc, lstm_sc, ext_sc, ctx_sc, *, num_heads):
    T, D = x_ref.shape
    D2 = 2 * D
    dh = D2 // num_heads

    x = x_ref[...]
    h = _layer_norm_2d(x, lng_ref[...], lnb_ref[...])

    # --- both LSTM directions share one lane-dense 256-wide gate matmul -----
    xg_sc[...] = (jnp.dot(h, wih_ref[...], preferred_element_type=jnp.float32)
                  + bih_ref[...])                             # (T, 8D): [fwd | rev]
    whh_f = whhf_ref[...]
    whh_r = whhr_ref[...]
    hf = jnp.zeros((1, D), jnp.float32)
    cf = jnp.zeros((1, D), jnp.float32)
    hr = jnp.zeros((1, D), jnp.float32)
    cr = jnp.zeros((1, D), jnp.float32)
    for s in range(T):                                        # T is small & static
        # forward direction, time s
        g = xg_sc[s:s + 1, 0:4 * D] + jnp.dot(hf, whh_f,
                                              preferred_element_type=jnp.float32)
        ig = _sigmoid(g[:, 0:D]); fg = _sigmoid(g[:, D:2 * D])
        gg = jnp.tanh(g[:, 2 * D:3 * D]); og = _sigmoid(g[:, 3 * D:4 * D])
        cf = fg * cf + ig * gg
        hf = og * jnp.tanh(cf)
        lstm_sc[s:s + 1, 0:D] = hf
        # reverse direction, time T-1-s (interleaved with forward)
        tr = T - 1 - s
        gr = xg_sc[tr:tr + 1, 4 * D:8 * D] + jnp.dot(hr, whh_r,
                                                     preferred_element_type=jnp.float32)
        igr = _sigmoid(gr[:, 0:D]); fgr = _sigmoid(gr[:, D:2 * D])
        ggr = jnp.tanh(gr[:, 2 * D:3 * D]); ogr = _sigmoid(gr[:, 3 * D:4 * D])
        cr = fgr * cr + igr * ggr
        hr = ogr * jnp.tanh(cr)
        lstm_sc[tr:tr + 1, D:2 * D] = hr

    lstm = lstm_sc[...]                                       # (T, 2D)

    # --- fused Q|K|V projection (192-wide) + positional projection ----------
    qkv = (jnp.dot(lstm, wqkv_ref[...], preferred_element_type=jnp.float32)
           + bqkv_ref[...])
    p_all = jnp.dot(pos_ref[...], wp_ref[...], preferred_element_type=jnp.float32)
    q = qkv[:, 0:D2]
    k = qkv[:, D2:2 * D2]
    v = qkv[:, 2 * D2:3 * D2]
    qu = q + ub_ref[...]
    qv = q + vb_ref[...]
    inv_sqrt = 1.0 / math.sqrt(float(D2))
    row = lax.broadcasted_iota(jnp.int32, (T, T), 0)

    for hd in range(num_heads):
        c0 = hd * dh
        c1 = c0 + dh
        qu_h = qu[:, c0:c1]
        qv_h = qv[:, c0:c1]
        k_h = k[:, c0:c1]
        v_h = v[:, c0:c1]
        p_h = p_all[:, c0:c1]
        content = lax.dot_general(qu_h, k_h, (((1,), (1,)), ((), ())),
                                  preferred_element_type=jnp.float32)   # (T, T)
        pos_sc = lax.dot_general(qv_h, p_h, (((1,), (1,)), ((), ())),
                                 preferred_element_type=jnp.float32)    # (T, T)
        # exact Transformer-XL relative shift (gather-free, via padded scratch)
        ext_sc[...] = jnp.zeros_like(ext_sc)
        ext_sc[:, 0:T] = pos_sc
        ext_sc[0:T - 1, T + 1:2 * T + 1] = ext_sc[1:T, 0:T]
        shifted = jnp.zeros((T, T), jnp.float32)
        for s in range(T):
            shifted = shifted + jnp.where(row == (T - 1 - s),
                                          ext_sc[:, s:s + T], 0.0)
        score = (content + shifted) * inv_sqrt
        m = jnp.max(score, axis=-1, keepdims=True)
        e = jnp.exp(score - m)
        attn = e * pl.reciprocal(jnp.sum(e, axis=-1, keepdims=True), approx=True)
        ctx_sc[:, c0:c1] = jnp.dot(attn, v_h, preferred_element_type=jnp.float32)

    att = (jnp.dot(ctx_sc[...], wo_ref[...], preferred_element_type=jnp.float32)
           + bo_ref[...])
    y = jnp.dot(att, wfc_ref[...], preferred_element_type=jnp.float32) + bfc_ref[...]
    o_ref[...] = x + y


def positional_encoding(length, d_model):
    position = jnp.arange(length, dtype=jnp.float32)[:, None]
    div_term = jnp.exp(jnp.arange(0, d_model, 2, dtype=jnp.float32)
                       * (-math.log(10000.0) / d_model))
    pe = jnp.zeros((length, d_model), jnp.float32)
    pe = pe.at[:, 0::2].set(jnp.sin(position * div_term))
    pe = pe.at[:, 1::2].set(jnp.cos(position * div_term))
    return pe


def mhsa_block(x, p, num_heads):
    B, T, D = x.shape
    D2 = 2 * D
    a = p["att"]
    w_ih = jnp.concatenate([p["w_ih_f"].T, p["w_ih_r"].T], axis=1)      # (D, 8D)
    b_ih = jnp.concatenate([p["b_ih_f"] + p["b_hh_f"],
                            p["b_ih_r"] + p["b_hh_r"]]).reshape(1, 8 * D)
    wqkv = jnp.concatenate([a["wq"].T, a["wk"].T, a["wv"].T], axis=1)   # (2D, 6D)
    bqkv = jnp.concatenate([a["bq"], a["bk"], a["bv"]]).reshape(1, 3 * D2)
    pos = positional_encoding(T, D2)
    args = [x, p["ln_g"].reshape(1, D), p["ln_b"].reshape(1, D),
            w_ih, b_ih, p["w_hh_f"].T, p["w_hh_r"].T,
            wqkv, bqkv, pos, a["wp"].T,
            a["u_bias"].reshape(1, D2), a["v_bias"].reshape(1, D2),
            a["wo"].T, a["bo"].reshape(1, D2),
            p["fc_w"].T, p["fc_b"].reshape(1, D)]
    in_specs = [pl.BlockSpec((None, T, D), lambda b: (b, 0, 0))] + \
               [pl.BlockSpec(arg.shape, lambda b: (0, 0)) for arg in args[1:]]
    return pl.pallas_call(
        functools.partial(_mhsa_kernel, num_heads=num_heads),
        grid=(B,),
        in_specs=in_specs,
        out_specs=pl.BlockSpec((None, T, D), lambda b: (b, 0, 0)),
        out_shape=jax.ShapeDtypeStruct((B, T, D), jnp.float32),
        scratch_shapes=[pltpu.VMEM((T, 8 * D), jnp.float32),
                        pltpu.VMEM((T, 2 * D), jnp.float32),
                        pltpu.VMEM((T, 2 * T + 1), jnp.float32),
                        pltpu.VMEM((T, 2 * D), jnp.float32)],
        compiler_params=pltpu.CompilerParams(dimension_semantics=("parallel",)),
    )(*[arg.astype(jnp.float32) for arg in args])


# ----------------------------- merged output heads --------------------------
def _head_kernel(x_ref, w1_ref, b1_ref, w2_ref, b2_ref, o_ref, pad_sc):
    T, D = x_ref.shape
    x = x_ref[...]
    pad_sc[...] = jnp.zeros_like(pad_sc)
    pad_sc[1:1 + T, :] = x                                    # padding=1 for k=3
    acc = jnp.zeros((T, w1_ref.shape[1]), jnp.float32)
    for j in range(3):
        acc = acc + jnp.dot(pad_sc[j:j + T, :], w1_ref[j * D:(j + 1) * D, :],
                            preferred_element_type=jnp.float32)
    acc = jnp.maximum(acc + b1_ref[...], 0.0)                 # ReLU
    o_ref[...] = jnp.dot(acc, w2_ref[...],
                         preferred_element_type=jnp.float32) + b2_ref[...]


def heads_forward(x, head_params):
    B, T, D = x.shape
    names = list(head_params.keys())
    w1_list = [head_params[n]["w1"] for n in names]           # (HC, D, 3)
    b1_list = [head_params[n]["b1"] for n in names]
    w2_list = [head_params[n]["w2"] for n in names]           # (classes, HC, 1)
    b2_list = [head_params[n]["b2"] for n in names]
    HC = w1_list[0].shape[0]
    classes = [w.shape[0] for w in w2_list]
    Ctot = sum(classes)
    w1m = jnp.concatenate(w1_list, axis=0)                    # (nH*HC, D, 3)
    w1k = jnp.concatenate([w1m[:, :, j].T for j in range(3)], axis=0)  # (3D, nH*HC)
    b1m = jnp.concatenate(b1_list).reshape(1, -1)
    # block-diagonal 1x1-conv weight so both heads run in one matmul
    w2m = jnp.zeros((len(names) * HC, Ctot), jnp.float32)
    coff = 0
    for i, w2 in enumerate(w2_list):
        w2m = w2m.at[i * HC:(i + 1) * HC, coff:coff + classes[i]].set(w2[:, :, 0].T)
        coff += classes[i]
    b2m = jnp.concatenate(b2_list).reshape(1, -1)

    out = pl.pallas_call(
        _head_kernel,
        grid=(B,),
        in_specs=[pl.BlockSpec((None, T, D), lambda b: (b, 0, 0)),
                  pl.BlockSpec(w1k.shape, lambda b: (0, 0)),
                  pl.BlockSpec(b1m.shape, lambda b: (0, 0)),
                  pl.BlockSpec(w2m.shape, lambda b: (0, 0)),
                  pl.BlockSpec(b2m.shape, lambda b: (0, 0))],
        out_specs=pl.BlockSpec((None, T, Ctot), lambda b: (b, 0, 0)),
        out_shape=jax.ShapeDtypeStruct((B, T, Ctot), jnp.float32),
        scratch_shapes=[pltpu.VMEM((T + 2, D), jnp.float32)],
        compiler_params=pltpu.CompilerParams(dimension_semantics=("parallel",)),
    )(x.astype(jnp.float32), w1k, b1m, w2m, b2m)

    z = {}
    coff = 0
    for i, n in enumerate(names):
        z[n] = jnp.transpose(out[:, :, coff:coff + classes[i]], (0, 2, 1))
        coff += classes[i]
    return z


# ----------------------- stem: conv lowering (im2col) -----------------------
def patch_embed(x, w, b):
    """Conv1d(in_chans, embed, kernel=stride=patch).  x: (B, C, L) -> (B, T, E)."""
    # TODO(synk): PatchEmbed class not provided; assumed Conv1d(kernel=stride=patch_size), no norm.
    B, C, L = x.shape
    E, _, ps = w.shape
    T = L // ps
    col = x[:, :, :T * ps].reshape(B, C, T, ps)
    col = jnp.transpose(col, (0, 2, 1, 3)).reshape(B * T, C * ps)
    return matmul(col, w.reshape(E, C * ps).T, b).reshape(B, T, E)


def conv2d_s2_k3(x, w, b, relu=True):
    """Conv2d kernel 3, stride 2, no padding.  x: (B, C, H, W) -> (B, O, H', W')."""
    B, C, H, W = x.shape
    O = w.shape[0]
    Ho = (H - 3) // 2 + 1
    Wo = (W - 3) // 2 + 1
    patches = []
    for dh in range(3):
        for dw in range(3):
            patches.append(x[:, :, dh:dh + 2 * (Ho - 1) + 1:2,
                             dw:dw + 2 * (Wo - 1) + 1:2])
    col = jnp.stack(patches, axis=2)                          # (B, C, 9, Ho, Wo)
    col = jnp.transpose(col, (0, 3, 4, 1, 2)).reshape(B * Ho * Wo, C * 9)
    out = matmul(col, w.reshape(O, C * 9).T, b, activation="relu" if relu else None)
    return jnp.transpose(out.reshape(B, Ho, Wo, O), (0, 3, 1, 2))


def conv_subsample(x, p, input_lengths):
    """Conv2dSubampling: two Conv2d(k=3, s=2)+ReLU.  x: (B, T, D)."""
    h = x[:, None, :, :]
    h = conv2d_s2_k3(h, p["w1"], p["b1"], relu=True)
    h = conv2d_s2_k3(h, p["w2"], p["b2"], relu=True)
    B, C, T2, D2 = h.shape
    out = jnp.transpose(h, (0, 2, 1, 3)).reshape(B, T2, C * D2)
    out_lengths = (input_lengths >> 2) - 1
    return out, out_lengths


# --------------------------------- forward ----------------------------------
def block_forward(x, p, num_heads, conv_kernel_size):
    x = ff_block(x, p["ff1"])                                  # x + 0.5*FF(x)
    x = conv_block(x, p["conv"], conv_kernel_size)             # x + Conv(x)
    x = mhsa_block(x, p["mhsa"], num_heads)                    # x + BiLSTM-SA(x)
    x = ff_block(x, p["ff2"], final_ln=(p["ln_g"], p["ln_b"])) # x + 0.5*FF(x), then LN
    return x


@jax.jit
def model_forward(params, inputs, input_lengths):
    x = patch_embed(jnp.transpose(inputs, (0, 2, 1)),
                    params["patch_w"], params["patch_b"])
    out, _ = conv_subsample(x, params["subsample"], input_lengths)
    B, T, F = out.shape
    d = params["proj_w"].shape[0]
    out = matmul(out.reshape(B * T, F), params["proj_w"].T,
                 params["proj_b"]).reshape(B, T, d)
    for lp in params["layers"]:
        out = block_forward(out, lp, SETTINGS["num_attention_heads"],
                            SETTINGS["conv_kernel_size"])
    return heads_forward(out, params["heads"])


# ------------------------------ parameter init ------------------------------
def init_params(key):
    d = SETTINGS["lstm_dim"]
    input_dim = SETTINGS["input_dim"]
    ps = SETTINGS["patch_size"]
    nh = SETTINGS["num_attention_heads"]
    k = SETTINGS["conv_kernel_size"]
    keys = iter(jax.random.split(key, 512))

    def w(shape, scale=0.05):
        return scale * jax.random.normal(next(keys), shape, dtype=jnp.float32)

    def zeros(shape):
        return jnp.zeros(shape, jnp.float32)

    def ones(shape):
        return jnp.ones(shape, jnp.float32)

    def ff_params():
        return dict(ln_g=ones((d,)), ln_b=zeros((d,)),
                    w1=w((4 * d, d)), b1=zeros((4 * d,)),
                    w2=w((d, 4 * d)), b2=zeros((d,)))

    params = {}
    params["patch_w"] = w((input_dim, IN_CHANS, ps))
    params["patch_b"] = w((input_dim,))
    params["subsample"] = dict(w1=w((d, 1, 3, 3)), b1=w((d,)),
                               w2=w((d, d, 3, 3)), b2=w((d,)))
    dsub = ((input_dim - 1) // 2 - 1) // 2
    params["proj_w"] = w((d, d * dsub))
    params["proj_b"] = zeros((d,))

    layers = []
    for _ in range(SETTINGS["layer_num"]):
        lp = dict(
            ff1=ff_params(),
            conv=dict(ln_g=ones((d,)), ln_b=zeros((d,)),
                      pw1_w=w((2 * d, d, 1)), pw1_b=zeros((2 * d,)),
                      dw_w=w((d, 1, k)),
                      pw2_w=w((d, d, 1)), pw2_b=zeros((d,))),
            mhsa=dict(ln_g=ones((d,)), ln_b=zeros((d,)),
                      w_ih_f=w((4 * d, d)), w_hh_f=w((4 * d, d)),
                      b_ih_f=zeros((4 * d,)), b_hh_f=zeros((4 * d,)),
                      w_ih_r=w((4 * d, d)), w_hh_r=w((4 * d, d)),
                      b_ih_r=zeros((4 * d,)), b_hh_r=zeros((4 * d,)),
                      att=dict(wq=w((2 * d, 2 * d)), bq=zeros((2 * d,)),
                               wk=w((2 * d, 2 * d)), bk=zeros((2 * d,)),
                               wv=w((2 * d, 2 * d)), bv=zeros((2 * d,)),
                               wp=w((2 * d, 2 * d)),
                               u_bias=w((nh, 2 * d // nh)),
                               v_bias=w((nh, 2 * d // nh)),
                               wo=w((2 * d, 2 * d)), bo=zeros((2 * d,))),
                      fc_w=w((d, 2 * d)), fc_b=zeros((d,))),
            ff2=ff_params(),
            ln_g=ones((d,)), ln_b=zeros((d,)),
        )
        layers.append(lp)
    params["layers"] = layers

    params["heads"] = {}
    for head, classes in HEADS.items():
        hp = dict(w1=w((HEAD_CONV, d, 3)),
                  w2=w((classes, HEAD_CONV, FINAL_KERNEL)))
        if "hm" in head:
            hp["b1"] = w((HEAD_CONV,))
            hp["b2"] = jnp.full((classes,), -2.19, jnp.float32)   # hm bias init
        else:
            hp["b1"] = zeros((HEAD_CONV,))                        # fill_fc_weights
            hp["b2"] = zeros((classes,))
        params["heads"][head] = hp
    return params


# ----------------------------------- main ------------------------------------
if __name__ == "__main__":
    key = jax.random.PRNGKey(0)
    pkey, xkey = jax.random.split(key)
    params = init_params(pkey)

    B, L_raw = 2, 128
    inputs = jax.random.normal(xkey, (B, L_raw, IN_CHANS), dtype=jnp.float32)
    input_lengths = jnp.full((B,), L_raw, dtype=jnp.int32)

    z = model_forward(params, inputs, input_lengths)
    jax.block_until_ready(z)

    # Sanity: each head output is (B, classes, T_sub) and finite.
    for head, classes in HEADS.items():
        assert z[head].shape[0] == B and z[head].shape[1] == classes
        assert bool(jnp.all(jnp.isfinite(z[head])))

    print("KERNEL_OK")
</pallas_src>

<mosaic_0001>
module attributes {stable_mosaic.version = 11 : i64} {
  func.func @_matmul_kernel(%arg0: i32, %arg1: memref<64x8xf32, #tpu.memory_space<vmem>>, %arg2: memref<8x32xf32, #tpu.memory_space<vmem>>, %arg3: memref<1x32xf32, #tpu.memory_space<vmem>>, %arg4: memref<64x32xf32, #tpu.memory_space<vmem>>) attributes {dimension_semantics = [#tpu.dimension_semantics<parallel>], iteration_bounds = array<i64: 1>, scalar_prefetch = 0 : i64, scratch_operands = 0 : i64, tpu.core_type = #tpu.core_type<tc>, window_params = [{transform_indices = @transform_0, window_bounds = array<i64: 64, 8>}, {pipeline_mode = #tpu.pipeline_mode<synchronous>, transform_indices = @transform_1, window_bounds = array<i64: 8, 32>}, {pipeline_mode = #tpu.pipeline_mode<synchronous>, transform_indices = @transform_2, window_bounds = array<i64: 1, 32>}, {transform_indices = @transform_3, window_bounds = array<i64: 64, 32>}]} {
    %c0 = arith.constant 0 : index
    %c0_0 = arith.constant 0 : index
    %0 = vector.load %arg1[%c0, %c0_0] : memref<64x8xf32, #tpu.memory_space<vmem>>, vector<64x8xf32>
    %c0_1 = arith.constant 0 : index
    %c0_2 = arith.constant 0 : index
    %1 = vector.load %arg2[%c0_1, %c0_2] : memref<8x32xf32, #tpu.memory_space<vmem>>, vector<8x32xf32>
    %cst = arith.constant dense<0.000000e+00> : vector<64x32xf32>
    %2 = tpu.matmul %0, %1, %cst {dimension_numbers = #tpu.dot_dimension_numbers<[1], [0], [0], [1], [0, 0, 1, 1], [], []>} : vector<64x8xf32>, vector<8x32xf32>, vector<64x32xf32> -> vector<64x32xf32>
    %c0_3 = arith.constant 0 : index
    %c0_4 = arith.constant 0 : index
    %3 = vector.load %arg3[%c0_3, %c0_4] : memref<1x32xf32, #tpu.memory_space<vmem>>, vector<1x32xf32>
    %4 = vector.broadcast %3 : vector<1x32xf32> to vector<64x32xf32>
    %5 = arith.addf %2, %4 : vector<64x32xf32>
    %c0_5 = arith.constant 0 : index
    %c0_6 = arith.constant 0 : index
    %6 = vector.load %arg4[%c0_5, %c0_6] : memref<64x32xf32, #tpu.memory_space<vmem>>, vector<64x32xf32>
    tpu.vector_store %arg4[%c0_5, %c0_6], %5 {strides = array<i32>} : memref<64x32xf32, #tpu.memory_space<vmem>>, vector<64x32xf32>,
    return
  }
  func.func @transform_0(%arg0: i32) -> (i32, i32) {
    %c0_i32 = arith.constant 0 : i32
    %c0_i32_0 = arith.constant 0 : i32
    return %arg0, %c0_i32 : i32, i32
  }
  func.func @transform_1(%arg0: i32) -> (i32, i32) {
    %c0_i32 = arith.constant 0 : i32
    %c0_i32_0 = arith.constant 0 : i32
    %c0_i32_1 = arith.constant 0 : i32
    return %c0_i32, %c0_i32_0 : i32, i32
  }
  func.func @transform_2(%arg0: i32) -> (i32, i32) {
    %c0_i32 = arith.constant 0 : i32
    %c0_i32_0 = arith.constant 0 : i32
    %c0_i32_1 = arith.constant 0 : i32
    return %c0_i32, %c0_i32_0 : i32, i32
  }
  func.func @transform_3(%arg0: i32) -> (i32, i32) {
    %c0_i32 = arith.constant 0 : i32
    %c0_i32_0 = arith.constant 0 : i32
    return %arg0, %c0_i32 : i32, i32
  }
}

module attributes {stable_mosaic.version = 11 : i64} {
  func.func @_matmul_kernel(%arg0: i32, %arg1: memref<128x9xf32, #tpu.memory_space<vmem>>, %arg2: memref<9x32xf32, #tpu.memory_space<vmem>>, %arg3: memref<1x32xf32, #tpu.memory_space<vmem>>, %arg4: memref<128x32xf32, #tpu.memory_space<vmem>>) attributes {dimension_semantics = [#tpu.dimension_semantics<parallel>], iteration_bounds = array<i64: 4>, scalar_prefetch = 0 : i64, scratch_operands = 0 : i64, tpu.core_type = #tpu.core_type<tc>, window_params = [{transform_indices = @transform_0, window_bounds = array<i64: 128, 9>}, {pipeline_mode = #tpu.pipeline_mode<synchronous>, transform_indices = @transform_1, window_bounds = array<i64: 9, 32>}, {pipeline_mode = #tpu.pipeline_mode<synchronous>, transform_indices = @transform_2, window_bounds = array<i64: 1, 32>}, {transform_indices = @transform_3, window_bounds = array<i64: 128, 32>}]} {
    %c0 = arith.constant 0 : index
    %c0_0 = arith.constant 0 : index
    %0 = vector.load %arg1[%c0, %c0_0] : memref<128x9xf32, #tpu.memory_space<vmem>>, vector<128x9xf32>
    %c0_1 = arith.constant 0 : index
    %c0_2 = arith.constant 0 : index
    %1 = vector.load %arg2[%c0_1, %c0_2] : memref<9x32xf32, #tpu.memory_space<vmem>>, vector<9x32xf32>
    %cst = arith.constant dense<0.000000e+00> : vector<128x32xf32>
    %2 = tpu.matmul %0, %1, %cst {dimension_numbers = #tpu.dot_dimension_numbers<[1], [0], [0], [1], [0, 0, 1, 1], [], []>} : vector<128x9xf32>, vector<9x32xf32>, vector<128x32xf32> -> vector<128x32xf32>
    %c0_3 = arith.constant 0 : index
    %c0_4 = arith.constant 0 : index
    %3 = vector.load %arg3[%c0_3, %c0_4] : memref<1x32xf32, #tpu.memory_space<vmem>>, vector<1x32xf32>
    %4 = vector.broadcast %3 : vector<1x32xf32> to vector<128x32xf32>
    %5 = arith.addf %2, %4 : vector<128x32xf32>
    %cst_5 = arith.constant 0.000000e+00 : f32
    %6 = vector.broadcast %cst_5 : f32 to vector<128x32xf32>
    %7 = arith.maximumf %5, %6 : vector<128x32xf32>
    %c0_6 = arith.constant 0 : index
    %c0_7 = arith.constant 0 : index
    %8 = vector.load %arg4[%c0_6, %c0_7] : memref<128x32xf32, #tpu.memory_space<vmem>>, vector<128x32xf32>
    tpu.vector_store %arg4[%c0_6, %c0_7], %7 {strides = array<i32>} : memref<128x32xf32, #tpu.memory_space<vmem>>, vector<128x32xf32>,
    return
  }
  func.func @transform_0(%arg0: i32) -> (i32, i32) {
    %c0_i32 = arith.constant 0 : i32
    %c0_i32_0 = arith.constant 0 : i32
    return %arg0, %c0_i32 : i32, i32
  }
  func.func @transform_1(%arg0: i32) -> (i32, i32) {
    %c0_i32 = arith.constant 0 : i32
    %c0_i32_0 = arith.constant 0 : i32
    %c0_i32_1 = arith.constant 0 : i32
    return %c0_i32, %c0_i32_0 : i32, i32
  }
  func.func @transform_2(%arg0: i32) -> (i32, i32) {
    %c0_i32 = arith.constant 0 : i32
    %c0_i32_0 = arith.constant 0 : i32
    %c0_i32_1 = arith.constant 0 : i32
    return %c0_i32, %c0_i32_0 : i32, i32
  }
  func.func @transform_3(%arg0: i32) -> (i32, i32) {
    %c0_i32 = arith.constant 0 : i32
    %c0_i32_0 = arith.constant 0 : i32
    return %arg0, %c0_i32 : i32, i32
  }
}

module attributes {stable_mosaic.version = 11 : i64} {
  func.func @_matmul_kernel(%arg0: i32, %arg1: memref<98x288xf32, #tpu.memory_space<vmem>>, %arg2: memref<288x32xf32, #tpu.memory_space<vmem>>, %arg3: memref<1x32xf32, #tpu.memory_space<vmem>>, %arg4: memref<98x32xf32, #tpu.memory_space<vmem>>) attributes {dimension_semantics = [#tpu.dimension_semantics<parallel>], iteration_bounds = array<i64: 1>, scalar_prefetch = 0 : i64, scratch_operands = 0 : i64, tpu.core_type = #tpu.core_type<tc>, window_params = [{transform_indices = @transform_0, window_bounds = array<i64: 98, 288>}, {pipeline_mode = #tpu.pipeline_mode<synchronous>, transform_indices = @transform_1, window_bounds = array<i64: 288, 32>}, {pipeline_mode = #tpu.pipeline_mode<synchronous>, transform_indices = @transform_2, window_bounds = array<i64: 1, 32>}, {transform_indices = @transform_3, window_bounds = array<i64: 98, 32>}]} {
    %c0 = arith.constant 0 : index
    %c0_0 = arith.constant 0 : index
    %0 = vector.load %arg1[%c0, %c0_0] : memref<98x288xf32, #tpu.memory_space<vmem>>, vector<98x288xf32>
    %c0_1 = arith.constant 0 : index
    %c0_2 = arith.constant 0 : index
    %1 = vector.load %arg2[%c0_1, %c0_2] : memref<288x32xf32, #tpu.memory_space<vmem>>, vector<288x32xf32>
    %cst = arith.constant dense<0.000000e+00> : vector<98x32xf32>
    %2 = tpu.matmul %0, %1, %cst {dimension_numbers = #tpu.dot_dimension_numbers<[1], [0], [0], [1], [0, 0, 1, 1], [], []>} : vector<98x288xf32>, vector<288x32xf32>, vector<98x32xf32> -> vector<98x32xf32>
    %c0_3 = arith.constant 0 : index
    %c0_4 = arith.constant 0 : index
    %3 = vector.load %arg3[%c0_3, %c0_4] : memref<1x32xf32, #tpu.memory_space<vmem>>, vector<1x32xf32>
    %4 = vector.broadcast %3 : vector<1x32xf32> to vector<98x32xf32>
    %5 = arith.addf %2, %4 : vector<98x32xf32>
    %cst_5 = arith.constant 0.000000e+00 : f32
    %6 = vector.broadcast %cst_5 : f32 to vector<98x32xf32>
    %7 = arith.maximumf %5, %6 : vector<98x32xf32>
    %c0_6 = arith.constant 0 : index
    %c0_7 = arith.constant 0 : index
    %8 = vector.load %arg4[%c0_6, %c0_7] : memref<98x32xf32, #tpu.memory_space<vmem>>, vector<98x32xf32>
    tpu.vector_store %arg4[%c0_6, %c0_7], %7 {strides = array<i32>} : memref<98x32xf32, #tpu.memory_space<vmem>>, vector<98x32xf32>,
    return
  }
  func.func @transform_0(%arg0: i32) -> (i32, i32) {
    %c0_i32 = arith.constant 0 : i32
    %c0_i32_0 = arith.constant 0 : i32
    return %arg0, %c0_i32 : i32, i32
  }
  func.func @transform_1(%arg0: i32) -> (i32, i32) {
    %c0_i32 = arith.constant 0 : i32
    %c0_i32_0 = arith.constant 0 : i32
    %c0_i32_1 = arith.constant 0 : i32
    return %c0_i32, %c0_i32_0 : i32, i32
  }
  func.func @transform_2(%arg0: i32) -> (i32, i32) {
    %c0_i32 = arith.constant 0 : i32
    %c0_i32_0 = arith.constant 0 : i32
    %c0_i32_1 = arith.constant 0 : i32
    return %c0_i32, %c0_i32_0 : i32, i32
  }
  func.func @transform_3(%arg0: i32) -> (i32, i32) {
    %c0_i32 = arith.constant 0 : i32
    %c0_i32_0 = arith.constant 0 : i32
    return %arg0, %c0_i32 : i32, i32
  }
}

module attributes {stable_mosaic.version = 11 : i64} {
  func.func @_matmul_kernel(%arg0: i32, %arg1: memref<14x224xf32, #tpu.memory_space<vmem>>, %arg2: memref<224x32xf32, #tpu.memory_space<vmem>>, %arg3: memref<1x32xf32, #tpu.memory_space<vmem>>, %arg4: memref<14x32xf32, #tpu.memory_space<vmem>>) attributes {dimension_semantics = [#tpu.dimension_semantics<parallel>], iteration_bounds = array<i64: 1>, scalar_prefetch = 0 : i64, scratch_operands = 0 : i64, tpu.core_type = #tpu.core_type<tc>, window_params = [{transform_indices = @transform_0, window_bounds = array<i64: 14, 224>}, {pipeline_mode = #tpu.pipeline_mode<synchronous>, transform_indices = @transform_1, window_bounds = array<i64: 224, 32>}, {pipeline_mode = #tpu.pipeline_mode<synchronous>, transform_indices = @transform_2, window_bounds = array<i64: 1, 32>}, {transform_indices = @transform_3, window_bounds = array<i64: 14, 32>}]} {
    %c0 = arith.constant 0 : index
    %c0_0 = arith.constant 0 : index
    %0 = vector.load %arg1[%c0, %c0_0] : memref<14x224xf32, #tpu.memory_space<vmem>>, vector<14x224xf32>
    %c0_1 = arith.constant 0 : index
    %c0_2 = arith.constant 0 : index
    %1 = vector.load %arg2[%c0_1, %c0_2] : memref<224x32xf32, #tpu.memory_space<vmem>>, vector<224x32xf32>
    %cst = arith.constant dense<0.000000e+00> : vector<14x32xf32>
    %2 = tpu.matmul %0, %1, %cst {dimension_numbers = #tpu.dot_dimension_numbers<[1], [0], [0], [1], [0, 0, 1, 1], [], []>} : vector<14x224xf32>, vector<224x32xf32>, vector<14x32xf32> -> vector<14x32xf32>
    %c0_3 = arith.constant 0 : index
    %c0_4 = arith.constant 0 : index
    %3 = vector.load %arg3[%c0_3, %c0_4] : memref<1x32xf32, #tpu.memory_space<vmem>>, vector<1x32xf32>
    %4 = vector.broadcast %3 : vector<1x32xf32> to vector<14x32xf32>
    %5 = arith.addf %2, %4 : vector<14x32xf32>
    %c0_5 = arith.constant 0 : index
    %c0_6 = arith.constant 0 : index
    %6 = vector.load %arg4[%c0_5, %c0_6] : memref<14x32xf32, #tpu.memory_space<vmem>>, vector<14x32xf32>
    tpu.vector_store %arg4[%c0_5, %c0_6], %5 {strides = array<i32>} : memref<14x32xf32, #tpu.memory_space<vmem>>, vector<14x32xf32>,
    return
  }
  func.func @transform_0(%arg0: i32) -> (i32, i32) {
    %c0_i32 = arith.constant 0 : i32
    %c0_i32_0 = arith.constant 0 : i32
    return %arg0, %c0_i32 : i32, i32
  }
  func.func @transform_1(%arg0: i32) -> (i32, i32) {
    %c0_i32 = arith.constant 0 : i32
    %c0_i32_0 = arith.constant 0 : i32
    %c0_i32_1 = arith.constant 0 : i32
    return %c0_i32, %c0_i32_0 : i32, i32
  }
  func.func @transform_2(%arg0: i32) -> (i32, i32) {
    %c0_i32 = arith.constant 0 : i32
    %c0_i32_0 = arith.constant 0 : i32
    %c0_i32_1 = arith.constant 0 : i32
    return %c0_i32, %c0_i32_0 : i32, i32
  }
  func.func @transform_3(%arg0: i32) -> (i32, i32) {
    %c0_i32 = arith.constant 0 : i32
    %c0_i32_0 = arith.constant 0 : i32
    return %arg0, %c0_i32 : i32, i32
  }
}

module attributes {stable_mosaic.version = 11 : i64} {
  func.func @_ff_kernel(%arg0: i32, %arg1: memref<1x7x32xf32, #tpu.memory_space<vmem>>, %arg2: memref<1x32xf32, #tpu.memory_space<vmem>>, %arg3: memref<1x32xf32, #tpu.memory_space<vmem>>, %arg4: memref<32x128xf32, #tpu.memory_space<vmem>>, %arg5: memref<1x128xf32, #tpu.memory_space<vmem>>, %arg6: memref<128x32xf32, #tpu.memory_space<vmem>>, %arg7: memref<1x32xf32, #tpu.memory_space<vmem>>, %arg8: memref<1x7x32xf32, #tpu.memory_space<vmem>>) attributes {dimension_semantics = [#tpu.dimension_semantics<parallel>], iteration_bounds = array<i64: 2>, scalar_prefetch = 0 : i64, scratch_operands = 0 : i64, tpu.core_type = #tpu.core_type<tc>, window_params = [{transform_indices = @transform_0, window_bounds = array<i64: 1, 7, 32>}, {pipeline_mode = #tpu.pipeline_mode<synchronous>, transform_indices = @transform_1, window_bounds = array<i64: 1, 32>}, {pipeline_mode = #tpu.pipeline_mode<synchronous>, transform_indices = @transform_2, window_bounds = array<i64: 1, 32>}, {pipeline_mode = #tpu.pipeline_mode<synchronous>, transform_indices = @transform_3, window_bounds = array<i64: 32, 128>}, {pipeline_mode = #tpu.pipeline_mode<synchronous>, transform_indices = @transform_4, window_bounds = array<i64: 1, 128>}, {pipeline_mode = #tpu.pipeline_mode<synchronous>, transform_indices = @transform_5, window_bounds = array<i64: 128, 32>}, {pipeline_mode = #tpu.pipeline_mode<synchronous>, transform_indices = @transform_6, window_bounds = array<i64: 1, 32>}, {transform_indices = @transform_7, window_bounds = array<i64: 1, 7, 32>}]} {
    %c0 = arith.constant 0 : index
    %c0_0 = arith.constant 0 : index
    %c0_1 = arith.constant 0 : index
    %0 = vector.load %arg1[%c0, %c0_0, %c0_1] : memref<1x7x32xf32, #tpu.memory_space<vmem>>, vector<1x7x32xf32>
    %1 = vector.shape_cast %0 : vector<1x7x32xf32> to vector<7x32xf32>
    %c0_2 = arith.constant 0 : index
    %c0_3 = arith.constant 0 : index
    %2 = vector.load %arg2[%c0_2, %c0_3] : memref<1x32xf32, #tpu.memory_space<vmem>>, vector<1x32xf32>
    %c0_4 = arith.constant 0 : index
    %c0_5 = arith.constant 0 : index
    %3 = vector.load %arg3[%c0_4, %c0_5] : memref<1x32xf32, #tpu.memory_space<vmem>>, vector<1x32xf32>
    %cst = arith.constant dense<0.000000e+00> : vector<7xf32>
    %4 = vector.multi_reduction <add>, %1, %cst [1] : vector<7x32xf32> to vector<7xf32>
    %5 = vector.shape_cast %4 : vector<7xf32> to vector<7x1xf32>
    %cst_6 = arith.constant 3.200000e+01 : f32
    %6 = vector.broadcast %cst_6 : f32 to vector<7x1xf32>
    %7 = arith.divf %5, %6 : vector<7x1xf32>
    %8 = vector.broadcast %7 : vector<7x1xf32> to vector<7x32xf32>
    %9 = arith.subf %1, %8 : vector<7x32xf32>
    %10 = vector.broadcast %7 : vector<7x1xf32> to vector<7x32xf32>
    %11 = arith.subf %1, %10 : vector<7x32xf32>
    %12 = arith.mulf %9, %11 : vector<7x32xf32>
    %cst_7 = arith.constant dense<0.000000e+00> : vector<7xf32>
    %13 = vector.multi_reduction <add>, %12, %cst_7 [1] : vector<7x32xf32> to vector<7xf32>
    %14 = vector.shape_cast %13 : vector<7xf32> to vector<7x1xf32>
    %cst_8 = arith.constant 3.200000e+01 : f32
    %15 = vector.broadcast %cst_8 : f32 to vector<7x1xf32>
    %16 = arith.divf %14, %15 : vector<7x1xf32>
    %17 = vector.broadcast %7 : vector<7x1xf32> to vector<7x32xf32>
    %18 = arith.subf %1, %17 : vector<7x32xf32>
    %cst_9 = arith.constant 9.99999974E-6 : f32
    %19 = vector.broadcast %cst_9 : f32 to vector<7x1xf32>
    %20 = arith.addf %16, %19 : vector<7x1xf32>
    %21 = math.rsqrt %20 : vector<7x1xf32>
    %22 = vector.broadcast %21 : vector<7x1xf32> to vector<7x32xf32>
    %23 = arith.mulf %18, %22 : vector<7x32xf32>
    %24 = vector.broadcast %2 : vector<1x32xf32> to vector<7x32xf32>
    %25 = arith.mulf %23, %24 : vector<7x32xf32>
    %26 = vector.broadcast %3 : vector<1x32xf32> to vector<7x32xf32>
    %27 = arith.addf %25, %26 : vector<7x32xf32>
    %c0_10 = arith.constant 0 : index
    %c0_11 = arith.constant 0 : index
    %28 = vector.load %arg4[%c0_10, %c0_11] : memref<32x128xf32, #tpu.memory_space<vmem>>, vector<32x128xf32>
    %cst_12 = arith.constant dense<0.000000e+00> : vector<7x128xf32>
    %29 = tpu.matmul %27, %28, %cst_12 {dimension_numbers = #tpu.dot_dimension_numbers<[1], [0], [0], [1], [0, 0, 1, 1], [], []>} : vector<7x32xf32>, vector<32x128xf32>, vector<7x128xf32> -> vector<7x128xf32>
    %c0_13 = arith.constant 0 : index
    %c0_14 = arith.constant 0 : index
    %30 = vector.load %arg5[%c0_13, %c0_14] : memref<1x128xf32, #tpu.memory_space<vmem>>, vector<1x128xf32>
    %31 = vector.broadcast %30 : vector<1x128xf32> to vector<7x128xf32>
    %32 = arith.addf %29, %31 : vector<7x128xf32>
    %cst_15 = arith.constant 5.000000e-01 : f32
    %33 = vector.broadcast %cst_15 : f32 to vector<7x128xf32>
    %34 = arith.mulf %33, %32 : vector<7x128xf32>
    %35 = math.tanh %34 : vector<7x128xf32>
    %cst_16 = arith.constant 1.000000e+00 : f32
    %36 = vector.broadcast %cst_16 : f32 to vector<7x128xf32>
    %37 = arith.addf %35, %36 : vector<7x128xf32>
    %cst_17 = arith.constant 5.000000e-01 : f32
    %38 = vector.broadcast %cst_17 : f32 to vector<7x128xf32>
    %39 = arith.mulf %38, %37 : vector<7x128xf32>
    %40 = arith.mulf %32, %39 : vector<7x128xf32>
    %c0_18 = arith.constant 0 : index
    %c0_19 = arith.constant 0 : index
    %41 = vector.load %arg6[%c0_18, %c0_19] : memref<128x32xf32, #tpu.memory_space<vmem>>, vector<128x32xf32>
    %cst_20 = arith.constant dense<0.000000e+00> : vector<7x32xf32>
    %42 = tpu.matmul %40, %41, %cst_20 {dimension_numbers = #tpu.dot_dimension_numbers<[1], [0], [0], [1], [0, 0, 1, 1], [], []>} : vector<7x128xf32>, vector<128x32xf32>, vector<7x32xf32> -> vector<7x32xf32>
    %c0_21 = arith.constant 0 : index
    %c0_22 = arith.constant 0 : index
    %43 = vector.load %arg7[%c0_21, %c0_22] : memref<1x32xf32, #tpu.memory_space<vmem>>, vector<1x32xf32>
    %44 = vector.broadcast %43 : vector<1x32xf32> to vector<7x32xf32>
    %45 = arith.addf %42, %44 : vector<7x32xf32>
    %cst_23 = arith.constant 5.000000e-01 : f32
    %46 = vector.broadcast %cst_23 : f32 to vector<7x32xf32>
    %47 = arith.mulf %46, %45 : vector<7x32xf32>
    %48 = arith.addf %1, %47 : vector<7x32xf32>
    %c0_24 = arith.constant 0 : index
    %c0_25 = arith.constant 0 : index
    %c0_26 = arith.constant 0 : index
    %49 = vector.load %arg8[%c0_24, %c0_25, %c0_26] : memref<1x7x32xf32, #tpu.memory_space<vmem>>, vector<1x7x32xf32>
    %50 = vector.shape_cast %49 : vector<1x7x32xf32> to vector<7x32xf32>
    %51 = vector.shape_cast %48 : vector<7x32xf32> to vector<1x7x32xf32>
    tpu.vector_store %arg8[%c0_24, %c0_25, %c0_26], %51 {strides = array<i32>} : memref<1x7x32xf32, #tpu.memory_space<vmem>>, vector<1x7x32xf32>,
    return
  }
  func.func @transform_0(%arg0: i32) -> (i32, i32, i32) {
    %c0_i32 = arith.constant 0 : i32
    %c0_i32_0 = arith.constant 0 : i32
    %c0_i32_1 = arith.constant 0 : i32
    return %arg0, %c0_i32, %c0_i32_0 : i32, i32, i32
  }
  func.func @transform_1(%arg0: i32) -> (i32, i32) {
    %c0_i32 = arith.constant 0 : i32
    %c0_i32_0 = arith.constant 0 : i32
    %c0_i32_1 = arith.constant 0 : i32
    return %c0_i32, %c0_i32_0 : i32, i32
  }
  func.func @transform_2(%arg0: i32) -> (i32, i32) {
    %c0_i32 = arith.constant 0 : i32
    %c0_i32_0 = arith.constant 0 : i32
    %c0_i32_1 = arith.constant 0 : i32
    return %c0_i32, %c0_i32_0 : i32, i32
  }
  func.func @transform_3(%arg0: i32) -> (i32, i32) {
    %c0_i32 = arith.constant 0 : i32
    %c0_i32_0 = arith.constant 0 : i32
    %c0_i32_1 = arith.constant 0 : i32
    return %c0_i32, %c0_i32_0 : i32, i32
  }
  func.func @transform_4(%arg0: i32) -> (i32, i32) {
    %c0_i32 = arith.constant 0 : i32
    %c0_i32_0 = arith.constant 0 : i32
    %c0_i32_1 = arith.constant 0 : i32
    return %c0_i32, %c0_i32_0 : i32, i32
  }
  func.func @transform_5(%arg0: i32) -> (i32, i32) {
    %c0_i32 = arith.constant 0 : i32
    %c0_i32_0 = arith.constant 0 : i32
    %c0_i32_1 = arith.constant 0 : i32
    return %c0_i32, %c0_i32_0 : i32, i32
  }
  func.func @transform_6(%arg0: i32) -> (i32, i32) {
    %c0_i32 = arith.constant 0 : i32
    %c0_i32_0 = arith.constant 0 : i32
    %c0_i32_1 = arith.constant 0 : i32
    return %c0_i32, %c0_i32_0 : i32, i32
  }
  func.func @transform_7(%arg0: i32) -> (i32, i32, i32) {
    %c0_i32 = arith.constant 0 : i32
    %c0_i32_0 = arith.constant 0 : i32
    %c0_i32_1 = arith.constant 0 : i32
    return %arg0, %c0_i32, %c0_i32_0 : i32, i32, i32
  }
}

module attributes {stable_mosaic.version = 11 : i64} {
  func.func @_conv_kernel(%arg0: i32, %arg1: memref<1x7x32xf32, #tpu.memory_space<vmem>>, %arg2: memref<1x32xf32, #tpu.memory_space<vmem>>, %arg3: memref<1x32xf32, #tpu.memory_space<vmem>>, %arg4: memref<32x64xf32, #tpu.memory_space<vmem>>, %arg5: memref<1x64xf32, #tpu.memory_space<vmem>>, %arg6: memref<7x32xf32, #tpu.memory_space<vmem>>, %arg7: memref<32x32xf32, #tpu.memory_space<vmem>>, %arg8: memref<1x32xf32, #tpu.memory_space<vmem>>, %arg9: memref<1x7x32xf32, #tpu.memory_space<vmem>>, %arg10: memref<13x32xf32, #tpu.memory_space<vmem>>) attributes {dimension_semantics = [#tpu.dimension_semantics<parallel>], iteration_bounds = array<i64: 2>, scalar_prefetch = 0 : i64, scratch_operands = 1 : i64, tpu.core_type = #tpu.core_type<tc>, window_params = [{transform_indices = @transform_0, window_bounds = array<i64: 1, 7, 32>}, {pipeline_mode = #tpu.pipeline_mode<synchronous>, transform_indices = @transform_1, window_bounds = array<i64: 1, 32>}, {pipeline_mode = #tpu.pipeline_mode<synchronous>, transform_indices = @transform_2, window_bounds = array<i64: 1, 32>}, {pipeline_mode = #tpu.pipeline_mode<synchronous>, transform_indices = @transform_3, window_bounds = array<i64: 32, 64>}, {pipeline_mode = #tpu.pipeline_mode<synchronous>, transform_indices = @transform_4, window_bounds = array<i64: 1, 64>}, {pipeline_mode = #tpu.pipeline_mode<synchronous>, transform_indices = @transform_5, window_bounds = array<i64: 7, 32>}, {pipeline_mode = #tpu.pipeline_mode<synchronous>, transform_indices = @transform_6, window_bounds = array<i64: 32, 32>}, {pipeline_mode = #tpu.pipeline_mode<synchronous>, transform_indices = @transform_7, window_bounds = array<i64: 1, 32>}, {transform_indices = @transform_8, window_bounds = array<i64: 1, 7, 32>}]} {
    %c0 = arith.constant 0 : index
    %c0_0 = arith.constant 0 : index
    %c0_1 = arith.constant 0 : index
    %0 = vector.load %arg1[%c0, %c0_0, %c0_1] : memref<1x7x32xf32, #tpu.memory_space<vmem>>, vector<1x7x32xf32>
    %1 = vector.shape_cast %0 : vector<1x7x32xf32> to vector<7x32xf32>
    %c0_2 = arith.constant 0 : index
    %c0_3 = arith.constant 0 : index
    %2 = vector.load %arg2[%c0_2, %c0_3] : memref<1x32xf32, #tpu.memory_space<vmem>>, vector<1x32xf32>
    %c0_4 = arith.constant 0 : index
    %c0_5 = arith.constant 0 : index
    %3 = vector.load %arg3[%c0_4, %c0_5] : memref<1x32xf32, #tpu.memory_space<vmem>>, vector<1x32xf32>
    %cst = arith.constant dense<0.000000e+00> : vector<7xf32>
    %4 = vector.multi_reduction <add>, %1, %cst [1] : vector<7x32xf32> to vector<7xf32>
    %5 = vector.shape_cast %4 : vector<7xf32> to vector<7x1xf32>
    %cst_6 = arith.constant 3.200000e+01 : f32
    %6 = vector.broadcast %cst_6 : f32 to vector<7x1xf32>
    %7 = arith.divf %5, %6 : vector<7x1xf32>
    %8 = vector.broadcast %7 : vector<7x1xf32> to vector<7x32xf32>
    %9 = arith.subf %1, %8 : vector<7x32xf32>
    %10 = vector.broadcast %7 : vector<7x1xf32> to vector<7x32xf32>
    %11 = arith.subf %1, %10 : vector<7x32xf32>
    %12 = arith.mulf %9, %11 : vector<7x32xf32>
    %cst_7 = arith.constant dense<0.000000e+00> : vector<7xf32>
    %13 = vector.multi_reduction <add>, %12, %cst_7 [1] : vector<7x32xf32> to vector<7xf32>
    %14 = vector.shape_cast %13 : vector<7xf32> to vector<7x1xf32>
    %cst_8 = arith.constant 3.200000e+01 : f32
    %15 = vector.broadcast %cst_8 : f32 to vector<7x1xf32>
    %16 = arith.divf %14, %15 : vector<7x1xf32>
    %17 = vector.broadcast %7 : vector<7x1xf32> to vector<7x32xf32>
    %18 = arith.subf %1, %17 : vector<7x32xf32>
    %cst_9 = arith.constant 9.99999974E-6 : f32
    %19 = vector.broadcast %cst_9 : f32 to vector<7x1xf32>
    %20 = arith.addf %16, %19 : vector<7x1xf32>
    %21 = math.rsqrt %20 : vector<7x1xf32>
    %22 = vector.broadcast %21 : vector<7x1xf32> to vector<7x32xf32>
    %23 = arith.mulf %18, %22 : vector<7x32xf32>
    %24 = vector.broadcast %2 : vector<1x32xf32> to vector<7x32xf32>
    %25 = arith.mulf %23, %24 : vector<7x32xf32>
    %26 = vector.broadcast %3 : vector<1x32xf32> to vector<7x32xf32>
    %27 = arith.addf %25, %26 : vector<7x32xf32>
    %c0_10 = arith.constant 0 : index
    %c0_11 = arith.constant 0 : index
    %28 = vector.load %arg4[%c0_10, %c0_11] : memref<32x64xf32, #tpu.memory_space<vmem>>, vector<32x64xf32>
    %cst_12 = arith.constant dense<0.000000e+00> : vector<7x64xf32>
    %29 = tpu.matmul %27, %28, %cst_12 {dimension_numbers = #tpu.dot_dimension_numbers<[1], [0], [0], [1], [0, 0, 1, 1], [], []>} : vector<7x32xf32>, vector<32x64xf32>, vector<7x64xf32> -> vector<7x64xf32>
    %c0_13 = arith.constant 0 : index
    %c0_14 = arith.constant 0 : index
    %30 = vector.load %arg5[%c0_13, %c0_14] : memref<1x64xf32, #tpu.memory_space<vmem>>, vector<1x64xf32>
    %31 = vector.broadcast %30 : vector<1x64xf32> to vector<7x64xf32>
    %32 = arith.addf %29, %31 : vector<7x64xf32>
    %33 = vector.extract_strided_slice %32 {offsets = [0, 0], sizes = [7, 32], strides = [1, 1]} : vector<7x64xf32> to vector<7x32xf32>
    %34 = vector.extract_strided_slice %32 {offsets = [0, 32], sizes = [7, 32], strides = [1, 1]} : vector<7x64xf32> to vector<7x32xf32>
    %cst_15 = arith.constant 5.000000e-01 : f32
    %35 = vector.broadcast %cst_15 : f32 to vector<7x32xf32>
    %36 = arith.mulf %35, %34 : vector<7x32xf32>
    %37 = math.tanh %36 : vector<7x32xf32>
    %cst_16 = arith.constant 1.000000e+00 : f32
    %38 = vector.broadcast %cst_16 : f32 to vector<7x32xf32>
    %39 = arith.addf %37, %38 : vector<7x32xf32>
    %cst_17 = arith.constant 5.000000e-01 : f32
    %40 = vector.broadcast %cst_17 : f32 to vector<7x32xf32>
    %41 = arith.mulf %40, %39 : vector<7x32xf32>
    %42 = arith.mulf %33, %41 : vector<7x32xf32>
    %cst_18 = arith.constant 0.000000e+00 : f32
    %43 = vector.broadcast %cst_18 : f32 to vector<13x32xf32>
    %c0_19 = arith.constant 0 : index
    %c0_20 = arith.constant 0 : index
    %44 = vector.load %arg10[%c0_19, %c0_20] : memref<13x32xf32, #tpu.memory_space<vmem>>, vector<13x32xf32>
    tpu.vector_store %arg10[%c0_19, %c0_20], %43 {strides = array<i32>} : memref<13x32xf32, #tpu.memory_space<vmem>>, vector<13x32xf32>,
    %c3 = arith.constant 3 : index
    %c0_21 = arith.constant 0 : index
    %45 = vector.load %arg10[%c3, %c0_21] : memref<13x32xf32, #tpu.memory_space<vmem>>, vector<7x32xf32>
    tpu.vector_store %arg10[%c3, %c0_21], %42 {strides = array<i32>} : memref<13x32xf32, #tpu.memory_space<vmem>>, vector<7x32xf32>,
    %cst_22 = arith.constant 0.000000e+00 : f32
    %46 = vector.broadcast %cst_22 : f32 to vector<7x32xf32>
    %c0_23 = arith.constant 0 : index
    %c0_24 = arith.constant 0 : index
    %47 = vector.load %arg10[%c0_23, %c0_24] : memref<13x32xf32, #tpu.memory_space<vmem>>, vector<7x32xf32>
    %c0_25 = arith.constant 0 : index
    %c0_26 = arith.constant 0 : index
    %48 = vector.load %arg6[%c0_25, %c0_26] : memref<7x32xf32, #tpu.memory_space<vmem>>, vector<1x32xf32>
    %49 = vector.broadcast %48 : vector<1x32xf32> to vector<7x32xf32>
    %50 = arith.mulf %47, %49 : vector<7x32xf32>
    %51 = arith.addf %46, %50 : vector<7x32xf32>
    %c1 = arith.constant 1 : index
    %c0_27 = arith.constant 0 : index
    %52 = vector.load %arg10[%c1, %c0_27] : memref<13x32xf32, #tpu.memory_space<vmem>>, vector<7x32xf32>
    %c1_28 = arith.constant 1 : index
    %c0_29 = arith.constant 0 : index
    %53 = vector.load %arg6[%c1_28, %c0_29] : memref<7x32xf32, #tpu.memory_space<vmem>>, vector<1x32xf32>
    %54 = vector.broadcast %53 : vector<1x32xf32> to vector<7x32xf32>
    %55 = arith.mulf %52, %54 : vector<7x32xf32>
    %56 = arith.addf %51, %55 : vector<7x32xf32>
    %c2 = arith.constant 2 : index
    %c0_30 = arith.constant 0 : index
    %57 = vector.load %arg10[%c2, %c0_30] : memref<13x32xf32, #tpu.memory_space<vmem>>, vector<7x32xf32>
    %c2_31 = arith.constant 2 : index
    %c0_32 = arith.constant 0 : index
    %58 = vector.load %arg6[%c2_31, %c0_32] : memref<7x32xf32, #tpu.memory_space<vmem>>, vector<1x32xf32>
    %59 = vector.broadcast %58 : vector<1x32xf32> to vector<7x32xf32>
    %60 = arith.mulf %57, %59 : vector<7x32xf32>
    %61 = arith.addf %56, %60 : vector<7x32xf32>
    %c3_33 = arith.constant 3 : index
    %c0_34 = arith.constant 0 : index
    %62 = vector.load %arg10[%c3_33, %c0_34] : memref<13x32xf32, #tpu.memory_space<vmem>>, vector<7x32xf32>
    %c3_35 = arith.constant 3 : index
    %c0_36 = arith.constant 0 : index
    %63 = vector.load %arg6[%c3_35, %c0_36] : memref<7x32xf32, #tpu.memory_space<vmem>>, vector<1x32xf32>
    %64 = vector.broadcast %63 : vector<1x32xf32> to vector<7x32xf32>
    %65 = arith.mulf %62, %64 : vector<7x32xf32>
    %66 = arith.addf %61, %65 : vector<7x32xf32>
    %c4 = arith.constant 4 : index
    %c0_37 = arith.constant 0 : index
    %67 = vector.load %arg10[%c4, %c0_37] : memref<13x32xf32, #tpu.memory_space<vmem>>, vector<7x32xf32>
    %c4_38 = arith.constant 4 : index
    %c0_39 = arith.constant 0 : index
    %68 = vector.load %arg6[%c4_38, %c0_39] : memref<7x32xf32, #tpu.memory_space<vmem>>, vector<1x32xf32>
    %69 = vector.broadcast %68 : vector<1x32xf32> to vector<7x32xf32>
    %70 = arith.mulf %67, %69 : vector<7x32xf32>
    %71 = arith.addf %66, %70 : vector<7x32xf32>
    %c5 = arith.constant 5 : index
    %c0_40 = arith.constant 0 : index
    %72 = vector.load %arg10[%c5, %c0_40] : memref<13x32xf32, #tpu.memory_space<vmem>>, vector<7x32xf32>
    %c5_41 = arith.constant 5 : index
    %c0_42 = arith.constant 0 : index
    %73 = vector.load %arg6[%c5_41, %c0_42] : memref<7x32xf32, #tpu.memory_space<vmem>>, vector<1x32xf32>
    %74 = vector.broadcast %73 : vector<1x32xf32> to vector<7x32xf32>
    %75 = arith.mulf %72, %74 : vector<7x32xf32>
    %76 = arith.addf %71, %75 : vector<7x32xf32>
    %c6 = arith.constant 6 : index
    %c0_43 = arith.constant 0 : index
    %77 = vector.load %arg10[%c6, %c0_43] : memref<13x32xf32, #tpu.memory_space<vmem>>, vector<7x32xf32>
    %c6_44 = arith.constant 6 : index
    %c0_45 = arith.constant 0 : index
    %78 = vector.load %arg6[%c6_44, %c0_45] : memref<7x32xf32, #tpu.memory_space<vmem>>, vector<1x32xf32>
    %79 = vector.broadcast %78 : vector<1x32xf32> to vector<7x32xf32>
    %80 = arith.mulf %77, %79 : vector<7x32xf32>
    %81 = arith.addf %76, %80 : vector<7x32xf32>
    %cst_46 = arith.constant 0.999994993 : f32
    %82 = vector.broadcast %cst_46 : f32 to vector<7x32xf32>
    %83 = arith.mulf %81, %82 : vector<7x32xf32>
    %cst_47 = arith.constant 5.000000e-01 : f32
    %84 = vector.broadcast %cst_47 : f32 to vector<7x32xf32>
    %85 = arith.mulf %84, %83 : vector<7x32xf32>
    %86 = math.tanh %85 : vector<7x32xf32>
    %cst_48 = arith.constant 1.000000e+00 : f32
    %87 = vector.broadcast %cst_48 : f32 to vector<7x32xf32>
    %88 = arith.addf %86, %87 : vector<7x32xf32>
    %cst_49 = arith.constant 5.000000e-01 : f32
    %89 = vector.broadcast %cst_49 : f32 to vector<7x32xf32>
    %90 = arith.mulf %89, %88 : vector<7x32xf32>
    %91 = arith.mulf %83, %90 : vector<7x32xf32>
    %c0_50 = arith.constant 0 : index
    %c0_51 = arith.constant 0 : index
    %92 = vector.load %arg7[%c0_50, %c0_51] : memref<32x32xf32, #tpu.memory_space<vmem>>, vector<32x32xf32>
    %cst_52 = arith.constant dense<0.000000e+00> : vector<7x32xf32>
    %93 = tpu.matmul %91, %92, %cst_52 {dimension_numbers = #tpu.dot_dimension_numbers<[1], [0], [0], [1], [0, 0, 1, 1], [], []>} : vector<7x32xf32>, vector<32x32xf32>, vector<7x32xf32> -> vector<7x32xf32>
    %c0_53 = arith.constant 0 : index
    %c0_54 = arith.constant 0 : index
    %94 = vector.load %arg8[%c0_53, %c0_54] : memref<1x32xf32, #tpu.memory_space<vmem>>, vector<1x32xf32>
    %95 = vector.broadcast %94 : vector<1x32xf32> to vector<7x32xf32>
    %96 = arith.addf %93, %95 : vector<7x32xf32>
    %97 = arith.addf %1, %96 : vector<7x32xf32>
    %c0_55 = arith.constant 0 : index
    %c0_56 = arith.constant 0 : index
    %c0_57 = arith.constant 0 : index
    %98 = vector.load %arg9[%c0_55, %c0_56, %c0_57] : memref<1x7x32xf32, #tpu.memory_space<vmem>>, vector<1x7x32xf32>
    %99 = vector.shape_cast %98 : vector<1x7x32xf32> to vector<7x32xf32>
    %100 = vector.shape_cast %97 : vector<7x32xf32> to vector<1x7x32xf32>
    tpu.vector_store %arg9[%c0_55, %c0_56, %c0_57], %100 {strides = array<i32>} : memref<1x7x32xf32, #tpu.memory_space<vmem>>, vector<1x7x32xf32>,
    return
  }
  func.func @transform_0(%arg0: i32) -> (i32, i32, i32) {
    %c0_i32 = arith.constant 0 : i32
    %c0_i32_0 = arith.constant 0 : i32
    %c0_i32_1 = arith.constant 0 : i32
    return %arg0, %c0_i32, %c0_i32_0 : i32, i32, i32
  }
  func.func @transform_1(%arg0: i32) -> (i32, i32) {
    %c0_i32 = arith.constant 0 : i32
    %c0_i32_0 = arith.constant 0 : i32
    %c0_i32_1 = arith.constant 0 : i32
    return %c0_i32, %c0_i32_0 : i32, i32
  }
  func.func @transform_2(%arg0: i32) -> (i32, i32) {
    %c0_i32 = arith.constant 0 : i32
    %c0_i32_0 = arith.constant 0 : i32
    %c0_i32_1 = arith.constant 0 : i32
    return %c0_i32, %c0_i32_0 : i32, i32
  }
  func.func @transform_3(%arg0: i32) -> (i32, i32) {
    %c0_i32 = arith.constant 0 : i32
    %c0_i32_0 = arith.constant 0 : i32
    %c0_i32_1 = arith.constant 0 : i32
    return %c0_i32, %c0_i32_0 : i32, i32
  }
  func.func @transform_4(%arg0: i32) -> (i32, i32) {
    %c0_i32 = arith.constant 0 : i32
    %c0_i32_0 = arith.constant 0 : i32
    %c0_i32_1 = arith.constant 0 : i32
    return %c0_i32, %c0_i32_0 : i32, i32
  }
  func.func @transform_5(%arg0: i32) -> (i32, i32) {
    %c0_i32 = arith.constant 0 : i32
    %c0_i32_0 = arith.constant 0 : i32
    %c0_i32_1 = arith.constant 0 : i32
    return %c0_i32, %c0_i32_0 : i32, i32
  }
  func.func @transform_6(%arg0: i32) -> (i32, i32) {
    %c0_i32 = arith.constant 0 : i32
    %c0_i32_0 = arith.constant 0 : i32
    %c0_i32_1 = arith.constant 0 : i32
    return %c0_i32, %c0_i32_0 : i32, i32
  }
  func.func @transform_7(%arg0: i32) -> (i32, i32) {
    %c0_i32 = arith.constant 0 : i32
    %c0_i32_0 = arith.constant 0 : i32
    %c0_i32_1 = arith.constant 0 : i32
    return %c0_i32, %c0_i32_0 : i32, i32
  }
  func.func @transform_8(%arg0: i32) -> (i32, i32, i32) {
    %c0_i32 = arith.constant 0 : i32
    %c0_i32_0 = arith.constant 0 : i32
    %c0_i32_1 = arith.constant 0 : i32
    return %arg0, %c0_i32, %c0_i32_0 : i32, i32, i32
  }
}

module attributes {stable_mosaic.version = 11 : i64} {
  func.func @_ff_kernel(%arg0: i32, %arg1: memref<1x7x32xf32, #tpu.memory_space<vmem>>, %arg2: memref<1x32xf32, #tpu.memory_space<vmem>>, %arg3: memref<1x32xf32, #tpu.memory_space<vmem>>, %arg4: memref<32x128xf32, #tpu.memory_space<vmem>>, %arg5: memref<1x128xf32, #tpu.memory_space<vmem>>, %arg6: memref<128x32xf32, #tpu.memory_space<vmem>>, %arg7: memref<1x32xf32, #tpu.memory_space<vmem>>, %arg8: memref<1x32xf32, #tpu.memory_space<vmem>>, %arg9: memref<1x32xf32, #tpu.memory_space<vmem>>, %arg10: memref<1x7x32xf32, #tpu.memory_space<vmem>>) attributes {dimension_semantics = [#tpu.dimension_semantics<parallel>], iteration_bounds = array<i64: 2>, scalar_prefetch = 0 : i64, scratch_operands = 0 : i64, tpu.core_type = #tpu.core_type<tc>, window_params = [{transform_indices = @transform_0, window_bounds = array<i64: 1, 7, 32>}, {pipeline_mode = #tpu.pipeline_mode<synchronous>, transform_indices = @transform_1, window_bounds = array<i64: 1, 32>}, {pipeline_mode = #tpu.pipeline_mode<synchronous>, transform_indices = @transform_2, window_bounds = array<i64: 1, 32>}, {pipeline_mode = #tpu.pipeline_mode<synchronous>, transform_indices = @transform_3, window_bounds = array<i64: 32, 128>}, {pipeline_mode = #tpu.pipeline_mode<synchronous>, transform_indices = @transform_4, window_bounds = array<i64: 1, 128>}, {pipeline_mode = #tpu.pipeline_mode<synchronous>, transform_indices = @transform_5, window_bounds = array<i64: 128, 32>}, {pipeline_mode = #tpu.pipeline_mode<synchronous>, transform_indices = @transform_6, window_bounds = array<i64: 1, 32>}, {pipeline_mode = #tpu.pipeline_mode<synchronous>, transform_indices = @transform_7, window_bounds = array<i64: 1, 32>}, {pipeline_mode = #tpu.pipeline_mode<synchronous>, transform_indices = @transform_8, window_bounds = array<i64: 1, 32>}, {transform_indices = @transform_9, window_bounds = array<i64: 1, 7, 32>}]} {
    %c0 = arith.constant 0 : index
    %c0_0 = arith.constant 0 : index
    %c0_1 = arith.constant 0 : index
    %0 = vector.load %arg1[%c0, %c0_0, %c0_1] : memref<1x7x32xf32, #tpu.memory_space<vmem>>, vector<1x7x32xf32>
    %1 = vector.shape_cast %0 : vector<1x7x32xf32> to vector<7x32xf32>
    %c0_2 = arith.constant 0 : index
    %c0_3 = arith.constant 0 : index
    %2 = vector.load %arg2[%c0_2, %c0_3] : memref<1x32xf32, #tpu.memory_space<vmem>>, vector<1x32xf32>
    %c0_4 = arith.constant 0 : index
    %c0_5 = arith.constant 0 : index
    %3 = vector.load %arg3[%c0_4, %c0_5] : memref<1x32xf32, #tpu.memory_space<vmem>>, vector<1x32xf32>
    %cst = arith.constant dense<0.000000e+00> : vector<7xf32>
    %4 = vector.multi_reduction <add>, %1, %cst [1] : vector<7x32xf32> to vector<7xf32>
    %5 = vector.shape_cast %4 : vector<7xf32> to vector<7x1xf32>
    %cst_6 = arith.constant 3.200000e+01 : f32
    %6 = vector.broadcast %cst_6 : f32 to vector<7x1xf32>
    %7 = arith.divf %5, %6 : vector<7x1xf32>
    %8 = vector.broadcast %7 : vector<7x1xf32> to vector<7x32xf32>
    %9 = arith.subf %1, %8 : vector<7x32xf32>
    %10 = vector.broadcast %7 : vector<7x1xf32> to vector<7x32xf32>
    %11 = arith.subf %1, %10 : vector<7x32xf32>
    %12 = arith.mulf %9, %11 : vector<7x32xf32>
    %cst_7 = arith.constant dense<0.000000e+00> : vector<7xf32>
    %13 = vector.multi_reduction <add>, %12, %cst_7 [1] : vector<7x32xf32> to vector<7xf32>
    %14 = vector.shape_cast %13 : vector<7xf32> to vector<7x1xf32>
    %cst_8 = arith.constant 3.200000e+01 : f32
    %15 = vector.broadcast %cst_8 : f32 to vector<7x1xf32>
    %16 = arith.divf %14, %15 : vector<7x1xf32>
    %17 = vector.broadcast %7 : vector<7x1xf32> to vector<7x32xf32>
    %18 = arith.subf %1, %17 : vector<7x32xf32>
    %cst_9 = arith.constant 9.99999974E-6 : f32
    %19 = vector.broadcast %cst_9 : f32 to vector<7x1xf32>
    %20 = arith.addf %16, %19 : vector<7x1xf32>
    %21 = math.rsqrt %20 : vector<7x1xf32>
    %22 = vector.broadcast %21 : vector<7x1xf32> to vector<7x32xf32>
    %23 = arith.mulf %18, %22 : vector<7x32xf32>
    %24 = vector.broadcast %2 : vector<1x32xf32> to vector<7x32xf32>
    %25 = arith.mulf %23, %24 : vector<7x32xf32>
    %26 = vector.broadcast %3 : vector<1x32xf32> to vector<7x32xf32>
    %27 = arith.addf %25, %26 : vector<7x32xf32>
    %c0_10 = arith.constant 0 : index
    %c0_11 = arith.constant 0 : index
    %28 = vector.load %arg4[%c0_10, %c0_11] : memref<32x128xf32, #tpu.memory_space<vmem>>, vector<32x128xf32>
    %cst_12 = arith.constant dense<0.000000e+00> : vector<7x128xf32>
    %29 = tpu.matmul %27, %28, %cst_12 {dimension_numbers = #tpu.dot_dimension_numbers<[1], [0], [0], [1], [0, 0, 1, 1], [], []>} : vector<7x32xf32>, vector<32x128xf32>, vector<7x128xf32> -> vector<7x128xf32>
    %c0_13 = arith.constant 0 : index
    %c0_14 = arith.constant 0 : index
    %30 = vector.load %arg5[%c0_13, %c0_14] : memref<1x128xf32, #tpu.memory_space<vmem>>, vector<1x128xf32>
    %31 = vector.broadcast %30 : vector<1x128xf32> to vector<7x128xf32>
    %32 = arith.addf %29, %31 : vector<7x128xf32>
    %cst_15 = arith.constant 5.000000e-01 : f32
    %33 = vector.broadcast %cst_15 : f32 to vector<7x128xf32>
    %34 = arith.mulf %33, %32 : vector<7x128xf32>
    %35 = math.tanh %34 : vector<7x128xf32>
    %cst_16 = arith.constant 1.000000e+00 : f32
    %36 = vector.broadcast %cst_16 : f32 to vector<7x128xf32>
    %37 = arith.addf %35, %36 : vector<7x128xf32>
    %cst_17 = arith.constant 5.000000e-01 : f32
    %38 = vector.broadcast %cst_17 : f32 to vector<7x128xf32>
    %39 = arith.mulf %38, %37 : vector<7x128xf32>
    %40 = arith.mulf %32, %39 : vector<7x128xf32>
    %c0_18 = arith.constant 0 : index
    %c0_19 = arith.constant 0 : index
    %41 = vector.load %arg6[%c0_18, %c0_19] : memref<128x32xf32, #tpu.memory_space<vmem>>, vector<128x32xf32>
    %cst_20 = arith.constant dense<0.000000e+00> : vector<7x32xf32>
    %42 = tpu.matmul %40, %41, %cst_20 {dimension_numbers = #tpu.dot_dimension_numbers<[1], [0], [0], [1], [0, 0, 1, 1], [], []>} : vector<7x128xf32>, vector<128x32xf32>, vector<7x32xf32> -> vector<7x32xf32>
    %c0_21 = arith.constant 0 : index
    %c0_22 = arith.constant 0 : index
    %43 = vector.load %arg7[%c0_21, %c0_22] : memref<1x32xf32, #tpu.memory_space<vmem>>, vector<1x32xf32>
    %44 = vector.broadcast %43 : vector<1x32xf32> to vector<7x32xf32>
    %45 = arith.addf %42, %44 : vector<7x32xf32>
    %cst_23 = arith.constant 5.000000e-01 : f32
    %46 = vector.broadcast %cst_23 : f32 to vector<7x32xf32>
    %47 = arith.mulf %46, %45 : vector<7x32xf32>
    %48 = arith.addf %1, %47 : vector<7x32xf32>
    %c0_24 = arith.constant 0 : index
    %c0_25 = arith.constant 0 : index
    %49 = vector.load %arg8[%c0_24, %c0_25] : memref<1x32xf32, #tpu.memory_space<vmem>>, vector<1x32xf32>
    %c0_26 = arith.constant 0 : index
    %c0_27 = arith.constant 0 : index
    %50 = vector.load %arg9[%c0_26, %c0_27] : memref<1x32xf32, #tpu.memory_space<vmem>>, vector<1x32xf32>
    %cst_28 = arith.constant dense<0.000000e+00> : vector<7xf32>
    %51 = vector.multi_reduction <add>, %48, %cst_28 [1] : vector<7x32xf32> to vector<7xf32>
    %52 = vector.shape_cast %51 : vector<7xf32> to vector<7x1xf32>
    %cst_29 = arith.constant 3.200000e+01 : f32
    %53 = vector.broadcast %cst_29 : f32 to vector<7x1xf32>
    %54 = arith.divf %52, %53 : vector<7x1xf32>
    %55 = vector.broadcast %54 : vector<7x1xf32> to vector<7x32xf32>
    %56 = arith.subf %48, %55 : vector<7x32xf32>
    %57 = vector.broadcast %54 : vector<7x1xf32> to vector<7x32xf32>
    %58 = arith.subf %48, %57 : vector<7x32xf32>
    %59 = arith.mulf %56, %58 : vector<7x32xf32>
    %cst_30 = arith.constant dense<0.000000e+00> : vector<7xf32>
    %60 = vector.multi_reduction <add>, %59, %cst_30 [1] : vector<7x32xf32> to vector<7xf32>
    %61 = vector.shape_cast %60 : vector<7xf32> to vector<7x1xf32>
    %cst_31 = arith.constant 3.200000e+01 : f32
    %62 = vector.broadcast %cst_31 : f32 to vector<7x1xf32>
    %63 = arith.divf %61, %62 : vector<7x1xf32>
    %64 = vector.broadcast %54 : vector<7x1xf32> to vector<7x32xf32>
    %65 = arith.subf %48, %64 : vector<7x32xf32>
    %cst_32 = arith.constant 9.99999974E-6 : f32
    %66 = vector.broadcast %cst_32 : f32 to vector<7x1xf32>
    %67 = arith.addf %63, %66 : vector<7x1xf32>
    %68 = math.rsqrt %67 : vector<7x1xf32>
    %69 = vector.broadcast %68 : vector<7x1xf32> to vector<7x32xf32>
    %70 = arith.mulf %65, %69 : vector<7x32xf32>
    %71 = vector.broadcast %49 : vector<1x32xf32> to vector<7x32xf32>
    %72 = arith.mulf %70, %71 : vector<7x32xf32>
    %73 = vector.broadcast %50 : vector<1x32xf32> to vector<7x32xf32>
    %74 = arith.addf %72, %73 : vector<7x32xf32>
    %c0_33 = arith.constant 0 : index
    %c0_34 = arith.constant 0 : index
    %c0_35 = arith.constant 0 : index
    %75 = vector.load %arg10[%c0_33, %c0_34, %c0_35] : memref<1x7x32xf32, #tpu.memory_space<vmem>>, vector<1x7x32xf32>
    %76 = vector.shape_cast %75 : vector<1x7x32xf32> to vector<7x32xf32>
    %77 = vector.shape_cast %74 : vector<7x32xf32> to vector<1x7x32xf32>
    tpu.vector_store %arg10[%c0_33, %c0_34, %c0_35], %77 {strides = array<i32>} : memref<1x7x32xf32, #tpu.memory_space<vmem>>, vector<1x7x32xf32>,
    return
  }
  func.func @transform_0(%arg0: i32) -> (i32, i32, i32) {
    %c0_i32 = arith.constant 0 : i32
    %c0_i32_0 = arith.constant 0 : i32
    %c0_i32_1 = arith.constant 0 : i32
    return %arg0, %c0_i32, %c0_i32_0 : i32, i32, i32
  }
  func.func @transform_1(%arg0: i32) -> (i32, i32) {
    %c0_i32 = arith.constant 0 : i32
    %c0_i32_0 = arith.constant 0 : i32
    %c0_i32_1 = arith.constant 0 : i32
    return %c0_i32, %c0_i32_0 : i32, i32
  }
  func.func @transform_2(%arg0: i32) -> (i32, i32) {
    %c0_i32 = arith.constant 0 : i32
    %c0_i32_0 = arith.constant 0 : i32
    %c0_i32_1 = arith.constant 0 : i32
    return %c0_i32, %c0_i32_0 : i32, i32
  }
  func.func @transform_3(%arg0: i32) -> (i32, i32) {
    %c0_i32 = arith.constant 0 : i32
    %c0_i32_0 = arith.constant 0 : i32
    %c0_i32_1 = arith.constant 0 : i32
    return %c0_i32, %c0_i32_0 : i32, i32
  }
  func.func @transform_4(%arg0: i32) -> (i32, i32) {
    %c0_i32 = arith.constant 0 : i32
    %c0_i32_0 = arith.constant 0 : i32
    %c0_i32_1 = arith.constant 0 : i32
    return %c0_i32, %c0_i32_0 : i32, i32
  }
  func.func @transform_5(%arg0: i32) -> (i32, i32) {
    %c0_i32 = arith.constant 0 : i32
    %c0_i32_0 = arith.constant 0 : i32
    %c0_i32_1 = arith.constant 0 : i32
    return %c0_i32, %c0_i32_0 : i32, i32
  }
  func.func @transform_6(%arg0: i32) -> (i32, i32) {
    %c0_i32 = arith.constant 0 : i32
    %c0_i32_0 = arith.constant 0 : i32
    %c0_i32_1 = arith.constant 0 : i32
    return %c0_i32, %c0_i32_0 : i32, i32
  }
  func.func @transform_7(%arg0: i32) -> (i32, i32) {
    %c0_i32 = arith.constant 0 : i32
    %c0_i32_0 = arith.constant 0 : i32
    %c0_i32_1 = arith.constant 0 : i32
    return %c0_i32, %c0_i32_0 : i32, i32
  }
  func.func @transform_8(%arg0: i32) -> (i32, i32) {
    %c0_i32 = arith.constant 0 : i32
    %c0_i32_0 = arith.constant 0 : i32
    %c0_i32_1 = arith.constant 0 : i32
    return %c0_i32, %c0_i32_0 : i32, i32
  }
  func.func @transform_9(%arg0: i32) -> (i32, i32, i32) {
    %c0_i32 = arith.constant 0 : i32
    %c0_i32_0 = arith.constant 0 : i32
    %c0_i32_1 = arith.constant 0 : i32
    return %arg0, %c0_i32, %c0_i32_0 : i32, i32, i32
  }
}

module attributes {stable_mosaic.version = 11 : i64} {
  func.func @_mhsa_kernel(%arg0: i32, %arg1: memref<1x7x32xf32, #tpu.memory_space<vmem>>, %arg2: memref<1x32xf32, #tpu.memory_space<vmem>>, %arg3: memref<1x32xf32, #tpu.memory_space<vmem>>, %arg4: memref<32x256xf32, #tpu.memory_space<vmem>>, %arg5: memref<1x256xf32, #tpu.memory_space<vmem>>, %arg6: memref<32x128xf32, #tpu.memory_space<vmem>>, %arg7: memref<32x128xf32, #tpu.memory_space<vmem>>, %arg8: memref<64x192xf32, #tpu.memory_space<vmem>>, %arg9: memref<1x192xf32, #tpu.memory_space<vmem>>, %arg10: memref<7x64xf32, #tpu.memory_space<vmem>>, %arg11: memref<64x64xf32, #tpu.memory_space<vmem>>, %arg12: memref<1x64xf32, #tpu.memory_space<vmem>>, %arg13: memref<1x64xf32, #tpu.memory_space<vmem>>, %arg14: memref<64x64xf32, #tpu.memory_space<vmem>>, %arg15: memref<1x64xf32, #tpu.memory_space<vmem>>, %arg16: memref<64x32xf32, #tpu.memory_space<vmem>>, %arg17: memref<1x32xf32, #tpu.memory_space<vmem>>, %arg18: memref<1x7x32xf32, #tpu.memory_space<vmem>>, %arg19: memref<7x256xf32, #tpu.memory_space<vmem>>, %arg20: memref<7x64xf32, #tpu.memory_space<vmem>>, %arg21: memref<7x15xf32, #tpu.memory_space<vmem>>, %arg22: memref<7x64xf32, #tpu.memory_space<vmem>>) attributes {dimension_semantics = [#tpu.dimension_semantics<parallel>], iteration_bounds = array<i64: 2>, scalar_prefetch = 0 : i64, scratch_operands = 4 : i64, tpu.core_type = #tpu.core_type<tc>, window_params = [{transform_indices = @transform_0, window_bounds = array<i64: 1, 7, 32>}, {pipeline_mode = #tpu.pipeline_mode<synchronous>, transform_indices = @transform_1, window_bounds = array<i64: 1, 32>}, {pipeline_mode = #tpu.pipeline_mode<synchronous>, transform_indices = @transform_2, window_bounds = array<i64: 1, 32>}, {pipeline_mode = #tpu.pipeline_mode<synchronous>, transform_indices = @transform_3, window_bounds = array<i64: 32, 256>}, {pipeline_mode = #tpu.pipeline_mode<synchronous>, transform_indices = @transform_4, window_bounds = array<i64: 1, 256>}, {pipeline_mode = #tpu.pipeline_mode<synchronous>, transform_indices = @transform_5, window_bounds = array<i64: 32, 128>}, {pipeline_mode = #tpu.pipeline_mode<synchronous>, transform_indices = @transform_6, window_bounds = array<i64: 32, 128>}, {pipeline_mode = #tpu.pipeline_mode<synchronous>, transform_indices = @transform_7, window_bounds = array<i64: 64, 192>}, {pipeline_mode = #tpu.pipeline_mode<synchronous>, transform_indices = @transform_8, window_bounds = array<i64: 1, 192>}, {pipeline_mode = #tpu.pipeline_mode<synchronous>, transform_indices = @transform_9, window_bounds = array<i64: 7, 64>}, {pipeline_mode = #tpu.pipeline_mode<synchronous>, transform_indices = @transform_10, window_bounds = array<i64: 64, 64>}, {pipeline_mode = #tpu.pipeline_mode<synchronous>, transform_indices = @transform_11, window_bounds = array<i64: 1, 64>}, {pipeline_mode = #tpu.pipeline_mode<synchronous>, transform_indices = @transform_12, window_bounds = array<i64: 1, 64>}, {pipeline_mode = #tpu.pipeline_mode<synchronous>, transform_indices = @transform_13, window_bounds = array<i64: 64, 64>}, {pipeline_mode = #tpu.pipeline_mode<synchronous>, transform_indices = @transform_14, window_bounds = array<i64: 1, 64>}, {pipeline_mode = #tpu.pipeline_mode<synchronous>, transform_indices = @transform_15, window_bounds = array<i64: 64, 32>}, {pipeline_mode = #tpu.pipeline_mode<synchronous>, transform_indices = @transform_16, window_bounds = array<i64: 1, 32>}, {transform_indices = @transform_17, window_bounds = array<i64: 1, 7, 32>}]} {
    %c0 = arith.constant 0 : index
    %c0_0 = arith.constant 0 : index
    %c0_1 = arith.constant 0 : index
    %0 = vector.load %arg1[%c0, %c0_0, %c0_1] : memref<1x7x32xf32, #tpu.memory_space<vmem>>, vector<1x7x32xf32>
    %1 = vector.shape_cast %0 : vector<1x7x32xf32> to vector<7x32xf32>
    %c0_2 = arith.constant 0 : index
    %c0_3 = arith.constant 0 : index
    %2 = vector.load %arg2[%c0_2, %c0_3] : memref<1x32xf32, #tpu.memory_space<vmem>>, vector<1x32xf32>
    %c0_4 = arith.constant 0 : index
    %c0_5 = arith.constant 0 : index
    %3 = vector.load %arg3[%c0_4, %c0_5] : memref<1x32xf32, #tpu.memory_space<vmem>>, vector<1x32xf32>
    %cst = arith.constant dense<0.000000e+00> : vector<7xf32>
    %4 = vector.multi_reduction <add>, %1, %cst [1] : vector<7x32xf32> to vector<7xf32>
    %5 = vector.shape_cast %4 : vector<7xf32> to vector<7x1xf32>
    %cst_6 = arith.constant 3.200000e+01 : f32
    %6 = vector.broadcast %cst_6 : f32 to vector<7x1xf32>
    %7 = arith.divf %5, %6 : vector<7x1xf32>
    %8 = vector.broadcast %7 : vector<7x1xf32> to vector<7x32xf32>
    %9 = arith.subf %1, %8 : vector<7x32xf32>
    %10 = vector.broadcast %7 : vector<7x1xf32> to vector<7x32xf32>
    %11 = arith.subf %1, %10 : vector<7x32xf32>
    %12 = arith.mulf %9, %11 : vector<7x32xf32>
    %cst_7 = arith.constant dense<0.000000e+00> : vector<7xf32>
    %13 = vector.multi_reduction <add>, %12, %cst_7 [1] : vector<7x32xf32> to vector<7xf32>
    %14 = vector.shape_cast %13 : vector<7xf32> to vector<7x1xf32>
    %cst_8 = arith.constant 3.200000e+01 : f32
    %15 = vector.broadcast %cst_8 : f32 to vector<7x1xf32>
    %16 = arith.divf %14, %15 : vector<7x1xf32>
    %17 = vector.broadcast %7 : vector<7x1xf32> to vector<7x32xf32>
    %18 = arith.subf %1, %17 : vector<7x32xf32>
    %cst_9 = arith.constant 9.99999974E-6 : f32
    %19 = vector.broadcast %cst_9 : f32 to vector<7x1xf32>
    %20 = arith.addf %16, %19 : vector<7x1xf32>
    %21 = math.rsqrt %20 : vector<7x1xf32>
    %22 = vector.broadcast %21 : vector<7x1xf32> to vector<7x32xf32>
    %23 = arith.mulf %18, %22 : vector<7x32xf32>
    %24 = vector.broadcast %2 : vector<1x32xf32> to vector<7x32xf32>
    %25 = arith.mulf %23, %24 : vector<7x32xf32>
    %26 = vector.broadcast %3 : vector<1x32xf32> to vector<7x32xf32>
    %27 = arith.addf %25, %26 : vector<7x32xf32>
    %c0_10 = arith.constant 0 : index
    %c0_11 = arith.constant 0 : index
    %28 = vector.load %arg4[%c0_10, %c0_11] : memref<32x256xf32, #tpu.memory_space<vmem>>, vector<32x256xf32>
    %cst_12 = arith.constant dense<0.000000e+00> : vector<7x256xf32>
    %29 = tpu.matmul %27, %28, %cst_12 {dimension_numbers = #tpu.dot_dimension_numbers<[1], [0], [0], [1], [0, 0, 1, 1], [], []>} : vector<7x32xf32>, vector<32x256xf32>, vector<7x256xf32> -> vector<7x256xf32>
    %c0_13 = arith.constant 0 : index
    %c0_14 = arith.constant 0 : index
    %30 = vector.load %arg5[%c0_13, %c0_14] : memref<1x256xf32, #tpu.memory_space<vmem>>, vector<1x256xf32>
    %31 = vector.broadcast %30 : vector<1x256xf32> to vector<7x256xf32>
    %32 = arith.addf %29, %31 : vector<7x256xf32>
    %c0_15 = arith.constant 0 : index
    %c0_16 = arith.constant 0 : index
    %33 = vector.load %arg19[%c0_15, %c0_16] : memref<7x256xf32, #tpu.memory_space<vmem>>, vector<7x256xf32>
    tpu.vector_store %arg19[%c0_15, %c0_16], %32 {strides = array<i32>} : memref<7x256xf32, #tpu.memory_space<vmem>>, vector<7x256xf32>,
    %c0_17 = arith.constant 0 : index
    %c0_18 = arith.constant 0 : index
    %34 = vector.load %arg6[%c0_17, %c0_18] : memref<32x128xf32, #tpu.memory_space<vmem>>, vector<32x128xf32>
    %c0_19 = arith.constant 0 : index
    %c0_20 = arith.constant 0 : index
    %35 = vector.load %arg7[%c0_19, %c0_20] : memref<32x128xf32, #tpu.memory_space<vmem>>, vector<32x128xf32>
    %cst_21 = arith.constant 0.000000e+00 : f32
    %36 = vector.broadcast %cst_21 : f32 to vector<1x32xf32>
    %cst_22 = arith.constant 0.000000e+00 : f32
    %37 = vector.broadcast %cst_22 : f32 to vector<1x32xf32>
    %cst_23 = arith.constant 0.000000e+00 : f32
    %38 = vector.broadcast %cst_23 : f32 to vector<1x32xf32>
    %cst_24 = arith.constant 0.000000e+00 : f32
    %39 = vector.broadcast %cst_24 : f32 to vector<1x32xf32>
    %c0_25 = arith.constant 0 : index
    %c0_26 = arith.constant 0 : index
    %40 = vector.load %arg19[%c0_25, %c0_26] : memref<7x256xf32, #tpu.memory_space<vmem>>, vector<1x128xf32>
    %cst_27 = arith.constant dense<0.000000e+00> : vector<1x128xf32>
    %41 = tpu.matmul %36, %34, %cst_27 {dimension_numbers = #tpu.dot_dimension_numbers<[1], [0], [0], [1], [0, 0, 1, 1], [], []>} : vector<1x32xf32>, vector<32x128xf32>, vector<1x128xf32> -> vector<1x128xf32>
    %42 = arith.addf %40, %41 : vector<1x128xf32>
    %43 = vector.extract_strided_slice %42 {offsets = [0, 0], sizes = [1, 32], strides = [1, 1]} : vector<1x128xf32> to vector<1x32xf32>
    %cst_28 = arith.constant 5.000000e-01 : f32
    %44 = vector.broadcast %cst_28 : f32 to vector<1x32xf32>
    %45 = arith.mulf %44, %43 : vector<1x32xf32>
    %46 = math.tanh %45 : vector<1x32xf32>
    %cst_29 = arith.constant 1.000000e+00 : f32
    %47 = vector.broadcast %cst_29 : f32 to vector<1x32xf32>
    %48 = arith.addf %46, %47 : vector<1x32xf32>
    %cst_30 = arith.constant 5.000000e-01 : f32
    %49 = vector.broadcast %cst_30 : f32 to vector<1x32xf32>
    %50 = arith.mulf %49, %48 : vector<1x32xf32>
    %51 = vector.extract_strided_slice %42 {offsets = [0, 32], sizes = [1, 32], strides = [1, 1]} : vector<1x128xf32> to vector<1x32xf32>
    %cst_31 = arith.constant 5.000000e-01 : f32
    %52 = vector.broadcast %cst_31 : f32 to vector<1x32xf32>
    %53 = arith.mulf %52, %51 : vector<1x32xf32>
    %54 = math.tanh %53 : vector<1x32xf32>
    %cst_32 = arith.constant 1.000000e+00 : f32
    %55 = vector.broadcast %cst_32 : f32 to vector<1x32xf32>
    %56 = arith.addf %54, %55 : vector<1x32xf32>
    %cst_33 = arith.constant 5.000000e-01 : f32
    %57 = vector.broadcast %cst_33 : f32 to vector<1x32xf32>
    %58 = arith.mulf %57, %56 : vector<1x32xf32>
    %59 = vector.extract_strided_slice %42 {offsets = [0, 64], sizes = [1, 32], strides = [1, 1]} : vector<1x128xf32> to vector<1x32xf32>
    %60 = math.tanh %59 : vector<1x32xf32>
    %61 = vector.extract_strided_slice %42 {offsets = [0, 96], sizes = [1, 32], strides = [1, 1]} : vector<1x128xf32> to vector<1x32xf32>
    %cst_34 = arith.constant 5.000000e-01 : f32
    %62 = vector.broadcast %cst_34 : f32 to vector<1x32xf32>
    %63 = arith.mulf %62, %61 : vector<1x32xf32>
    %64 = math.tanh %63 : vector<1x32xf32>
    %cst_35 = arith.constant 1.000000e+00 : f32
    %65 = vector.broadcast %cst_35 : f32 to vector<1x32xf32>
    %66 = arith.addf %64, %65 : vector<1x32xf32>
    %cst_36 = arith.constant 5.000000e-01 : f32
    %67 = vector.broadcast %cst_36 : f32 to vector<1x32xf32>
    %68 = arith.mulf %67, %66 : vector<1x32xf32>
    %69 = arith.mulf %58, %37 : vector<1x32xf32>
    %70 = arith.mulf %50, %60 : vector<1x32xf32>
    %71 = arith.addf %69, %70 : vector<1x32xf32>
    %72 = math.tanh %71 : vector<1x32xf32>
    %73 = arith.mulf %68, %72 : vector<1x32xf32>
    %c0_37 = arith.constant 0 : index
    %c0_38 = arith.constant 0 : index
    %74 = vector.load %arg20[%c0_37, %c0_38] : memref<7x64xf32, #tpu.memory_space<vmem>>, vector<1x32xf32>
    tpu.vector_store %arg20[%c0_37, %c0_38], %73 {strides = array<i32>} : memref<7x64xf32, #tpu.memory_space<vmem>>, vector<1x32xf32>,
    %c6 = arith.constant 6 : index
    %c128 = arith.constant 128 : index
    %75 = vector.load %arg19[%c6, %c128] : memref<7x256xf32, #tpu.memory_space<vmem>>, vector<1x128xf32>
    %cst_39 = arith.constant dense<0.000000e+00> : vector<1x128xf32>
    %76 = tpu.matmul %38, %35, %cst_39 {dimension_numbers = #tpu.dot_dimension_numbers<[1], [0], [0], [1], [0, 0, 1, 1], [], []>} : vector<1x32xf32>, vector<32x128xf32>, vector<1x128xf32> -> vector<1x128xf32>
    %77 = arith.addf %75, %76 : vector<1x128xf32>
    %78 = vector.extract_strided_slice %77 {offsets = [0, 0], sizes = [1, 32], strides = [1, 1]} : vector<1x128xf32> to vector<1x32xf32>
    %cst_40 = arith.constant 5.000000e-01 : f32
    %79 = vector.broadcast %cst_40 : f32 to vector<1x32xf32>
    %80 = arith.mulf %79, %78 : vector<1x32xf32>
    %81 = math.tanh %80 : vector<1x32xf32>
    %cst_41 = arith.constant 1.000000e+00 : f32
    %82 = vector.broadcast %cst_41 : f32 to vector<1x32xf32>
    %83 = arith.addf %81, %82 : vector<1x32xf32>
    %cst_42 = arith.constant 5.000000e-01 : f32
    %84 = vector.broadcast %cst_42 : f32 to vector<1x32xf32>
    %85 = arith.mulf %84, %83 : vector<1x32xf32>
    %86 = vector.extract_strided_slice %77 {offsets = [0, 32], sizes = [1, 32], strides = [1, 1]} : vector<1x128xf32> to vector<1x32xf32>
    %cst_43 = arith.constant 5.000000e-01 : f32
    %87 = vector.broadcast %cst_43 : f32 to vector<1x32xf32>
    %88 = arith.mulf %87, %86 : vector<1x32xf32>
    %89 = math.tanh %88 : vector<1x32xf32>
    %cst_44 = arith.constant 1.000000e+00 : f32
    %90 = vector.broadcast %cst_44 : f32 to vector<1x32xf32>
    %91 = arith.addf %89, %90 : vector<1x32xf32>
    %cst_45 = arith.constant 5.000000e-01 : f32
    %92 = vector.broadcast %cst_45 : f32 to vector<1x32xf32>
    %93 = arith.mulf %92, %91 : vector<1x32xf32>
    %94 = vector.extract_strided_slice %77 {offsets = [0, 64], sizes = [1, 32], strides = [1, 1]} : vector<1x128xf32> to vector<1x32xf32>
    %95 = math.tanh %94 : vector<1x32xf32>
    %96 = vector.extract_strided_slice %77 {offsets = [0, 96], sizes = [1, 32], strides = [1, 1]} : vector<1x128xf32> to vector<1x32xf32>
    %cst_46 = arith.constant 5.000000e-01 : f32
    %97 = vector.broadcast %cst_46 : f32 to vector<1x32xf32>
    %98 = arith.mulf %97, %96 : vector<1x32xf32>
    %99 = math.tanh %98 : vector<1x32xf32>
    %cst_47 = arith.constant 1.000000e+00 : f32
    %100 = vector.broadcast %cst_47 : f32 to vector<1x32xf32>
    %101 = arith.addf %99, %100 : vector<1x32xf32>
    %cst_48 = arith.constant 5.000000e-01 : f32
    %102 = vector.broadcast %cst_48 : f32 to vector<1x32xf32>
    %103 = arith.mulf %102, %101 : vector<1x32xf32>
    %104 = arith.mulf %93, %39 : vector<1x32xf32>
    %105 = arith.mulf %85, %95 : vector<1x32xf32>
    %106 = arith.addf %104, %105 : vector<1x32xf32>
    %107 = math.tanh %106 : vector<1x32xf32>
    %108 = arith.mulf %103, %107 : vector<1x32xf32>
    %c6_49 = arith.constant 6 : index
    %c32 = arith.constant 32 : index
    %109 = vector.load %arg20[%c6_49, %c32] : memref<7x64xf32, #tpu.memory_space<vmem>>, vector<1x32xf32>
    tpu.vector_store %arg20[%c6_49, %c32], %108 {strides = array<i32>} : memref<7x64xf32, #tpu.memory_space<vmem>>, vector<1x32xf32>,
    %c1 = arith.constant 1 : index
    %c0_50 = arith.constant 0 : index
    %110 = vector.load %arg19[%c1, %c0_50] : memref<7x256xf32, #tpu.memory_space<vmem>>, vector<1x128xf32>
    %cst_51 = arith.constant dense<0.000000e+00> : vector<1x128xf32>
    %111 = tpu.matmul %73, %34, %cst_51 {dimension_numbers = #tpu.dot_dimension_numbers<[1], [0], [0], [1], [0, 0, 1, 1], [], []>} : vector<1x32xf32>, vector<32x128xf32>, vector<1x128xf32> -> vector<1x128xf32>
    %112 = arith.addf %110, %111 : vector<1x128xf32>
    %113 = vector.extract_strided_slice %112 {offsets = [0, 0], sizes = [1, 32], strides = [1, 1]} : vector<1x128xf32> to vector<1x32xf32>
    %cst_52 = arith.constant 5.000000e-01 : f32
    %114 = vector.broadcast %cst_52 : f32 to vector<1x32xf32>
    %115 = arith.mulf %114, %113 : vector<1x32xf32>
    %116 = math.tanh %115 : vector<1x32xf32>
    %cst_53 = arith.constant 1.000000e+00 : f32
    %117 = vector.broadcast %cst_53 : f32 to vector<1x32xf32>
    %118 = arith.addf %116, %117 : vector<1x32xf32>
    %cst_54 = arith.constant 5.000000e-01 : f32
    %119 = vector.broadcast %cst_54 : f32 to vector<1x32xf32>
    %120 = arith.mulf %119, %118 : vector<1x32xf32>
    %121 = vector.extract_strided_slice %112 {offsets = [0, 32], sizes = [1, 32], strides = [1, 1]} : vector<1x128xf32> to vector<1x32xf32>
    %cst_55 = arith.constant 5.000000e-01 : f32
    %122 = vector.broadcast %cst_55 : f32 to vector<1x32xf32>
    %123 = arith.mulf %122, %121 : vector<1x32xf32>
    %124 = math.tanh %123 : vector<1x32xf32>
    %cst_56 = arith.constant 1.000000e+00 : f32
    %125 = vector.broadcast %cst_56 : f32 to vector<1x32xf32>
    %126 = arith.addf %124, %125 : vector<1x32xf32>
    %cst_57 = arith.constant 5.000000e-01 : f32
    %127 = vector.broadcast %cst_57 : f32 to vector<1x32xf32>
    %128 = arith.mulf %127, %126 : vector<1x32xf32>
    %129 = vector.extract_strided_slice %112 {offsets = [0, 64], sizes = [1, 32], strides = [1, 1]} : vector<1x128xf32> to vector<1x32xf32>
    %130 = math.tanh %129 : vector<1x32xf32>
    %131 = vector.extract_strided_slice %112 {offsets = [0, 96], sizes = [1, 32], strides = [1, 1]} : vector<1x128xf32> to vector<1x32xf32>
    %cst_58 = arith.constant 5.000000e-01 : f32
    %132 = vector.broadcast %cst_58 : f32 to vector<1x32xf32>
    %133 = arith.mulf %132, %131 : vector<1x32xf32>
    %134 = math.tanh %133 : vector<1x32xf32>
    %cst_59 = arith.constant 1.000000e+00 : f32
    %135 = vector.broadcast %cst_59 : f32 to vector<1x32xf32>
    %136 = arith.addf %134, %135 : vector<1x32xf32>
    %cst_60 = arith.constant 5.000000e-01 : f32
    %137 = vector.broadcast %cst_60 : f32 to vector<1x32xf32>
    %138 = arith.mulf %137, %136 : vector<1x32xf32>
    %139 = arith.mulf %128, %71 : vector<1x32xf32>
    %140 = arith.mulf %120, %130 : vector<1x32xf32>
    %141 = arith.addf %139, %140 : vector<1x32xf32>
    %142 = math.tanh %141 : vector<1x32xf32>
    %143 = arith.mulf %138, %142 : vector<1x32xf32>
    %c1_61 = arith.constant 1 : index
    %c0_62 = arith.constant 0 : index
    %144 = vector.load %arg20[%c1_61, %c0_62] : memref<7x64xf32, #tpu.memory_space<vmem>>, vector<1x32xf32>
    tpu.vector_store %arg20[%c1_61, %c0_62], %143 {strides = array<i32>} : memref<7x64xf32, #tpu.memory_space<vmem>>, vector<1x32xf32>,
    %c5 = arith.constant 5 : index
    %c128_63 = arith.constant 128 : index
    %145 = vector.load %arg19[%c5, %c128_63] : memref<7x256xf32, #tpu.memory_space<vmem>>, vector<1x128xf32>
    %cst_64 = arith.constant dense<0.000000e+00> : vector<1x128xf32>
    %146 = tpu.matmul %108, %35, %cst_64 {dimension_numbers = #tpu.dot_dimension_numbers<[1], [0], [0], [1], [0, 0, 1, 1], [], []>} : vector<1x32xf32>, vector<32x128xf32>, vector<1x128xf32> -> vector<1x128xf32>
    %147 = arith.addf %145, %146 : vector<1x128xf32>
    %148 = vector.extract_strided_slice %147 {offsets = [0, 0], sizes = [1, 32], strides = [1, 1]} : vector<1x128xf32> to vector<1x32xf32>
    %cst_65 = arith.constant 5.000000e-01 : f32
    %149 = vector.broadcast %cst_65 : f32 to vector<1x32xf32>
    %150 = arith.mulf %149, %148 : vector<1x32xf32>
    %151 = math.tanh %150 : vector<1x32xf32>
    %cst_66 = arith.constant 1.000000e+00 : f32
    %152 = vector.broadcast %cst_66 : f32 to vector<1x32xf32>
    %153 = arith.addf %151, %152 : vector<1x32xf32>
    %cst_67 = arith.constant 5.000000e-01 : f32
    %154 = vector.broadcast %cst_67 : f32 to vector<1x32xf32>
    %155 = arith.mulf %154, %153 : vector<1x32xf32>
    %156 = vector.extract_strided_slice %147 {offsets = [0, 32], sizes = [1, 32], strides = [1, 1]} : vector<1x128xf32> to vector<1x32xf32>
    %cst_68 = arith.constant 5.000000e-01 : f32
    %157 = vector.broadcast %cst_68 : f32 to vector<1x32xf32>
    %158 = arith.mulf %157, %156 : vector<1x32xf32>
    %159 = math.tanh %158 : vector<1x32xf32>
    %cst_69 = arith.constant 1.000000e+00 : f32
    %160 = vector.broadcast %cst_69 : f32 to vector<1x32xf32>
    %161 = arith.addf %159, %160 : vector<1x32xf32>
    %cst_70 = arith.constant 5.000000e-01 : f32
    %162 = vector.broadcast %cst_70 : f32 to vector<1x32xf32>
    %163 = arith.mulf %162, %161 : vector<1x32xf32>
    %164 = vector.extract_strided_slice %147 {offsets = [0, 64], sizes = [1, 32], strides = [1, 1]} : vector<1x128xf32> to vector<1x32xf32>
    %165 = math.tanh %164 : vector<1x32xf32>
    %166 = vector.extract_strided_slice %147 {offsets = [0, 96], sizes = [1, 32], strides = [1, 1]} : vector<1x128xf32> to vector<1x32xf32>
    %cst_71 = arith.constant 5.000000e-01 : f32
    %167 = vector.broadcast %cst_71 : f32 to vector<1x32xf32>
    %168 = arith.mulf %167, %166 : vector<1x32xf32>
    %169 = math.tanh %168 : vector<1x32xf32>
    %cst_72 = arith.constant 1.000000e+00 : f32
    %170 = vector.broadcast %cst_72 : f32 to vector<1x32xf32>
    %171 = arith.addf %169, %170 : vector<1x32xf32>
    %cst_73 = arith.constant 5.000000e-01 : f32
    %172 = vector.broadcast %cst_73 : f32 to vector<1x32xf32>
    %173 = arith.mulf %172, %171 : vector<1x32xf32>
    %174 = arith.mulf %163, %106 : vector<1x32xf32>
    %175 = arith.mulf %155, %165 : vector<1x32xf32>
    %176 = arith.addf %174, %175 : vector<1x32xf32>
    %177 = math.tanh %176 : vector<1x32xf32>
    %178 = arith.mulf %173, %177 : vector<1x32xf32>
    %c5_74 = arith.constant 5 : index
    %c32_75 = arith.constant 32 : index
    %179 = vector.load %arg20[%c5_74, %c32_75] : memref<7x64xf32, #tpu.memory_space<vmem>>, vector<1x32xf32>
    tpu.vector_store %arg20[%c5_74, %c32_75], %178 {strides = array<i32>} : memref<7x64xf32, #tpu.memory_space<vmem>>, vector<1x32xf32>,
    %c2 = arith.constant 2 : index
    %c0_76 = arith.constant 0 : index
    %180 = vector.load %arg19[%c2, %c0_76] : memref<7x256xf32, #tpu.memory_space<vmem>>, vector<1x128xf32>
    %cst_77 = arith.constant dense<0.000000e+00> : vector<1x128xf32>
    %181 = tpu.matmul %143, %34, %cst_77 {dimension_numbers = #tpu.dot_dimension_numbers<[1], [0], [0], [1], [0, 0, 1, 1], [], []>} : vector<1x32xf32>, vector<32x128xf32>, vector<1x128xf32> -> vector<1x128xf32>
    %182 = arith.addf %180, %181 : vector<1x128xf32>
    %183 = vector.extract_strided_slice %182 {offsets = [0, 0], sizes = [1, 32], strides = [1, 1]} : vector<1x128xf32> to vector<1x32xf32>
    %cst_78 = arith.constant 5.000000e-01 : f32
    %184 = vector.broadcast %cst_78 : f32 to vector<1x32xf32>
    %185 = arith.mulf %184, %183 : vector<1x32xf32>
    %186 = math.tanh %185 : vector<1x32xf32>
    %cst_79 = arith.constant 1.000000e+00 : f32
    %187 = vector.broadcast %cst_79 : f32 to vector<1x32xf32>
    %188 = arith.addf %186, %187 : vector<1x32xf32>
    %cst_80 = arith.constant 5.000000e-01 : f32
    %189 = vector.broadcast %cst_80 : f32 to vector<1x32xf32>
    %190 = arith.mulf %189, %188 : vector<1x32xf32>
    %191 = vector.extract_strided_slice %182 {offsets = [0, 32], sizes = [1, 32], strides = [1, 1]} : vector<1x128xf32> to vector<1x32xf32>
    %cst_81 = arith.constant 5.000000e-01 : f32
    %192 = vector.broadcast %cst_81 : f32 to vector<1x32xf32>
    %193 = arith.mulf %192, %191 : vector<1x32xf32>
    %194 = math.tanh %193 : vector<1x32xf32>
    %cst_82 = arith.constant 1.000000e+00 : f32
    %195 = vector.broadcast %cst_82 : f32 to vector<1x32xf32>
    %196 = arith.addf %194, %195 : vector<1x32xf32>
    %cst_83 = arith.constant 5.000000e-01 : f32
    %197 = vector.broadcast %cst_83 : f32 to vector<1x32xf32>
    %198 = arith.mulf %197, %196 : vector<1x32xf32>
    %199 = vector.extract_strided_slice %182 {offsets = [0, 64], sizes = [1, 32], strides = [1, 1]} : vector<1x128xf32> to vector<1x32xf32>
    %200 = math.tanh %199 : vector<1x32xf32>
    %201 = vector.extract_strided_slice %182 {offsets = [0, 96], sizes = [1, 32], strides = [1, 1]} : vector<1x128xf32> to vector<1x32xf32>
    %cst_84 = arith.constant 5.000000e-01 : f32
    %202 = vector.broadcast %cst_84 : f32 to vector<1x32xf32>
    %203 = arith.mulf %202, %201 : vector<1x32xf32>
    %204 = math.tanh %203 : vector<1x32xf32>
    %cst_85 = arith.constant 1.000000e+00 : f32
    %205 = vector.broadcast %cst_85 : f32 to vector<1x32xf32>
    %206 = arith.addf %204, %205 : vector<1x32xf32>
    %cst_86 = arith.constant 5.000000e-01 : f32
    %207 = vector.broadcast %cst_86 : f32 to vector<1x32xf32>
    %208 = arith.mulf %207, %206 : vector<1x32xf32>
    %209 = arith.mulf %198, %141 : vector<1x32xf32>
    %210 = arith.mulf %190, %200 : vector<1x32xf32>
    %211 = arith.addf %209, %210 : vector<1x32xf32>
    %212 = math.tanh %211 : vector<1x32xf32>
    %213 = arith.mulf %208, %212 : vector<1x32xf32>
    %c2_87 = arith.constant 2 : index
    %c0_88 = arith.constant 0 : index
    %214 = vector.load %arg20[%c2_87, %c0_88] : memref<7x64xf32, #tpu.memory_space<vmem>>, vector<1x32xf32>
    tpu.vector_store %arg20[%c2_87, %c0_88], %213 {strides = array<i32>} : memref<7x64xf32, #tpu.memory_space<vmem>>, vector<1x32xf32>,
    %c4 = arith.constant 4 : index
    %c128_89 = arith.constant 128 : index
    %215 = vector.load %arg19[%c4, %c128_89] : memref<7x256xf32, #tpu.memory_space<vmem>>, vector<1x128xf32>
    %cst_90 = arith.constant dense<0.000000e+00> : vector<1x128xf32>
    %216 = tpu.matmul %178, %35, %cst_90 {dimension_numbers = #tpu.dot_dimension_numbers<[1], [0], [0], [1], [0, 0, 1, 1], [], []>} : vector<1x32xf32>, vector<32x128xf32>, vector<1x128xf32> -> vector<1x128xf32>
    %217 = arith.addf %215, %216 : vector<1x128xf32>
    %218 = vector.extract_strided_slice %217 {offsets = [0, 0], sizes = [1, 32], strides = [1, 1]} : vector<1x128xf32> to vector<1x32xf32>
    %cst_91 = arith.constant 5.000000e-01 : f32
    %219 = vector.broadcast %cst_91 : f32 to vector<1x32xf32>
    %220 = arith.mulf %219, %218 : vector<1x32xf32>
    %221 = math.tanh %220 : vector<1x32xf32>
    %cst_92 = arith.constant 1.000000e+00 : f32
    %222 = vector.broadcast %cst_92 : f32 to vector<1x32xf32>
    %223 = arith.addf %221, %222 : vector<1x32xf32>
    %cst_93 = arith.constant 5.000000e-01 : f32
    %224 = vector.broadcast %cst_93 : f32 to vector<1x32xf32>
    %225 = arith.mulf %224, %223 : vector<1x32xf32>
    %226 = vector.extract_strided_slice %217 {offsets = [0, 32], sizes = [1, 32], strides = [1, 1]} : vector<1x128xf32> to vector<1x32xf32>
    %cst_94 = arith.constant 5.000000e-01 : f32
    %227 = vector.broadcast %cst_94 : f32 to vector<1x32xf32>
    %228 = arith.mulf %227, %226 : vector<1x32xf32>
    %229 = math.tanh %228 : vector<1x32xf32>
    %cst_95 = arith.constant 1.000000e+00 : f32
    %230 = vector.broadcast %cst_95 : f32 to vector<1x32xf32>
    %231 = arith.addf %229, %230 : vector<1x32xf32>
    %cst_96 = arith.constant 5.000000e-01 : f32
    %232 = vector.broadcast %cst_96 : f32 to vector<1x32xf32>
    %233 = arith.mulf %232, %231 : vector<1x32xf32>
    %234 = vector.extract_strided_slice %217 {offsets = [0, 64], sizes = [1, 32], strides = [1, 1]} : vector<1x128xf32> to vector<1x32xf32>
    %235 = math.tanh %234 : vector<1x32xf32>
    %236 = vector.extract_strided_slice %217 {offsets = [0, 96], sizes = [1, 32], strides = [1, 1]} : vector<1x128xf32> to vector<1x32xf32>
    %cst_97 = arith.constant 5.000000e-01 : f32
    %237 = vector.broadcast %cst_97 : f32 to vector<1x32xf32>
    %238 = arith.mulf %237, %236 : vector<1x32xf32>
    %239 = math.tanh %238 : vector<1x32xf32>
    %cst_98 = arith.constant 1.000000e+00 : f32
    %240 = vector.broadcast %cst_98 : f32 to vector<1x32xf32>
    %241 = arith.addf %239, %240 : vector<1x32xf32>
    %cst_99 = arith.constant 5.000000e-01 : f32
    %242 = vector.broadcast %cst_99 : f32 to vector<1x32xf32>
    %243 = arith.mulf %242, %241 : vector<1x32xf32>
    %244 = arith.mulf %233, %176 : vector<1x32xf32>
    %245 = arith.mulf %225, %235 : vector<1x32xf32>
    %246 = arith.addf %244, %245 : vector<1x32xf32>
    %247 = math.tanh %246 : vector<1x32xf32>
    %248 = arith.mulf %243, %247 : vector<1x32xf32>
    %c4_100 = arith.constant 4 : index
    %c32_101 = arith.constant 32 : index
    %249 = vector.load %arg20[%c4_100, %c32_101] : memref<7x64xf32, #tpu.memory_space<vmem>>, vector<1x32xf32>
    tpu.vector_store %arg20[%c4_100, %c32_101], %248 {strides = array<i32>} : memref<7x64xf32, #tpu.memory_space<vmem>>, vector<1x32xf32>,
    %c3 = arith.constant 3 : index
    %c0_102 = arith.constant 0 : index
    %250 = vector.load %arg19[%c3, %c0_102] : memref<7x256xf32, #tpu.memory_space<vmem>>, vector<1x128xf32>
    %cst_103 = arith.constant dense<0.000000e+00> : vector<1x128xf32>
    %251 = tpu.matmul %213, %34, %cst_103 {dimension_numbers = #tpu.dot_dimension_numbers<[1], [0], [0], [1], [0, 0, 1, 1], [], []>} : vector<1x32xf32>, vector<32x128xf32>, vector<1x128xf32> -> vector<1x128xf32>
    %252 = arith.addf %250, %251 : vector<1x128xf32>
    %253 = vector.extract_strided_slice %252 {offsets = [0, 0], sizes = [1, 32], strides = [1, 1]} : vector<1x128xf32> to vector<1x32xf32>
    %cst_104 = arith.constant 5.000000e-01 : f32
    %254 = vector.broadcast %cst_104 : f32 to vector<1x32xf32>
    %255 = arith.mulf %254, %253 : vector<1x32xf32>
    %256 = math.tanh %255 : vector<1x32xf32>
    %cst_105 = arith.constant 1.000000e+00 : f32
    %257 = vector.broadcast %cst_105 : f32 to vector<1x32xf32>
    %258 = arith.addf %256, %257 : vector<1x32xf32>
    %cst_106 = arith.constant 5.000000e-01 : f32
    %259 = vector.broadcast %cst_106 : f32 to vector<1x32xf32>
    %260 = arith.mulf %259, %258 : vector<1x32xf32>
    %261 = vector.extract_strided_slice %252 {offsets = [0, 32], sizes = [1, 32], strides = [1, 1]} : vector<1x128xf32> to vector<1x32xf32>
    %cst_107 = arith.constant 5.000000e-01 : f32
    %262 = vector.broadcast %cst_107 : f32 to vector<1x32xf32>
    %263 = arith.mulf %262, %261 : vector<1x32xf32>
    %264 = math.tanh %263 : vector<1x32xf32>
    %cst_108 = arith.constant 1.000000e+00 : f32
    %265 = vector.broadcast %cst_108 : f32 to vector<1x32xf32>
    %266 = arith.addf %264, %265 : vector<1x32xf32>
    %cst_109 = arith.constant 5.000000e-01 : f32
    %267 = vector.broadcast %cst_109 : f32 to vector<1x32xf32>
    %268 = arith.mulf %267, %266 : vector<1x32xf32>
    %269 = vector.extract_strided_slice %252 {offsets = [0, 64], sizes = [1, 32], strides = [1, 1]} : vector<1x128xf32> to vector<1x32xf32>
    %270 = math.tanh %269 : vector<1x32xf32>
    %271 = vector.extract_strided_slice %252 {offsets = [0, 96], sizes = [1, 32], strides = [1, 1]} : vector<1x128xf32> to vector<1x32xf32>
    %cst_110 = arith.constant 5.000000e-01 : f32
    %272 = vector.broadcast %cst_110 : f32 to vector<1x32xf32>
    %273 = arith.mulf %272, %271 : vector<1x32xf32>
    %274 = math.tanh %273 : vector<1x32xf32>
    %cst_111 = arith.constant 1.000000e+00 : f32
    %275 = vector.broadcast %cst_111 : f32 to vector<1x32xf32>
    %276 = arith.addf %274, %275 : vector<1x32xf32>
    %cst_112 = arith.constant 5.000000e-01 : f32
    %277 = vector.broadcast %cst_112 : f32 to vector<1x32xf32>
    %278 = arith.mulf %277, %276 : vector<1x32xf32>
    %279 = arith.mulf %268, %211 : vector<1x32xf32>
    %280 = arith.mulf %260, %270 : vector<1x32xf32>
    %281 = arith.addf %279, %280 : vector<1x32xf32>
    %282 = math.tanh %281 : vector<1x32xf32>
    %283 = arith.mulf %278, %282 : vector<1x32xf32>
    %c3_113 = arith.constant 3 : index
    %c0_114 = arith.constant 0 : index
    %284 = vector.load %arg20[%c3_113, %c0_114] : memref<7x64xf32, #tpu.memory_space<vmem>>, vector<1x32xf32>
    tpu.vector_store %arg20[%c3_113, %c0_114], %283 {strides = array<i32>} : memref<7x64xf32, #tpu.memory_space<vmem>>, vector<1x32xf32>,
    %c3_115 = arith.constant 3 : index
    %c128_116 = arith.constant 128 : index
    %285 = vector.load %arg19[%c3_115, %c128_116] : memref<7x256xf32, #tpu.memory_space<vmem>>, vector<1x128xf32>
    %cst_117 = arith.constant dense<0.000000e+00> : vector<1x128xf32>
    %286 = tpu.matmul %248, %35, %cst_117 {dimension_numbers = #tpu.dot_dimension_numbers<[1], [0], [0], [1], [0, 0, 1, 1], [], []>} : vector<1x32xf32>, vector<32x128xf32>, vector<1x128xf32> -> vector<1x128xf32>
    %287 = arith.addf %285, %286 : vector<1x128xf32>
    %288 = vector.extract_strided_slice %287 {offsets = [0, 0], sizes = [1, 32], strides = [1, 1]} : vector<1x128xf32> to vector<1x32xf32>
    %cst_118 = arith.constant 5.000000e-01 : f32
    %289 = vector.broadcast %cst_118 : f32 to vector<1x32xf32>
    %290 = arith.mulf %289, %288 : vector<1x32xf32>
    %291 = math.tanh %290 : vector<1x32xf32>
    %cst_119 = arith.constant 1.000000e+00 : f32
    %292 = vector.broadcast %cst_119 : f32 to vector<1x32xf32>
    %293 = arith.addf %291, %292 : vector<1x32xf32>
    %cst_120 = arith.constant 5.000000e-01 : f32
    %294 = vector.broadcast %cst_120 : f32 to vector<1x32xf32>
    %295 = arith.mulf %294, %293 : vector<1x32xf32>
    %296 = vector.extract_strided_slice %287 {offsets = [0, 32], sizes = [1, 32], strides = [1, 1]} : vector<1x128xf32> to vector<1x32xf32>
    %cst_121 = arith.constant 5.000000e-01 : f32
    %297 = vector.broadcast %cst_121 : f32 to vector<1x32xf32>
    %298 = arith.mulf %297, %296 : vector<1x32xf32>
    %299 = math.tanh %298 : vector<1x32xf32>
    %cst_122 = arith.constant 1.000000e+00 : f32
    %300 = vector.broadcast %cst_122 : f32 to vector<1x32xf32>
    %301 = arith.addf %299, %300 : vector<1x32xf32>
    %cst_123 = arith.constant 5.000000e-01 : f32
    %302 = vector.broadcast %cst_123 : f32 to vector<1x32xf32>
    %303 = arith.mulf %302, %301 : vector<1x32xf32>
    %304 = vector.extract_strided_slice %287 {offsets = [0, 64], sizes = [1, 32], strides = [1, 1]} : vector<1x128xf32> to vector<1x32xf32>
    %305 = math.tanh %304 : vector<1x32xf32>
    %306 = vector.extract_strided_slice %287 {offsets = [0, 96], sizes = [1, 32], strides = [1, 1]} : vector<1x128xf32> to vector<1x32xf32>
    %cst_124 = arith.constant 5.000000e-01 : f32
    %307 = vector.broadcast %cst_124 : f32 to vector<1x32xf32>
    %308 = arith.mulf %307, %306 : vector<1x32xf32>
    %309 = math.tanh %308 : vector<1x32xf32>
    %cst_125 = arith.constant 1.000000e+00 : f32
    %310 = vector.broadcast %cst_125 : f32 to vector<1x32xf32>
    %311 = arith.addf %309, %310 : vector<1x32xf32>
    %cst_126 = arith.constant 5.000000e-01 : f32
    %312 = vector.broadcast %cst_126 : f32 to vector<1x32xf32>
    %313 = arith.mulf %312, %311 : vector<1x32xf32>
    %314 = arith.mulf %303, %246 : vector<1x32xf32>
    %315 = arith.mulf %295, %305 : vector<1x32xf32>
    %316 = arith.addf %314, %315 : vector<1x32xf32>
    %317 = math.tanh %316 : vector<1x32xf32>
    %318 = arith.mulf %313, %317 : vector<1x32xf32>
    %c3_127 = arith.constant 3 : index
    %c32_128 = arith.constant 32 : index
    %319 = vector.load %arg20[%c3_127, %c32_128] : memref<7x64xf32, #tpu.memory_space<vmem>>, vector<1x32xf32>
    tpu.vector_store %arg20[%c3_127, %c32_128], %318 {strides = array<i32>} : memref<7x64xf32, #tpu.memory_space<vmem>>, vector<1x32xf32>,
    %c4_129 = arith.constant 4 : index
    %c0_130 = arith.constant 0 : index
    %320 = vector.load %arg19[%c4_129, %c0_130] : memref<7x256xf32, #tpu.memory_space<vmem>>, vector<1x128xf32>
    %cst_131 = arith.constant dense<0.000000e+00> : vector<1x128xf32>
    %321 = tpu.matmul %283, %34, %cst_131 {dimension_numbers = #tpu.dot_dimension_numbers<[1], [0], [0], [1], [0, 0, 1, 1], [], []>} : vector<1x32xf32>, vector<32x128xf32>, vector<1x128xf32> -> vector<1x128xf32>
    %322 = arith.addf %320, %321 : vector<1x128xf32>
    %323 = vector.extract_strided_slice %322 {offsets = [0, 0], sizes = [1, 32], strides = [1, 1]} : vector<1x128xf32> to vector<1x32xf32>
    %cst_132 = arith.constant 5.000000e-01 : f32
    %324 = vector.broadcast %cst_132 : f32 to vector<1x32xf32>
    %325 = arith.mulf %324, %323 : vector<1x32xf32>
    %326 = math.tanh %325 : vector<1x32xf32>
    %cst_133 = arith.constant 1.000000e+00 : f32
    %327 = vector.broadcast %cst_133 : f32 to vector<1x32xf32>
    %328 = arith.addf %326, %327 : vector<1x32xf32>
    %cst_134 = arith.constant 5.000000e-01 : f32
    %329 = vector.broadcast %cst_134 : f32 to vector<1x32xf32>
    %330 = arith.mulf %329, %328 : vector<1x32xf32>
    %331 = vector.extract_strided_slice %322 {offsets = [0, 32], sizes = [1, 32], strides = [1, 1]} : vector<1x128xf32> to vector<1x32xf32>
    %cst_135 = arith.constant 5.000000e-01 : f32
    %332 = vector.broadcast %cst_135 : f32 to vector<1x32xf32>
    %333 = arith.mulf %332, %331 : vector<1x32xf32>
    %334 = math.tanh %333 : vector<1x32xf32>
    %cst_136 = arith.constant 1.000000e+00 : f32
    %335 = vector.broadcast %cst_136 : f32 to vector<1x32xf32>
    %336 = arith.addf %334, %335 : vector<1x32xf32>
    %cst_137 = arith.constant 5.000000e-01 : f32
    %337 = vector.broadcast %cst_137 : f32 to vector<1x32xf32>
    %338 = arith.mulf %337, %336 : vector<1x32xf32>
    %339 = vector.extract_strided_slice %322 {offsets = [0, 64], sizes = [1, 32], strides = [1, 1]} : vector<1x128xf32> to vector<1x32xf32>
    %340 = math.tanh %339 : vector<1x32xf32>
    %341 = vector.extract_strided_slice %322 {offsets = [0, 96], sizes = [1, 32], strides = [1, 1]} : vector<1x128xf32> to vector<1x32xf32>
    %cst_138 = arith.constant 5.000000e-01 : f32
    %342 = vector.broadcast %cst_138 : f32 to vector<1x32xf32>
    %343 = arith.mulf %342, %341 : vector<1x32xf32>
    %344 = math.tanh %343 : vector<1x32xf32>
    %cst_139 = arith.constant 1.000000e+00 : f32
    %345 = vector.broadcast %cst_139 : f32 to vector<1x32xf32>
    %346 = arith.addf %344, %345 : vector<1x32xf32>
    %cst_140 = arith.constant 5.000000e-01 : f32
    %347 = vector.broadcast %cst_140 : f32 to vector<1x32xf32>
    %348 = arith.mulf %347, %346 : vector<1x32xf32>
    %349 = arith.mulf %338, %281 : vector<1x32xf32>
    %350 = arith.mulf %330, %340 : vector<1x32xf32>
    %351 = arith.addf %349, %350 : vector<1x32xf32>
    %352 = math.tanh %351 : vector<1x32xf32>
    %353 = arith.mulf %348, %352 : vector<1x32xf32>
    %c4_141 = arith.constant 4 : index
    %c0_142 = arith.constant 0 : index
    %354 = vector.load %arg20[%c4_141, %c0_142] : memref<7x64xf32, #tpu.memory_space<vmem>>, vector<1x32xf32>
    tpu.vector_store %arg20[%c4_141, %c0_142], %353 {strides = array<i32>} : memref<7x64xf32, #tpu.memory_space<vmem>>, vector<1x32xf32>,
    %c2_143 = arith.constant 2 : index
    %c128_144 = arith.constant 128 : index
    %355 = vector.load %arg19[%c2_143, %c128_144] : memref<7x256xf32, #tpu.memory_space<vmem>>, vector<1x128xf32>
    %cst_145 = arith.constant dense<0.000000e+00> : vector<1x128xf32>
    %356 = tpu.matmul %318, %35, %cst_145 {dimension_numbers = #tpu.dot_dimension_numbers<[1], [0], [0], [1], [0, 0, 1, 1], [], []>} : vector<1x32xf32>, vector<32x128xf32>, vector<1x128xf32> -> vector<1x128xf32>
    %357 = arith.addf %355, %356 : vector<1x128xf32>
    %358 = vector.extract_strided_slice %357 {offsets = [0, 0], sizes = [1, 32], strides = [1, 1]} : vector<1x128xf32> to vector<1x32xf32>
    %cst_146 = arith.constant 5.000000e-01 : f32
    %359 = vector.broadcast %cst_146 : f32 to vector<1x32xf32>
    %360 = arith.mulf %359, %358 : vector<1x32xf32>
    %361 = math.tanh %360 : vector<1x32xf32>
    %cst_147 = arith.constant 1.000000e+00 : f32
    %362 = vector.broadcast %cst_147 : f32 to vector<1x32xf32>
    %363 = arith.addf %361, %362 : vector<1x32xf32>
    %cst_148 = arith.constant 5.000000e-01 : f32
    %364 = vector.broadcast %cst_148 : f32 to vector<1x32xf32>
    %365 = arith.mulf %364, %363 : vector<1x32xf32>
    %366 = vector.extract_strided_slice %357 {offsets = [0, 32], sizes = [1, 32], strides = [1, 1]} : vector<1x128xf32> to vector<1x32xf32>
    %cst_149 = arith.constant 5.000000e-01 : f32
    %367 = vector.broadcast %cst_149 : f32 to vector<1x32xf32>
    %368 = arith.mulf %367, %366 : vector<1x32xf32>
    %369 = math.tanh %368 : vector<1x32xf32>
    %cst_150 = arith.constant 1.000000e+00 : f32
    %370 = vector.broadcast %cst_150 : f32 to vector<1x32xf32>
    %371 = arith.addf %369, %370 : vector<1x32xf32>
    %cst_151 = arith.constant 5.000000e-01 : f32
    %372 = vector.broadcast %cst_151 : f32 to vector<1x32xf32>
    %373 = arith.mulf %372, %371 : vector<1x32xf32>
    %374 = vector.extract_strided_slice %357 {offsets = [0, 64], sizes = [1, 32], strides = [1, 1]} : vector<1x128xf32> to vector<1x32xf32>
    %375 = math.tanh %374 : vector<1x32xf32>
    %376 = vector.extract_strided_slice %357 {offsets = [0, 96], sizes = [1, 32], strides = [1, 1]} : vector<1x128xf32> to vector<1x32xf32>
    %cst_152 = arith.constant 5.000000e-01 : f32
    %377 = vector.broadcast %cst_152 : f32 to vector<1x32xf32>
    %378 = arith.mulf %377, %376 : vector<1x32xf32>
    %379 = math.tanh %378 : vector<1x32xf32>
    %cst_153 = arith.constant 1.000000e+00 : f32
    %380 = vector.broadcast %cst_153 : f32 to vector<1x32xf32>
    %381 = arith.addf %379, %380 : vector<1x32xf32>
    %cst_154 = arith.constant 5.000000e-01 : f32
    %382 = vector.broadcast %cst_154 : f32 to vector<1x32xf32>
    %383 = arith.mulf %382, %381 : vector<1x32xf32>
    %384 = arith.mulf %373, %316 : vector<1x32xf32>
    %385 = arith.mulf %365, %375 : vector<1x32xf32>
    %386 = arith.addf %384, %385 : vector<1x32xf32>
    %387 = math.tanh %386 : vector<1x32xf32>
    %388 = arith.mulf %383, %387 : vector<1x32xf32>
    %c2_155 = arith.constant 2 : index
    %c32_156 = arith.constant 32 : index
    %389 = vector.load %arg20[%c2_155, %c32_156] : memref<7x64xf32, #tpu.memory_space<vmem>>, vector<1x32xf32>
    tpu.vector_store %arg20[%c2_155, %c32_156], %388 {strides = array<i32>} : memref<7x64xf32, #tpu.memory_space<vmem>>, vector<1x32xf32>,
    %c5_157 = arith.constant 5 : index
    %c0_158 = arith.constant 0 : index
    %390 = vector.load %arg19[%c5_157, %c0_158] : memref<7x256xf32, #tpu.memory_space<vmem>>, vector<1x128xf32>
    %cst_159 = arith.constant dense<0.000000e+00> : vector<1x128xf32>
    %391 = tpu.matmul %353, %34, %cst_159 {dimension_numbers = #tpu.dot_dimension_numbers<[1], [0], [0], [1], [0, 0, 1, 1], [], []>} : vector<1x32xf32>, vector<32x128xf32>, vector<1x128xf32> -> vector<1x128xf32>
    %392 = arith.addf %390, %391 : vector<1x128xf32>
    %393 = vector.extract_strided_slice %392 {offsets = [0, 0], sizes = [1, 32], strides = [1, 1]} : vector<1x128xf32> to vector<1x32xf32>
    %cst_160 = arith.constant 5.000000e-01 : f32
    %394 = vector.broadcast %cst_160 : f32 to vector<1x32xf32>
    %395 = arith.mulf %394, %393 : vector<1x32xf32>
    %396 = math.tanh %395 : vector<1x32xf32>
    %cst_161 = arith.constant 1.000000e+00 : f32
    %397 = vector.broadcast %cst_161 : f32 to vector<1x32xf32>
    %398 = arith.addf %396, %397 : vector<1x32xf32>
    %cst_162 = arith.constant 5.000000e-01 : f32
    %399 = vector.broadcast %cst_162 : f32 to vector<1x32xf32>
    %400 = arith.mulf %399, %398 : vector<1x32xf32>
    %401 = vector.extract_strided_slice %392 {offsets = [0, 32], sizes = [1, 32], strides = [1, 1]} : vector<1x128xf32> to vector<1x32xf32>
    %cst_163 = arith.constant 5.000000e-01 : f32
    %402 = vector.broadcast %cst_163 : f32 to vector<1x32xf32>
    %403 = arith.mulf %402, %401 : vector<1x32xf32>
    %404 = math.tanh %403 : vector<1x32xf32>
    %cst_164 = arith.constant 1.000000e+00 : f32
    %405 = vector.broadcast %cst_164 : f32 to vector<1x32xf32>
    %406 = arith.addf %404, %405 : vector<1x32xf32>
    %cst_165 = arith.constant 5.000000e-01 : f32
    %407 = vector.broadcast %cst_165 : f32 to vector<1x32xf32>
    %408 = arith.mulf %407, %406 : vector<1x32xf32>
    %409 = vector.extract_strided_slice %392 {offsets = [0, 64], sizes = [1, 32], strides = [1, 1]} : vector<1x128xf32> to vector<1x32xf32>
    %410 = math.tanh %409 : vector<1x32xf32>
    %411 = vector.extract_strided_slice %392 {offsets = [0, 96], sizes = [1, 32], strides = [1, 1]} : vector<1x128xf32> to vector<1x32xf32>
    %cst_166 = arith.constant 5.000000e-01 : f32
    %412 = vector.broadcast %cst_166 : f32 to vector<1x32xf32>
    %413 = arith.mulf %412, %411 : vector<1x32xf32>
    %414 = math.tanh %413 : vector<1x32xf32>
    %cst_167 = arith.constant 1.000000e+00 : f32
    %415 = vector.broadcast %cst_167 : f32 to vector<1x32xf32>
    %416 = arith.addf %414, %415 : vector<1x32xf32>
    %cst_168 = arith.constant 5.000000e-01 : f32
    %417 = vector.broadcast %cst_168 : f32 to vector<1x32xf32>
    %418 = arith.mulf %417, %416 : vector<1x32xf32>
    %419 = arith.mulf %408, %351 : vector<1x32xf32>
    %420 = arith.mulf %400, %410 : vector<1x32xf32>
    %421 = arith.addf %419, %420 : vector<1x32xf32>
    %422 = math.tanh %421 : vector<1x32xf32>
    %423 = arith.mulf %418, %422 : vector<1x32xf32>
    %c5_169 = arith.constant 5 : index
    %c0_170 = arith.constant 0 : index
    %424 = vector.load %arg20[%c5_169, %c0_170] : memref<7x64xf32, #tpu.memory_space<vmem>>, vector<1x32xf32>
    tpu.vector_store %arg20[%c5_169, %c0_170], %423 {strides = array<i32>} : memref<7x64xf32, #tpu.memory_space<vmem>>, vector<1x32xf32>,
    %c1_171 = arith.constant 1 : index
    %c128_172 = arith.constant 128 : index
    %425 = vector.load %arg19[%c1_171, %c128_172] : memref<7x256xf32, #tpu.memory_space<vmem>>, vector<1x128xf32>
    %cst_173 = arith.constant dense<0.000000e+00> : vector<1x128xf32>
    %426 = tpu.matmul %388, %35, %cst_173 {dimension_numbers = #tpu.dot_dimension_numbers<[1], [0], [0], [1], [0, 0, 1, 1], [], []>} : vector<1x32xf32>, vector<32x128xf32>, vector<1x128xf32> -> vector<1x128xf32>
    %427 = arith.addf %425, %426 : vector<1x128xf32>
    %428 = vector.extract_strided_slice %427 {offsets = [0, 0], sizes = [1, 32], strides = [1, 1]} : vector<1x128xf32> to vector<1x32xf32>
    %cst_174 = arith.constant 5.000000e-01 : f32
    %429 = vector.broadcast %cst_174 : f32 to vector<1x32xf32>
    %430 = arith.mulf %429, %428 : vector<1x32xf32>
    %431 = math.tanh %430 : vector<1x32xf32>
    %cst_175 = arith.constant 1.000000e+00 : f32
    %432 = vector.broadcast %cst_175 : f32 to vector<1x32xf32>
    %433 = arith.addf %431, %432 : vector<1x32xf32>
    %cst_176 = arith.constant 5.000000e-01 : f32
    %434 = vector.broadcast %cst_176 : f32 to vector<1x32xf32>
    %435 = arith.mulf %434, %433 : vector<1x32xf32>
    %436 = vector.extract_strided_slice %427 {offsets = [0, 32], sizes = [1, 32], strides = [1, 1]} : vector<1x128xf32> to vector<1x32xf32>
    %cst_177 = arith.constant 5.000000e-01 : f32
    %437 = vector.broadcast %cst_177 : f32 to vector<1x32xf32>
    %438 = arith.mulf %437, %436 : vector<1x32xf32>
    %439 = math.tanh %438 : vector<1x32xf32>
    %cst_178 = arith.constant 1.000000e+00 : f32
    %440 = vector.broadcast %cst_178 : f32 to vector<1x32xf32>
    %441 = arith.addf %439, %440 : vector<1x32xf32>
    %cst_179 = arith.constant 5.000000e-01 : f32
    %442 = vector.broadcast %cst_179 : f32 to vector<1x32xf32>
    %443 = arith.mulf %442, %441 : vector<1x32xf32>
    %444 = vector.extract_strided_slice %427 {offsets = [0, 64], sizes = [1, 32], strides = [1, 1]} : vector<1x128xf32> to vector<1x32xf32>
    %445 = math.tanh %444 : vector<1x32xf32>
    %446 = vector.extract_strided_slice %427 {offsets = [0, 96], sizes = [1, 32], strides = [1, 1]} : vector<1x128xf32> to vector<1x32xf32>
    %cst_180 = arith.constant 5.000000e-01 : f32
    %447 = vector.broadcast %cst_180 : f32 to vector<1x32xf32>
    %448 = arith.mulf %447, %446 : vector<1x32xf32>
    %449 = math.tanh %448 : vector<1x32xf32>
    %cst_181 = arith.constant 1.000000e+00 : f32
    %450 = vector.broadcast %cst_181 : f32 to vector<1x32xf32>
    %451 = arith.addf %449, %450 : vector<1x32xf32>
    %cst_182 = arith.constant 5.000000e-01 : f32
    %452 = vector.broadcast %cst_182 : f32 to vector<1x32xf32>
    %453 = arith.mulf %452, %451 : vector<1x32xf32>
    %454 = arith.mulf %443, %386 : vector<1x32xf32>
    %455 = arith.mulf %435, %445 : vector<1x32xf32>
    %456 = arith.addf %454, %455 : vector<1x32xf32>
    %457 = math.tanh %456 : vector<1x32xf32>
    %458 = arith.mulf %453, %457 : vector<1x32xf32>
    %c1_183 = arith.constant 1 : index
    %c32_184 = arith.constant 32 : index
    %459 = vector.load %arg20[%c1_183, %c32_184] : memref<7x64xf32, #tpu.memory_space<vmem>>, vector<1x32xf32>
    tpu.vector_store %arg20[%c1_183, %c32_184], %458 {strides = array<i32>} : memref<7x64xf32, #tpu.memory_space<vmem>>, vector<1x32xf32>,
    %c6_185 = arith.constant 6 : index
    %c0_186 = arith.constant 0 : index
    %460 = vector.load %arg19[%c6_185, %c0_186] : memref<7x256xf32, #tpu.memory_space<vmem>>, vector<1x128xf32>
    %cst_187 = arith.constant dense<0.000000e+00> : vector<1x128xf32>
    %461 = tpu.matmul %423, %34, %cst_187 {dimension_numbers = #tpu.dot_dimension_numbers<[1], [0], [0], [1], [0, 0, 1, 1], [], []>} : vector<1x32xf32>, vector<32x128xf32>, vector<1x128xf32> -> vector<1x128xf32>
    %462 = arith.addf %460, %461 : vector<1x128xf32>
    %463 = vector.extract_strided_slice %462 {offsets = [0, 0], sizes = [1, 32], strides = [1, 1]} : vector<1x128xf32> to vector<1x32xf32>
    %cst_188 = arith.constant 5.000000e-01 : f32
    %464 = vector.broadcast %cst_188 : f32 to vector<1x32xf32>
    %465 = arith.mulf %464, %463 : vector<1x32xf32>
    %466 = math.tanh %465 : vector<1x32xf32>
    %cst_189 = arith.constant 1.000000e+00 : f32
    %467 = vector.broadcast %cst_189 : f32 to vector<1x32xf32>
    %468 = arith.addf %466, %467 : vector<1x32xf32>
    %cst_190 = arith.constant 5.000000e-01 : f32
    %469 = vector.broadcast %cst_190 : f32 to vector<1x32xf32>
    %470 = arith.mulf %469, %468 : vector<1x32xf32>
    %471 = vector.extract_strided_slice %462 {offsets = [0, 32], sizes = [1, 32], strides = [1, 1]} : vector<1x128xf32> to vector<1x32xf32>
    %cst_191 = arith.constant 5.000000e-01 : f32
    %472 = vector.broadcast %cst_191 : f32 to vector<1x32xf32>
    %473 = arith.mulf %472, %471 : vector<1x32xf32>
    %474 = math.tanh %473 : vector<1x32xf32>
    %cst_192 = arith.constant 1.000000e+00 : f32
    %475 = vector.broadcast %cst_192 : f32 to vector<1x32xf32>
    %476 = arith.addf %474, %475 : vector<1x32xf32>
    %cst_193 = arith.constant 5.000000e-01 : f32
    %477 = vector.broadcast %cst_193 : f32 to vector<1x32xf32>
    %478 = arith.mulf %477, %476 : vector<1x32xf32>
    %479 = vector.extract_strided_slice %462 {offsets = [0, 64], sizes = [1, 32], strides = [1, 1]} : vector<1x128xf32> to vector<1x32xf32>
    %480 = math.tanh %479 : vector<1x32xf32>
    %481 = vector.extract_strided_slice %462 {offsets = [0, 96], sizes = [1, 32], strides = [1, 1]} : vector<1x128xf32> to vector<1x32xf32>
    %cst_194 = arith.constant 5.000000e-01 : f32
    %482 = vector.broadcast %cst_194 : f32 to vector<1x32xf32>
    %483 = arith.mulf %482, %481 : vector<1x32xf32>
    %484 = math.tanh %483 : vector<1x32xf32>
    %cst_195 = arith.constant 1.000000e+00 : f32
    %485 = vector.broadcast %cst_195 : f32 to vector<1x32xf32>
    %486 = arith.addf %484, %485 : vector<1x32xf32>
    %cst_196 = arith.constant 5.000000e-01 : f32
    %487 = vector.broadcast %cst_196 : f32 to vector<1x32xf32>
    %488 = arith.mulf %487, %486 : vector<1x32xf32>
    %489 = arith.mulf %478, %421 : vector<1x32xf32>
    %490 = arith.mulf %470, %480 : vector<1x32xf32>
    %491 = arith.addf %489, %490 : vector<1x32xf32>
    %492 = math.tanh %491 : vector<1x32xf32>
    %493 = arith.mulf %488, %492 : vector<1x32xf32>
    %c6_197 = arith.constant 6 : index
    %c0_198 = arith.constant 0 : index
    %494 = vector.load %arg20[%c6_197, %c0_198] : memref<7x64xf32, #tpu.memory_space<vmem>>, vector<1x32xf32>
    tpu.vector_store %arg20[%c6_197, %c0_198], %493 {strides = array<i32>} : memref<7x64xf32, #tpu.memory_space<vmem>>, vector<1x32xf32>,
    %c0_199 = arith.constant 0 : index
    %c128_200 = arith.constant 128 : index
    %495 = vector.load %arg19[%c0_199, %c128_200] : memref<7x256xf32, #tpu.memory_space<vmem>>, vector<1x128xf32>
    %cst_201 = arith.constant dense<0.000000e+00> : vector<1x128xf32>
    %496 = tpu.matmul %458, %35, %cst_201 {dimension_numbers = #tpu.dot_dimension_numbers<[1], [0], [0], [1], [0, 0, 1, 1], [], []>} : vector<1x32xf32>, vector<32x128xf32>, vector<1x128xf32> -> vector<1x128xf32>
    %497 = arith.addf %495, %496 : vector<1x128xf32>
    %498 = vector.extract_strided_slice %497 {offsets = [0, 0], sizes = [1, 32], strides = [1, 1]} : vector<1x128xf32> to vector<1x32xf32>
    %cst_202 = arith.constant 5.000000e-01 : f32
    %499 = vector.broadcast %cst_202 : f32 to vector<1x32xf32>
    %500 = arith.mulf %499, %498 : vector<1x32xf32>
    %501 = math.tanh %500 : vector<1x32xf32>
    %cst_203 = arith.constant 1.000000e+00 : f32
    %502 = vector.broadcast %cst_203 : f32 to vector<1x32xf32>
    %503 = arith.addf %501, %502 : vector<1x32xf32>
    %cst_204 = arith.constant 5.000000e-01 : f32
    %504 = vector.broadcast %cst_204 : f32 to vector<1x32xf32>
    %505 = arith.mulf %504, %503 : vector<1x32xf32>
    %506 = vector.extract_strided_slice %497 {offsets = [0, 32], sizes = [1, 32], strides = [1, 1]} : vector<1x128xf32> to vector<1x32xf32>
    %cst_205 = arith.constant 5.000000e-01 : f32
    %507 = vector.broadcast %cst_205 : f32 to vector<1x32xf32>
    %508 = arith.mulf %507, %506 : vector<1x32xf32>
    %509 = math.tanh %508 : vector<1x32xf32>
    %cst_206 = arith.constant 1.000000e+00 : f32
    %510 = vector.broadcast %cst_206 : f32 to vector<1x32xf32>
    %511 = arith.addf %509, %510 : vector<1x32xf32>
    %cst_207 = arith.constant 5.000000e-01 : f32
    %512 = vector.broadcast %cst_207 : f32 to vector<1x32xf32>
    %513 = arith.mulf %512, %511 : vector<1x32xf32>
    %514 = vector.extract_strided_slice %497 {offsets = [0, 64], sizes = [1, 32], strides = [1, 1]} : vector<1x128xf32> to vector<1x32xf32>
    %515 = math.tanh %514 : vector<1x32xf32>
    %516 = vector.extract_strided_slice %497 {offsets = [0, 96], sizes = [1, 32], strides = [1, 1]} : vector<1x128xf32> to vector<1x32xf32>
    %cst_208 = arith.constant 5.000000e-01 : f32
    %517 = vector.broadcast %cst_208 : f32 to vector<1x32xf32>
    %518 = arith.mulf %517, %516 : vector<1x32xf32>
    %519 = math.tanh %518 : vector<1x32xf32>
    %cst_209 = arith.constant 1.000000e+00 : f32
    %520 = vector.broadcast %cst_209 : f32 to vector<1x32xf32>
    %521 = arith.addf %519, %520 : vector<1x32xf32>
    %cst_210 = arith.constant 5.000000e-01 : f32
    %522 = vector.broadcast %cst_210 : f32 to vector<1x32xf32>
    %523 = arith.mulf %522, %521 : vector<1x32xf32>
    %524 = arith.mulf %513, %456 : vector<1x32xf32>
    %525 = arith.mulf %505, %515 : vector<1x32xf32>
    %526 = arith.addf %524, %525 : vector<1x32xf32>
    %527 = math.tanh %526 : vector<1x32xf32>
    %528 = arith.mulf %523, %527 : vector<1x32xf32>
    %c0_211 = arith.constant 0 : index
    %c32_212 = arith.constant 32 : index
    %529 = vector.load %arg20[%c0_211, %c32_212] : memref<7x64xf32, #tpu.memory_space<vmem>>, vector<1x32xf32>
    tpu.vector_store %arg20[%c0_211, %c32_212], %528 {strides = array<i32>} : memref<7x64xf32, #tpu.memory_space<vmem>>, vector<1x32xf32>,
    %c0_213 = arith.constant 0 : index
    %c0_214 = arith.constant 0 : index
    %530 = vector.load %arg20[%c0_213, %c0_214] : memref<7x64xf32, #tpu.memory_space<vmem>>, vector<7x64xf32>
    %c0_215 = arith.constant 0 : index
    %c0_216 = arith.constant 0 : index
    %531 = vector.load %arg8[%c0_215, %c0_216] : memref<64x192xf32, #tpu.memory_space<vmem>>, vector<64x192xf32>
    %cst_217 = arith.constant dense<0.000000e+00> : vector<7x192xf32>
    %532 = tpu.matmul %530, %531, %cst_217 {dimension_numbers = #tpu.dot_dimension_numbers<[1], [0], [0], [1], [0, 0, 1, 1], [], []>} : vector<7x64xf32>, vector<64x192xf32>, vector<7x192xf32> -> vector<7x192xf32>
    %c0_218 = arith.constant 0 : index
    %c0_219 = arith.constant 0 : index
    %533 = vector.load %arg9[%c0_218, %c0_219] : memref<1x192xf32, #tpu.memory_space<vmem>>, vector<1x192xf32>
    %534 = vector.broadcast %533 : vector<1x192xf32> to vector<7x192xf32>
    %535 = arith.addf %532, %534 : vector<7x192xf32>
    %c0_220 = arith.constant 0 : index
    %c0_221 = arith.constant 0 : index
    %536 = vector.load %arg10[%c0_220, %c0_221] : memref<7x64xf32, #tpu.memory_space<vmem>>, vector<7x64xf32>
    %c0_222 = arith.constant 0 : index
    %c0_223 = arith.constant 0 : index
    %537 = vector.load %arg11[%c0_222, %c0_223] : memref<64x64xf32, #tpu.memory_space<vmem>>, vector<64x64xf32>
    %cst_224 = arith.constant dense<0.000000e+00> : vector<7x64xf32>
    %538 = tpu.matmul %536, %537, %cst_224 {dimension_numbers = #tpu.dot_dimension_numbers<[1], [0], [0], [1], [0, 0, 1, 1], [], []>} : vector<7x64xf32>, vector<64x64xf32>, vector<7x64xf32> -> vector<7x64xf32>
    %539 = vector.extract_strided_slice %535 {offsets = [0, 0], sizes = [7, 64], strides = [1, 1]} : vector<7x192xf32> to vector<7x64xf32>
    %540 = vector.extract_strided_slice %535 {offsets = [0, 64], sizes = [7, 64], strides = [1, 1]} : vector<7x192xf32> to vector<7x64xf32>
    %541 = vector.extract_strided_slice %535 {offsets = [0, 128], sizes = [7, 64], strides = [1, 1]} : vector<7x192xf32> to vector<7x64xf32>
    %c0_225 = arith.constant 0 : index
    %c0_226 = arith.constant 0 : index
    %542 = vector.load %arg12[%c0_225, %c0_226] : memref<1x64xf32, #tpu.memory_space<vmem>>, vector<1x64xf32>
    %543 = vector.broadcast %542 : vector<1x64xf32> to vector<7x64xf32>
    %544 = arith.addf %539, %543 : vector<7x64xf32>
    %c0_227 = arith.constant 0 : index
    %c0_228 = arith.constant 0 : index
    %545 = vector.load %arg13[%c0_227, %c0_228] : memref<1x64xf32, #tpu.memory_space<vmem>>, vector<1x64xf32>
    %546 = vector.broadcast %545 : vector<1x64xf32> to vector<7x64xf32>
    %547 = arith.addf %539, %546 : vector<7x64xf32>
    %548 = tpu.iota {dimensions = array<i32: 0>} : vector<7x7xi32>
    %549 = vector.extract_strided_slice %544 {offsets = [0, 0], sizes = [7, 16], strides = [1, 1]} : vector<7x64xf32> to vector<7x16xf32>
    %550 = vector.extract_strided_slice %547 {offsets = [0, 0], sizes = [7, 16], strides = [1, 1]} : vector<7x64xf32> to vector<7x16xf32>
    %551 = vector.extract_strided_slice %540 {offsets = [0, 0], sizes = [7, 16], strides = [1, 1]} : vector<7x64xf32> to vector<7x16xf32>
    %552 = vector.extract_strided_slice %541 {offsets = [0, 0], sizes = [7, 16], strides = [1, 1]} : vector<7x64xf32> to vector<7x16xf32>
    %553 = vector.extract_strided_slice %538 {offsets = [0, 0], sizes = [7, 16], strides = [1, 1]} : vector<7x64xf32> to vector<7x16xf32>
    %cst_229 = arith.constant dense<0.000000e+00> : vector<7x7xf32>
    %554 = tpu.matmul %549, %551, %cst_229 {dimension_numbers = #tpu.dot_dimension_numbers<[1], [1], [0], [0], [0, 0, 1, 0], [], []>} : vector<7x16xf32>, vector<7x16xf32>, vector<7x7xf32> -> vector<7x7xf32>
    %cst_230 = arith.constant dense<0.000000e+00> : vector<7x7xf32>
    %555 = tpu.matmul %550, %553, %cst_230 {dimension_numbers = #tpu.dot_dimension_numbers<[1], [1], [0], [0], [0, 0, 1, 0], [], []>} : vector<7x16xf32>, vector<7x16xf32>, vector<7x7xf32> -> vector<7x7xf32>
    %cst_231 = arith.constant 0.000000e+00 : f32
    %556 = vector.broadcast %cst_231 : f32 to vector<7x15xf32>
    %c0_232 = arith.constant 0 : index
    %c0_233 = arith.constant 0 : index
    %557 = vector.load %arg21[%c0_232, %c0_233] : memref<7x15xf32, #tpu.memory_space<vmem>>, vector<7x15xf32>
    tpu.vector_store %arg21[%c0_232, %c0_233], %556 {strides = array<i32>} : memref<7x15xf32, #tpu.memory_space<vmem>>, vector<7x15xf32>,
    %c0_234 = arith.constant 0 : index
    %c0_235 = arith.constant 0 : index
    %558 = vector.load %arg21[%c0_234, %c0_235] : memref<7x15xf32, #tpu.memory_space<vmem>>, vector<7x7xf32>
    tpu.vector_store %arg21[%c0_234, %c0_235], %555 {strides = array<i32>} : memref<7x15xf32, #tpu.memory_space<vmem>>, vector<7x7xf32>,
    %c1_236 = arith.constant 1 : index
    %c0_237 = arith.constant 0 : index
    %559 = vector.load %arg21[%c1_236, %c0_237] : memref<7x15xf32, #tpu.memory_space<vmem>>, vector<6x7xf32>
    %c0_238 = arith.constant 0 : index
    %c8 = arith.constant 8 : index
    %560 = vector.load %arg21[%c0_238, %c8] : memref<7x15xf32, #tpu.memory_space<vmem>>, vector<6x7xf32>
    tpu.vector_store %arg21[%c0_238, %c8], %559 {strides = array<i32>} : memref<7x15xf32, #tpu.memory_space<vmem>>, vector<6x7xf32>,
    %cst_239 = arith.constant 0.000000e+00 : f32
    %561 = vector.broadcast %cst_239 : f32 to vector<7x7xf32>
    %c6_i32 = arith.constant 6 : i32
    %562 = vector.broadcast %c6_i32 : i32 to vector<7x7xi32>
    %563 = arith.cmpi eq, %548, %562 : vector<7x7xi32>
    %c0_240 = arith.constant 0 : index
    %c0_241 = arith.constant 0 : index
    %564 = vector.load %arg21[%c0_240, %c0_241] : memref<7x15xf32, #tpu.memory_space<vmem>>, vector<7x7xf32>
    %cst_242 = arith.constant 0.000000e+00 : f32
    %565 = vector.broadcast %cst_242 : f32 to vector<7x7xf32>
    %566 = arith.select %563, %564, %565 : vector<7x7xi1>, vector<7x7xf32>
    %567 = arith.addf %561, %566 : vector<7x7xf32>
    %c5_i32 = arith.constant 5 : i32
    %568 = vector.broadcast %c5_i32 : i32 to vector<7x7xi32>
    %569 = arith.cmpi eq, %548, %568 : vector<7x7xi32>
    %c0_243 = arith.constant 0 : index
    %c1_244 = arith.constant 1 : index
    %570 = vector.load %arg21[%c0_243, %c1_244] : memref<7x15xf32, #tpu.memory_space<vmem>>, vector<7x7xf32>
    %cst_245 = arith.constant 0.000000e+00 : f32
    %571 = vector.broadcast %cst_245 : f32 to vector<7x7xf32>
    %572 = arith.select %569, %570, %571 : vector<7x7xi1>, vector<7x7xf32>
    %573 = arith.addf %567, %572 : vector<7x7xf32>
    %c4_i32 = arith.constant 4 : i32
    %574 = vector.broadcast %c4_i32 : i32 to vector<7x7xi32>
    %575 = arith.cmpi eq, %548, %574 : vector<7x7xi32>
    %c0_246 = arith.constant 0 : index
    %c2_247 = arith.constant 2 : index
    %576 = vector.load %arg21[%c0_246, %c2_247] : memref<7x15xf32, #tpu.memory_space<vmem>>, vector<7x7xf32>
    %cst_248 = arith.constant 0.000000e+00 : f32
    %577 = vector.broadcast %cst_248 : f32 to vector<7x7xf32>
    %578 = arith.select %575, %576, %577 : vector<7x7xi1>, vector<7x7xf32>
    %579 = arith.addf %573, %578 : vector<7x7xf32>
    %c3_i32 = arith.constant 3 : i32
    %580 = vector.broadcast %c3_i32 : i32 to vector<7x7xi32>
    %581 = arith.cmpi eq, %548, %580 : vector<7x7xi32>
    %c0_249 = arith.constant 0 : index
    %c3_250 = arith.constant 3 : index
    %582 = vector.load %arg21[%c0_249, %c3_250] : memref<7x15xf32, #tpu.memory_space<vmem>>, vector<7x7xf32>
    %cst_251 = arith.constant 0.000000e+00 : f32
    %583 = vector.broadcast %cst_251 : f32 to vector<7x7xf32>
    %584 = arith.select %581, %582, %583 : vector<7x7xi1>, vector<7x7xf32>
    %585 = arith.addf %579, %584 : vector<7x7xf32>
    %c2_i32 = arith.constant 2 : i32
    %586 = vector.broadcast %c2_i32 : i32 to vector<7x7xi32>
    %587 = arith.cmpi eq, %548, %586 : vector<7x7xi32>
    %c0_252 = arith.constant 0 : index
    %c4_253 = arith.constant 4 : index
    %588 = vector.load %arg21[%c0_252, %c4_253] : memref<7x15xf32, #tpu.memory_space<vmem>>, vector<7x7xf32>
    %cst_254 = arith.constant 0.000000e+00 : f32
    %589 = vector.broadcast %cst_254 : f32 to vector<7x7xf32>
    %590 = arith.select %587, %588, %589 : vector<7x7xi1>, vector<7x7xf32>
    %591 = arith.addf %585, %590 : vector<7x7xf32>
    %c1_i32 = arith.constant 1 : i32
    %592 = vector.broadcast %c1_i32 : i32 to vector<7x7xi32>
    %593 = arith.cmpi eq, %548, %592 : vector<7x7xi32>
    %c0_255 = arith.constant 0 : index
    %c5_256 = arith.constant 5 : index
    %594 = vector.load %arg21[%c0_255, %c5_256] : memref<7x15xf32, #tpu.memory_space<vmem>>, vector<7x7xf32>
    %cst_257 = arith.constant 0.000000e+00 : f32
    %595 = vector.broadcast %cst_257 : f32 to vector<7x7xf32>
    %596 = arith.select %593, %594, %595 : vector<7x7xi1>, vector<7x7xf32>
    %597 = arith.addf %591, %596 : vector<7x7xf32>
    %c0_i32 = arith.constant 0 : i32
    %598 = vector.broadcast %c0_i32 : i32 to vector<7x7xi32>
    %599 = arith.cmpi eq, %548, %598 : vector<7x7xi32>
    %c0_258 = arith.constant 0 : index
    %c6_259 = arith.constant 6 : index
    %600 = vector.load %arg21[%c0_258, %c6_259] : memref<7x15xf32, #tpu.memory_space<vmem>>, vector<7x7xf32>
    %cst_260 = arith.constant 0.000000e+00 : f32
    %601 = vector.broadcast %cst_260 : f32 to vector<7x7xf32>
    %602 = arith.select %599, %600, %601 : vector<7x7xi1>, vector<7x7xf32>
    %603 = arith.addf %597, %602 : vector<7x7xf32>
    %604 = arith.addf %554, %603 : vector<7x7xf32>
    %cst_261 = arith.constant 1.250000e-01 : f32
    %605 = vector.broadcast %cst_261 : f32 to vector<7x7xf32>
    %606 = arith.mulf %604, %605 : vector<7x7xf32>
    %cst_262 = arith.constant dense<0xFF800000> : vector<7xf32>
    %607 = vector.multi_reduction <maximumf>, %606, %cst_262 [1] : vector<7x7xf32> to vector<7xf32>
    %608 = vector.shape_cast %607 : vector<7xf32> to vector<7x1xf32>
    %609 = vector.broadcast %608 : vector<7x1xf32> to vector<7x7xf32>
    %610 = arith.subf %606, %609 : vector<7x7xf32>
    %611 = math.exp %610 : vector<7x7xf32>
    %cst_263 = arith.constant dense<0.000000e+00> : vector<7xf32>
    %612 = vector.multi_reduction <add>, %611, %cst_263 [1] : vector<7x7xf32> to vector<7xf32>
    %613 = vector.shape_cast %612 : vector<7xf32> to vector<7x1xf32>
    %614 = tpu.reciprocal %613 {approx = true} : vector<7x1xf32> -> vector<7x1xf32>
    %615 = vector.broadcast %614 : vector<7x1xf32> to vector<7x7xf32>
    %616 = arith.mulf %611, %615 : vector<7x7xf32>
    %cst_264 = arith.constant dense<0.000000e+00> : vector<7x16xf32>
    %617 = tpu.matmul %616, %552, %cst_264 {dimension_numbers = #tpu.dot_dimension_numbers<[1], [0], [0], [1], [0, 0, 1, 1], [], []>} : vector<7x7xf32>, vector<7x16xf32>, vector<7x16xf32> -> vector<7x16xf32>
    %c0_265 = arith.constant 0 : index
    %c0_266 = arith.constant 0 : index
    %618 = vector.load %arg22[%c0_265, %c0_266] : memref<7x64xf32, #tpu.memory_space<vmem>>, vector<7x16xf32>
    tpu.vector_store %arg22[%c0_265, %c0_266], %617 {strides = array<i32>} : memref<7x64xf32, #tpu.memory_space<vmem>>, vector<7x16xf32>,
    %619 = vector.extract_strided_slice %544 {offsets = [0, 16], sizes = [7, 16], strides = [1, 1]} : vector<7x64xf32> to vector<7x16xf32>
    %620 = vector.extract_strided_slice %547 {offsets = [0, 16], sizes = [7, 16], strides = [1, 1]} : vector<7x64xf32> to vector<7x16xf32>
    %621 = vector.extract_strided_slice %540 {offsets = [0, 16], sizes = [7, 16], strides = [1, 1]} : vector<7x64xf32> to vector<7x16xf32>
    %622 = vector.extract_strided_slice %541 {offsets = [0, 16], sizes = [7, 16], strides = [1, 1]} : vector<7x64xf32> to vector<7x16xf32>
    %623 = vector.extract_strided_slice %538 {offsets = [0, 16], sizes = [7, 16], strides = [1, 1]} : vector<7x64xf32> to vector<7x16xf32>
    %cst_267 = arith.constant dense<0.000000e+00> : vector<7x7xf32>
    %624 = tpu.matmul %619, %621, %cst_267 {dimension_numbers = #tpu.dot_dimension_numbers<[1], [1], [0], [0], [0, 0, 1, 0], [], []>} : vector<7x16xf32>, vector<7x16xf32>, vector<7x7xf32> -> vector<7x7xf32>
    %cst_268 = arith.constant dense<0.000000e+00> : vector<7x7xf32>
    %625 = tpu.matmul %620, %623, %cst_268 {dimension_numbers = #tpu.dot_dimension_numbers<[1], [1], [0], [0], [0, 0, 1, 0], [], []>} : vector<7x16xf32>, vector<7x16xf32>, vector<7x7xf32> -> vector<7x7xf32>
    %cst_269 = arith.constant 0.000000e+00 : f32
    %626 = vector.broadcast %cst_269 : f32 to vector<7x15xf32>
    %c0_270 = arith.constant 0 : index
    %c0_271 = arith.constant 0 : index
    %627 = vector.load %arg21[%c0_270, %c0_271] : memref<7x15xf32, #tpu.memory_space<vmem>>, vector<7x15xf32>
    tpu.vector_store %arg21[%c0_270, %c0_271], %626 {strides = array<i32>} : memref<7x15xf32, #tpu.memory_space<vmem>>, vector<7x15xf32>,
    %c0_272 = arith.constant 0 : index
    %c0_273 = arith.constant 0 : index
    %628 = vector.load %arg21[%c0_272, %c0_273] : memref<7x15xf32, #tpu.memory_space<vmem>>, vector<7x7xf32>
    tpu.vector_store %arg21[%c0_272, %c0_273], %625 {strides = array<i32>} : memref<7x15xf32, #tpu.memory_space<vmem>>, vector<7x7xf32>,
    %c1_274 = arith.constant 1 : index
    %c0_275 = arith.constant 0 : index
    %629 = vector.load %arg21[%c1_274, %c0_275] : memref<7x15xf32, #tpu.memory_space<vmem>>, vector<6x7xf32>
    %c0_276 = arith.constant 0 : index
    %c8_277 = arith.constant 8 : index
    %630 = vector.load %arg21[%c0_276, %c8_277] : memref<7x15xf32, #tpu.memory_space<vmem>>, vector<6x7xf32>
    tpu.vector_store %arg21[%c0_276, %c8_277], %629 {strides = array<i32>} : memref<7x15xf32, #tpu.memory_space<vmem>>, vector<6x7xf32>,
    %cst_278 = arith.constant 0.000000e+00 : f32
    %631 = vector.broadcast %cst_278 : f32 to vector<7x7xf32>
    %c6_i32_279 = arith.constant 6 : i32
    %632 = vector.broadcast %c6_i32_279 : i32 to vector<7x7xi32>
    %633 = arith.cmpi eq, %548, %632 : vector<7x7xi32>
    %c0_280 = arith.constant 0 : index
    %c0_281 = arith.constant 0 : index
    %634 = vector.load %arg21[%c0_280, %c0_281] : memref<7x15xf32, #tpu.memory_space<vmem>>, vector<7x7xf32>
    %cst_282 = arith.constant 0.000000e+00 : f32
    %635 = vector.broadcast %cst_282 : f32 to vector<7x7xf32>
    %636 = arith.select %633, %634, %635 : vector<7x7xi1>, vector<7x7xf32>
    %637 = arith.addf %631, %636 : vector<7x7xf32>
    %c5_i32_283 = arith.constant 5 : i32
    %638 = vector.broadcast %c5_i32_283 : i32 to vector<7x7xi32>
    %639 = arith.cmpi eq, %548, %638 : vector<7x7xi32>
    %c0_284 = arith.constant 0 : index
    %c1_285 = arith.constant 1 : index
    %640 = vector.load %arg21[%c0_284, %c1_285] : memref<7x15xf32, #tpu.memory_space<vmem>>, vector<7x7xf32>
    %cst_286 = arith.constant 0.000000e+00 : f32
    %641 = vector.broadcast %cst_286 : f32 to vector<7x7xf32>
    %642 = arith.select %639, %640, %641 : vector<7x7xi1>, vector<7x7xf32>
    %643 = arith.addf %637, %642 : vector<7x7xf32>
    %c4_i32_287 = arith.constant 4 : i32
    %644 = vector.broadcast %c4_i32_287 : i32 to vector<7x7xi32>
    %645 = arith.cmpi eq, %548, %644 : vector<7x7xi32>
    %c0_288 = arith.constant 0 : index
    %c2_289 = arith.constant 2 : index
    %646 = vector.load %arg21[%c0_288, %c2_289] : memref<7x15xf32, #tpu.memory_space<vmem>>, vector<7x7xf32>
    %cst_290 = arith.constant 0.000000e+00 : f32
    %647 = vector.broadcast %cst_290 : f32 to vector<7x7xf32>
    %648 = arith.select %645, %646, %647 : vector<7x7xi1>, vector<7x7xf32>
    %649 = arith.addf %643, %648 : vector<7x7xf32>
    %c3_i32_291 = arith.constant 3 : i32
    %650 = vector.broadcast %c3_i32_291 : i32 to vector<7x7xi32>
    %651 = arith.cmpi eq, %548, %650 : vector<7x7xi32>
    %c0_292 = arith.constant 0 : index
    %c3_293 = arith.constant 3 : index
    %652 = vector.load %arg21[%c0_292, %c3_293] : memref<7x15xf32, #tpu.memory_space<vmem>>, vector<7x7xf32>
    %cst_294 = arith.constant 0.000000e+00 : f32
    %653 = vector.broadcast %cst_294 : f32 to vector<7x7xf32>
    %654 = arith.select %651, %652, %653 : vector<7x7xi1>, vector<7x7xf32>
    %655 = arith.addf %649, %654 : vector<7x7xf32>
    %c2_i32_295 = arith.constant 2 : i32
    %656 = vector.broadcast %c2_i32_295 : i32 to vector<7x7xi32>
    %657 = arith.cmpi eq, %548, %656 : vector<7x7xi32>
    %c0_296 = arith.constant 0 : index
    %c4_297 = arith.constant 4 : index
    %658 = vector.load %arg21[%c0_296, %c4_297] : memref<7x15xf32, #tpu.memory_space<vmem>>, vector<7x7xf32>
    %cst_298 = arith.constant 0.000000e+00 : f32
    %659 = vector.broadcast %cst_298 : f32 to vector<7x7xf32>
    %660 = arith.select %657, %658, %659 : vector<7x7xi1>, vector<7x7xf32>
    %661 = arith.addf %655, %660 : vector<7x7xf32>
    %c1_i32_299 = arith.constant 1 : i32
    %662 = vector.broadcast %c1_i32_299 : i32 to vector<7x7xi32>
    %663 = arith.cmpi eq, %548, %662 : vector<7x7xi32>
    %c0_300 = arith.constant 0 : index
    %c5_301 = arith.constant 5 : index
    %664 = vector.load %arg21[%c0_300, %c5_301] : memref<7x15xf32, #tpu.memory_space<vmem>>, vector<7x7xf32>
    %cst_302 = arith.constant 0.000000e+00 : f32
    %665 = vector.broadcast %cst_302 : f32 to vector<7x7xf32>
    %666 = arith.select %663, %664, %665 : vector<7x7xi1>, vector<7x7xf32>
    %667 = arith.addf %661, %666 : vector<7x7xf32>
    %c0_i32_303 = arith.constant 0 : i32
    %668 = vector.broadcast %c0_i32_303 : i32 to vector<7x7xi32>
    %669 = arith.cmpi eq, %548, %668 : vector<7x7xi32>
    %c0_304 = arith.constant 0 : index
    %c6_305 = arith.constant 6 : index
    %670 = vector.load %arg21[%c0_304, %c6_305] : memref<7x15xf32, #tpu.memory_space<vmem>>, vector<7x7xf32>
    %cst_306 = arith.constant 0.000000e+00 : f32
    %671 = vector.broadcast %cst_306 : f32 to vector<7x7xf32>
    %672 = arith.select %669, %670, %671 : vector<7x7xi1>, vector<7x7xf32>
    %673 = arith.addf %667, %672 : vector<7x7xf32>
    %674 = arith.addf %624, %673 : vector<7x7xf32>
    %cst_307 = arith.constant 1.250000e-01 : f32
    %675 = vector.broadcast %cst_307 : f32 to vector<7x7xf32>
    %676 = arith.mulf %674, %675 : vector<7x7xf32>
    %cst_308 = arith.constant dense<0xFF800000> : vector<7xf32>
    %677 = vector.multi_reduction <maximumf>, %676, %cst_308 [1] : vector<7x7xf32> to vector<7xf32>
    %678 = vector.shape_cast %677 : vector<7xf32> to vector<7x1xf32>
    %679 = vector.broadcast %678 : vector<7x1xf32> to vector<7x7xf32>
    %680 = arith.subf %676, %679 : vector<7x7xf32>
    %681 = math.exp %680 : vector<7x7xf32>
    %cst_309 = arith.constant dense<0.000000e+00> : vector<7xf32>
    %682 = vector.multi_reduction <add>, %681, %cst_309 [1] : vector<7x7xf32> to vector<7xf32>
    %683 = vector.shape_cast %682 : vector<7xf32> to vector<7x1xf32>
    %684 = tpu.reciprocal %683 {approx = true} : vector<7x1xf32> -> vector<7x1xf32>
    %685 = vector.broadcast %684 : vector<7x1xf32> to vector<7x7xf32>
    %686 = arith.mulf %681, %685 : vector<7x7xf32>
    %cst_310 = arith.constant dense<0.000000e+00> : vector<7x16xf32>
    %687 = tpu.matmul %686, %622, %cst_310 {dimension_numbers = #tpu.dot_dimension_numbers<[1], [0], [0], [1], [0, 0, 1, 1], [], []>} : vector<7x7xf32>, vector<7x16xf32>, vector<7x16xf32> -> vector<7x16xf32>
    %c0_311 = arith.constant 0 : index
    %c16 = arith.constant 16 : index
    %688 = vector.load %arg22[%c0_311, %c16] : memref<7x64xf32, #tpu.memory_space<vmem>>, vector<7x16xf32>
    tpu.vector_store %arg22[%c0_311, %c16], %687 {strides = array<i32>} : memref<7x64xf32, #tpu.memory_space<vmem>>, vector<7x16xf32>,
    %689 = vector.extract_strided_slice %544 {offsets = [0, 32], sizes = [7, 16], strides = [1, 1]} : vector<7x64xf32> to vector<7x16xf32>
    %690 = vector.extract_strided_slice %547 {offsets = [0, 32], sizes = [7, 16], strides = [1, 1]} : vector<7x64xf32> to vector<7x16xf32>
    %691 = vector.extract_strided_slice %540 {offsets = [0, 32], sizes = [7, 16], strides = [1, 1]} : vector<7x64xf32> to vector<7x16xf32>
    %692 = vector.extract_strided_slice %541 {offsets = [0, 32], sizes = [7, 16], strides = [1, 1]} : vector<7x64xf32> to vector<7x16xf32>
    %693 = vector.extract_strided_slice %538 {offsets = [0, 32], sizes = [7, 16], strides = [1, 1]} : vector<7x64xf32> to vector<7x16xf32>
    %cst_312 = arith.constant dense<0.000000e+00> : vector<7x7xf32>
    %694 = tpu.matmul %689, %691, %cst_312 {dimension_numbers = #tpu.dot_dimension_numbers<[1], [1], [0], [0], [0, 0, 1, 0], [], []>} : vector<7x16xf32>, vector<7x16xf32>, vector<7x7xf32> -> vector<7x7xf32>
    %cst_313 = arith.constant dense<0.000000e+00> : vector<7x7xf32>
    %695 = tpu.matmul %690, %693, %cst_313 {dimension_numbers = #tpu.dot_dimension_numbers<[1], [1], [0], [0], [0, 0, 1, 0], [], []>} : vector<7x16xf32>, vector<7x16xf32>, vector<7x7xf32> -> vector<7x7xf32>
    %cst_314 = arith.constant 0.000000e+00 : f32
    %696 = vector.broadcast %cst_314 : f32 to vector<7x15xf32>
    %c0_315 = arith.constant 0 : index
    %c0_316 = arith.constant 0 : index
    %697 = vector.load %arg21[%c0_315, %c0_316] : memref<7x15xf32, #tpu.memory_space<vmem>>, vector<7x15xf32>
    tpu.vector_store %arg21[%c0_315, %c0_316], %696 {strides = array<i32>} : memref<7x15xf32, #tpu.memory_space<vmem>>, vector<7x15xf32>,
    %c0_317 = arith.constant 0 : index
    %c0_318 = arith.constant 0 : index
    %698 = vector.load %arg21[%c0_317, %c0_318] : memref<7x15xf32, #tpu.memory_space<vmem>>, vector<7x7xf32>
    tpu.vector_store %arg21[%c0_317, %c0_318], %695 {strides = array<i32>} : memref<7x15xf32, #tpu.memory_space<vmem>>, vector<7x7xf32>,
    %c1_319 = arith.constant 1 : index
    %c0_320 = arith.constant 0 : index
    %699 = vector.load %arg21[%c1_319, %c0_320] : memref<7x15xf32, #tpu.memory_space<vmem>>, vector<6x7xf32>
    %c0_321 = arith.constant 0 : index
    %c8_322 = arith.constant 8 : index
    %700 = vector.load %arg21[%c0_321, %c8_322] : memref<7x15xf32, #tpu.memory_space<vmem>>, vector<6x7xf32>
    tpu.vector_store %arg21[%c0_321, %c8_322], %699 {strides = array<i32>} : memref<7x15xf32, #tpu.memory_space<vmem>>, vector<6x7xf32>,
    %cst_323 = arith.constant 0.000000e+00 : f32
    %701 = vector.broadcast %cst_323 : f32 to vector<7x7xf32>
    %c6_i32_324 = arith.constant 6 : i32
    %702 = vector.broadcast %c6_i32_324 : i32 to vector<7x7xi32>
    %703 = arith.cmpi eq, %548, %702 : vector<7x7xi32>
    %c0_325 = arith.constant 0 : index
    %c0_326 = arith.constant 0 : index
    %704 = vector.load %arg21[%c0_325, %c0_326] : memref<7x15xf32, #tpu.memory_space<vmem>>, vector<7x7xf32>
    %cst_327 = arith.constant 0.000000e+00 : f32
    %705 = vector.broadcast %cst_327 : f32 to vector<7x7xf32>
    %706 = arith.select %703, %704, %705 : vector<7x7xi1>, vector<7x7xf32>
    %707 = arith.addf %701, %706 : vector<7x7xf32>
    %c5_i32_328 = arith.constant 5 : i32
    %708 = vector.broadcast %c5_i32_328 : i32 to vector<7x7xi32>
    %709 = arith.cmpi eq, %548, %708 : vector<7x7xi32>
    %c0_329 = arith.constant 0 : index
    %c1_330 = arith.constant 1 : index
    %710 = vector.load %arg21[%c0_329, %c1_330] : memref<7x15xf32, #tpu.memory_space<vmem>>, vector<7x7xf32>
    %cst_331 = arith.constant 0.000000e+00 : f32
    %711 = vector.broadcast %cst_331 : f32 to vector<7x7xf32>
    %712 = arith.select %709, %710, %711 : vector<7x7xi1>, vector<7x7xf32>
    %713 = arith.addf %707, %712 : vector<7x7xf32>
    %c4_i32_332 = arith.constant 4 : i32
    %714 = vector.broadcast %c4_i32_332 : i32 to vector<7x7xi32>
    %715 = arith.cmpi eq, %548, %714 : vector<7x7xi32>
    %c0_333 = arith.constant 0 : index
    %c2_334 = arith.constant 2 : index
    %716 = vector.load %arg21[%c0_333, %c2_334] : memref<7x15xf32, #tpu.memory_space<vmem>>, vector<7x7xf32>
    %cst_335 = arith.constant 0.000000e+00 : f32
    %717 = vector.broadcast %cst_335 : f32 to vector<7x7xf32>
    %718 = arith.select %715, %716, %717 : vector<7x7xi1>, vector<7x7xf32>
    %719 = arith.addf %713, %718 : vector<7x7xf32>
    %c3_i32_336 = arith.constant 3 : i32
    %720 = vector.broadcast %c3_i32_336 : i32 to vector<7x7xi32>
    %721 = arith.cmpi eq, %548, %720 : vector<7x7xi32>
    %c0_337 = arith.constant 0 : index
    %c3_338 = arith.constant 3 : index
    %722 = vector.load %arg21[%c0_337, %c3_338] : memref<7x15xf32, #tpu.memory_space<vmem>>, vector<7x7xf32>
    %cst_339 = arith.constant 0.000000e+00 : f32
    %723 = vector.broadcast %cst_339 : f32 to vector<7x7xf32>
    %724 = arith.select %721, %722, %723 : vector<7x7xi1>, vector<7x7xf32>
    %725 = arith.addf %719, %724 : vector<7x7xf32>
    %c2_i32_340 = arith.constant 2 : i32
    %726 = vector.broadcast %c2_i32_340 : i32 to vector<7x7xi32>
    %727 = arith.cmpi eq, %548, %726 : vector<7x7xi32>
    %c0_341 = arith.constant 0 : index
    %c4_342 = arith.constant 4 : index
    %728 = vector.load %arg21[%c0_341, %c4_342] : memref<7x15xf32, #tpu.memory_space<vmem>>, vector<7x7xf32>
    %cst_343 = arith.constant 0.000000e+00 : f32
    %729 = vector.broadcast %cst_343 : f32 to vector<7x7xf32>
    %730 = arith.select %727, %728, %729 : vector<7x7xi1>, vector<7x7xf32>
    %731 = arith.addf %725, %730 : vector<7x7xf32>
    %c1_i32_344 = arith.constant 1 : i32
    %732 = vector.broadcast %c1_i32_344 : i32 to vector<7x7xi32>
    %733 = arith.cmpi eq, %548, %732 : vector<7x7xi32>
    %c0_345 = arith.constant 0 : index
    %c5_346 = arith.constant 5 : index
    %734 = vector.load %arg21[%c0_345, %c5_346] : memref<7x15xf32, #tpu.memory_space<vmem>>, vector<7x7xf32>
    %cst_347 = arith.constant 0.000000e+00 : f32
    %735 = vector.broadcast %cst_347 : f32 to vector<7x7xf32>
    %736 = arith.select %733, %734, %735 : vector<7x7xi1>, vector<7x7xf32>
    %737 = arith.addf %731, %736 : vector<7x7xf32>
    %c0_i32_348 = arith.constant 0 : i32
    %738 = vector.broadcast %c0_i32_348 : i32 to vector<7x7xi32>
    %739 = arith.cmpi eq, %548, %738 : vector<7x7xi32>
    %c0_349 = arith.constant 0 : index
    %c6_350 = arith.constant 6 : index
    %740 = vector.load %arg21[%c0_349, %c6_350] : memref<7x15xf32, #tpu.memory_space<vmem>>, vector<7x7xf32>
    %cst_351 = arith.constant 0.000000e+00 : f32
    %741 = vector.broadcast %cst_351 : f32 to vector<7x7xf32>
    %742 = arith.select %739, %740, %741 : vector<7x7xi1>, vector<7x7xf32>
    %743 = arith.addf %737, %742 : vector<7x7xf32>
    %744 = arith.addf %694, %743 : vector<7x7xf32>
    %cst_352 = arith.constant 1.250000e-01 : f32
    %745 = vector.broadcast %cst_352 : f32 to vector<7x7xf32>
    %746 = arith.mulf %744, %745 : vector<7x7xf32>
    %cst_353 = arith.constant dense<0xFF800000> : vector<7xf32>
    %747 = vector.multi_reduction <maximumf>, %746, %cst_353 [1] : vector<7x7xf32> to vector<7xf32>
    %748 = vector.shape_cast %747 : vector<7xf32> to vector<7x1xf32>
    %749 = vector.broadcast %748 : vector<7x1xf32> to vector<7x7xf32>
    %750 = arith.subf %746, %749 : vector<7x7xf32>
    %751 = math.exp %750 : vector<7x7xf32>
    %cst_354 = arith.constant dense<0.000000e+00> : vector<7xf32>
    %752 = vector.multi_reduction <add>, %751, %cst_354 [1] : vector<7x7xf32> to vector<7xf32>
    %753 = vector.shape_cast %752 : vector<7xf32> to vector<7x1xf32>
    %754 = tpu.reciprocal %753 {approx = true} : vector<7x1xf32> -> vector<7x1xf32>
    %755 = vector.broadcast %754 : vector<7x1xf32> to vector<7x7xf32>
    %756 = arith.mulf %751, %755 : vector<7x7xf32>
    %cst_355 = arith.constant dense<0.000000e+00> : vector<7x16xf32>
    %757 = tpu.matmul %756, %692, %cst_355 {dimension_numbers = #tpu.dot_dimension_numbers<[1], [0], [0], [1], [0, 0, 1, 1], [], []>} : vector<7x7xf32>, vector<7x16xf32>, vector<7x16xf32> -> vector<7x16xf32>
    %c0_356 = arith.constant 0 : index
    %c32_357 = arith.constant 32 : index
    %758 = vector.load %arg22[%c0_356, %c32_357] : memref<7x64xf32, #tpu.memory_space<vmem>>, vector<7x16xf32>
    tpu.vector_store %arg22[%c0_356, %c32_357], %757 {strides = array<i32>} : memref<7x64xf32, #tpu.memory_space<vmem>>, vector<7x16xf32>,
    %759 = vector.extract_strided_slice %544 {offsets = [0, 48], sizes = [7, 16], strides = [1, 1]} : vector<7x64xf32> to vector<7x16xf32>
    %760 = vector.extract_strided_slice %547 {offsets = [0, 48], sizes = [7, 16], strides = [1, 1]} : vector<7x64xf32> to vector<7x16xf32>
    %761 = vector.extract_strided_slice %540 {offsets = [0, 48], sizes = [7, 16], strides = [1, 1]} : vector<7x64xf32> to vector<7x16xf32>
    %762 = vector.extract_strided_slice %541 {offsets = [0, 48], sizes = [7, 16], strides = [1, 1]} : vector<7x64xf32> to vector<7x16xf32>
    %763 = vector.extract_strided_slice %538 {offsets = [0, 48], sizes = [7, 16], strides = [1, 1]} : vector<7x64xf32> to vector<7x16xf32>
    %cst_358 = arith.constant dense<0.000000e+00> : vector<7x7xf32>
    %764 = tpu.matmul %759, %761, %cst_358 {dimension_numbers = #tpu.dot_dimension_numbers<[1], [1], [0], [0], [0, 0, 1, 0], [], []>} : vector<7x16xf32>, vector<7x16xf32>, vector<7x7xf32> -> vector<7x7xf32>
    %cst_359 = arith.constant dense<0.000000e+00> : vector<7x7xf32>
    %765 = tpu.matmul %760, %763, %cst_359 {dimension_numbers = #tpu.dot_dimension_numbers<[1], [1], [0], [0], [0, 0, 1, 0], [], []>} : vector<7x16xf32>, vector<7x16xf32>, vector<7x7xf32> -> vector<7x7xf32>
    %cst_360 = arith.constant 0.000000e+00 : f32
    %766 = vector.broadcast %cst_360 : f32 to vector<7x15xf32>
    %c0_361 = arith.constant 0 : index
    %c0_362 = arith.constant 0 : index
    %767 = vector.load %arg21[%c0_361, %c0_362] : memref<7x15xf32, #tpu.memory_space<vmem>>, vector<7x15xf32>
    tpu.vector_store %arg21[%c0_361, %c0_362], %766 {strides = array<i32>} : memref<7x15xf32, #tpu.memory_space<vmem>>, vector<7x15xf32>,
    %c0_363 = arith.constant 0 : index
    %c0_364 = arith.constant 0 : index
    %768 = vector.load %arg21[%c0_363, %c0_364] : memref<7x15xf32, #tpu.memory_space<vmem>>, vector<7x7xf32>
    tpu.vector_store %arg21[%c0_363, %c0_364], %765 {strides = array<i32>} : memref<7x15xf32, #tpu.memory_space<vmem>>, vector<7x7xf32>,
    %c1_365 = arith.constant 1 : index
    %c0_366 = arith.constant 0 : index
    %769 = vector.load %arg21[%c1_365, %c0_366] : memref<7x15xf32, #tpu.memory_space<vmem>>, vector<6x7xf32>
    %c0_367 = arith.constant 0 : index
    %c8_368 = arith.constant 8 : index
    %770 = vector.load %arg21[%c0_367, %c8_368] : memref<7x15xf32, #tpu.memory_space<vmem>>, vector<6x7xf32>
    tpu.vector_store %arg21[%c0_367, %c8_368], %769 {strides = array<i32>} : memref<7x15xf32, #tpu.memory_space<vmem>>, vector<6x7xf32>,
    %cst_369 = arith.constant 0.000000e+00 : f32
    %771 = vector.broadcast %cst_369 : f32 to vector<7x7xf32>
    %c6_i32_370 = arith.constant 6 : i32
    %772 = vector.broadcast %c6_i32_370 : i32 to vector<7x7xi32>
    %773 = arith.cmpi eq, %548, %772 : vector<7x7xi32>
    %c0_371 = arith.constant 0 : index
    %c0_372 = arith.constant 0 : index
    %774 = vector.load %arg21[%c0_371, %c0_372] : memref<7x15xf32, #tpu.memory_space<vmem>>, vector<7x7xf32>
    %cst_373 = arith.constant 0.000000e+00 : f32
    %775 = vector.broadcast %cst_373 : f32 to vector<7x7xf32>
    %776 = arith.select %773, %774, %775 : vector<7x7xi1>, vector<7x7xf32>
    %777 = arith.addf %771, %776 : vector<7x7xf32>
    %c5_i32_374 = arith.constant 5 : i32
    %778 = vector.broadcast %c5_i32_374 : i32 to vector<7x7xi32>
    %779 = arith.cmpi eq, %548, %778 : vector<7x7xi32>
    %c0_375 = arith.constant 0 : index
    %c1_376 = arith.constant 1 : index
    %780 = vector.load %arg21[%c0_375, %c1_376] : memref<7x15xf32, #tpu.memory_space<vmem>>, vector<7x7xf32>
    %cst_377 = arith.constant 0.000000e+00 : f32
    %781 = vector.broadcast %cst_377 : f32 to vector<7x7xf32>
    %782 = arith.select %779, %780, %781 : vector<7x7xi1>, vector<7x7xf32>
    %783 = arith.addf %777, %782 : vector<7x7xf32>
    %c4_i32_378 = arith.constant 4 : i32
    %784 = vector.broadcast %c4_i32_378 : i32 to vector<7x7xi32>
    %785 = arith.cmpi eq, %548, %784 : vector<7x7xi32>
    %c0_379 = arith.constant 0 : index
    %c2_380 = arith.constant 2 : index
    %786 = vector.load %arg21[%c0_379, %c2_380] : memref<7x15xf32, #tpu.memory_space<vmem>>, vector<7x7xf32>
    %cst_381 = arith.constant 0.000000e+00 : f32
    %787 = vector.broadcast %cst_381 : f32 to vector<7x7xf32>
    %788 = arith.select %785, %786, %787 : vector<7x7xi1>, vector<7x7xf32>
    %789 = arith.addf %783, %788 : vector<7x7xf32>
    %c3_i32_382 = arith.constant 3 : i32
    %790 = vector.broadcast %c3_i32_382 : i32 to vector<7x7xi32>
    %791 = arith.cmpi eq, %548, %790 : vector<7x7xi32>
    %c0_383 = arith.constant 0 : index
    %c3_384 = arith.constant 3 : index
    %792 = vector.load %arg21[%c0_383, %c3_384] : memref<7x15xf32, #tpu.memory_space<vmem>>, vector<7x7xf32>
    %cst_385 = arith.constant 0.000000e+00 : f32
    %793 = vector.broadcast %cst_385 : f32 to vector<7x7xf32>
    %794 = arith.select %791, %792, %793 : vector<7x7xi1>, vector<7x7xf32>
    %795 = arith.addf %789, %794 : vector<7x7xf32>
    %c2_i32_386 = arith.constant 2 : i32
    %796 = vector.broadcast %c2_i32_386 : i32 to vector<7x7xi32>
    %797 = arith.cmpi eq, %548, %796 : vector<7x7xi32>
    %c0_387 = arith.constant 0 : index
    %c4_388 = arith.constant 4 : index
    %798 = vector.load %arg21[%c0_387, %c4_388] : memref<7x15xf32, #tpu.memory_space<vmem>>, vector<7x7xf32>
    %cst_389 = arith.constant 0.000000e+00 : f32
    %799 = vector.broadcast %cst_389 : f32 to vector<7x7xf32>
    %800 = arith.select %797, %798, %799 : vector<7x7xi1>, vector<7x7xf32>
    %801 = arith.addf %795, %800 : vector<7x7xf32>
    %c1_i32_390 = arith.constant 1 : i32
    %802 = vector.broadcast %c1_i32_390 : i32 to vector<7x7xi32>
    %803 = arith.cmpi eq, %548, %802 : vector<7x7xi32>
    %c0_391 = arith.constant 0 : index
    %c5_392 = arith.constant 5 : index
    %804 = vector.load %arg21[%c0_391, %c5_392] : memref<7x15xf32, #tpu.memory_space<vmem>>, vector<7x7xf32>
    %cst_393 = arith.constant 0.000000e+00 : f32
    %805 = vector.broadcast %cst_393 : f32 to vector<7x7xf32>
    %806 = arith.select %803, %804, %805 : vector<7x7xi1>, vector<7x7xf32>
    %807 = arith.addf %801, %806 : vector<7x7xf32>
    %c0_i32_394 = arith.constant 0 : i32
    %808 = vector.broadcast %c0_i32_394 : i32 to vector<7x7xi32>
    %809 = arith.cmpi eq, %548, %808 : vector<7x7xi32>
    %c0_395 = arith.constant 0 : index
    %c6_396 = arith.constant 6 : index
    %810 = vector.load %arg21[%c0_395, %c6_396] : memref<7x15xf32, #tpu.memory_space<vmem>>, vector<7x7xf32>
    %cst_397 = arith.constant 0.000000e+00 : f32
    %811 = vector.broadcast %cst_397 : f32 to vector<7x7xf32>
    %812 = arith.select %809, %810, %811 : vector<7x7xi1>, vector<7x7xf32>
    %813 = arith.addf %807, %812 : vector<7x7xf32>
    %814 = arith.addf %764, %813 : vector<7x7xf32>
    %cst_398 = arith.constant 1.250000e-01 : f32
    %815 = vector.broadcast %cst_398 : f32 to vector<7x7xf32>
    %816 = arith.mulf %814, %815 : vector<7x7xf32>
    %cst_399 = arith.constant dense<0xFF800000> : vector<7xf32>
    %817 = vector.multi_reduction <maximumf>, %816, %cst_399 [1] : vector<7x7xf32> to vector<7xf32>
    %818 = vector.shape_cast %817 : vector<7xf32> to vector<7x1xf32>
    %819 = vector.broadcast %818 : vector<7x1xf32> to vector<7x7xf32>
    %820 = arith.subf %816, %819 : vector<7x7xf32>
    %821 = math.exp %820 : vector<7x7xf32>
    %cst_400 = arith.constant dense<0.000000e+00> : vector<7xf32>
    %822 = vector.multi_reduction <add>, %821, %cst_400 [1] : vector<7x7xf32> to vector<7xf32>
    %823 = vector.shape_cast %822 : vector<7xf32> to vector<7x1xf32>
    %824 = tpu.reciprocal %823 {approx = true} : vector<7x1xf32> -> vector<7x1xf32>
    %825 = vector.broadcast %824 : vector<7x1xf32> to vector<7x7xf32>
    %826 = arith.mulf %821, %825 : vector<7x7xf32>
    %cst_401 = arith.constant dense<0.000000e+00> : vector<7x16xf32>
    %827 = tpu.matmul %826, %762, %cst_401 {dimension_numbers = #tpu.dot_dimension_numbers<[1], [0], [0], [1], [0, 0, 1, 1], [], []>} : vector<7x7xf32>, vector<7x16xf32>, vector<7x16xf32> -> vector<7x16xf32>
    %c0_402 = arith.constant 0 : index
    %c48 = arith.constant 48 : index
    %828 = vector.load %arg22[%c0_402, %c48] : memref<7x64xf32, #tpu.memory_space<vmem>>, vector<7x16xf32>
    tpu.vector_store %arg22[%c0_402, %c48], %827 {strides = array<i32>} : memref<7x64xf32, #tpu.memory_space<vmem>>, vector<7x16xf32>,
    %c0_403 = arith.constant 0 : index
    %c0_404 = arith.constant 0 : index
    %829 = vector.load %arg22[%c0_403, %c0_404] : memref<7x64xf32, #tpu.memory_space<vmem>>, vector<7x64xf32>
    %c0_405 = arith.constant 0 : index
    %c0_406 = arith.constant 0 : index
    %830 = vector.load %arg14[%c0_405, %c0_406] : memref<64x64xf32, #tpu.memory_space<vmem>>, vector<64x64xf32>
    %cst_407 = arith.constant dense<0.000000e+00> : vector<7x64xf32>
    %831 = tpu.matmul %829, %830, %cst_407 {dimension_numbers = #tpu.dot_dimension_numbers<[1], [0], [0], [1], [0, 0, 1, 1], [], []>} : vector<7x64xf32>, vector<64x64xf32>, vector<7x64xf32> -> vector<7x64xf32>
    %c0_408 = arith.constant 0 : index
    %c0_409 = arith.constant 0 : index
    %832 = vector.load %arg15[%c0_408, %c0_409] : memref<1x64xf32, #tpu.memory_space<vmem>>, vector<1x64xf32>
    %833 = vector.broadcast %832 : vector<1x64xf32> to vector<7x64xf32>
    %834 = arith.addf %831, %833 : vector<7x64xf32>
    %c0_410 = arith.constant 0 : index
    %c0_411 = arith.constant 0 : index
    %835 = vector.load %arg16[%c0_410, %c0_411] : memref<64x32xf32, #tpu.memory_space<vmem>>, vector<64x32xf32>
    %cst_412 = arith.constant dense<0.000000e+00> : vector<7x32xf32>
    %836 = tpu.matmul %834, %835, %cst_412 {dimension_numbers = #tpu.dot_dimension_numbers<[1], [0], [0], [1], [0, 0, 1, 1], [], []>} : vector<7x64xf32>, vector<64x32xf32>, vector<7x32xf32> -> vector<7x32xf32>
    %c0_413 = arith.constant 0 : index
    %c0_414 = arith.constant 0 : index
    %837 = vector.load %arg17[%c0_413, %c0_414] : memref<1x32xf32, #tpu.memory_space<vmem>>, vector<1x32xf32>
    %838 = vector.broadcast %837 : vector<1x32xf32> to vector<7x32xf32>
    %839 = arith.addf %836, %838 : vector<7x32xf32>
    %840 = arith.addf %1, %839 : vector<7x32xf32>
    %c0_415 = arith.constant 0 : index
    %c0_416 = arith.constant 0 : index
    %c0_417 = arith.constant 0 : index
    %841 = vector.load %arg18[%c0_415, %c0_416, %c0_417] : memref<1x7x32xf32, #tpu.memory_space<vmem>>, vector<1x7x32xf32>
    %842 = vector.shape_cast %841 : vector<1x7x32xf32> to vector<7x32xf32>
    %843 = vector.shape_cast %840 : vector<7x32xf32> to vector<1x7x32xf32>
    tpu.vector_store %arg18[%c0_415, %c0_416, %c0_417], %843 {strides = array<i32>} : memref<1x7x32xf32, #tpu.memory_space<vmem>>, vector<1x7x32xf32>,
    return
  }
  func.func @transform_0(%arg0: i32) -> (i32, i32, i32) {
    %c0_i32 = arith.constant 0 : i32
    %c0_i32_0 = arith.constant 0 : i32
    %c0_i32_1 = arith.constant 0 : i32
    return %arg0, %c0_i32, %c0_i32_0 : i32, i32, i32
  }
  func.func @transform_1(%arg0: i32) -> (i32, i32) {
    %c0_i32 = arith.constant 0 : i32
    %c0_i32_0 = arith.constant 0 : i32
    %c0_i32_1 = arith.constant 0 : i32
    return %c0_i32, %c0_i32_0 : i32, i32
  }
  func.func @transform_2(%arg0: i32) -> (i32, i32) {
    %c0_i32 = arith.constant 0 : i32
    %c0_i32_0 = arith.constant 0 : i32
    %c0_i32_1 = arith.constant 0 : i32
    return %c0_i32, %c0_i32_0 : i32, i32
  }
  func.func @transform_3(%arg0: i32) -> (i32, i32) {
    %c0_i32 = arith.constant 0 : i32
    %c0_i32_0 = arith.constant 0 : i32
    %c0_i32_1 = arith.constant 0 : i32
    return %c0_i32, %c0_i32_0 : i32, i32
  }
  func.func @transform_4(%arg0: i32) -> (i32, i32) {
    %c0_i32 = arith.constant 0 : i32
    %c0_i32_0 = arith.constant 0 : i32
    %c0_i32_1 = arith.constant 0 : i32
    return %c0_i32, %c0_i32_0 : i32, i32
  }
  func.func @transform_5(%arg0: i32) -> (i32, i32) {
    %c0_i32 = arith.constant 0 : i32
    %c0_i32_0 = arith.constant 0 : i32
    %c0_i32_1 = arith.constant 0 : i32
    return %c0_i32, %c0_i32_0 : i32, i32
  }
  func.func @transform_6(%arg0: i32) -> (i32, i32) {
    %c0_i32 = arith.constant 0 : i32
    %c0_i32_0 = arith.constant 0 : i32
    %c0_i32_1 = arith.constant 0 : i32
    return %c0_i32, %c0_i32_0 : i32, i32
  }
  func.func @transform_7(%arg0: i32) -> (i32, i32) {
    %c0_i32 = arith.constant 0 : i32
    %c0_i32_0 = arith.constant 0 : i32
    %c0_i32_1 = arith.constant 0 : i32
    return %c0_i32, %c0_i32_0 : i32, i32
  }
  func.func @transform_8(%arg0: i32) -> (i32, i32) {
    %c0_i32 = arith.constant 0 : i32
    %c0_i32_0 = arith.constant 0 : i32
    %c0_i32_1 = arith.constant 0 : i32
    return %c0_i32, %c0_i32_0 : i32, i32
  }
  func.func @transform_9(%arg0: i32) -> (i32, i32) {
    %c0_i32 = arith.constant 0 : i32
    %c0_i32_0 = arith.constant 0 : i32
    %c0_i32_1 = arith.constant 0 : i32
    return %c0_i32, %c0_i32_0 : i32, i32
  }
  func.func @transform_10(%arg0: i32) -> (i32, i32) {
    %c0_i32 = arith.constant 0 : i32
    %c0_i32_0 = arith.constant 0 : i32
    %c0_i32_1 = arith.constant 0 : i32
    return %c0_i32, %c0_i32_0 : i32, i32
  }
  func.func @transform_11(%arg0: i32) -> (i32, i32) {
    %c0_i32 = arith.constant 0 : i32
    %c0_i32_0 = arith.constant 0 : i32
    %c0_i32_1 = arith.constant 0 : i32
    return %c0_i32, %c0_i32_0 : i32, i32
  }
  func.func @transform_12(%arg0: i32) -> (i32, i32) {
    %c0_i32 = arith.constant 0 : i32
    %c0_i32_0 = arith.constant 0 : i32
    %c0_i32_1 = arith.constant 0 : i32
    return %c0_i32, %c0_i32_0 : i32, i32
  }
  func.func @transform_13(%arg0: i32) -> (i32, i32) {
    %c0_i32 = arith.constant 0 : i32
    %c0_i32_0 = arith.constant 0 : i32
    %c0_i32_1 = arith.constant 0 : i32
    return %c0_i32, %c0_i32_0 : i32, i32
  }
  func.func @transform_14(%arg0: i32) -> (i32, i32) {
    %c0_i32 = arith.constant 0 : i32
    %c0_i32_0 = arith.constant 0 : i32
    %c0_i32_1 = arith.constant 0 : i32
    return %c0_i32, %c0_i32_0 : i32, i32
  }
  func.func @transform_15(%arg0: i32) -> (i32, i32) {
    %c0_i32 = arith.constant 0 : i32
    %c0_i32_0 = arith.constant 0 : i32
    %c0_i32_1 = arith.constant 0 : i32
    return %c0_i32, %c0_i32_0 : i32, i32
  }
  func.func @transform_16(%arg0: i32) -> (i32, i32) {
    %c0_i32 = arith.constant 0 : i32
    %c0_i32_0 = arith.constant 0 : i32
    %c0_i32_1 = arith.constant 0 : i32
    return %c0_i32, %c0_i32_0 : i32, i32
  }
  func.func @transform_17(%arg0: i32) -> (i32, i32, i32) {
    %c0_i32 = arith.constant 0 : i32
    %c0_i32_0 = arith.constant 0 : i32
    %c0_i32_1 = arith.constant 0 : i32
    return %arg0, %c0_i32, %c0_i32_0 : i32, i32, i32
  }
}

module attributes {stable_mosaic.version = 11 : i64} {
  func.func @_head_kernel(%arg0: i32, %arg1: memref<1x7x32xf32, #tpu.memory_space<vmem>>, %arg2: memref<96x64xf32, #tpu.memory_space<vmem>>, %arg3: memref<1x64xf32, #tpu.memory_space<vmem>>, %arg4: memref<64x5xf32, #tpu.memory_space<vmem>>, %arg5: memref<1x5xf32, #tpu.memory_space<vmem>>, %arg6: memref<1x7x5xf32, #tpu.memory_space<vmem>>, %arg7: memref<9x32xf32, #tpu.memory_space<vmem>>) attributes {dimension_semantics = [#tpu.dimension_semantics<parallel>], iteration_bounds = array<i64: 2>, scalar_prefetch = 0 : i64, scratch_operands = 1 : i64, tpu.core_type = #tpu.core_type<tc>, window_params = [{transform_indices = @transform_0, window_bounds = array<i64: 1, 7, 32>}, {pipeline_mode = #tpu.pipeline_mode<synchronous>, transform_indices = @transform_1, window_bounds = array<i64: 96, 64>}, {pipeline_mode = #tpu.pipeline_mode<synchronous>, transform_indices = @transform_2, window_bounds = array<i64: 1, 64>}, {pipeline_mode = #tpu.pipeline_mode<synchronous>, transform_indices = @transform_3, window_bounds = array<i64: 64, 5>}, {pipeline_mode = #tpu.pipeline_mode<synchronous>, transform_indices = @transform_4, window_bounds = array<i64: 1, 5>}, {transform_indices = @transform_5, window_bounds = array<i64: 1, 7, 5>}]} {
    %c0 = arith.constant 0 : index
    %c0_0 = arith.constant 0 : index
    %c0_1 = arith.constant 0 : index
    %0 = vector.load %arg1[%c0, %c0_0, %c0_1] : memref<1x7x32xf32, #tpu.memory_space<vmem>>, vector<1x7x32xf32>
    %1 = vector.shape_cast %0 : vector<1x7x32xf32> to vector<7x32xf32>
    %cst = arith.constant 0.000000e+00 : f32
    %2 = vector.broadcast %cst : f32 to vector<9x32xf32>
    %c0_2 = arith.constant 0 : index
    %c0_3 = arith.constant 0 : index
    %3 = vector.load %arg7[%c0_2, %c0_3] : memref<9x32xf32, #tpu.memory_space<vmem>>, vector<9x32xf32>
    tpu.vector_store %arg7[%c0_2, %c0_3], %2 {strides = array<i32>} : memref<9x32xf32, #tpu.memory_space<vmem>>, vector<9x32xf32>,
    %c1 = arith.constant 1 : index
    %c0_4 = arith.constant 0 : index
    %4 = vector.load %arg7[%c1, %c0_4] : memref<9x32xf32, #tpu.memory_space<vmem>>, vector<7x32xf32>
    tpu.vector_store %arg7[%c1, %c0_4], %1 {strides = array<i32>} : memref<9x32xf32, #tpu.memory_space<vmem>>, vector<7x32xf32>,
    %cst_5 = arith.constant 0.000000e+00 : f32
    %5 = vector.broadcast %cst_5 : f32 to vector<7x64xf32>
    %c0_6 = arith.constant 0 : index
    %c0_7 = arith.constant 0 : index
    %6 = vector.load %arg7[%c0_6, %c0_7] : memref<9x32xf32, #tpu.memory_space<vmem>>, vector<7x32xf32>
    %c0_8 = arith.constant 0 : index
    %c0_9 = arith.constant 0 : index
    %7 = vector.load %arg2[%c0_8, %c0_9] : memref<96x64xf32, #tpu.memory_space<vmem>>, vector<32x64xf32>
    %cst_10 = arith.constant dense<0.000000e+00> : vector<7x64xf32>
    %8 = tpu.matmul %6, %7, %cst_10 {dimension_numbers = #tpu.dot_dimension_numbers<[1], [0], [0], [1], [0, 0, 1, 1], [], []>} : vector<7x32xf32>, vector<32x64xf32>, vector<7x64xf32> -> vector<7x64xf32>
    %9 = arith.addf %5, %8 : vector<7x64xf32>
    %c1_11 = arith.constant 1 : index
    %c0_12 = arith.constant 0 : index
    %10 = vector.load %arg7[%c1_11, %c0_12] : memref<9x32xf32, #tpu.memory_space<vmem>>, vector<7x32xf32>
    %c32 = arith.constant 32 : index
    %c0_13 = arith.constant 0 : index
    %11 = vector.load %arg2[%c32, %c0_13] : memref<96x64xf32, #tpu.memory_space<vmem>>, vector<32x64xf32>
    %cst_14 = arith.constant dense<0.000000e+00> : vector<7x64xf32>
    %12 = tpu.matmul %10, %11, %cst_14 {dimension_numbers = #tpu.dot_dimension_numbers<[1], [0], [0], [1], [0, 0, 1, 1], [], []>} : vector<7x32xf32>, vector<32x64xf32>, vector<7x64xf32> -> vector<7x64xf32>
    %13 = arith.addf %9, %12 : vector<7x64xf32>
    %c2 = arith.constant 2 : index
    %c0_15 = arith.constant 0 : index
    %14 = vector.load %arg7[%c2, %c0_15] : memref<9x32xf32, #tpu.memory_space<vmem>>, vector<7x32xf32>
    %c64 = arith.constant 64 : index
    %c0_16 = arith.constant 0 : index
    %15 = vector.load %arg2[%c64, %c0_16] : memref<96x64xf32, #tpu.memory_space<vmem>>, vector<32x64xf32>
    %cst_17 = arith.constant dense<0.000000e+00> : vector<7x64xf32>
    %16 = tpu.matmul %14, %15, %cst_17 {dimension_numbers = #tpu.dot_dimension_numbers<[1], [0], [0], [1], [0, 0, 1, 1], [], []>} : vector<7x32xf32>, vector<32x64xf32>, vector<7x64xf32> -> vector<7x64xf32>
    %17 = arith.addf %13, %16 : vector<7x64xf32>
    %c0_18 = arith.constant 0 : index
    %c0_19 = arith.constant 0 : index
    %18 = vector.load %arg3[%c0_18, %c0_19] : memref<1x64xf32, #tpu.memory_space<vmem>>, vector<1x64xf32>
    %19 = vector.broadcast %18 : vector<1x64xf32> to vector<7x64xf32>
    %20 = arith.addf %17, %19 : vector<7x64xf32>
    %cst_20 = arith.constant 0.000000e+00 : f32
    %21 = vector.broadcast %cst_20 : f32 to vector<7x64xf32>
    %22 = arith.maximumf %20, %21 : vector<7x64xf32>
    %c0_21 = arith.constant 0 : index
    %c0_22 = arith.constant 0 : index
    %23 = vector.load %arg4[%c0_21, %c0_22] : memref<64x5xf32, #tpu.memory_space<vmem>>, vector<64x5xf32>
    %cst_23 = arith.constant dense<0.000000e+00> : vector<7x5xf32>
    %24 = tpu.matmul %22, %23, %cst_23 {dimension_numbers = #tpu.dot_dimension_numbers<[1], [0], [0], [1], [0, 0, 1, 1], [], []>} : vector<7x64xf32>, vector<64x5xf32>, vector<7x5xf32> -> vector<7x5xf32>
    %c0_24 = arith.constant 0 : index
    %c0_25 = arith.constant 0 : index
    %25 = vector.load %arg5[%c0_24, %c0_25] : memref<1x5xf32, #tpu.memory_space<vmem>>, vector<1x5xf32>
    %26 = vector.broadcast %25 : vector<1x5xf32> to vector<7x5xf32>
    %27 = arith.addf %24, %26 : vector<7x5xf32>
    %c0_26 = arith.constant 0 : index
    %c0_27 = arith.constant 0 : index
    %c0_28 = arith.constant 0 : index
    %28 = vector.load %arg6[%c0_26, %c0_27, %c0_28] : memref<1x7x5xf32, #tpu.memory_space<vmem>>, vector<1x7x5xf32>
    %29 = vector.shape_cast %28 : vector<1x7x5xf32> to vector<7x5xf32>
    %30 = vector.shape_cast %27 : vector<7x5xf32> to vector<1x7x5xf32>
    tpu.vector_store %arg6[%c0_26, %c0_27, %c0_28], %30 {strides = array<i32>} : memref<1x7x5xf32, #tpu.memory_space<vmem>>, vector<1x7x5xf32>,
    return
  }
  func.func @transform_0(%arg0: i32) -> (i32, i32, i32) {
    %c0_i32 = arith.constant 0 : i32
    %c0_i32_0 = arith.constant 0 : i32
    %c0_i32_1 = arith.constant 0 : i32
    return %arg0, %c0_i32, %c0_i32_0 : i32, i32, i32
  }
  func.func @transform_1(%arg0: i32) -> (i32, i32) {
    %c0_i32 = arith.constant 0 : i32
    %c0_i32_0 = arith.constant 0 : i32
    %c0_i32_1 = arith.constant 0 : i32
    return %c0_i32, %c0_i32_0 : i32, i32
  }
  func.func @transform_2(%arg0: i32) -> (i32, i32) {
    %c0_i32 = arith.constant 0 : i32
    %c0_i32_0 = arith.constant 0 : i32
    %c0_i32_1 = arith.constant 0 : i32
    return %c0_i32, %c0_i32_0 : i32, i32
  }
  func.func @transform_3(%arg0: i32) -> (i32, i32) {
    %c0_i32 = arith.constant 0 : i32
    %c0_i32_0 = arith.constant 0 : i32
    %c0_i32_1 = arith.constant 0 : i32
    return %c0_i32, %c0_i32_0 : i32, i32
  }
  func.func @transform_4(%arg0: i32) -> (i32, i32) {
    %c0_i32 = arith.constant 0 : i32
    %c0_i32_0 = arith.constant 0 : i32
    %c0_i32_1 = arith.constant 0 : i32
    return %c0_i32, %c0_i32_0 : i32, i32
  }
  func.func @transform_5(%arg0: i32) -> (i32, i32, i32) {
    %c0_i32 = arith.constant 0 : i32
    %c0_i32_0 = arith.constant 0 : i32
    %c0_i32_1 = arith.constant 0 : i32
    return %arg0, %c0_i32, %c0_i32_0 : i32, i32, i32
  }
}

</mosaic_0001>

<bundles_post_ra>
// kernel: model_forward.9
= control target key start
LH: loop header
LB: loop body
LE: loop exit
PB: predicated region body
PF: predicated region fallthrough
CT: control target
= control target key end

     0   :  { %8 = vsyncpa [#allocation3], 0  ;;  %s294_s0 = inlined_call_operand.vmem [shape: f32[64,8], index: 0, kind: input, shape index: {}]   ;;  %s295_s1 = inlined_call_operand.hbm [shape: f32[8,32], index: 1, kind: input, shape index: {}]   ;;  %s296_s2 = inlined_call_operand.hbm [shape: f32[1,32], index: 2, kind: input, shape index: {}]   ;;  %s297_s3 = inlined_call_operand.vmem [shape: f32[64,32], index: 3, kind: output, shape index: {}]  }
   0x1   :  { %s17_s14 = sshll.u32 %s295_s1, 4  ;;  %s18_s14 = int_to_ptr.hbm [resolvable:$true] %s17_s14 }
   0x2   :  { %9 = vsyncpa [#allocation5], 0  ;;  %s202_s15 = smov [#allocation2]   ;;  %s28_s19 = sshll.u32 %s296_s2, 4  ;;  %s29_s19 = int_to_ptr.hbm [resolvable:$true] %s28_s19 }
   0x3   :  { %s19_s16 = sshll.u32 %s202_s15, 4  ;;  %s203_s20 = smov [#allocation4]   ;;  %s20_s16 = int_to_ptr.vmem [resolvable:$true] %s19_s16 }
   0x4   :  { %22 = dma.hbm_to_vmem [thread:$0]  %s18_s14, 128, %s20_s16, [#allocation3]  }
   0x5   :  { %s30_s21 = sshll.u32 %s203_s20, 4  ;;  %s31_s21 = int_to_ptr.vmem [resolvable:$true] %s30_s21 }
   0x6   :  { %33 = dma.hbm_to_vmem [thread:$0]  %s29_s19, 16, %s31_s21, [#allocation5]  }
   0x7   :  { %198 = dma.done.wait [#allocation3], 128  }
   0x8   :  { %199 = vsyncadd [#allocation3], 4294967168 }
   0x9   :  { %200 = dma.done.wait [#allocation5], 16  }
   0xa   :  { %201 = vsyncadd [#allocation5], 4294967280  ;;  %vm55_vm0 = vcmask 64512   ;;  %v50_v0 = vld [vmem:[#allocation2] sm:$0xff]  ;;  %v48_v2 = vld [vmem:[%s294_s0 + $0x30] sm:$0xff]  ;;  %vm121_vm1 = vcmask 261120  }
   0xb   :  { %v46_v1 = vld [vmem:[%s294_s0 + $0x20] sm:$0xff]  ;;  %145 = vmatpush.msra.mxu2 %v50_v0  ;;  %146 = vmatpush.msra.mxu3 %v50_v0  ;;  %v44_v4 = vld [vmem:[%s294_s0 + $0x10] sm:$0xff]  ;;  %v47_v5 = vld [vmem:[%s294_s0 + $0x28] sm:$0xff] }
   0xc   :  { %v42_v3 = vld [vmem:[%s294_s0] sm:$0xff]  ;;  %140 = vmatmul.msk.f32.vlgmr.msra.gmra.mxu2 %vm55_vm0, %v46_v1  ;;  %142 = vmatmul.msk.f32.vlgmr.msra.gmra.mxu3 %vm55_vm0, %v48_v2  ;;  %v49_v6 = vld [vmem:[%s294_s0 + $0x38] sm:$0xff]  ;;  %v43_v7 = vld [vmem:[%s294_s0 + $0x8] sm:$0xff] }
   0xd   :  { %95 = vmatpush.msra.mxu0 %v50_v0  ;;  %144 = vmatpush.msra.mxu1 %v50_v0  ;;  %v45_v8 = vld [vmem:[%s294_s0 + $0x18] sm:$0xff]  ;;  %v149_v9 = vld [vmem:[#allocation4] ss:$0 sm:$0xff] }
   0xe   :  { %136 = vmatmul.msk.f32.vlgmr.msra.gmra.mxu0 %vm55_vm0, %v42_v3  ;;  %138 = vmatmul.msk.f32.vlgmr.msra.gmra.mxu1 %vm55_vm0, %v44_v4 }
  0x14   :  { %141 = vmatmul.msk.f32.gmra.mxu2 %vm55_vm0, %v47_v5  ;;  %143 = vmatmul.msk.f32.gmra.mxu3 %vm55_vm0, %v49_v6 }
  0x16   :  { %137 = vmatmul.msk.f32.gmra.mxu0 %vm55_vm0, %v43_v7  ;;  %139 = vmatmul.msk.f32.gmra.mxu1 %vm55_vm0, %v45_v8 }
  0x8b   :  { %v97_v10 = vpop.f32.mrf.mxu0  ;;  %v103_v11 = vpop.f32.mrf.mxu1 }
  0x8c   :  { %v98_v12 = vadd.f32 %v149_v9, %v97_v10  ;;  %v104_v13 = vadd.f32 %v149_v9, %v103_v11 }
  0x8e   :  { %122 = vst.msk [vmem:[%s297_s3] sm:$0xff] %vm121_vm1, %v98_v12 }
  0x8f   :  { %124 = vst.msk [vmem:[%s297_s3 + $0x10] sm:$0xff] %vm121_vm1, %v104_v13  ;;  %v109_v14 = vpop.f32.mrf.mxu2  ;;  %v115_v15 = vpop.f32.mrf.mxu3 }
  0x90   :  { %v110_v16 = vadd.f32 %v149_v9, %v109_v14  ;;  %v116_v17 = vadd.f32 %v149_v9, %v115_v15 }
  0x92   :  { %126 = vst.msk [vmem:[%s297_s3 + $0x20] sm:$0xff] %vm121_vm1, %v110_v16 }
  0x93   :  { %128 = vst.msk [vmem:[%s297_s3 + $0x30] sm:$0xff] %vm121_vm1, %v116_v17  ;;  %v100_v18 = vpop.f32.mrf.mxu0  ;;  %v106_v19 = vpop.f32.mrf.mxu1 }
  0x94   :  { %v101_v20 = vadd.f32 %v149_v9, %v100_v18  ;;  %v107_v21 = vadd.f32 %v149_v9, %v106_v19 }
  0x96   :  { %123 = vst.msk [vmem:[%s297_s3 + $0x8] sm:$0xff] %vm121_vm1, %v101_v20 }
  0x97   :  { %125 = vst.msk [vmem:[%s297_s3 + $0x18] sm:$0xff] %vm121_vm1, %v107_v21  ;;  %v112_v22 = vpop.f32.mrf.mxu2  ;;  %v118_v23 = vpop.f32.mrf.mxu3 }
  0x98   :  { %v113_v24 = vadd.f32 %v149_v9, %v112_v22  ;;  %v119_v25 = vadd.f32 %v149_v9, %v118_v23 }
  0x9a   :  { %127 = vst.msk [vmem:[%s297_s3 + $0x28] sm:$0xff] %vm121_vm1, %v113_v24 }
  0x9b   :  { %129 = vst.msk [vmem:[%s297_s3 + $0x38] sm:$0xff] %vm121_vm1, %v119_v25 }
  0x9c   :  { %134 = vsyncpa [#allocation3], 1 }
  0x9d   :  { %135 = vsyncpa [#allocation5], 1 }

// kernel: model_forward.10
= control target key start
LH: loop header
LB: loop body
LE: loop exit
PB: predicated region body
PF: predicated region fallthrough
CT: control target
= control target key end

     0   :  { %8 = vsyncpa [#allocation3], 0  ;;  %s963_s12 = smov 0   ;;  %s965_s13 = smov 0   ;;  %s1183_s0 = inlined_call_operand.vmem [shape: f32[450,9], index: 0, kind: input, shape index: {}]   ;;  %s1184_s1 = inlined_call_operand.vmem [shape: f32[9,32], index: 1, kind: input, shape index: {}]   ;;  %s1185_s2 = inlined_call_operand.hbm [shape: f32[1,32], index: 2, kind: input, shape index: {}]   ;;  %s1186_s3 = inlined_call_operand.vmem [shape: f32[450,32], index: 3, kind: output, shape index: {}]  }
   0x1   :  { %s967_s14 = smov 0  }
   0x2 LB: > { %s976_s15 = sadd.s32 4294967295, %s908_s14   ;;  %s978_s16 = sadd.s32 1, %s908_s14   ;;  %s908_s14 = sphi %s967_s14, %s1195_s14   ;;  %s904_s13 = sphi %s965_s13, %s1194_s13   ;;  %s900_s12 = sphi %s963_s12, %s1193_s12  }
   0x3   : > { %s86_s17 = ssub.s32 %s908_s14, %s978_s16  ;;  %s89_s18 = sadd.s32 1, %s904_s13 }
   0x4   : > { %p87_p0 = scmp.eq.s32.totalorder %s86_s17, 0  ;;  %p99_p1 = scmp.ne.s32.totalorder %s904_s13, %s900_s12 }
   0x5   : > { %p100_p2 = scmp.eq.s32.totalorder %s976_s15, 3  ;;  %p669_p3 = scmp.ge.s32.totalorder %s908_s14, 1 }
   0x6   : > { %s986_s19 = scalar_select %p87_p0, %s904_s13, %s89_s18  }
   0x7   : > { %p988_p4 = por %p100_p2, %p99_p1  ;;  %p113_p5 = scmp.lt.s32.totalorder %s908_s14, 5 }
   0x8   : > { %p728_p6 = scmp.eq.s32.totalorder %s976_s15, 0  ;;  %s128_s23 = sshll.u32 %s1185_s2, 4  ;;  %s129_s23 = int_to_ptr.hbm [resolvable:$true] %s128_s23 }
   0x9   : > { %p114_p7 = pnand %p669_p3, %p113_p5  ;;  %s942_s24 = smov [#allocation2]  }
   0xa   : > { %s130_s25 = sshll.u32 %s942_s24, 4  ;;  %s131_s25 = int_to_ptr.vmem [resolvable:$true] %s130_s25 }
   0xb   : > { %p724_p8 = pneg %p114_p7  ;;  %160 = sbr.rel (%p114_p7) target bundleno = 235 (0xeb), region = 32 }
   0xd   : > { %p725_p9 = pnand %p728_p6, %p724_p8 }
   0xf   : > { %727 = dma.hbm_to_vmem [thread:$0]  (!%p725_p9), %s129_s23, 16, %s131_s25, [#allocation3]  }
  0x10   : > { %895 = dma.done.wait (%p728_p6), [#allocation3], 16  }
  0x11   : > { %897 = vsyncadd (%p728_p6), [#allocation3], 4294967280  ;;  %s997_s26 = sshll.u32 %s976_s15, 4  ;;  %vm278_vm0 = vcmask 1040384   ;;  %v224_v0 = vld [vmem:[%s1184_s1 + $0x8] sm:$0x1] }
  0x12   : > { %p193_p10 = scmp.lt.s32.totalorder %s997_s26, 56  ;;  %v223_v1 = vld [vmem:[%s1184_s1] sm:$0xff]  ;;  %715 = vmatpush.msk.msra.mxu2 %vm278_vm0, %v224_v0  ;;  %716 = vmatpush.msk.msra.mxu3 %vm278_vm0, %v224_v0  ;;  %vm229_vm1 = vcmask 72704   ;;  %s185_s9 = sand.u32 1, %s900_s12   ;;  %vm363_vm2 = vcmask 261120  }
  0x13   : > { %677 = vmatpush.msk.msra.mxu0 %vm278_vm0, %v224_v0  ;;  %714 = vmatpush.msk.msra.mxu1 %vm278_vm0, %v224_v0  ;;  %v819_v18 = vld [vmem:[#allocation2] ss:$0 sm:$0xff]  ;;  %s674_s10 = sshll.u32 %s185_s9, 7  ;;  %s388_s12 = ssub.s32 (%p988_p4), 57, %s997_s26 }
  0x14   : > { %s194_s27 = scalar_select %p193_p10, %s997_s26, 56  ;;  %718 = vmatpush.msra.mxu2 %v223_v1  ;;  %719 = vmatpush.msra.mxu3 %v223_v1 }
  0x15   : > { %297 = vmatpush.msra.mxu0 %v223_v1  ;;  %717 = vmatpush.msra.mxu1 %v223_v1  ;;  %s1045_s11 = scalar_lea.vmem [#allocation4], %s674_s10   ;;  %s711_s14 = sshll.u32 (%p988_p4), %s976_s15, 7 }
  0x16   : > { %s676_s28 = sshll.u32 %s194_s27, 3  ;;  %p389_p11 = scmp.lt.s32.totalorder (%p988_p4), %s388_s12, 16 }
  0x17   : > { %s1004_s4 = scalar_lea.vmem %s1183_s0, %s676_s28  ;;  %s1086_s21 = scalar_lea.vmem (%p988_p4), %s1186_s3, %s711_s14  }
  0x18   : > { %v215_v2 = vld [vmem:[%s1004_s4 + $0x40] sm:$0xff]  ;;  %v216_v6 = vld [vmem:[%s1004_s4 + $0x48] sm:$0xff]  ;;  %v217_v10 = vld [vmem:[%s1004_s4 + $0x50] sm:$0xff] }
  0x19   : > { %v219_v3 = vld [vmem:[%s1004_s4 + $0x60] sm:$0xff]  ;;  %686 = vmatmul.msk.f32.vlgmr.msra.gmra.mxu2 %vm229_vm1, %v215_v2  ;;  %v220_v7 = vld [vmem:[%s1004_s4 + $0x68] sm:$0xff]  ;;  %v221_v11 = vld [vmem:[%s1004_s4 + $0x70] sm:$0xff] }
  0x1a   : > { %v207_v4 = vld [vmem:[%s1004_s4] sm:$0xff]  ;;  %690 = vmatmul.msk.f32.vlgmr.msra.gmra.mxu3 %vm229_vm1, %v219_v3  ;;  %v208_v8 = vld [vmem:[%s1004_s4 + $0x8] sm:$0xff]  ;;  %v209_v12 = vld [vmem:[%s1004_s4 + $0x10] sm:$0xff] }
  0x1b   : > { %v211_v5 = vld [vmem:[%s1004_s4 + $0x20] sm:$0xff]  ;;  %678 = vmatmul.msk.f32.vlgmr.msra.gmra.mxu0 %vm229_vm1, %v207_v4  ;;  %v212_v9 = vld [vmem:[%s1004_s4 + $0x28] sm:$0xff]  ;;  %v213_v13 = vld [vmem:[%s1004_s4 + $0x30] sm:$0xff] }
  0x1c   : > { %682 = vmatmul.msk.f32.vlgmr.msra.gmra.mxu1 %vm229_vm1, %v211_v5  ;;  %v218_v14 = vld [vmem:[%s1004_s4 + $0x58] sm:$0xff] }
  0x1d   : > { %v222_v15 = vld [vmem:[%s1004_s4 + $0x78] sm:$0xff] }
  0x1e   : > { %v210_v16 = vld [vmem:[%s1004_s4 + $0x18] sm:$0xff] }
  0x1f   : > { %v214_v17 = vld [vmem:[%s1004_s4 + $0x38] sm:$0xff] }
  0x21   : > { %687 = vmatmul.msk.f32.gmra.mxu2 %vm229_vm1, %v216_v6 }
  0x22   : > { %691 = vmatmul.msk.f32.gmra.mxu3 %vm229_vm1, %v220_v7 }
  0x23   : > { %679 = vmatmul.msk.f32.gmra.mxu0 %vm229_vm1, %v208_v8 }
  0x24   : > { %683 = vmatmul.msk.f32.gmra.mxu1 %vm229_vm1, %v212_v9 }
  0x29   : > { %688 = vmatmul.msk.f32.gmra.mxu2 %vm229_vm1, %v217_v10 }
  0x2a   : > { %692 = vmatmul.msk.f32.gmra.mxu3 %vm229_vm1, %v221_v11 }
  0x2b   : > { %680 = vmatmul.msk.f32.gmra.mxu0 %vm229_vm1, %v209_v12 }
  0x2c   : > { %684 = vmatmul.msk.f32.gmra.mxu1 %vm229_vm1, %v213_v13 }
  0x31   : > { %689 = vmatmul.msk.f32.gmra.mxu2 %vm229_vm1, %v218_v14 }
  0x32   : > { %693 = vmatmul.msk.f32.gmra.mxu3 %vm229_vm1, %v222_v15 }
  0x33   : > { %681 = vmatmul.msk.f32.gmra.mxu0 %vm229_vm1, %v210_v16 }
  0x34   : > { %685 = vmatmul.msk.f32.gmra.mxu1 %vm229_vm1, %v214_v17 }
  0x98   : > { %v299_v19 = vpop.f32.mrf.mxu0 }
  0x99   : > { %v311_v20 = vpop.f32.mrf.mxu1  ;;  %v300_v21 = vadd.f32 %v819_v18, %v299_v19 }
  0x9a   : > { %v312_v22 = vadd.f32 %v819_v18, %v311_v20 }
  0x9b   : > { %v347_v23 = vmax.f32 %v300_v21, 0.0 }
  0x9c   : > { %v351_v24 = vmax.f32 %v312_v22, 0.0  ;;  %v323_v25 = vpop.f32.mrf.mxu2 }
  0x9d   : > { %v335_v26 = vpop.f32.mrf.mxu3  ;;  %364 = vst.msk [vmem:[%s1045_s11] sm:$0xff] %vm363_vm2, %v347_v23  ;;  %v324_v27 = vadd.f32 %v819_v18, %v323_v25 }
  0x9e   : > { %v336_v28 = vadd.f32 %v819_v18, %v335_v26  ;;  %368 = vst.msk [vmem:[%s1045_s11 + $0x20] sm:$0xff] %vm363_vm2, %v351_v24 }
  0x9f   : > { %v355_v29 = vmax.f32 %v324_v27, 0.0 }
  0xa0   : > { %v359_v30 = vmax.f32 %v336_v28, 0.0  ;;  %v302_v31 = vpop.f32.mrf.mxu0 }
  0xa1   : > { %v314_v32 = vpop.f32.mrf.mxu1  ;;  %372 = vst.msk [vmem:[%s1045_s11 + $0x40] sm:$0xff] %vm363_vm2, %v355_v29  ;;  %v303_v33 = vadd.f32 %v819_v18, %v302_v31 }
  0xa2   : > { %v315_v34 = vadd.f32 %v819_v18, %v314_v32  ;;  %376 = vst.msk [vmem:[%s1045_s11 + $0x60] sm:$0xff] %vm363_vm2, %v359_v30 }
  0xa3   : > { %v348_v35 = vmax.f32 %v303_v33, 0.0 }
  0xa4   : > { %v352_v36 = vmax.f32 %v315_v34, 0.0  ;;  %v326_v37 = vpop.f32.mrf.mxu2 }
  0xa5   : > { %v338_v38 = vpop.f32.mrf.mxu3  ;;  %365 = vst.msk [vmem:[%s1045_s11 + $0x8] sm:$0xff] %vm363_vm2, %v348_v35  ;;  %v327_v39 = vadd.f32 %v819_v18, %v326_v37 }
  0xa6   : > { %v339_v40 = vadd.f32 %v819_v18, %v338_v38  ;;  %369 = vst.msk [vmem:[%s1045_s11 + $0x28] sm:$0xff] %vm363_vm2, %v352_v36 }
  0xa7   : > { %v356_v41 = vmax.f32 %v327_v39, 0.0 }
  0xa8   : > { %v360_v42 = vmax.f32 %v339_v40, 0.0  ;;  %v305_v43 = vpop.f32.mrf.mxu0 }
  0xa9   : > { %v317_v44 = vpop.f32.mrf.mxu1  ;;  %373 = vst.msk [vmem:[%s1045_s11 + $0x48] sm:$0xff] %vm363_vm2, %v356_v41  ;;  %v306_v45 = vadd.f32 %v819_v18, %v305_v43 }
  0xaa   : > { %v318_v46 = vadd.f32 %v819_v18, %v317_v44  ;;  %377 = vst.msk [vmem:[%s1045_s11 + $0x68] sm:$0xff] %vm363_vm2, %v360_v42 }
  0xab   : > { %v349_v47 = vmax.f32 %v306_v45, 0.0 }
  0xac   : > { %v353_v48 = vmax.f32 %v318_v46, 0.0  ;;  %v329_v49 = vpop.f32.mrf.mxu2 }
  0xad   : > { %v341_v50 = vpop.f32.mrf.mxu3  ;;  %366 = vst.msk [vmem:[%s1045_s11 + $0x10] sm:$0xff] %vm363_vm2, %v349_v47  ;;  %v330_v51 = vadd.f32 %v819_v18, %v329_v49 }
  0xae   : > { %v342_v52 = vadd.f32 %v819_v18, %v341_v50  ;;  %370 = vst.msk [vmem:[%s1045_s11 + $0x30] sm:$0xff] %vm363_vm2, %v353_v48 }
  0xaf   : > { %v357_v53 = vmax.f32 %v330_v51, 0.0 }
  0xb0   : > { %v361_v54 = vmax.f32 %v342_v52, 0.0  ;;  %v308_v55 = vpop.f32.mrf.mxu0 }
  0xb1   : > { %v320_v56 = vpop.f32.mrf.mxu1  ;;  %374 = vst.msk [vmem:[%s1045_s11 + $0x50] sm:$0xff] %vm363_vm2, %v357_v53  ;;  %v309_v57 = vadd.f32 %v819_v18, %v308_v55 }
  0xb2   : > { %v321_v58 = vadd.f32 %v819_v18, %v320_v56  ;;  %378 = vst.msk [vmem:[%s1045_s11 + $0x70] sm:$0xff] %vm363_vm2, %v361_v54 }
  0xb3   : > { %v350_v59 = vmax.f32 %v309_v57, 0.0 }
  0xb4   : > { %v354_v60 = vmax.f32 %v321_v58, 0.0  ;;  %v332_v61 = vpop.f32.mrf.mxu2 }
  0xb5   : > { %v344_v62 = vpop.f32.mrf.mxu3  ;;  %367 = vst.msk [vmem:[%s1045_s11 + $0x18] sm:$0xff] %vm363_vm2, %v350_v59  ;;  %v333_v63 = vadd.f32 %v819_v18, %v332_v61 }
  0xb6   : > { %v345_v0 = vadd.f32 %v819_v18, %v344_v62  ;;  %371 = vst.msk [vmem:[%s1045_s11 + $0x38] sm:$0xff] %vm363_vm2, %v354_v60  ;;  %386 = sbr.rel (!%p988_p4) target bundleno = 235 (0xeb), region = 40 }
  0xb7   : > { %v358_v1 = vmax.f32 %v333_v63, 0.0 }
  0xb8   : > { %v362_v2 = vmax.f32 %v345_v0, 0.0 }
  0xb9   : > { %375 = vst.msk [vmem:[%s1045_s11 + $0x58] sm:$0xff] %vm363_vm2, %v358_v1 }
  0xba   : > { %379 = vst.msk [vmem:[%s1045_s11 + $0x78] sm:$0xff] %vm363_vm2, %v362_v2 }
  0xbb   : > { %s1197_s12 = smov (!%p389_p11, %s388_s12), 16 }
  0xbc   : > { %s696_s22 = sshll.u32 %s1197_s12, 3 }
  0xbd   : > { %p699_p12 = scmp.eq.s32.totalorder %s696_s22, 0 }
  0xbe   : > { %s1092_s23 = sshrl.u32 (!%p699_p12), %s1197_s12, 4 }
  0xbf   : > { %397 = sbr.rel (%p699_p12) target bundleno = 235 (0xeb), region = 44  ;;  %p700_p13 = scmp.le.s32.totalorder (!%p699_p12), %s1092_s23, 0 }
  0xc4   : > { %615 = sbr.rel (%p700_p13) target bundleno = 218 (0xda), region = 121  ;;  %s1188_s15 = smov (!%p700_p13), %s1086_s21 }
  0xc5   : > { %s1189_s20 = smov (!%p700_p13), %s1045_s11  ;;  %s1101_s24 = smov (!%p700_p13), 0  }
  0xc6   : > { %s1103_s25 = smov (!%p700_p13), 0  }
  0xc9 LB: >> { %v490_v3 = vld [vmem:[%s916_s20] sm:$0xff]  ;;  %v492_v4 = vld [vmem:[%s916_s20 + $0x8] sm:$0xff]  ;;  %v494_v5 = vld [vmem:[%s916_s20 + $0x10] sm:$0xff]  ;;  %s522_s26 = sadd.s32 1, %s920_s24  ;;  %s484_s25 = sadd.s32 1, %s924_s25   ;;  %s924_s25 = sphi %s1103_s25, %s484_s25   ;;  %s920_s24 = sphi %s1101_s24, %s1192_s24   ;;  %s916_s20 = sphi %s1189_s20, %s1191_s20   ;;  %s912_s15 = sphi %s1188_s15, %s1190_s15  }
  0xca   : >> { %491 = vst [vmem:[%s912_s15] sm:$0xff] %v490_v3  ;;  %v496_v6 = vld [vmem:[%s916_s20 + $0x18] sm:$0xff]  ;;  %p523_p0 = scmp.ge.s32.totalorder %s522_s26, %s1092_s23  ;;  %v498_v7 = vld [vmem:[%s916_s20 + $0x20] sm:$0xff]  ;;  %v500_v8 = vld [vmem:[%s916_s20 + $0x28] sm:$0xff]  ;;  %p483_p1 = scmp.ge.s32.totalorder %s484_s25, %s1092_s23 }
  0xcb   : >> { %493 = vst [vmem:[%s912_s15 + $0x8] sm:$0xff] %v492_v4  ;;  %v502_v9 = vld [vmem:[%s916_s20 + $0x30] sm:$0xff]  ;;  %v504_v10 = vld [vmem:[%s916_s20 + $0x38] sm:$0xff]  ;;  %v506_v11 = vld [vmem:[%s916_s20 + $0x40] sm:$0xff] }
  0xcc   : >> { %495 = vst [vmem:[%s912_s15 + $0x10] sm:$0xff] %v494_v5  ;;  %s1199_s26 = smov (%p523_p0, %s522_s26), 0  ;;  %v508_v12 = vld [vmem:[%s916_s20 + $0x48] sm:$0xff]  ;;  %v510_v13 = vld [vmem:[%s916_s20 + $0x50] sm:$0xff]  ;;  %v512_v14 = vld [vmem:[%s916_s20 + $0x58] sm:$0xff] }
  0xcd   : >> { %497 = vst [vmem:[%s912_s15 + $0x18] sm:$0xff] %v496_v6  ;;  %s701_s27 = sshll.u32 %s1199_s26, 7  ;;  %v514_v15 = vld [vmem:[%s916_s20 + $0x60] sm:$0xff]  ;;  %v516_v16 = vld [vmem:[%s916_s20 + $0x68] sm:$0xff]  ;;  %v518_v17 = vld [vmem:[%s916_s20 + $0x70] sm:$0xff]  ;;  %s1192_s24 = smov %s1199_s26 }
  0xce   : >> { %499 = vst [vmem:[%s912_s15 + $0x20] sm:$0xff] %v498_v7  ;;  %s527_s28 = scalar_lea.vmem %s1045_s11, %s701_s27 [#allocation4]   ;;  %s528_s29 = scalar_lea.vmem %s1086_s21, %s701_s27   ;;  %v520_v18 = vld [vmem:[%s916_s20 + $0x78] sm:$0xff] }
  0xcf   : >> { %501 = vst [vmem:[%s912_s15 + $0x28] sm:$0xff] %v500_v8  ;;  %s1191_s20 = smov %s527_s28 }
  0xd0   : >> { %503 = vst [vmem:[%s912_s15 + $0x30] sm:$0xff] %v502_v9 }
  0xd1   : >> { %505 = vst [vmem:[%s912_s15 + $0x38] sm:$0xff] %v504_v10 }
  0xd2   : >> { %507 = vst [vmem:[%s912_s15 + $0x40] sm:$0xff] %v506_v11 }
  0xd3   : >> { %509 = vst [vmem:[%s912_s15 + $0x48] sm:$0xff] %v508_v12 }
  0xd4   : >> { %511 = vst [vmem:[%s912_s15 + $0x50] sm:$0xff] %v510_v13 }
  0xd5   : >> { %513 = vst [vmem:[%s912_s15 + $0x58] sm:$0xff] %v512_v14  ;;  %486 = sbr.rel (!%p483_p1) target bundleno = 201 (0xc9), region = 127 }
  0xd6   : >> { %515 = vst [vmem:[%s912_s15 + $0x60] sm:$0xff] %v514_v15 }
  0xd7   : >> { %517 = vst [vmem:[%s912_s15 + $0x68] sm:$0xff] %v516_v16 }
  0xd8   : >> { %519 = vst [vmem:[%s912_s15 + $0x70] sm:$0xff] %v518_v17 }
  0xd9   : >> { %521 = vst [vmem:[%s912_s15 + $0x78] sm:$0xff] %v520_v18  ;;  %s1190_s15 = smov %s528_s29 }
  0xda PF: > { %s1165_s30 = sand.u32 15, %s1197_s12   ;;  %s712_s4 = sshll.u32 %s1092_s23, 7 }
  0xdb   : > { %s533_s5 = scalar_lea.vmem %s1045_s11, %s712_s4 [#allocation4]   ;;  %s535_s6 = scalar_lea.vmem %s1086_s21, %s712_s4  }
  0xdc   : > { %p706_p2 = scmp.le.s32.totalorder %s1165_s30, 0 }
  0xdd   : > { %s926_s7 = smov (!%p706_p2), %s535_s6   ;;  %s930_s8 = smov (!%p706_p2), %s533_s5  }
  0xde   : > { %629 = sbr.rel (%p706_p2) target bundleno = 235 (0xeb), region = 132  ;;  %s934_s9 = smov (!%p706_p2), 0  }
  0xdf   : > { %s938_s10 = smov (!%p706_p2), 0  }
  0xe3 LB: >> { %v545_v19 = vld [vmem:[%s932_s8] sm:$0xff]  ;;  %s547_s12 = sadd.s32 1, %s936_s9  ;;  %s539_s10 = sadd.s32 1, %s940_s10   ;;  %s940_s10 = sphi %s938_s10, %s539_s10   ;;  %s936_s9 = sphi %s934_s9, %s935_s9   ;;  %s932_s8 = sphi %s930_s8, %s552_s8   ;;  %s928_s7 = sphi %s926_s7, %s553_s7  }
  0xe4   : >> { %546 = vst [vmem:[%s928_s7] sm:$0xff] %v545_v19  ;;  %p548_p3 = scmp.ge.s32.totalorder %s547_s12, %s1165_s30  ;;  %p538_p4 = scmp.ge.s32.totalorder %s539_s10, %s1165_s30 }
  0xe6   : >> { %s1201_s12 = smov (%p548_p3, %s547_s12), 0  ;;  %541 = sbr.rel (!%p538_p4) target bundleno = 227 (0xe3), region = 138 }
  0xe7   : >> { %s707_s11 = sshll.u32 %s1201_s12, 3  ;;  %s935_s9 = smov %s1201_s12  }
  0xe8   : >> { %s552_s8 = scalar_lea.vmem %s533_s5, %s707_s11 [#allocation4]   ;;  %s553_s7 = scalar_lea.vmem %s535_s6, %s707_s11  }
  0xeb PF: > { %p11_p5 = scmp.ge.s32.totalorder %s978_s16, 6   ;;  %s1193_s12 = smov %s904_s13 }
  0xec   : > { %s1194_s13 = smov %s986_s19  ;;  %s1195_s14 = smov %s978_s16 }
  0xed   :  { %13 = sbr.rel (!%p11_p5) target bundleno = 2 (0x2), region = 149 }
  0xf2   :  { %569 = vsyncpa [#allocation3], 1 }
  0xf3   :  { %571 = vsyncpa [#allocation3 + $0x1], 1 }

// kernel: model_forward.11
= control target key start
LH: loop header
LB: loop body
LE: loop exit
PB: predicated region body
PF: predicated region fallthrough
CT: control target
= control target key end

     0   :  { %vm93_vm0 = vcmask 261120   ;;  %vm326_vm1 = vcmask 254976   ;;  %s777_s1 = inlined_call_operand.vmem [shape: f32[288,32], index: 1, kind: input, shape index: {}]   ;;  %s778_s0 = inlined_call_operand.vmem [shape: f32[98,288], index: 0, kind: input, shape index: {}]   ;;  %s779_s2 = inlined_call_operand.vmem [shape: f32[1,32], index: 2, kind: input, shape index: {}]   ;;  %s780_s3 = inlined_call_operand.vmem [shape: f32[98,32], index: 3, kind: output, shape index: {}]  }
   0x1   :  { %v68_v0 = vld [vmem:[%s777_s1 + $0x78] sm:$0xff]  ;;  %v67_v2 = vld [vmem:[%s777_s1 + $0x70] sm:$0xff]  ;;  %v66_v5 = vld [vmem:[%s777_s1 + $0x68] sm:$0xff] }
   0x2   :  { %v408_v1 = vld [vmem:[%s777_s1 + $0x118] sm:$0xff]  ;;  %133 = vmatpush.msra.mxu0 %v68_v0  ;;  %345 = vmatpush.msra.mxu3 %v68_v0  ;;  %v421_v4 = vld [vmem:[%s777_s1 + $0x110] sm:$0xff]  ;;  %v436_v7 = vld [vmem:[%s777_s1 + $0x108] sm:$0xff] }
   0x3   :  { %v416_v3 = vld [vmem:[%s777_s1 + $0xf8] sm:$0xff]  ;;  %257 = vmatpush.msra.mxu2 %v408_v1  ;;  %v431_v6 = vld [vmem:[%s777_s1 + $0xf0] sm:$0xff]  ;;  %v441_v8 = vld [vmem:[%s777_s1 + $0xe8] sm:$0xff] }
   0x4   :  { %189 = vmatpush.msra.mxu1 %v416_v3  ;;  %134 = vmatpush.msra.mxu0 %v67_v2  ;;  %v65_v9 = vld [vmem:[%s777_s1 + $0x60] sm:$0xff]  ;;  %v16_v12 = vld [vmem:[%s778_s0 + $0x10] sm:$0xff]  ;;  %v64_v13 = vld [vmem:[%s777_s1 + $0x58] sm:$0xff] }
   0x5   :  { %346 = vmatpush.msra.mxu3 %v67_v2  ;;  %258 = vmatpush.msra.mxu2 %v421_v4  ;;  %v451_v10 = vld [vmem:[%s777_s1 + $0x100] sm:$0xff]  ;;  %v469_v14 = vld [vmem:[%s777_s1 + $0xd8] sm:$0xff]  ;;  %v63_v15 = vld [vmem:[%s777_s1 + $0x50] sm:$0xff] }
   0x6   :  { %190 = vmatpush.msra.mxu1 %v431_v6  ;;  %135 = vmatpush.msra.mxu0 %v66_v5  ;;  %v456_v11 = vld [vmem:[%s777_s1 + $0xe0] sm:$0xff]  ;;  %v480_v16 = vld [vmem:[%s777_s1 + $0xd0] sm:$0xff]  ;;  %v62_v17 = vld [vmem:[%s777_s1 + $0x48] sm:$0xff] }
   0x7   :  { %347 = vmatpush.msra.mxu3 %v66_v5  ;;  %259 = vmatpush.msra.mxu2 %v436_v7  ;;  %v489_v18 = vld [vmem:[%s777_s1 + $0xc8] sm:$0xff]  ;;  %v61_v19 = vld [vmem:[%s777_s1 + $0x40] sm:$0xff]  ;;  %v60_v22 = vld [vmem:[%s777_s1 + $0x38] sm:$0xff] }
   0x8   :  { %191 = vmatpush.msra.mxu1 %v441_v8  ;;  %136 = vmatpush.msra.mxu0 %v65_v9  ;;  %v498_v20 = vld [vmem:[%s777_s1 + $0xc0] sm:$0xff]  ;;  %v19_v21 = vld [vmem:[%s778_s0 + $0x28] sm:$0xff]  ;;  %v510_v23 = vld [vmem:[%s777_s1 + $0xb8] sm:$0xff] }
   0x9   :  { %348 = vmatpush.msra.mxu3 %v65_v9  ;;  %260 = vmatpush.msra.mxu2 %v451_v10  ;;  %v59_v24 = vld [vmem:[%s777_s1 + $0x30] sm:$0xff]  ;;  %v58_v26 = vld [vmem:[%s777_s1 + $0x28] sm:$0xff]  ;;  %v57_v28 = vld [vmem:[%s777_s1 + $0x20] sm:$0xff] }
   0xa   :  { %192 = vmatpush.msra.mxu1 %v456_v11  ;;  %332 = vmatmul.msk.f32.vlgmr.msra.gmra.mxu2 %vm93_vm0, %v16_v12  ;;  %v520_v25 = vld [vmem:[%s777_s1 + $0xb0] sm:$0xff]  ;;  %v529_v27 = vld [vmem:[%s777_s1 + $0xa8] sm:$0xff]  ;;  %v538_v29 = vld [vmem:[%s777_s1 + $0xa0] sm:$0xff] }
   0xb   :  { %137 = vmatpush.msra.mxu0 %v64_v13  ;;  %349 = vmatpush.msra.mxu3 %v64_v13  ;;  %v22_v30 = vld [vmem:[%s778_s0 + $0x40] sm:$0xff]  ;;  %v56_v31 = vld [vmem:[%s777_s1 + $0x18] sm:$0xff]  ;;  %v55_v33 = vld [vmem:[%s777_s1 + $0x10] sm:$0xff] }
   0xc   :  { %193 = vmatpush.msra.mxu1 %v469_v14  ;;  %v550_v32 = vld [vmem:[%s777_s1 + $0x98] sm:$0xff]  ;;  %v71_v34 = vld [vmem:[%s777_s1 + $0x90] sm:$0xff]  ;;  %v54_v35 = vld [vmem:[%s777_s1 + $0x8] sm:$0xff] }
   0xd   :  { %138 = vmatpush.msra.mxu0 %v63_v15  ;;  %350 = vmatpush.msra.mxu3 %v63_v15  ;;  %v70_v36 = vld [vmem:[%s777_s1 + $0x88] sm:$0xff]  ;;  %v53_v37 = vld [vmem:[%s777_s1] sm:$0xff]  ;;  %v41_v39 = vld [vmem:[%s778_s0 + $0xd8] sm:$0xff] }
   0xe   :  { %194 = vmatpush.msra.mxu1 %v480_v16  ;;  %v14_v38 = vld [vmem:[%s778_s0] sm:$0xff]  ;;  %v25_v40 = vld [vmem:[%s778_s0 + $0x58] sm:$0xff]  ;;  %v15_v42 = vld [vmem:[%s778_s0 + $0x8] sm:$0xff] }
   0xf   :  { %139 = vmatpush.msra.mxu0 %v62_v17  ;;  %351 = vmatpush.msra.mxu3 %v62_v17  ;;  %v69_v41 = vld [vmem:[%s777_s1 + $0x80] sm:$0xff]  ;;  %v17_v43 = vld [vmem:[%s778_s0 + $0x18] sm:$0xff]  ;;  %v44_v44 = vld [vmem:[%s778_s0 + $0xf0] sm:$0xff] }
  0x10   :  { %195 = vmatpush.msra.mxu1 %v489_v18  ;;  %v28_v45 = vld [vmem:[%s778_s0 + $0x70] sm:$0xff]  ;;  %v18_v46 = vld [vmem:[%s778_s0 + $0x20] sm:$0xff]  ;;  %v47_v48 = vld [vmem:[%s778_s0 + $0x108] sm:$0xff] }
  0x11   :  { %140 = vmatpush.msra.mxu0 %v61_v19  ;;  %352 = vmatpush.msra.mxu3 %v61_v19  ;;  %v20_v47 = vld [vmem:[%s778_s0 + $0x30] sm:$0xff]  ;;  %v31_v49 = vld [vmem:[%s778_s0 + $0x88] sm:$0xff]  ;;  %v21_v50 = vld [vmem:[%s778_s0 + $0x38] sm:$0xff] }
  0x12   :  { %196 = vmatpush.msra.mxu1 %v498_v20  ;;  %333 = vmatmul.msk.f32.gmra.mxu2 %vm93_vm0, %v19_v21  ;;  %v23_v51 = vld [vmem:[%s778_s0 + $0x48] sm:$0xff]  ;;  %v50_v52 = vld [vmem:[%s778_s0 + $0x120] sm:$0x3]  ;;  %v24_v54 = vld [vmem:[%s778_s0 + $0x50] sm:$0xff] }
  0x13   :  { %141 = vmatpush.msra.mxu0 %v60_v22  ;;  %353 = vmatpush.msra.mxu3 %v60_v22  ;;  %v34_v53 = vld [vmem:[%s778_s0 + $0xa0] sm:$0xff]  ;;  %v37_v57 = vld [vmem:[%s778_s0 + $0xb8] sm:$0xff]  ;;  %v27_v58 = vld [vmem:[%s778_s0 + $0x68] sm:$0xff] }
  0x14   :  { %197 = vmatpush.msra.mxu1 %v510_v23  ;;  %v26_v55 = vld [vmem:[%s778_s0 + $0x60] sm:$0xff]  ;;  %v29_v59 = vld [vmem:[%s778_s0 + $0x78] sm:$0xff]  ;;  %v40_v61 = vld [vmem:[%s778_s0 + $0xd0] sm:$0xff] }
  0x15   :  { %142 = vmatpush.msra.mxu0 %v59_v24  ;;  %354 = vmatpush.msra.mxu3 %v59_v24  ;;  %v42_v56 = vld [vmem:[%s778_s0 + $0xe0] sm:$0xff]  ;;  %v45_v60 = vld [vmem:[%s778_s0 + $0xf8] sm:$0xff]  ;;  %v32_v63 = vld [vmem:[%s778_s0 + $0x90] sm:$0xff] }
  0x16   :  { %198 = vmatpush.msra.mxu1 %v520_v25  ;;  %v30_v62 = vld [vmem:[%s778_s0 + $0x80] sm:$0xff]  ;;  %v48_v0 = vld [vmem:[%s778_s0 + $0x110] sm:$0xff]  ;;  %v33_v2 = vld [vmem:[%s778_s0 + $0x98] sm:$0xff] }
  0x17   :  { %143 = vmatpush.msra.mxu0 %v58_v26  ;;  %355 = vmatpush.msra.mxu3 %v58_v26  ;;  %v46_v5 = vld [vmem:[%s778_s0 + $0x100] sm:$0xff]  ;;  %v52_v9 = vld [vmem:[%s778_s0 + $0x130] sm:$0x3] }
  0x18   :  { %199 = vmatpush.msra.mxu1 %v529_v27  ;;  %v711_v13 = vld [vmem:[%s779_s2] ss:$0 sm:$0xff] }
  0x19   :  { %144 = vmatpush.msra.mxu0 %v57_v28  ;;  %356 = vmatpush.msra.mxu3 %v57_v28 }
  0x1a   :  { %200 = vmatpush.msra.mxu1 %v538_v29  ;;  %334 = vmatmul.msk.f32.gmra.mxu2 %vm93_vm0, %v22_v30 }
  0x1b   :  { %145 = vmatpush.msra.mxu0 %v56_v31  ;;  %357 = vmatpush.msra.mxu3 %v56_v31 }
  0x1c   :  { %201 = vmatpush.msra.mxu1 %v550_v32 }
  0x1d   :  { %146 = vmatpush.msra.mxu0 %v55_v33  ;;  %358 = vmatpush.msra.mxu3 %v55_v33 }
  0x1e   :  { %202 = vmatpush.msra.mxu1 %v71_v34 }
  0x1f   :  { %147 = vmatpush.msra.mxu0 %v54_v35  ;;  %359 = vmatpush.msra.mxu3 %v54_v35 }
  0x20   :  { %203 = vmatpush.msra.mxu1 %v70_v36 }
  0x21   :  { %148 = vmatpush.msra.mxu0 %v53_v37  ;;  %360 = vmatpush.msra.mxu3 %v53_v37 }
  0x22   :  { %149 = vmatmul.f32.vlgmr.msra.gmra.mxu0 %v14_v38  ;;  %176 = vmatmul.f32.vlgmr.msra.gmra.mxu3 %v41_v39 }
  0x23   :  { %335 = vmatmul.msk.f32.gmra.mxu2 %vm93_vm0, %v25_v40  ;;  %361 = vmatpush.msrb.mxu3 %v416_v3  ;;  %v35_v3 = vld [vmem:[%s778_s0 + $0xa8] sm:$0xff] }
  0x24   :  { %204 = vmatpush.msra.mxu1 %v69_v41 }
  0x25   :  { %205 = vmatmul.f32.vlgmr.msra.gmra.mxu1 %v15_v42  ;;  %362 = vmatpush.msrb.mxu3 %v431_v6  ;;  %v36_v6 = vld [vmem:[%s778_s0 + $0xb0] sm:$0xff] }
  0x27   :  { %363 = vmatpush.msrb.mxu3 %v441_v8  ;;  %v49_v8 = vld [vmem:[%s778_s0 + $0x118] sm:$0xff] }
  0x29   :  { %364 = vmatpush.msrb.mxu3 %v456_v11 }
  0x2a   :  { %152 = vmatmul.f32.gmra.mxu0 %v17_v43  ;;  %179 = vmatmul.f32.gmra.mxu3 %v44_v44 }
  0x2b   :  { %336 = vmatmul.msk.f32.gmra.mxu2 %vm93_vm0, %v28_v45  ;;  %365 = vmatpush.msrb.mxu3 %v469_v14 }
  0x2d   :  { %208 = vmatmul.f32.gmra.mxu1 %v18_v46  ;;  %366 = vmatpush.msrb.mxu3 %v480_v16 }
  0x2f   :  { %367 = vmatpush.msrb.mxu3 %v489_v18 }
  0x31   :  { %368 = vmatpush.msrb.mxu3 %v498_v20 }
  0x32   :  { %155 = vmatmul.f32.gmra.mxu0 %v20_v47  ;;  %182 = vmatmul.f32.gmra.mxu3 %v47_v48 }
  0x33   :  { %337 = vmatmul.msk.f32.gmra.mxu2 %vm93_vm0, %v31_v49  ;;  %369 = vmatpush.msrb.mxu3 %v510_v23 }
  0x35   :  { %211 = vmatmul.f32.gmra.mxu1 %v21_v50  ;;  %370 = vmatpush.msrb.mxu3 %v520_v25 }
  0x37   :  { %371 = vmatpush.msrb.mxu3 %v529_v27 }
  0x39   :  { %372 = vmatpush.msrb.mxu3 %v538_v29 }
  0x3a   :  { %158 = vmatmul.f32.gmra.mxu0 %v23_v51  ;;  %185 = vmatmul.f32.gmra.mxu3 %v50_v52 }
  0x3b   :  { %338 = vmatmul.msk.f32.gmra.mxu2 %vm93_vm0, %v34_v53  ;;  %373 = vmatpush.msrb.mxu3 %v550_v32 }
  0x3d   :  { %214 = vmatmul.f32.gmra.mxu1 %v24_v54  ;;  %374 = vmatpush.msrb.mxu3 %v71_v34 }
  0x3f   :  { %375 = vmatpush.msrb.mxu3 %v70_v36 }
  0x41   :  { %376 = vmatpush.msrb.mxu3 %v69_v41 }
  0x42   :  { %161 = vmatmul.f32.gmra.mxu0 %v26_v55  ;;  %232 = vmatmul.f32.vlgmr.msrb.gmra.mxu3 %v42_v56 }
  0x43   :  { %339 = vmatmul.msk.f32.gmra.mxu2 %vm93_vm0, %v37_v57  ;;  %377 = vmatpush.msra.mxu3 %v408_v1  ;;  %v43_v1 = vld [vmem:[%s778_s0 + $0xe8] sm:$0xff] }
  0x45   :  { %217 = vmatmul.f32.gmra.mxu1 %v27_v58  ;;  %378 = vmatpush.msra.mxu3 %v421_v4  ;;  %v51_v4 = vld [vmem:[%s778_s0 + $0x128] sm:$0x3] }
  0x47   :  { %379 = vmatpush.msra.mxu3 %v436_v7  ;;  %v38_v7 = vld [vmem:[%s778_s0 + $0xc0] sm:$0xff] }
  0x49   :  { %380 = vmatpush.msra.mxu3 %v451_v10  ;;  %v39_v10 = vld [vmem:[%s778_s0 + $0xc8] sm:$0xff] }
  0x4a   :  { %164 = vmatmul.f32.gmra.mxu0 %v29_v59  ;;  %235 = vmatmul.f32.gmra.mxu3 %v45_v60 }
  0x4b   :  { %340 = vmatmul.msk.f32.gmra.mxu2 %vm93_vm0, %v40_v61 }
  0x4d   :  { %220 = vmatmul.f32.gmra.mxu1 %v30_v62 }
  0x52   :  { %167 = vmatmul.f32.gmra.mxu0 %v32_v63  ;;  %238 = vmatmul.f32.gmra.mxu3 %v48_v0 }
  0x53   :  { %341 = vmatmul.msk.f32.gmra.mxu2 %vm93_vm0, %v43_v1 }
  0x55   :  { %223 = vmatmul.f32.gmra.mxu1 %v33_v2 }
  0x5a   :  { %170 = vmatmul.f32.gmra.mxu0 %v35_v3  ;;  %241 = vmatmul.f32.gmra.mxu3 %v51_v4 }
  0x5b   :  { %342 = vmatmul.msk.f32.gmra.mxu2 %vm93_vm0, %v46_v5 }
  0x5d   :  { %226 = vmatmul.f32.gmra.mxu1 %v36_v6 }
  0x62   :  { %173 = vmatmul.f32.gmra.mxu0 %v38_v7  ;;  %344 = vmatmul.msk.f32.vlgmr.msra.gmra.mxu3 %vm93_vm0, %v52_v9 }
  0x63   :  { %343 = vmatmul.msk.f32.gmra.mxu2 %vm93_vm0, %v49_v8 }
  0x65   :  { %229 = vmatmul.f32.gmra.mxu1 %v39_v10 }
  0x8d   :  { %v262_v11 = vpop.f32.mrf.mxu2 }
  0x95   :  { %v265_v12 = vpop.f32.mrf.mxu2 }
  0x9d   :  { %v268_v14 = vpop.f32.mrf.mxu2 }
  0x9f   :  { %v150_v15 = vpop.f32.mrf.mxu0 }
  0xa0   :  { %v151_v16 = vadd.f32 %v711_v13, %v150_v15 }
  0xa2   :  { %v206_v17 = vpop.f32.mrf.mxu1 }
  0xa3   :  { %v207_v18 = vadd.f32 %v206_v17, %v151_v16 }
  0xa5   :  { %v263_v19 = vadd.f32 %v262_v11, %v207_v18  ;;  %v177_v20 = vpop.f32.mrf.mxu3 }
  0xa6   :  { %v271_v21 = vpop.f32.mrf.mxu2  ;;  %v178_v2 = vadd.f32 %v711_v13, %v177_v20 }
  0xa7   :  { %v301_v22 = vmax.f32 %v263_v19, 0.0  ;;  %v153_v23 = vpop.f32.mrf.mxu0 }
  0xa8   :  { %v154_v24 = vadd.f32 %v711_v13, %v153_v23 }
  0xa9   :  { %314 = vst.msk [vmem:[%s780_s3] sm:$0xff] %vm93_vm0, %v301_v22 }
  0xaa   :  { %v209_v25 = vpop.f32.mrf.mxu1 }
  0xab   :  { %v210_v26 = vadd.f32 %v209_v25, %v154_v24 }
  0xad   :  { %v266_v27 = vadd.f32 %v265_v12, %v210_v26  ;;  %v180_v28 = vpop.f32.mrf.mxu3 }
  0xae   :  { %v274_v29 = vpop.f32.mrf.mxu2  ;;  %v181_v15 = vadd.f32 %v711_v13, %v180_v28 }
  0xaf   :  { %v302_v30 = vmax.f32 %v266_v27, 0.0  ;;  %v156_v31 = vpop.f32.mrf.mxu0 }
  0xb0   :  { %v157_v32 = vadd.f32 %v711_v13, %v156_v31 }
  0xb1   :  { %315 = vst.msk [vmem:[%s780_s3 + $0x8] sm:$0xff] %vm93_vm0, %v302_v30 }
  0xb2   :  { %v212_v33 = vpop.f32.mrf.mxu1 }
  0xb3   :  { %v213_v34 = vadd.f32 %v212_v33, %v157_v32 }
  0xb5   :  { %v269_v35 = vadd.f32 %v268_v14, %v213_v34  ;;  %v183_v36 = vpop.f32.mrf.mxu3 }
  0xb6   :  { %v277_v37 = vpop.f32.mrf.mxu2  ;;  %v184_v27 = vadd.f32 %v711_v13, %v183_v36 }
  0xb7   :  { %v303_v38 = vmax.f32 %v269_v35, 0.0  ;;  %v159_v39 = vpop.f32.mrf.mxu0 }
  0xb8   :  { %v160_v40 = vadd.f32 %v711_v13, %v159_v39 }
  0xb9   :  { %316 = vst.msk [vmem:[%s780_s3 + $0x10] sm:$0xff] %vm93_vm0, %v303_v38 }
  0xba   :  { %v215_v41 = vpop.f32.mrf.mxu1 }
  0xbb   :  { %v216_v42 = vadd.f32 %v215_v41, %v160_v40 }
  0xbd   :  { %v272_v43 = vadd.f32 %v271_v21, %v216_v42  ;;  %v186_v44 = vpop.f32.mrf.mxu3 }
  0xbe   :  { %v280_v45 = vpop.f32.mrf.mxu2  ;;  %v187_v28 = vadd.f32 %v711_v13, %v186_v44 }
  0xbf   :  { %v304_v46 = vmax.f32 %v272_v43, 0.0  ;;  %v162_v47 = vpop.f32.mrf.mxu0 }
  0xc0   :  { %v163_v48 = vadd.f32 %v711_v13, %v162_v47 }
  0xc1   :  { %317 = vst.msk [vmem:[%s780_s3 + $0x18] sm:$0xff] %vm93_vm0, %v304_v46 }
  0xc2   :  { %v218_v49 = vpop.f32.mrf.mxu1 }
  0xc3   :  { %v219_v50 = vadd.f32 %v218_v49, %v163_v48 }
  0xc5   :  { %v275_v51 = vadd.f32 %v274_v29, %v219_v50  ;;  %v233_v52 = vpop.f32.mrf.mxu3 }
  0xc6   :  { %v283_v53 = vpop.f32.mrf.mxu2  ;;  %v234_v4 = vadd.f32 %v233_v52, %v178_v2 }
  0xc7   :  { %v305_v54 = vmax.f32 %v275_v51, 0.0  ;;  %v165_v55 = vpop.f32.mrf.mxu0 }
  0xc8   :  { %v166_v56 = vadd.f32 %v711_v13, %v165_v55 }
  0xc9   :  { %318 = vst.msk [vmem:[%s780_s3 + $0x20] sm:$0xff] %vm93_vm0, %v305_v54 }
  0xca   :  { %v221_v57 = vpop.f32.mrf.mxu1 }
  0xcb   :  { %v222_v58 = vadd.f32 %v221_v57, %v166_v56 }
  0xcd   :  { %v278_v59 = vadd.f32 %v277_v37, %v222_v58  ;;  %v236_v60 = vpop.f32.mrf.mxu3 }
  0xce   :  { %v286_v61 = vpop.f32.mrf.mxu2  ;;  %v237_v17 = vadd.f32 %v236_v60, %v181_v15 }
  0xcf   :  { %v306_v62 = vmax.f32 %v278_v59, 0.0  ;;  %v168_v63 = vpop.f32.mrf.mxu0 }
  0xd0   :  { %v169_v0 = vadd.f32 %v711_v13, %v168_v63 }
  0xd1   :  { %319 = vst.msk [vmem:[%s780_s3 + $0x28] sm:$0xff] %vm93_vm0, %v306_v62 }
  0xd2   :  { %v224_v1 = vpop.f32.mrf.mxu1 }
  0xd3   :  { %v225_v3 = vadd.f32 %v224_v1, %v169_v0 }
  0xd5   :  { %v281_v5 = vadd.f32 %v280_v45, %v225_v3  ;;  %v239_v6 = vpop.f32.mrf.mxu3 }
  0xd6   :  { %v289_v7 = vpop.f32.mrf.mxu2  ;;  %v240_v30 = vadd.f32 %v239_v6, %v184_v27 }
  0xd7   :  { %v307_v8 = vmax.f32 %v281_v5, 0.0  ;;  %v290_v9 = vadd.f32 %v289_v7, %v234_v4  ;;  %v171_v10 = vpop.f32.mrf.mxu0 }
  0xd8   :  { %v172_v11 = vadd.f32 %v711_v13, %v171_v10 }
  0xd9   :  { %320 = vst.msk [vmem:[%s780_s3 + $0x30] sm:$0xff] %vm93_vm0, %v307_v8  ;;  %v310_v12 = vmax.f32 %v290_v9, 0.0 }
  0xda   :  { %v227_v14 = vpop.f32.mrf.mxu1 }
  0xdb   :  { %323 = vst.msk [vmem:[%s780_s3 + $0x48] sm:$0xff] %vm93_vm0, %v310_v12  ;;  %v228_v16 = vadd.f32 %v227_v14, %v172_v11 }
  0xdd   :  { %v284_v18 = vadd.f32 %v283_v53, %v228_v16  ;;  %v242_v19 = vpop.f32.mrf.mxu3 }
  0xde   :  { %v292_v20 = vpop.f32.mrf.mxu2  ;;  %v243_v31 = vadd.f32 %v242_v19, %v187_v28 }
  0xdf   :  { %v308_v21 = vmax.f32 %v284_v18, 0.0  ;;  %v293_v22 = vadd.f32 %v292_v20, %v237_v17  ;;  %v174_v23 = vpop.f32.mrf.mxu0 }
  0xe0   :  { %v175_v24 = vadd.f32 %v711_v13, %v174_v23 }
  0xe1   :  { %321 = vst.msk [vmem:[%s780_s3 + $0x38] sm:$0xff] %vm93_vm0, %v308_v21  ;;  %v311_v25 = vmax.f32 %v293_v22, 0.0 }
  0xe2   :  { %v230_v26 = vpop.f32.mrf.mxu1 }
  0xe3   :  { %324 = vst.msk [vmem:[%s780_s3 + $0x50] sm:$0xff] %vm93_vm0, %v311_v25  ;;  %v231_v29 = vadd.f32 %v230_v26, %v175_v24 }
  0xe5   :  { %v287_v32 = vadd.f32 %v286_v61, %v231_v29  ;;  %v298_v34 = vpop.f32.mrf.mxu3 }
  0xe6   :  { %v295_v33 = vpop.f32.mrf.mxu2  ;;  %v299_v38 = vadd.f32 %v298_v34, %v243_v31 }
  0xe7   :  { %v309_v35 = vmax.f32 %v287_v32, 0.0  ;;  %v296_v37 = vadd.f32 %v295_v33, %v240_v30 }
  0xe8   :  { %v313_v36 = vmax.f32 %v299_v38, 0.0 }
  0xe9   :  { %322 = vst.msk [vmem:[%s780_s3 + $0x40] sm:$0xff] %vm93_vm0, %v309_v35  ;;  %v312_v13 = vmax.f32 %v296_v37, 0.0 }
  0xea   :  { %327 = vst.msk [vmem:[%s780_s3 + $0x60] sm:$0x3] %vm326_vm1, %v313_v36 }
  0xeb   :  { %325 = vst.msk [vmem:[%s780_s3 + $0x58] sm:$0xff] %vm93_vm0, %v312_v13 }

// kernel: model_forward.12
= control target key start
LH: loop header
LB: loop body
LE: loop exit
PB: predicated region body
PF: predicated region fallthrough
CT: control target
= control target key end

     0   :  { %vm50_vm0 = vcmask 785408   ;;  %vm103_vm1 = vcmask 261120   ;;  %vm105_vm2 = vcmask 259072   ;;  %s257_s1 = inlined_call_operand.vmem [shape: f32[224,32], index: 1, kind: input, shape index: {}]   ;;  %s258_s2 = inlined_call_operand.vmem [shape: f32[1,32], index: 2, kind: input, shape index: {}]   ;;  %s259_s0 = inlined_call_operand.vmem [shape: f32[14,224], index: 0, kind: input, shape index: {}]   ;;  %s260_s3 = inlined_call_operand.vmem [shape: f32[14,32], index: 3, kind: output, shape index: {}]  }
   0x1   :  { %v33_v0 = vld [vmem:[%s257_s1 + $0x78] sm:$0xff]  ;;  %v32_v1 = vld [vmem:[%s257_s1 + $0x70] sm:$0xff]  ;;  %v31_v3 = vld [vmem:[%s257_s1 + $0x68] sm:$0xff] }
   0x2   :  { %57 = vmatpush.msra.mxu0 %v33_v0  ;;  %113 = vmatpush.msra.mxu2 %v33_v0  ;;  %v45_v2 = vld [vmem:[%s257_s1 + $0xd8] sm:$0xff]  ;;  %v44_v4 = vld [vmem:[%s257_s1 + $0xd0] sm:$0xff]  ;;  %v43_v5 = vld [vmem:[%s257_s1 + $0xc8] sm:$0xff] }
   0x3   :  { %84 = vmatpush.msra.mxu1 %v45_v2  ;;  %v30_v6 = vld [vmem:[%s257_s1 + $0x60] sm:$0xff]  ;;  %v29_v8 = vld [vmem:[%s257_s1 + $0x58] sm:$0xff]  ;;  %v28_v10 = vld [vmem:[%s257_s1 + $0x50] sm:$0xff] }
   0x4   :  { %58 = vmatpush.msra.mxu0 %v32_v1  ;;  %114 = vmatpush.msra.mxu2 %v32_v1  ;;  %v42_v7 = vld [vmem:[%s257_s1 + $0xc0] sm:$0xff]  ;;  %v41_v9 = vld [vmem:[%s257_s1 + $0xb8] sm:$0xff]  ;;  %v40_v11 = vld [vmem:[%s257_s1 + $0xb0] sm:$0xff] }
   0x5   :  { %85 = vmatpush.msra.mxu1 %v44_v4  ;;  %v27_v12 = vld [vmem:[%s257_s1 + $0x48] sm:$0xff]  ;;  %v26_v14 = vld [vmem:[%s257_s1 + $0x40] sm:$0xff]  ;;  %v25_v16 = vld [vmem:[%s257_s1 + $0x38] sm:$0xff] }
   0x6   :  { %59 = vmatpush.msra.mxu0 %v31_v3  ;;  %115 = vmatpush.msra.mxu2 %v31_v3  ;;  %v39_v13 = vld [vmem:[%s257_s1 + $0xa8] sm:$0xff]  ;;  %v38_v15 = vld [vmem:[%s257_s1 + $0xa0] sm:$0xff]  ;;  %v37_v17 = vld [vmem:[%s257_s1 + $0x98] sm:$0xff] }
   0x7   :  { %86 = vmatpush.msra.mxu1 %v43_v5  ;;  %v24_v18 = vld [vmem:[%s257_s1 + $0x30] sm:$0xff]  ;;  %v23_v20 = vld [vmem:[%s257_s1 + $0x28] sm:$0xff]  ;;  %v22_v22 = vld [vmem:[%s257_s1 + $0x20] sm:$0xff] }
   0x8   :  { %60 = vmatpush.msra.mxu0 %v30_v6  ;;  %116 = vmatpush.msra.mxu2 %v30_v6  ;;  %v36_v19 = vld [vmem:[%s257_s1 + $0x90] sm:$0xff]  ;;  %v35_v21 = vld [vmem:[%s257_s1 + $0x88] sm:$0xff]  ;;  %v34_v23 = vld [vmem:[%s257_s1 + $0x80] sm:$0xff] }
   0x9   :  { %87 = vmatpush.msra.mxu1 %v42_v7  ;;  %v21_v24 = vld [vmem:[%s257_s1 + $0x18] sm:$0xff]  ;;  %v15_v25 = vld [vmem:[%s259_s0 + $0x8] sm:$0xff]  ;;  %v20_v26 = vld [vmem:[%s257_s1 + $0x10] sm:$0xff] }
   0xa   :  { %61 = vmatpush.msra.mxu0 %v29_v8  ;;  %117 = vmatpush.msra.mxu2 %v29_v8  ;;  %v19_v27 = vld [vmem:[%s257_s1 + $0x8] sm:$0xff]  ;;  %v18_v28 = vld [vmem:[%s257_s1] sm:$0xff]  ;;  %v16_v30 = vld [vmem:[%s259_s0 + $0x10] sm:$0x3f] }
   0xb   :  { %88 = vmatpush.msra.mxu1 %v41_v9  ;;  %v14_v29 = vld [vmem:[%s259_s0] sm:$0xff]  ;;  %v17_v31 = vld [vmem:[%s259_s0 + $0x18] sm:$0x3f] }
   0xc   :  { %62 = vmatpush.msra.mxu0 %v28_v10  ;;  %118 = vmatpush.msra.mxu2 %v28_v10  ;;  %v129_v33 = vld [vmem:[%s258_s2] ss:$0 sm:$0xff] }
   0xd   :  { %89 = vmatpush.msra.mxu1 %v40_v11 }
   0xe   :  { %63 = vmatpush.msra.mxu0 %v27_v12  ;;  %119 = vmatpush.msra.mxu2 %v27_v12 }
   0xf   :  { %90 = vmatpush.msra.mxu1 %v39_v13 }
  0x10   :  { %64 = vmatpush.msra.mxu0 %v26_v14  ;;  %120 = vmatpush.msra.mxu2 %v26_v14 }
  0x11   :  { %91 = vmatpush.msra.mxu1 %v38_v15 }
  0x12   :  { %65 = vmatpush.msra.mxu0 %v25_v16  ;;  %121 = vmatpush.msra.mxu2 %v25_v16 }
  0x13   :  { %92 = vmatpush.msra.mxu1 %v37_v17 }
  0x14   :  { %66 = vmatpush.msra.mxu0 %v24_v18  ;;  %122 = vmatpush.msra.mxu2 %v24_v18 }
  0x15   :  { %93 = vmatpush.msra.mxu1 %v36_v19 }
  0x16   :  { %67 = vmatpush.msra.mxu0 %v23_v20  ;;  %123 = vmatpush.msra.mxu2 %v23_v20 }
  0x17   :  { %94 = vmatpush.msra.mxu1 %v35_v21 }
  0x18   :  { %68 = vmatpush.msra.mxu0 %v22_v22  ;;  %124 = vmatpush.msra.mxu2 %v22_v22 }
  0x19   :  { %95 = vmatpush.msra.mxu1 %v34_v23 }
  0x1a   :  { %69 = vmatpush.msra.mxu0 %v21_v24  ;;  %125 = vmatpush.msra.mxu2 %v21_v24 }
  0x1b   :  { %111 = vmatmul.msk.f32.vlgmr.msra.gmra.mxu1 %vm50_vm0, %v15_v25 }
  0x1c   :  { %70 = vmatpush.msra.mxu0 %v20_v26  ;;  %126 = vmatpush.msra.mxu2 %v20_v26 }
  0x1e   :  { %71 = vmatpush.msra.mxu0 %v19_v27  ;;  %127 = vmatpush.msra.mxu2 %v19_v27 }
  0x20   :  { %72 = vmatpush.msra.mxu0 %v18_v28  ;;  %128 = vmatpush.msra.mxu2 %v18_v28 }
  0x21   :  { %73 = vmatmul.f32.vlgmr.msra.gmra.mxu0 %v14_v29  ;;  %76 = vmatmul.f32.vlgmr.msra.gmra.mxu2 %v16_v30 }
  0x23   :  { %112 = vmatmul.msk.f32.gmra.mxu1 %vm50_vm0, %v17_v31 }
  0x98   :  { %v97_v32 = vpop.f32.mrf.mxu1 }
  0x9e   :  { %v74_v34 = vpop.f32.mrf.mxu0 }
  0x9f   :  { %v75_v35 = vadd.f32 %v129_v33, %v74_v34 }
  0xa0   :  { %v100_v38 = vpop.f32.mrf.mxu1 }
  0xa1   :  { %v98_v36 = vadd.f32 %v97_v32, %v75_v35 }
  0xa3   :  { %104 = vst.msk [vmem:[%s260_s3] sm:$0xff] %vm103_vm1, %v98_v36 }
  0xa4   :  { %v77_v37 = vpop.f32.mrf.mxu2 }
  0xa5   :  { %v78_v39 = vadd.f32 %v129_v33, %v77_v37 }
  0xa7   :  { %v101_v40 = vadd.f32 %v100_v38, %v78_v39 }
  0xa9   :  { %106 = vst.msk [vmem:[%s260_s3 + $0x8] sm:$0x3f] %vm105_vm2, %v101_v40 }

// kernel: model_forward.13
= control target key start
LH: loop header
LB: loop body
LE: loop exit
PB: predicated region body
PF: predicated region fallthrough
CT: control target
= control target key end

     0   :  { %12 = vsyncpa [#allocation3], 0  ;;  %s790_s0 = inlined_call_operand.vmem [shape: f32[2,7,32], index: 0, kind: input, shape index: {}]   ;;  %s791_s1 = inlined_call_operand.vmem [shape: f32[1,32], index: 1, kind: input, shape index: {}]   ;;  %s792_s2 = inlined_call_operand.vmem [shape: f32[1,32], index: 2, kind: input, shape index: {}]   ;;  %s793_s3 = inlined_call_operand.vmem [shape: f32[32,128], index: 3, kind: input, shape index: {}]   ;;  %s794_s4 = inlined_call_operand.hbm [shape: f32[1,128], index: 4, kind: input, shape index: {}]   ;;  %s795_s5 = inlined_call_operand.vmem [shape: f32[128,32], index: 5, kind: input, shape index: {}]   ;;  %s796_s6 = inlined_call_operand.hbm [shape: f32[1,32], index: 6, kind: input, shape index: {}]   ;;  %s797_s7 = inlined_call_operand.vmem [shape: f32[2,7,32], index: 7, kind: output, shape index: {}]  }
   0x1   :  { %13 = vsyncpa [#allocation5], 0  ;;  %s673_s24 = smov 0  }
   0x2 LB: > { %s223_s27 = sshll.u32 %s794_s4, 4  ;;  %s500_s28 = sadd.s32 4294967295, %s628_s24   ;;  %s628_s24 = sphi %s673_s24, %s19_s24   ;;  %s224_s27 = int_to_ptr.hbm [resolvable:$true] %s223_s27 }
   0x3   : > { %p502_p0 = scmp.ge.s32.totalorder %s628_s24, 1  ;;  %p202_p1 = scmp.lt.s32.totalorder %s628_s24, 3 }
   0x4   : > { %p529_p2 = scmp.eq.s32.totalorder %s500_s28, 0  ;;  %s630_s30 = smov [#allocation2]  }
   0x5   : > { %p684_p3 = pnand %p502_p0, %p202_p1  ;;  %s225_s8 = sshll.u32 %s630_s30, 4  ;;  %s226_s8 = int_to_ptr.vmem [resolvable:$true] %s225_s8 }
   0x6   : > { %s238_s11 = sshll.u32 %s796_s6, 4  ;;  %s631_s12 = smov [#allocation4]   ;;  %s239_s11 = int_to_ptr.hbm [resolvable:$true] %s238_s11 }
   0x7   : > { %p522_p4 = pneg %p684_p3  ;;  %s240_s13 = sshll.u32 %s631_s12, 4  ;;  %s241_s13 = int_to_ptr.vmem [resolvable:$true] %s240_s13 }
   0x8   : > { %260 = sbr.rel (%p684_p3) target bundleno = 566 (0x236), region = 48 }
   0x9   : > { %p523_p5 = pnand %p529_p2, %p522_p4 }
   0xb   : > { %525 = dma.hbm_to_vmem [thread:$0]  (!%p523_p5), %s224_s27, 16, %s226_s8, [#allocation3]  }
   0xc   : > { %528 = dma.hbm_to_vmem [thread:$0]  (!%p523_p5), %s239_s11, 16, %s241_s13, [#allocation5]  }
   0xd   : > { %619 = dma.done.wait (%p529_p2), [#allocation3], 16  }
   0xe   : > { %621 = vsyncadd (%p529_p2), [#allocation3], 4294967280 }
   0xf   : > { %623 = dma.done.wait (%p529_p2), [#allocation5], 16  }
  0x10   : > { %625 = vsyncadd (%p529_p2), [#allocation5], 4294967280  ;;  %p296_p6 = scmp.lt.s32.totalorder %s500_s28, 1  ;;  %vm307_vm0 = vcmask 260096   ;;  %v632_v2 = vmov 32.0   ;;  %v348_v14 = vld [vmem:[%s793_s3 + $0x18] sm:$0xff] }
  0x11   : > { %548 = vrcp.f32 %v632_v2  ;;  %369 = vmatpush.msra.mxu0 %v348_v14  ;;  %v347_v15 = vld [vmem:[%s793_s3 + $0x10] sm:$0xff]  ;;  %v346_v16 = vld [vmem:[%s793_s3 + $0x8] sm:$0xff]  ;;  %v345_v17 = vld [vmem:[%s793_s3] sm:$0xff]  ;;  %vm353_vm5 = vcmask 261120  }
  0x12   : > { %s800_s28 = smov (!%p296_p6, %s500_s28), 1  ;;  %v397_v18 = vld [vmem:[%s795_s5 + $0x78] sm:$0xff]  ;;  %v396_v19 = vld [vmem:[%s795_s5 + $0x70] sm:$0xff]  ;;  %v395_v20 = vld [vmem:[%s795_s5 + $0x68] sm:$0xff] }
  0x13   : > { %s509_s14 = sshll.u32 %s800_s28, 3  ;;  %370 = vmatpush.msra.mxu0 %v347_v15  ;;  %402 = vmatpush.msra.mxu1 %v397_v18  ;;  %v394_v23 = vld [vmem:[%s795_s5 + $0x60] sm:$0xff]  ;;  %v393_v25 = vld [vmem:[%s795_s5 + $0x58] sm:$0xff]  ;;  %v392_v26 = vld [vmem:[%s795_s5 + $0x50] sm:$0xff] }
  0x14   : > { %s299_s17 = scalar_lea.vmem %s790_s0, %s509_s14  ;;  %v391_v27 = vld [vmem:[%s795_s5 + $0x48] sm:$0xff]  ;;  %v544_v34 = vld [vmem:[%s791_s1] ss:$0 sm:$0xff]  ;;  %v389_v41 = vld [vmem:[%s795_s5 + $0x38] sm:$0xff]  ;;  %s303_s25 = scalar_lea.vmem %s797_s7, %s509_s14 }
  0x15   : > { %v708_v0 = vld [vmem:[%s299_s17] sm:$0x7f]  ;;  %371 = vmatpush.msra.mxu0 %v346_v16  ;;  %403 = vmatpush.msra.mxu1 %v396_v19  ;;  %v388_v42 = vld [vmem:[%s795_s5 + $0x30] sm:$0xff]  ;;  %v387_v43 = vld [vmem:[%s795_s5 + $0x28] sm:$0xff] }
  0x16   : > { %v308_v1 = vsel %vm307_vm0, %v708_v0, 0.0  ;;  %v545_v37 = vld [vmem:[%s792_s2] ss:$0 sm:$0xff]  ;;  %v385_v45 = vld [vmem:[%s795_s5 + $0x18] sm:$0xff]  ;;  %v384_v46 = vld [vmem:[%s795_s5 + $0x10] sm:$0xff] }
  0x17   : > { %309 = vadd.xlane.f32.xlu0 %v308_v1  ;;  %v549_v3 = vpop.eup %548  ;;  %372 = vmatpush.msra.mxu0 %v345_v17  ;;  %v390_v40 = vld [vmem:[%s795_s5 + $0x40] sm:$0xff]  ;;  %v383_v47 = vld [vmem:[%s795_s5 + $0x8] sm:$0xff] }
  0x18   : > { %v312_v4 = vmul.f32 32.0, %v549_v3  ;;  %vm316_vm1 = vweird.f32 %v549_v3  ;;  %404 = vmatpush.msra.mxu1 %v395_v20  ;;  %v386_v44 = vld [vmem:[%s795_s5 + $0x20] sm:$0xff] }
  0x19   : > { %v382_v48 = vld [vmem:[%s795_s5] sm:$0xff] }
  0x1a   : > { %v313_v5 = vsub.f32 1.0, %v312_v4  ;;  %405 = vmatpush.msra.mxu1 %v394_v23  ;;  %v546_v49 = vld [vmem:[#allocation2] ss:$0 sm:$0xff]  ;;  %v547_v57 = vld [vmem:[#allocation4] ss:$0 sm:$0xff] }
  0x1c   : > { %v314_v6 = vmul.f32 %v549_v3, %v313_v5  ;;  %406 = vmatpush.msra.mxu1 %v393_v25 }
  0x1e   : > { %v315_v7 = vadd.f32 %v549_v3, %v314_v6  ;;  %407 = vmatpush.msra.mxu1 %v392_v26 }
  0x20   : > { %v317_v8 = vsel %vm316_vm1, %v549_v3, %v315_v7  ;;  %408 = vmatpush.msra.mxu1 %v391_v27 }
  0x22   : > { %409 = vmatpush.msra.mxu1 %v390_v40 }
  0x24   : > { %410 = vmatpush.msra.mxu1 %v389_v41 }
  0x26   : > { %411 = vmatpush.msra.mxu1 %v388_v42 }
  0x28   : > { %412 = vmatpush.msra.mxu1 %v387_v43 }
  0x2a   : > { %413 = vmatpush.msra.mxu1 %v386_v44 }
  0x2c   : > { %414 = vmatpush.msra.mxu1 %v385_v45 }
  0x2e   : > { %415 = vmatpush.msra.mxu1 %v384_v46 }
  0x30   : > { %416 = vmatpush.msra.mxu1 %v383_v47 }
  0x32   : > { %417 = vmatpush.msra.mxu1 %v382_v48 }
  0x8a   : > { %v310_v9 = vpop.xlane.xlu0 %309 }
  0x8b   : > { %v318_v10 = vmul.f32 %v317_v8, %v310_v9 }
  0x8d   : > { %v319_v11 = vsub.f32 %v708_v0, %v318_v10 }
  0x8f   : > { %v320_v12 = vmul.f32 %v319_v11, %v319_v11 }
  0x91   : > { %v321_v13 = vsel %vm307_vm0, %v320_v12, 0.0 }
  0x92   : > { %322 = vadd.xlane.f32.xlu0 %v321_v13 }
 0x105   : > { %v323_v21 = vpop.xlane.xlu0 %322 }
 0x106   : > { %v324_v22 = vmul.f32 %v323_v21, %v317_v8 }
 0x108   : > { %v325_v24 = vadd.f32 1e-05, %v324_v22 }
 0x10a   : > { %550 = vrsqrt.f32 %v325_v24  ;;  %vm332_vm3 = vweird.f32 %v325_v24 }
 0x110   : > { %v551_v28 = vpop.eup %550 }
 0x111   : > { %v327_v29 = vmul.f32 %v551_v28, %v325_v24  ;;  %vm333_vm2 = vweird.f32 %v551_v28 }
 0x112   : > { %vm334_vm4 = vmor %vm332_vm3, %vm333_vm2 }
 0x113   : > { %v328_v30 = vmul.f32 %v551_v28, %v327_v29 }
 0x115   : > { %v329_v31 = vmul.f32 0.5, %v328_v30 }
 0x117   : > { %v330_v32 = vsub.f32 1.5, %v329_v31 }
 0x119   : > { %v331_v33 = vmul.f32 %v551_v28, %v330_v32 }
 0x11b   : > { %v335_v35 = vsel %vm334_vm4, %v551_v28, %v331_v33 }
 0x11c   : > { %v336_v36 = vmul.f32 %v335_v35, %v319_v11 }
 0x11e   : > { %v340_v38 = vmul.f32 %v544_v34, %v336_v36 }
 0x120   : > { %v344_v39 = vadd.f32 %v545_v37, %v340_v38 }
 0x122   : > { %511 = vmatmul.msk.f32.vlgmr.msra.gmra.mxu0 %vm353_vm5, %v344_v39 }
 0x19f   : > { %v374_v50 = vpop.f32.mrf.mxu0 }
 0x1a0   : > { %v375_v51 = vadd.f32 %v546_v49, %v374_v50 }
 0x1a2   : > { %v377_v52 = vmul.f32 0.5, %v375_v51 }
 0x1a4   : > { %552 = vtanh.f32 %v377_v52 }
 0x1aa   : > { %v553_v53 = vpop.eup %552 }
 0x1ab   : > { %v379_v54 = vadd.f32 1.0, %v553_v53 }
 0x1ad   : > { %v380_v55 = vmul.f32 0.5, %v379_v54 }
 0x1af   : > { %v381_v56 = vmul.f32 %v380_v55, %v375_v51 }
 0x1b1   : > { %418 = vmatmul.f32.vlgmr.msra.gmra.mxu1 %v381_v56 }
 0x22e   : > { %v419_v58 = vpop.f32.mrf.mxu1 }
 0x22f   : > { %v420_v59 = vadd.f32 %v547_v57, %v419_v58 }
 0x231   : > { %v422_v60 = vmul.f32 0.5, %v420_v59 }
 0x233   : > { %v423_v61 = vadd.f32 %v422_v60, %v708_v0 }
 0x235   : > { %424 = vst.msk [vmem:[%s303_s25] sm:$0x7f] %vm307_vm0, %v423_v61 }
 0x236 PF: > { %s19_s24 = sadd.s32 1, %s628_s24  }
 0x237   : > { %p16_p7 = scmp.ge.s32.totalorder %s19_s24, 4  }
 0x239   :  { %18 = sbr.rel (!%p16_p7) target bundleno = 2 (0x2), region = 87 }
 0x23e   :  { %444 = vsyncpa [#allocation3], 1 }
 0x23f   :  { %446 = vsyncpa [#allocation3 + $0x1], 1 }
 0x240   :  { %447 = vsyncpa [#allocation5], 1 }

// kernel: model_forward.14
= control target key start
LH: loop header
LB: loop body
LE: loop exit
PB: predicated region body
PF: predicated region fallthrough
CT: control target
= control target key end

     0   :  { %13 = vsyncpa [#allocation4], 0  ;;  %s1028_s0 = inlined_call_operand.vmem [shape: f32[2,7,32], index: 0, kind: input, shape index: {}]   ;;  %s1029_s1 = inlined_call_operand.hbm [shape: f32[1,32], index: 1, kind: input, shape index: {}]   ;;  %s1030_s2 = inlined_call_operand.hbm [shape: f32[1,32], index: 2, kind: input, shape index: {}]   ;;  %s1031_s3 = inlined_call_operand.vmem [shape: f32[32,64], index: 3, kind: input, shape index: {}]   ;;  %s1032_s4 = inlined_call_operand.hbm [shape: f32[1,64], index: 4, kind: input, shape index: {}]   ;;  %s1033_s5 = inlined_call_operand.vmem [shape: f32[7,32], index: 5, kind: input, shape index: {}]   ;;  %s1034_s6 = inlined_call_operand.vmem [shape: f32[32,32], index: 6, kind: input, shape index: {}]   ;;  %s1035_s7 = inlined_call_operand.hbm [shape: f32[1,32], index: 7, kind: input, shape index: {}]   ;;  %s1036_s8 = inlined_call_operand.vmem [shape: f32[2,7,32], index: 8, kind: output, shape index: {}]  }
   0x1   :  { %14 = vsyncpa [#allocation6], 0 }
   0x2   :  { %15 = vsyncpa [#allocation9], 0  ;;  %s896_s27 = smov 0  }
   0x3 LB: > { %s249_s30 = sshll.u32 %s1030_s2, 4  ;;  %s905_s9 = sadd.s32 4294967295, %s842_s27   ;;  %s842_s27 = sphi %s896_s27, %s21_s27   ;;  %s250_s30 = int_to_ptr.hbm [resolvable:$true] %s249_s30 }
   0x4   : > { %p616_p0 = scmp.ge.s32.totalorder %s842_s27, 1  ;;  %p225_p1 = scmp.lt.s32.totalorder %s842_s27, 3 }
   0x5   : > { %p662_p2 = scmp.eq.s32.totalorder %s905_s9, 0  ;;  %s844_s11 = smov [#allocation5]  }
   0x6   : > { %p910_p3 = pnand %p616_p0, %p225_p1  ;;  %s251_s12 = sshll.u32 %s844_s11, 4  ;;  %s252_s12 = int_to_ptr.vmem [resolvable:$true] %s251_s12 }
   0x7   : > { %s237_s15 = sshll.u32 %s1029_s1, 4  ;;  %s264_s18 = sshll.u32 %s1032_s4, 4  ;;  %s238_s15 = int_to_ptr.hbm [resolvable:$true] %s237_s15  ;;  %s265_s18 = int_to_ptr.hbm [resolvable:$true] %s264_s18 }
   0x8   : > { %p649_p4 = pneg %p910_p3  ;;  %s845_s20 = smov [#allocation3]  }
   0x9   : > { %s239_s21 = sshll.u32 %s845_s20, 4  ;;  %s846_s22 = smov [#allocation7]   ;;  %s240_s21 = int_to_ptr.vmem [resolvable:$true] %s239_s21 }
   0xa   : > { %p924_p5 = pnand %p662_p2, %p649_p4  ;;  %s266_s23 = sshll.u32 %s846_s22, 4  ;;  %s267_s23 = int_to_ptr.vmem [resolvable:$true] %s266_s23 }
   0xb   : > { %s282_s26 = sshll.u32 %s1035_s7, 4  ;;  %s847_s28 = smov [#allocation8]   ;;  %s283_s26 = int_to_ptr.hbm [resolvable:$true] %s282_s26 }
   0xc   : > { %655 = dma.hbm_to_vmem [thread:$0]  (!%p924_p5), %s250_s30, 16, %s252_s12, [#allocation6]  }
   0xd   : > { %652 = dma.hbm_to_vmem [thread:$0]  (!%p924_p5), %s238_s15, 16, %s240_s21, [#allocation4]  }
   0xe   : > { %658 = dma.hbm_to_vmem [thread:$0]  (!%p924_p5), %s265_s18, 16, %s267_s23, [#allocation6]  }
   0xf   : > { %s284_s29 = sshll.u32 %s847_s28, 4  ;;  %304 = sbr.rel (%p910_p3) target bundleno = 728 (0x2d8), region = 52  ;;  %s285_s29 = int_to_ptr.vmem [resolvable:$true] %s284_s29 }
  0x10   : > { %661 = dma.hbm_to_vmem [thread:$0]  (!%p924_p5), %s283_s26, 16, %s285_s29, [#allocation9]  }
  0x14   : > { %829 = dma.done.wait (%p662_p2), [#allocation4], 16  }
  0x15   : > { %831 = vsyncadd (%p662_p2), [#allocation4], 4294967280 }
  0x16   : > { %833 = dma.done.wait (%p662_p2), [#allocation6], 32  }
  0x17   : > { %835 = vsyncadd (%p662_p2), [#allocation6], 4294967264 }
  0x18   : > { %837 = dma.done.wait (%p662_p2), [#allocation9], 16  }
  0x19   : > { %839 = vsyncadd (%p662_p2), [#allocation9], 4294967280  ;;  %p352_p6 = scmp.lt.s32.totalorder %s905_s9, 1  ;;  %vm363_vm0 = vcmask 260096   ;;  %v848_v2 = vmov 32.0   ;;  %v404_v14 = vld [vmem:[%s1031_s3 + $0x18] sm:$0xff] }
  0x1a   : > { %696 = vrcp.f32 %v848_v2  ;;  %425 = vmatpush.msra.mxu0 %v404_v14  ;;  %v403_v15 = vld [vmem:[%s1031_s3 + $0x10] sm:$0xff]  ;;  %v402_v16 = vld [vmem:[%s1031_s3 + $0x8] sm:$0xff]  ;;  %v401_v17 = vld [vmem:[%s1031_s3] sm:$0xff]  ;;  %vm409_vm2 = vcmask 261120   ;;  %vm443_vm3 = vcmask 258048   ;;  %v849_v18 = vmov 0.0  }
  0x1b   : > { %s1040_s9 = smov (!%p352_p6, %s905_s9), 1  ;;  %442 = vst.msk [vmem:[#allocation2] sm:$0xff] %vm409_vm2, %v849_v18  ;;  %v685_v28 = vld [vmem:[#allocation3] ss:$0 sm:$0xff]  ;;  %v686_v31 = vld [vmem:[#allocation5] ss:$0 sm:$0xff] }
  0x1c   : > { %s627_s30 = sshll.u32 %s1040_s9, 3  ;;  %426 = vmatpush.msra.mxu0 %v403_v15  ;;  %444 = vst.msk [vmem:[#allocation2 + $0x8] sm:$0x1f] %vm443_vm3, %v849_v18  ;;  %v687_v34 = vld [vmem:[#allocation7] ss:$0 sm:$0xff]  ;;  %s850_s21 = smov 96  }
  0x1d   : > { %s355_s12 = scalar_lea.vmem %s1028_s0, %s627_s30  ;;  %v490_v41 = vld [vmem:[%s1034_s6 + $0x18] sm:$0xff]  ;;  %v489_v42 = vld [vmem:[%s1034_s6 + $0x10] sm:$0xff]  ;;  %v488_v43 = vld [vmem:[%s1034_s6 + $0x8] sm:$0xff]  ;;  %s359_s28 = scalar_lea.vmem %s1036_s8, %s627_s30 }
  0x1e   : > { %v963_v0 = vld [vmem:[%s355_s12] sm:$0x7f]  ;;  %427 = vmatpush.msra.mxu0 %v402_v16  ;;  %510 = vmatpush.msra.mxu1 %v490_v41 }
  0x1f   : > { %v364_v1 = vsel %vm363_vm0, %v963_v0, 0.0  ;;  %v487_v44 = vld [vmem:[%s1034_s6] sm:$0xff] }
  0x20   : > { %365 = vadd.xlane.f32.xlu0 %v364_v1  ;;  %v697_v3 = vpop.eup %696  ;;  %428 = vmatpush.msra.mxu0 %v401_v17  ;;  %v688_v47 = vld [vmem:[%s1033_s5] ss:$0 sm:$0xff]  ;;  %v689_v48 = vld [vmem:[%s1033_s5 + $0x1] ss:$0 sm:$0xff]  ;;  %v690_v49 = vld [vmem:[%s1033_s5 + $0x2] ss:$0 sm:$0xff] }
  0x21   : > { %v368_v4 = vmul.f32 32.0, %v697_v3  ;;  %vm372_vm1 = vweird.f32 %v697_v3  ;;  %511 = vmatpush.msra.mxu1 %v489_v42  ;;  %v691_v55 = vld [vmem:[%s1033_s5 + $0x3] ss:$0 sm:$0xff]  ;;  %v692_v59 = vld [vmem:[%s1033_s5 + $0x4] ss:$0 sm:$0xff] }
  0x22   : > { %v693_v63 = vld [vmem:[%s1033_s5 + $0x5] ss:$0 sm:$0xff]  ;;  %v695_v17 = vld [vmem:[#allocation8] ss:$0 sm:$0xff] }
  0x23   : > { %v369_v5 = vsub.f32 1.0, %v368_v4  ;;  %512 = vmatpush.msra.mxu1 %v488_v43  ;;  %v694_v4 = vld [vmem:[%s1033_s5 + $0x6] ss:$0 sm:$0xff] }
  0x25   : > { %v370_v6 = vmul.f32 %v697_v3, %v369_v5  ;;  %513 = vmatpush.msra.mxu1 %v487_v44 }
  0x27   : > { %v371_v7 = vadd.f32 %v697_v3, %v370_v6 }
  0x29   : > { %v373_v8 = vsel %vm372_vm1, %v697_v3, %v371_v7 }
  0x93   : > { %v366_v9 = vpop.xlane.xlu0 %365 }
  0x94   : > { %v374_v10 = vmul.f32 %v373_v8, %v366_v9 }
  0x96   : > { %v375_v11 = vsub.f32 %v963_v0, %v374_v10 }
  0x98   : > { %v376_v12 = vmul.f32 %v375_v11, %v375_v11 }
  0x9a   : > { %v377_v13 = vsel %vm363_vm0, %v376_v12, 0.0 }
  0x9b   : > { %378 = vadd.xlane.f32.xlu0 %v377_v13 }
 0x10e   : > { %v379_v19 = vpop.xlane.xlu0 %378 }
 0x10f   : > { %v380_v20 = vmul.f32 %v379_v19, %v373_v8 }
 0x111   : > { %v381_v21 = vadd.f32 1e-05, %v380_v20 }
 0x113   : > { %698 = vrsqrt.f32 %v381_v21  ;;  %vm388_vm5 = vweird.f32 %v381_v21 }
 0x119   : > { %v699_v22 = vpop.eup %698 }
 0x11a   : > { %v383_v23 = vmul.f32 %v699_v22, %v381_v21  ;;  %vm389_vm4 = vweird.f32 %v699_v22 }
 0x11b   : > { %vm390_vm6 = vmor %vm388_vm5, %vm389_vm4 }
 0x11c   : > { %v384_v24 = vmul.f32 %v699_v22, %v383_v23 }
 0x11e   : > { %v385_v25 = vmul.f32 0.5, %v384_v24 }
 0x120   : > { %v386_v26 = vsub.f32 1.5, %v385_v25 }
 0x122   : > { %v387_v27 = vmul.f32 %v699_v22, %v386_v26 }
 0x124   : > { %v391_v29 = vsel %vm390_vm6, %v699_v22, %v387_v27 }
 0x125   : > { %v392_v30 = vmul.f32 %v391_v29, %v375_v11 }
 0x127   : > { %v396_v32 = vmul.f32 %v685_v28, %v392_v30 }
 0x129   : > { %v400_v33 = vadd.f32 %v686_v31, %v396_v32 }
 0x12b   : > { %629 = vmatmul.msk.f32.vlgmr.msra.gmra.mxu0 %vm409_vm2, %v400_v33 }
 0x1a8   : > { %v430_v35 = vpop.f32.mrf.mxu0 }
 0x1a9   : > { %v431_v36 = vadd.f32 %v687_v34, %v430_v35 }
 0x1ab   : > { %v433_v37 = vmul.f32 0.5, %v431_v36 }
 0x1ad   : > { %700 = vtanh.f32 %v433_v37 }
 0x1b3   : > { %v701_v38 = vpop.eup %700 }
 0x1b4   : > { %v435_v39 = vadd.f32 1.0, %v701_v38 }
 0x1b6   : > { %v436_v40 = vmul.f32 0.5, %v435_v39 }
 0x1b8   : > { %438 = vrot.lane.b32.xlu1 %v436_v40, %s850_s21 }
 0x22a   : > { %v439_v45 = vpop.permute.xlu1 %438 }
 0x22b   : > { %v441_v46 = vmul.f32 %v439_v45, %v431_v36 }
 0x22d   : > { %445 = vst.msk [vmem:[#allocation2 + $0x3] sm:$0x7f] %vm363_vm0, %v441_v46 }
 0x234   : > { %v446_v50 = vld [vmem:[#allocation2] sm:$0x7f] }
 0x235   : > { %v451_v51 = vld [vmem:[#allocation2 + $0x1] sm:$0x7f]  ;;  %v449_v53 = vmul.f32 %v688_v47, %v446_v50 }
 0x236   : > { %v456_v52 = vld [vmem:[#allocation2 + $0x2] sm:$0x7f]  ;;  %v454_v54 = vmul.f32 %v689_v48, %v451_v51 }
 0x237   : > { %v461_v56 = vld [vmem:[#allocation2 + $0x3] sm:$0x7f]  ;;  %v459_v58 = vmul.f32 %v690_v49, %v456_v52 }
 0x238   : > { %v455_v57 = vadd.f32 %v454_v54, %v449_v53  ;;  %v466_v60 = vld [vmem:[#allocation2 + $0x4] sm:$0x7f]  ;;  %v464_v62 = vmul.f32 %v691_v55, %v461_v56 }
 0x239   : > { %v471_v1 = vld [vmem:[#allocation2 + $0x5] sm:$0x7f]  ;;  %v469_v3 = vmul.f32 %v692_v59, %v466_v60 }
 0x23a   : > { %v460_v61 = vadd.f32 %v459_v58, %v455_v57  ;;  %v476_v5 = vld [vmem:[#allocation2 + $0x6] sm:$0x7f]  ;;  %v474_v7 = vmul.f32 %v693_v63, %v471_v1 }
 0x23b   : > { %v479_v9 = vmul.f32 %v694_v4, %v476_v5 }
 0x23c   : > { %v465_v2 = vadd.f32 %v464_v62, %v460_v61 }
 0x23e   : > { %v470_v6 = vadd.f32 %v469_v3, %v465_v2 }
 0x240   : > { %v475_v8 = vadd.f32 %v474_v7, %v470_v6 }
 0x242   : > { %v480_v10 = vadd.f32 %v479_v9, %v475_v8 }
 0x244   : > { %v481_v11 = vmul.f32 0.999995, %v480_v10 }
 0x246   : > { %v482_v12 = vmul.f32 0.5, %v481_v11 }
 0x248   : > { %702 = vtanh.f32 %v482_v12 }
 0x24e   : > { %v703_v13 = vpop.eup %702 }
 0x24f   : > { %v484_v14 = vadd.f32 1.0, %v703_v13 }
 0x251   : > { %v485_v15 = vmul.f32 0.5, %v484_v14 }
 0x253   : > { %v486_v16 = vmul.f32 %v485_v15, %v481_v11 }
 0x255   : > { %630 = vmatmul.msk.f32.vlgmr.msra.gmra.mxu1 %vm409_vm2, %v486_v16 }
 0x2d2   : > { %v515_v18 = vpop.f32.mrf.mxu1 }
 0x2d3   : > { %v516_v19 = vadd.f32 %v695_v17, %v515_v18 }
 0x2d5   : > { %v518_v20 = vadd.f32 %v516_v19, %v963_v0 }
 0x2d7   : > { %519 = vst.msk [vmem:[%s359_s28] sm:$0x7f] %vm363_vm0, %v518_v20 }
 0x2d8 PF: > { %s21_s27 = sadd.s32 1, %s842_s27  }
 0x2d9   : > { %p18_p7 = scmp.ge.s32.totalorder %s21_s27, 4  }
 0x2db   :  { %20 = sbr.rel (!%p18_p7) target bundleno = 3 (0x3), region = 99 }
 0x2e0   :  { %539 = vsyncpa [#allocation4], 1 }
 0x2e1   :  { %541 = vsyncpa [#allocation4 + $0x1], 1 }
 0x2e2   :  { %542 = vsyncpa [#allocation6], 1 }
 0x2e3   :  { %543 = vsyncpa [#allocation9], 1 }

// kernel: model_forward.16
= control target key start
LH: loop header
LB: loop body
LE: loop exit
PB: predicated region body
PF: predicated region fallthrough
CT: control target
= control target key end

     0   :  { %14 = vsyncpa [#allocation3], 0  ;;  %s1136_s0 = inlined_call_operand.vmem [shape: f32[2,7,32], index: 0, kind: input, shape index: {}]   ;;  %s1137_s1 = inlined_call_operand.vmem [shape: f32[1,32], index: 1, kind: input, shape index: {}]   ;;  %s1138_s2 = inlined_call_operand.hbm [shape: f32[1,32], index: 2, kind: input, shape index: {}]   ;;  %s1139_s3 = inlined_call_operand.vmem [shape: f32[32,128], index: 3, kind: input, shape index: {}]   ;;  %s1140_s4 = inlined_call_operand.hbm [shape: f32[1,128], index: 4, kind: input, shape index: {}]   ;;  %s1141_s5 = inlined_call_operand.vmem [shape: f32[128,32], index: 5, kind: input, shape index: {}]   ;;  %s1142_s6 = inlined_call_operand.hbm [shape: f32[1,32], index: 6, kind: input, shape index: {}]   ;;  %s1143_s7 = inlined_call_operand.hbm [shape: f32[1,32], index: 7, kind: input, shape index: {}]   ;;  %s1144_s8 = inlined_call_operand.hbm [shape: f32[1,32], index: 8, kind: input, shape index: {}]   ;;  %s1145_s9 = inlined_call_operand.vmem [shape: f32[2,7,32], index: 9, kind: output, shape index: {}]  }
   0x1   :  { %15 = vsyncpa [#allocation5], 0 }
   0x2   :  { %16 = vsyncpa [#allocation8], 0  ;;  %s977_s30 = smov 0  }
   0x3 LB: > { %s277_s12 = sshll.u32 %s1140_s4, 4  ;;  %s986_s13 = sadd.s32 4294967295, %s919_s30   ;;  %s919_s30 = sphi %s977_s30, %s22_s30   ;;  %s278_s12 = int_to_ptr.hbm [resolvable:$true] %s277_s12 }
   0x4   : > { %p659_p0 = scmp.ge.s32.totalorder %s919_s30, 1  ;;  %p247_p1 = scmp.lt.s32.totalorder %s919_s30, 3 }
   0x5   : > { %p713_p2 = scmp.eq.s32.totalorder %s986_s13, 0  ;;  %s921_s15 = smov [#allocation4]  }
   0x6   : > { %p991_p3 = pnand %p659_p0, %p247_p1  ;;  %s279_s16 = sshll.u32 %s921_s15, 4  ;;  %s280_s16 = int_to_ptr.vmem [resolvable:$true] %s279_s16 }
   0x7   : > { %s304_s19 = sshll.u32 %s1143_s7, 4  ;;  %s262_s22 = sshll.u32 %s1138_s2, 4  ;;  %s305_s19 = int_to_ptr.hbm [resolvable:$true] %s304_s19  ;;  %s263_s22 = int_to_ptr.hbm [resolvable:$true] %s262_s22 }
   0x8   : > { %p697_p4 = pneg %p991_p3  ;;  %s922_s24 = smov [#allocation7]  }
   0x9   : > { %s306_s25 = sshll.u32 %s922_s24, 4  ;;  %s923_s26 = smov [#allocation2]   ;;  %s307_s25 = int_to_ptr.vmem [resolvable:$true] %s306_s25 }
   0xa   : > { %p1005_p5 = pnand %p713_p2, %p697_p4  ;;  %s264_s27 = sshll.u32 %s923_s26, 4  ;;  %s265_s27 = int_to_ptr.vmem [resolvable:$true] %s264_s27 }
   0xb   : > { %s292_s10 = sshll.u32 %s1142_s6, 4  ;;  %s316_s17 = sshll.u32 %s1144_s8, 4  ;;  %s293_s10 = int_to_ptr.hbm [resolvable:$true] %s292_s10  ;;  %s317_s17 = int_to_ptr.hbm [resolvable:$true] %s316_s17 }
   0xc   : > { %703 = dma.hbm_to_vmem [thread:$0]  (!%p1005_p5), %s278_s12, 16, %s280_s16, [#allocation5]  }
   0xd   : > { %709 = dma.hbm_to_vmem [thread:$0]  (!%p1005_p5), %s305_s19, 16, %s307_s25, [#allocation8]  }
   0xe   : > { %700 = dma.hbm_to_vmem [thread:$0]  (!%p1005_p5), %s263_s22, 16, %s265_s27, [#allocation3]  }
   0xf   : > { %s924_s18 = smov [#allocation6]   ;;  %s925_s12 = smov [#allocation9]  }
  0x10   : > { %s294_s20 = sshll.u32 %s924_s18, 4  ;;  %s318_s16 = sshll.u32 %s925_s12, 4  ;;  %s295_s20 = int_to_ptr.vmem [resolvable:$true] %s294_s20  ;;  %s319_s16 = int_to_ptr.vmem [resolvable:$true] %s318_s16 }
  0x11   : > { %706 = dma.hbm_to_vmem [thread:$0]  (!%p1005_p5), %s293_s10, 16, %s295_s20, [#allocation5]  }
  0x12   : > { %712 = dma.hbm_to_vmem [thread:$0]  (!%p1005_p5), %s317_s17, 16, %s319_s16, [#allocation8]  }
  0x13   : > { %338 = sbr.rel (%p991_p3) target bundleno = 847 (0x34f), region = 56 }
  0x18   : > { %906 = dma.done.wait (%p713_p2), [#allocation3], 16  }
  0x19   : > { %908 = vsyncadd (%p713_p2), [#allocation3], 4294967280 }
  0x1a   : > { %910 = dma.done.wait (%p713_p2), [#allocation5], 32  }
  0x1b   : > { %912 = vsyncadd (%p713_p2), [#allocation5], 4294967264 }
  0x1c   : > { %914 = dma.done.wait (%p713_p2), [#allocation8], 32  }
  0x1d   : > { %916 = vsyncadd (%p713_p2), [#allocation8], 4294967264  ;;  %p393_p6 = scmp.lt.s32.totalorder %s986_s13, 1  ;;  %vm404_vm0 = vcmask 260096   ;;  %v926_v2 = vmov 32.0   ;;  %v445_v14 = vld [vmem:[%s1139_s3 + $0x18] sm:$0xff] }
  0x1e   : > { %743 = vrcp.f32 %v926_v2  ;;  %466 = vmatpush.msra.mxu0 %v445_v14  ;;  %v444_v15 = vld [vmem:[%s1139_s3 + $0x10] sm:$0xff]  ;;  %v443_v16 = vld [vmem:[%s1139_s3 + $0x8] sm:$0xff]  ;;  %v442_v17 = vld [vmem:[%s1139_s3] sm:$0xff]  ;;  %vm450_vm5 = vcmask 261120  }
  0x1f   : > { %s1149_s13 = smov (!%p393_p6, %s986_s13), 1  ;;  %v494_v18 = vld [vmem:[%s1141_s5 + $0x78] sm:$0xff]  ;;  %v493_v19 = vld [vmem:[%s1141_s5 + $0x70] sm:$0xff]  ;;  %v492_v20 = vld [vmem:[%s1141_s5 + $0x68] sm:$0xff] }
  0x20   : > { %s672_s14 = sshll.u32 %s1149_s13, 3  ;;  %467 = vmatpush.msra.mxu0 %v444_v15  ;;  %499 = vmatpush.msra.mxu1 %v494_v18  ;;  %v491_v23 = vld [vmem:[%s1141_s5 + $0x60] sm:$0xff]  ;;  %v490_v25 = vld [vmem:[%s1141_s5 + $0x58] sm:$0xff]  ;;  %v489_v26 = vld [vmem:[%s1141_s5 + $0x50] sm:$0xff] }
  0x21   : > { %s396_s22 = scalar_lea.vmem %s1136_s0, %s672_s14  ;;  %v488_v27 = vld [vmem:[%s1141_s5 + $0x48] sm:$0xff]  ;;  %v737_v34 = vld [vmem:[%s1137_s1] ss:$0 sm:$0xff]  ;;  %v486_v41 = vld [vmem:[%s1141_s5 + $0x38] sm:$0xff]  ;;  %s400_s11 = scalar_lea.vmem %s1145_s9, %s672_s14 }
  0x22   : > { %v1049_v0 = vld [vmem:[%s396_s22] sm:$0x7f]  ;;  %468 = vmatpush.msra.mxu0 %v443_v16  ;;  %500 = vmatpush.msra.mxu1 %v493_v19  ;;  %v485_v42 = vld [vmem:[%s1141_s5 + $0x30] sm:$0xff]  ;;  %v484_v43 = vld [vmem:[%s1141_s5 + $0x28] sm:$0xff] }
  0x23   : > { %v405_v1 = vsel %vm404_vm0, %v1049_v0, 0.0  ;;  %v738_v37 = vld [vmem:[#allocation2] ss:$0 sm:$0xff]  ;;  %v482_v45 = vld [vmem:[%s1141_s5 + $0x18] sm:$0xff]  ;;  %v481_v46 = vld [vmem:[%s1141_s5 + $0x10] sm:$0xff] }
  0x24   : > { %406 = vadd.xlane.f32.xlu0 %v405_v1  ;;  %v744_v3 = vpop.eup %743  ;;  %469 = vmatpush.msra.mxu0 %v442_v17  ;;  %v487_v40 = vld [vmem:[%s1141_s5 + $0x40] sm:$0xff]  ;;  %v480_v47 = vld [vmem:[%s1141_s5 + $0x8] sm:$0xff] }
  0x25   : > { %v409_v4 = vmul.f32 32.0, %v744_v3  ;;  %vm413_vm1 = vweird.f32 %v744_v3  ;;  %501 = vmatpush.msra.mxu1 %v492_v20  ;;  %v483_v44 = vld [vmem:[%s1141_s5 + $0x20] sm:$0xff]  ;;  %v742_v16 = vld [vmem:[#allocation9] ss:$0 sm:$0xff] }
  0x26   : > { %v479_v48 = vld [vmem:[%s1141_s5] sm:$0xff] }
  0x27   : > { %v410_v5 = vsub.f32 1.0, %v409_v4  ;;  %502 = vmatpush.msra.mxu1 %v491_v23  ;;  %v739_v49 = vld [vmem:[#allocation4] ss:$0 sm:$0xff]  ;;  %v740_v57 = vld [vmem:[#allocation6] ss:$0 sm:$0xff] }
  0x28   : > { %v741_v14 = vld [vmem:[#allocation7] ss:$0 sm:$0xff] }
  0x29   : > { %v411_v6 = vmul.f32 %v744_v3, %v410_v5  ;;  %503 = vmatpush.msra.mxu1 %v490_v25 }
  0x2b   : > { %v412_v7 = vadd.f32 %v744_v3, %v411_v6  ;;  %504 = vmatpush.msra.mxu1 %v489_v26 }
  0x2d   : > { %v1053_v8 = vsel %vm413_vm1, %v744_v3, %v412_v7  ;;  %505 = vmatpush.msra.mxu1 %v488_v27 }
  0x2f   : > { %506 = vmatpush.msra.mxu1 %v487_v40 }
  0x31   : > { %507 = vmatpush.msra.mxu1 %v486_v41 }
  0x33   : > { %508 = vmatpush.msra.mxu1 %v485_v42 }
  0x35   : > { %509 = vmatpush.msra.mxu1 %v484_v43 }
  0x37   : > { %510 = vmatpush.msra.mxu1 %v483_v44 }
  0x39   : > { %511 = vmatpush.msra.mxu1 %v482_v45 }
  0x3b   : > { %512 = vmatpush.msra.mxu1 %v481_v46 }
  0x3d   : > { %513 = vmatpush.msra.mxu1 %v480_v47 }
  0x3f   : > { %514 = vmatpush.msra.mxu1 %v479_v48 }
  0x97   : > { %v407_v9 = vpop.xlane.xlu0 %406 }
  0x98   : > { %v415_v10 = vmul.f32 %v1053_v8, %v407_v9 }
  0x9a   : > { %v416_v11 = vsub.f32 %v1049_v0, %v415_v10 }
  0x9c   : > { %v417_v12 = vmul.f32 %v416_v11, %v416_v11 }
  0x9e   : > { %v418_v13 = vsel %vm404_vm0, %v417_v12, 0.0 }
  0x9f   : > { %419 = vadd.xlane.f32.xlu0 %v418_v13 }
 0x112   : > { %v420_v21 = vpop.xlane.xlu0 %419 }
 0x113   : > { %v421_v22 = vmul.f32 %v420_v21, %v1053_v8 }
 0x115   : > { %v422_v24 = vadd.f32 1e-05, %v421_v22 }
 0x117   : > { %745 = vrsqrt.f32 %v422_v24  ;;  %vm429_vm3 = vweird.f32 %v422_v24 }
 0x11d   : > { %v746_v28 = vpop.eup %745 }
 0x11e   : > { %v424_v29 = vmul.f32 %v746_v28, %v422_v24  ;;  %vm430_vm2 = vweird.f32 %v746_v28 }
 0x11f   : > { %vm431_vm4 = vmor %vm429_vm3, %vm430_vm2 }
 0x120   : > { %v425_v30 = vmul.f32 %v746_v28, %v424_v29 }
 0x122   : > { %v426_v31 = vmul.f32 0.5, %v425_v30 }
 0x124   : > { %v427_v32 = vsub.f32 1.5, %v426_v31 }
 0x126   : > { %v428_v33 = vmul.f32 %v746_v28, %v427_v32 }
 0x128   : > { %v432_v35 = vsel %vm431_vm4, %v746_v28, %v428_v33 }
 0x129   : > { %v433_v36 = vmul.f32 %v432_v35, %v416_v11 }
 0x12b   : > { %v437_v38 = vmul.f32 %v737_v34, %v433_v36 }
 0x12d   : > { %v441_v39 = vadd.f32 %v738_v37, %v437_v38 }
 0x12f   : > { %674 = vmatmul.msk.f32.vlgmr.msra.gmra.mxu0 %vm450_vm5, %v441_v39 }
 0x1ac   : > { %v471_v50 = vpop.f32.mrf.mxu0 }
 0x1ad   : > { %v472_v51 = vadd.f32 %v739_v49, %v471_v50 }
 0x1af   : > { %v474_v52 = vmul.f32 0.5, %v472_v51 }
 0x1b1   : > { %747 = vtanh.f32 %v474_v52 }
 0x1b7   : > { %v748_v53 = vpop.eup %747 }
 0x1b8   : > { %v476_v54 = vadd.f32 1.0, %v748_v53 }
 0x1ba   : > { %v477_v55 = vmul.f32 0.5, %v476_v54 }
 0x1bc   : > { %v478_v56 = vmul.f32 %v477_v55, %v472_v51 }
 0x1be   : > { %515 = vmatmul.f32.vlgmr.msra.gmra.mxu1 %v478_v56 }
 0x23b   : > { %v516_v58 = vpop.f32.mrf.mxu1 }
 0x23c   : > { %v517_v59 = vadd.f32 %v740_v57, %v516_v58 }
 0x23e   : > { %v519_v60 = vmul.f32 0.5, %v517_v59 }
 0x240   : > { %v520_v61 = vadd.f32 %v519_v60, %v1049_v0 }
 0x242   : > { %v523_v62 = vsel %vm404_vm0, %v520_v61, 0.0 }
 0x243   : > { %524 = vadd.xlane.f32.xlu1 %v523_v62 }
 0x2b6   : > { %v525_v63 = vpop.xlane.xlu1 %524 }
 0x2b7   : > { %v526_v1 = vmul.f32 %v525_v63, %v1053_v8 }
 0x2b9   : > { %v527_v2 = vsub.f32 %v520_v61, %v526_v1 }
 0x2bb   : > { %v528_v3 = vmul.f32 %v527_v2, %v527_v2 }
 0x2bd   : > { %v529_v4 = vsel %vm404_vm0, %v528_v3, 0.0 }
 0x2be   : > { %530 = vadd.xlane.f32.xlu1 %v529_v4 }
 0x331   : > { %v531_v5 = vpop.xlane.xlu1 %530 }
 0x332   : > { %v532_v6 = vmul.f32 %v531_v5, %v1053_v8 }
 0x334   : > { %v533_v7 = vadd.f32 1e-05, %v532_v6 }
 0x336   : > { %749 = vrsqrt.f32 %v533_v7  ;;  %vm540_vm7 = vweird.f32 %v533_v7 }
 0x33c   : > { %v750_v9 = vpop.eup %749 }
 0x33d   : > { %v535_v10 = vmul.f32 %v750_v9, %v533_v7  ;;  %vm541_vm6 = vweird.f32 %v750_v9 }
 0x33e   : > { %vm542_vm8 = vmor %vm540_vm7, %vm541_vm6 }
 0x33f   : > { %v536_v0 = vmul.f32 %v750_v9, %v535_v10 }
 0x341   : > { %v537_v11 = vmul.f32 0.5, %v536_v0 }
 0x343   : > { %v538_v12 = vsub.f32 1.5, %v537_v11 }
 0x345   : > { %v539_v13 = vmul.f32 %v750_v9, %v538_v12 }
 0x347   : > { %v543_v15 = vsel %vm542_vm8, %v750_v9, %v539_v13 }
 0x348   : > { %v544_v17 = vmul.f32 %v543_v15, %v527_v2 }
 0x34a   : > { %v548_v18 = vmul.f32 %v741_v14, %v544_v17 }
 0x34c   : > { %v552_v8 = vadd.f32 %v742_v16, %v548_v18 }
 0x34e   : > { %553 = vst.msk [vmem:[%s400_s11] sm:$0x7f] %vm404_vm0, %v552_v8 }
 0x34f PF: > { %s22_s30 = sadd.s32 1, %s919_s30  }
 0x350   : > { %p19_p7 = scmp.ge.s32.totalorder %s22_s30, 4  }
 0x352   :  { %21 = sbr.rel (!%p19_p7) target bundleno = 3 (0x3), region = 107 }
 0x357   :  { %573 = vsyncpa [#allocation3], 1 }
 0x358   :  { %575 = vsyncpa [#allocation3 + $0x1], 1 }
 0x359   :  { %576 = vsyncpa [#allocation5], 1 }
 0x35a   :  { %577 = vsyncpa [#allocation8], 1 }

// kernel: model_forward.17
= control target key start
LH: loop header
LB: loop body
LE: loop exit
PB: predicated region body
PF: predicated region fallthrough
CT: control target
= control target key end

     0   :  { %s472_s18 = smov 0   ;;  %s566_s0 = inlined_call_operand.vmem [shape: f32[2,7,32], index: 0, kind: input, shape index: {}]   ;;  %s567_s1 = inlined_call_operand.vmem [shape: f32[96,64], index: 1, kind: input, shape index: {}]   ;;  %s568_s2 = inlined_call_operand.vmem [shape: f32[1,64], index: 2, kind: input, shape index: {}]   ;;  %s569_s3 = inlined_call_operand.vmem [shape: f32[64,5], index: 3, kind: input, shape index: {}]   ;;  %s570_s4 = inlined_call_operand.vmem [shape: f32[1,5], index: 4, kind: input, shape index: {}]   ;;  %s571_s5 = inlined_call_operand.vmem [shape: f32[2,7,5], index: 5, kind: output, shape index: {}]  }
   0x1 LB: > { %s409_s19 = sadd.s32 4294967295, %s439_s18   ;;  %p413_p0 = scmp.ge.s32.totalorder %s439_s18, 1  ;;  %s439_s18 = sphi %s472_s18, %s15_s18  }
   0x2   : > { %p186_p1 = scmp.lt.s32.totalorder %s439_s18, 3 }
   0x4   : > { %p187_p2 = pnand %p413_p0, %p186_p1 }
   0x5   : > { %p212_p3 = scmp.lt.s32.totalorder (!%p187_p2), %s409_s19, 1 }
   0x6   : > { %190 = sbr.rel (%p187_p2) target bundleno = 298 (0x12a), region = 40 }
   0xb   : > { %v287_v0 = vld [vmem:[%s567_s1 + $0x58] sm:$0xff]  ;;  %v286_v1 = vld [vmem:[%s567_s1 + $0x50] sm:$0xff]  ;;  %vm221_vm0 = vcmask 261120   ;;  %v441_v5 = vmov 0.0   ;;  %vm223_vm1 = vcmask 253952   ;;  %v285_v6 = vld [vmem:[%s567_s1 + $0x48] sm:$0xff] }
   0xc   : > { %v236_v2 = vld [vmem:[%s567_s1 + $0x38] sm:$0xff]  ;;  %303 = vmatpush.msra.mxu2 %v287_v0  ;;  %v235_v4 = vld [vmem:[%s567_s1 + $0x30] sm:$0xff]  ;;  %222 = vst.msk [vmem:[#allocation2] sm:$0xff] %vm221_vm0, %v441_v5  ;;  %s573_s19 = smov (!%p212_p3, %s409_s19), 1  ;;  %v234_v8 = vld [vmem:[%s567_s1 + $0x28] sm:$0xff]  ;;  %vm225_vm2 = vcmask 260096  }
   0xd   : > { %252 = vmatpush.msra.mxu0 %v236_v2  ;;  %v231_v3 = vld [vmem:[%s567_s1 + $0x18] sm:$0xff]  ;;  %v230_v7 = vld [vmem:[%s567_s1 + $0x10] sm:$0xff]  ;;  %224 = vst.msk [vmem:[#allocation2 + $0x8] sm:$0x1] %vm223_vm1, %v441_v5  ;;  %v284_v9 = vld [vmem:[%s567_s1 + $0x40] sm:$0xff]  ;;  %s414_s15 = sshll.u32 %s573_s19, 3 }
   0xe   : > { %275 = vmatpush.msra.mxu1 %v231_v3  ;;  %304 = vmatpush.msra.mxu2 %v286_v1  ;;  %v229_v10 = vld [vmem:[%s567_s1 + $0x8] sm:$0xff]  ;;  %v233_v11 = vld [vmem:[%s567_s1 + $0x20] sm:$0xff]  ;;  %v325_v13 = vld [vmem:[%s569_s3 + $0x38] sm:$0xff]  ;;  %s215_s26 = scalar_lea.vmem %s566_s0, %s414_s15  ;;  %vm330_vm3 = vcmask 523264   ;;  %s219_s25 = scalar_lea.vmem %s571_s5, %s414_s15  ;;  %vm354_vm4 = vcmask 38912  }
   0xf   : > { %253 = vmatpush.msra.mxu0 %v235_v4  ;;  %v228_v12 = vld [vmem:[%s567_s1] sm:$0xff]  ;;  %v324_v14 = vld [vmem:[%s569_s3 + $0x30] sm:$0xff]  ;;  %342 = vmatpush.msra.mxu3 %v325_v13  ;;  %v323_v16 = vld [vmem:[%s569_s3 + $0x28] sm:$0xff] }
  0x10   : > { %276 = vmatpush.msra.mxu1 %v230_v7  ;;  %305 = vmatpush.msra.mxu2 %v285_v6  ;;  %v220_v15 = vld [vmem:[%s215_s26] sm:$0x7f]  ;;  %v321_v21 = vld [vmem:[%s569_s3 + $0x18] sm:$0xff]  ;;  %v320_v22 = vld [vmem:[%s569_s3 + $0x10] sm:$0xff] }
  0x11   : > { %254 = vmatpush.msra.mxu0 %v234_v8  ;;  %226 = vst.msk [vmem:[#allocation2 + $0x1] sm:$0x7f] %vm225_vm2, %v220_v15  ;;  %343 = vmatpush.msra.mxu3 %v324_v14  ;;  %v322_v20 = vld [vmem:[%s569_s3 + $0x20] sm:$0xff]  ;;  %v319_v23 = vld [vmem:[%s569_s3 + $0x8] sm:$0xff] }
  0x12   : > { %277 = vmatpush.msra.mxu1 %v229_v10  ;;  %306 = vmatpush.msra.mxu2 %v284_v9  ;;  %v318_v24 = vld [vmem:[%s569_s3] sm:$0xff] }
  0x13   : > { %255 = vmatpush.msra.mxu0 %v233_v11  ;;  %344 = vmatpush.msra.mxu3 %v323_v16  ;;  %v431_v28 = vld [vmem:[%s568_s2] ss:$0 sm:$0xff] }
  0x14   : > { %278 = vmatpush.msra.mxu1 %v228_v12  ;;  %v432_v33 = vld [vmem:[%s570_s4] ss:$0 sm:$0xff] }
  0x15   : > { %345 = vmatpush.msra.mxu3 %v322_v20 }
  0x17   : > { %346 = vmatpush.msra.mxu3 %v321_v21 }
  0x18   : > { %v283_v17 = vld [vmem:[#allocation2 + $0x2] sm:$0x7f] }
  0x19   : > { %v232_v18 = vld [vmem:[#allocation2 + $0x1] sm:$0x7f]  ;;  %418 = vmatmul.msk.f32.vlgmr.msra.gmra.mxu2 %vm221_vm0, %v283_v17  ;;  %347 = vmatpush.msra.mxu3 %v320_v22 }
  0x1a   : > { %v227_v19 = vld [vmem:[#allocation2] sm:$0x7f]  ;;  %416 = vmatmul.msk.f32.vlgmr.msra.gmra.mxu0 %vm221_vm0, %v232_v18 }
  0x1b   : > { %417 = vmatmul.msk.f32.vlgmr.msra.gmra.mxu1 %vm221_vm0, %v227_v19  ;;  %348 = vmatpush.msra.mxu3 %v319_v23 }
  0x1d   : > { %349 = vmatpush.msra.mxu3 %v318_v24 }
  0x97   : > { %v257_v25 = vpop.f32.mrf.mxu0 }
  0x98   : > { %v280_v26 = vpop.f32.mrf.mxu1 }
  0x99   : > { %v281_v27 = vadd.f32 %v280_v26, %v257_v25 }
  0x9c   : > { %v308_v29 = vpop.f32.mrf.mxu2 }
  0x9d   : > { %v311_v30 = vadd.f32 %v308_v29, %v281_v27 }
  0x9f   : > { %v316_v31 = vadd.f32 %v431_v28, %v311_v30 }
  0xa1   : > { %v317_v32 = vmax.f32 %v316_v31, 0.0 }
  0xa3   : > { %419 = vmatmul.msk.f32.vlgmr.msra.gmra.mxu3 %vm330_vm3, %v317_v32 }
 0x126   : > { %v351_v34 = vpop.f32.mrf.mxu3 }
 0x127   : > { %v352_v35 = vadd.f32 %v432_v33, %v351_v34 }
 0x129   : > { %355 = vst.msk [vmem:[%s219_s25] sm:$0x7f] %vm354_vm4, %v352_v35 }
 0x12a PF: > { %s15_s18 = sadd.s32 1, %s439_s18  }
 0x12b   : > { %p12_p4 = scmp.ge.s32.totalorder %s15_s18, 4  }
 0x12d   :  { %14 = sbr.rel (!%p12_p4) target bundleno = 1 (0x1), region = 70 }

// kernel: model_forward.15
= control target key start
LH: loop header
LB: loop body
LE: loop exit
PB: predicated region body
PF: predicated region fallthrough
CT: control target
= control target key end

     0   :  { %s3361_s0 = inlined_call_operand.vmem [shape: f32[2,7,32], index: 0, kind: input, shape index: {}]   ;;  %s3362_s1 = inlined_call_operand.vmem [shape: f32[1,32], index: 1, kind: input, shape index: {}]   ;;  %s3363_s2 = inlined_call_operand.hbm [shape: f32[1,32], index: 2, kind: input, shape index: {}]   ;;  %s3364_s3 = inlined_call_operand.vmem [shape: f32[32,256], index: 3, kind: input, shape index: {}]   ;;  %s3365_s4 = inlined_call_operand.vmem [shape: f32[1,256], index: 4, kind: input, shape index: {}]   ;;  %s3366_s5 = inlined_call_operand.vmem [shape: f32[32,128], index: 5, kind: input, shape index: {}]   ;;  %s3367_s6 = inlined_call_operand.vmem [shape: f32[32,128], index: 6, kind: input, shape index: {}]   ;;  %s3368_s7 = inlined_call_operand.vmem [shape: f32[64,192], index: 7, kind: input, shape index: {}]   ;;  %s3369_s8 = inlined_call_operand.vmem [shape: f32[1,192], index: 8, kind: input, shape index: {}]   ;;  %s3370_s9 = inlined_call_operand.vmem [shape: f32[7,64], index: 9, kind: input, shape index: {}]   ;;  %s3371_s10 = inlined_call_operand.vmem [shape: f32[64,64], index: 10, kind: input, shape index: {}]   ;;  %s3372_s11 = inlined_call_operand.vmem [shape: f32[1,64], index: 11, kind: input, shape index: {}]   ;;  %s3373_s12 = inlined_call_operand.vmem [shape: f32[1,64], index: 12, kind: input, shape index: {}]   ;;  %s3374_s13 = inlined_call_operand.vmem [shape: f32[64,64], index: 13, kind: input, shape index: {}]   ;;  %s3375_s14 = inlined_call_operand.hbm [shape: f32[1,64], index: 14, kind: input, shape index: {}]   ;;  %s3376_s15 = inlined_call_operand.vmem [shape: f32[64,32], index: 15, kind: input, shape index: {}]   ;;  %s3377_s16 = inlined_call_operand.hbm [shape: f32[1,32], index: 16, kind: input, shape index: {}]   ;;  %s3378_s17 = inlined_call_operand.vmem [shape: f32[2,7,32], index: 17, kind: output, shape index: {}]  }
   0x1   :  { %3381 = sst [smem:[#allocation13_spill]] %s3361_s0 }
   0x2   :  { %3382 = sst [smem:[#allocation14_spill]] %s3362_s1 }
   0x3   :  { %22 = vsyncpa [#allocation7], 0 }
   0x4   :  { %23 = vsyncpa [#allocation9], 0  ;;  %s2729_s24 = smov 0  }
   0x5 LB: > { %s482_s27 = sshll.u32 %s3375_s14, 4  ;;  %s2290_s28 = sadd.s32 4294967295, %s2618_s24   ;;  %s2618_s24 = sphi %s2729_s24, %s29_s24   ;;  %s483_s27 = int_to_ptr.hbm [resolvable:$true] %s482_s27 }
   0x6   : > { %p2292_p0 = scmp.ge.s32.totalorder %s2618_s24, 1  ;;  %p422_p1 = scmp.lt.s32.totalorder %s2618_s24, 3 }
   0x7   : > { %p2370_p2 = scmp.eq.s32.totalorder %s2290_s28, 0  ;;  %s2620_s0 = smov [#allocation8]  }
   0x8   : > { %p2740_p3 = pnand %p2292_p0, %p422_p1  ;;  %s484_s30 = sshll.u32 %s2620_s0, 4  ;;  %s485_s30 = int_to_ptr.vmem [resolvable:$true] %s484_s30 }
   0x9   : > { %s437_s1 = sshll.u32 %s3363_s2, 4  ;;  %s497_s22 = sshll.u32 %s3377_s16, 4  ;;  %s438_s1 = int_to_ptr.hbm [resolvable:$true] %s437_s1  ;;  %s498_s22 = int_to_ptr.hbm [resolvable:$true] %s497_s22 }
   0xa   : > { %p2360_p4 = pneg %p2740_p3  ;;  %s2621_s23 = smov [#allocation6]  }
   0xb   : > { %s439_s25 = sshll.u32 %s2621_s23, 4  ;;  %s2622_s26 = smov [#allocation10]   ;;  %s440_s25 = int_to_ptr.vmem [resolvable:$true] %s439_s25 }
   0xc   : > { %p2361_p5 = pnand %p2370_p2, %p2360_p4  ;;  %s499_s0 = sshll.u32 %s2622_s26, 4  ;;  %s500_s0 = int_to_ptr.vmem [resolvable:$true] %s499_s0 }
   0xd   : > { %519 = sbr.rel (%p2740_p3) target bundleno = 6459 (0x193b), region = 88 }
   0xe   : > { %2366 = dma.hbm_to_vmem [thread:$0]  (!%p2361_p5), %s483_s27, 16, %s485_s30, [#allocation9]  }
   0xf   : > { %2363 = dma.hbm_to_vmem [thread:$0]  (!%p2361_p5), %s438_s1, 16, %s440_s25, [#allocation7]  }
  0x10   : > { %2369 = dma.hbm_to_vmem [thread:$0]  (!%p2361_p5), %s498_s22, 16, %s500_s0, [#allocation9]  }
  0x12   : > { %2609 = dma.done.wait (%p2370_p2), [#allocation7], 16  }
  0x13   : > { %2611 = vsyncadd (%p2370_p2), [#allocation7], 4294967280 }
  0x14   : > { %2613 = dma.done.wait (%p2370_p2), [#allocation9], 32  }
  0x15   : > { %2615 = vsyncadd (%p2370_p2), [#allocation9], 4294967264  ;;  %p580_p6 = scmp.lt.s32.totalorder %s2290_s28, 1  ;;  %s3384_s19 = sld [smem:[#allocation13_spill]]  ;;  %vm591_vm0 = vcmask 260096   ;;  %v2623_v2 = vmov 32.0  }
  0x16   : > { %2409 = vrcp.f32 %v2623_v2  ;;  %v635_v14 = vld [vmem:[%s3364_s3 + $0x30] sm:$0xff]  ;;  %v636_v15 = vld [vmem:[%s3364_s3 + $0x38] sm:$0xff]  ;;  %v633_v16 = vld [vmem:[%s3364_s3 + $0x20] sm:$0xff]  ;;  %v2624_v32 = vmov 0.0   ;;  %s3385_s20 = sld [smem:[#allocation14_spill]]  ;;  %vm643_vm5 = vcmask 261120  }
  0x17   : > { %s3389_s28 = smov (!%p580_p6, %s2290_s28), 1  ;;  %659 = vmatpush.msra.mxu0 %v635_v14  ;;  %679 = vmatpush.msra.mxu1 %v636_v15  ;;  %v634_v17 = vld [vmem:[%s3364_s3 + $0x28] sm:$0xff]  ;;  %v631_v18 = vld [vmem:[%s3364_s3 + $0x10] sm:$0xff]  ;;  %v632_v19 = vld [vmem:[%s3364_s3 + $0x18] sm:$0xff]  ;;  %s2625_s23 = smov 64   ;;  %vm748_vm6 = vcmask 253952  }
  0x18   : > { %s3379_s27 = sshll.u32 %s3389_s28, 3  ;;  %v2797_v20 = vld [vmem:[%s3366_s5 + $0x18] sm:$0xff]  ;;  %v2807_v22 = vld [vmem:[%s3366_s5 + $0x10] sm:$0xff]  ;;  %v629_v23 = vld [vmem:[%s3364_s3] sm:$0xff]  ;;  %s2626_s25 = smov 32   ;;  %vm798_vm7 = vcmask 516352  }
  0x19   : > { %v2802_v21 = vld [vmem:[%s3367_s6 + $0x18] sm:$0xff]  ;;  %660 = vmatpush.msra.mxu0 %v633_v16  ;;  %680 = vmatpush.msra.mxu1 %v634_v17  ;;  %v630_v24 = vld [vmem:[%s3364_s3 + $0x8] sm:$0xff]  ;;  %v2820_v25 = vld [vmem:[%s3367_s6 + $0x10] sm:$0xff]  ;;  %vm1447_vm8 = vcmask 523264   ;;  %vm1535_vm9 = vcmask 130048   ;;  %s2627_s26 = smov 112  }
  0x1a   : > { %713 = vmatpush.msra.mxu2 %v2797_v20  ;;  %763 = vmatpush.msra.mxu3 %v2802_v21  ;;  %v2827_v26 = vld [vmem:[%s3366_s5 + $0x8] sm:$0xff]  ;;  %v2837_v28 = vld [vmem:[%s3366_s5] sm:$0xff]  ;;  %vm1663_vm10 = vcmask 1046528   ;;  %s3380_s1 = smov 48   ;;  %vm1562_vm11 = vcmask 120832   ;;  %vm1564_vm12 = vcmask 55296  }
  0x1b   : > { %s2767_s29 = scalar_lea.vmem %s3384_s19, %s3379_s27  ;;  %661 = vmatpush.msra.mxu0 %v631_v18  ;;  %681 = vmatpush.msra.mxu1 %v632_v19  ;;  %v2832_v27 = vld [vmem:[%s3367_s6 + $0x8] sm:$0xff]  ;;  %v2846_v29 = vld [vmem:[%s3367_s6] sm:$0xff]  ;;  %1563 = vst.msk [vmem:[#allocation4] sm:$0x7f] %vm1562_vm11, %v2624_v32  ;;  %vm1571_vm13 = vcmask 119872   ;;  %s2630_s21 = smov 127  }
  0x1c   : > { %v588_v0 = vld [vmem:[%s2767_s29] sm:$0x7f]  ;;  %v2410_v3 = vpop.eup %2409  ;;  %714 = vmatpush.msra.mxu2 %v2807_v22  ;;  %764 = vmatpush.msra.mxu3 %v2820_v25  ;;  %v2404_v43 = vld [vmem:[#allocation6] ss:$0 sm:$0xff]  ;;  %s2631_s22 = smov 126   ;;  %s2632_s0 = smov 125  }
  0x1d   : > { %v592_v1 = vsel %vm591_vm0, %v588_v0, 0.0  ;;  %v596_v4 = vmul.f32 32.0, %v2410_v3  ;;  %vm600_vm1 = vweird.f32 %v2410_v3  ;;  %662 = vmatpush.msra.mxu0 %v629_v23  ;;  %682 = vmatpush.msra.mxu1 %v630_v24  ;;  %v2403_v40 = vld [vmem:[%s3385_s20] ss:$0 sm:$0xff]  ;;  %s2633_s30 = smov 124   ;;  %s2634_s18 = smov 122  }
  0x1e   : > { %593 = vadd.xlane.f32.xlu0 %v592_v1  ;;  %715 = vmatpush.msra.mxu2 %v2827_v26  ;;  %v637_v46 = vld [vmem:[%s3365_s4] sm:$0x3]  ;;  %s2635_s19 = smov 123   ;;  %s2636_s27 = smov 96  }
  0x1f   : > { %v597_v5 = vsub.f32 1.0, %v596_v4  ;;  %815 = vmatpush.msrb.mxu0 %v2797_v20  ;;  %868 = vmatpush.msrb.mxu1 %v2802_v21  ;;  %v639_v47 = vperm.slane %v637_v46, 0  ;;  %v640_v48 = vperm.slane %v637_v46, 1  ;;  %s2637_s20 = smov 80  }
  0x20   : > { %765 = vmatpush.msra.mxu3 %v2832_v27  ;;  %716 = vmatpush.msra.mxu2 %v2837_v28 }
  0x21   : > { %v598_v6 = vmul.f32 %v2410_v3, %v597_v5  ;;  %816 = vmatpush.msrb.mxu0 %v2807_v22  ;;  %869 = vmatpush.msrb.mxu1 %v2820_v25 }
  0x22   : > { %766 = vmatpush.msra.mxu3 %v2846_v29  ;;  %717 = vmatmul.f32.vlgmr.msra.gmra.mxu2 %v2624_v32 }
  0x23   : > { %v599_v7 = vadd.f32 %v2410_v3, %v598_v6  ;;  %767 = vmatmul.f32.vlgmr.msra.gmra.mxu3 %v2624_v32  ;;  %817 = vmatpush.msrb.mxu0 %v2827_v26 }
  0x24   : > { %870 = vmatpush.msrb.mxu1 %v2832_v27  ;;  %919 = vmatpush.msrb.mxu2 %v2797_v20 }
  0x25   : > { %v601_v8 = vsel %vm600_vm1, %v2410_v3, %v599_v7  ;;  %972 = vmatpush.msrb.mxu3 %v2802_v21  ;;  %818 = vmatpush.msrb.mxu0 %v2837_v28 }
  0x26   : > { %871 = vmatpush.msrb.mxu1 %v2846_v29  ;;  %920 = vmatpush.msrb.mxu2 %v2807_v22 }
  0x27   : > { %973 = vmatpush.msrb.mxu3 %v2820_v25 }
  0x28   : > { %921 = vmatpush.msrb.mxu2 %v2827_v26 }
  0x29   : > { %974 = vmatpush.msrb.mxu3 %v2832_v27 }
  0x2a   : > { %922 = vmatpush.msrb.mxu2 %v2837_v28 }
  0x2b   : > { %975 = vmatpush.msrb.mxu3 %v2846_v29 }
  0x2c   : > { %1127 = vmatpush.msra.mxu2 %v2797_v20 }
  0x2d   : > { %1180 = vmatpush.msra.mxu3 %v2802_v21 }
  0x2e   : > { %1128 = vmatpush.msra.mxu2 %v2807_v22 }
  0x2f   : > { %1181 = vmatpush.msra.mxu3 %v2820_v25 }
  0x30   : > { %1129 = vmatpush.msra.mxu2 %v2827_v26 }
  0x31   : > { %1182 = vmatpush.msra.mxu3 %v2832_v27 }
  0x32   : > { %1130 = vmatpush.msra.mxu2 %v2837_v28 }
  0x33   : > { %1183 = vmatpush.msra.mxu3 %v2846_v29 }
  0x91   : > { %v594_v9 = vpop.xlane.xlu0 %593 }
  0x92   : > { %v602_v10 = vmul.f32 %v601_v8, %v594_v9 }
  0x94   : > { %v2771_v11 = vsub.f32 %v588_v0, %v602_v10 }
  0x96   : > { %v604_v12 = vmul.f32 %v2771_v11, %v2771_v11 }
  0x98   : > { %v605_v13 = vsel %vm591_vm0, %v604_v12, 0.0 }
  0x99   : > { %606 = vadd.xlane.f32.xlu0 %v605_v13 }
  0xa5   : > { %v718_v53 = vpop.f32.mrf.mxu2 }
  0xa6   : > { %v768_v57 = vpop.f32.mrf.mxu3 }
 0x10c   : > { %v607_v30 = vpop.xlane.xlu0 %606 }
 0x10d   : > { %v608_v31 = vmul.f32 %v607_v30, %v601_v8 }
 0x10f   : > { %v609_v33 = vadd.f32 1e-05, %v608_v31 }
 0x111   : > { %2411 = vrsqrt.f32 %v609_v33  ;;  %vm616_vm3 = vweird.f32 %v609_v33 }
 0x117   : > { %v2412_v34 = vpop.eup %2411 }
 0x118   : > { %v611_v35 = vmul.f32 %v2412_v34, %v609_v33  ;;  %vm617_vm2 = vweird.f32 %v2412_v34 }
 0x119   : > { %vm618_vm4 = vmor %vm616_vm3, %vm617_vm2 }
 0x11a   : > { %v612_v36 = vmul.f32 %v2412_v34, %v611_v35 }
 0x11c   : > { %v613_v37 = vmul.f32 0.5, %v612_v36 }
 0x11e   : > { %v614_v38 = vsub.f32 1.5, %v613_v37 }
 0x120   : > { %v615_v39 = vmul.f32 %v2412_v34, %v614_v38 }
 0x122   : > { %v619_v41 = vsel %vm618_vm4, %v2412_v34, %v615_v39 }
 0x123   : > { %v620_v42 = vmul.f32 %v619_v41, %v2771_v11 }
 0x125   : > { %v624_v44 = vmul.f32 %v2403_v40, %v620_v42 }
 0x127   : > { %v628_v45 = vadd.f32 %v2404_v43, %v624_v44 }
 0x129   : > { %2303 = vmatmul.msk.f32.vlgmr.msra.gmra.mxu0 %vm643_vm5, %v628_v45  ;;  %2304 = vmatmul.msk.f32.vlgmr.msra.gmra.mxu1 %vm643_vm5, %v628_v45 }
 0x12a   : > { %1023 = vmatpush.msra.mxu0 %v2797_v20  ;;  %1076 = vmatpush.msra.mxu1 %v2802_v21 }
 0x12c   : > { %1024 = vmatpush.msra.mxu0 %v2807_v22  ;;  %1077 = vmatpush.msra.mxu1 %v2820_v25 }
 0x12e   : > { %1025 = vmatpush.msra.mxu0 %v2827_v26  ;;  %1078 = vmatpush.msra.mxu1 %v2832_v27 }
 0x130   : > { %1026 = vmatpush.msra.mxu0 %v2837_v28  ;;  %1079 = vmatpush.msra.mxu1 %v2846_v29 }
 0x1a6   : > { %v664_v49 = vpop.f32.mrf.mxu0  ;;  %v684_v50 = vpop.f32.mrf.mxu1 }
 0x1a7   : > { %v665_v51 = vadd.f32 %v664_v49, %v639_v47  ;;  %v685_v52 = vadd.f32 %v684_v50, %v640_v48 }
 0x1a9   : > { %687 = vst [vmem:[#allocation2] sm:$0x7f] %v665_v51 }
 0x1aa   : > { %688 = vst [vmem:[#allocation2 + $0x8] sm:$0x7f] %v685_v52 }
 0x1b0   : > { %v697_v54 = vld [vmem:[#allocation2] ss:$0 sm:$0xff]  ;;  %v800_v31 = vld [vmem:[#allocation2 + $0x1] ss:$0 sm:$0xff] }
 0x1b1   : > { %v721_v55 = vadd.f32 %v718_v53, %v697_v54  ;;  %v750_v56 = vld [vmem:[#allocation2 + $0xe] ss:$0 sm:$0xff]  ;;  %v851_v36 = vld [vmem:[#allocation2 + $0xd] ss:$0 sm:$0xff] }
 0x1b2   : > { %v771_v58 = vadd.f32 %v768_v57, %v750_v56 }
 0x1b3   : > { %2413 = vtanh.f32 %v721_v55  ;;  %v722_v61 = vmul.f32 0.5, %v721_v55 }
 0x1b4   : > { %2415 = vtanh.f32 %v771_v58  ;;  %v772_v62 = vmul.f32 0.5, %v771_v58 }
 0x1b5   : > { %2417 = vtanh.f32 %v722_v61 }
 0x1b6   : > { %2419 = vtanh.f32 %v772_v62 }
 0x1b9   : > { %v2414_v59 = vpop.eup %2413 }
 0x1ba   : > { %729 = vrot.lane.b32.xlu1 %v2414_v59, %s2625_s23  ;;  %v2416_v60 = vpop.eup %2415 }
 0x1bb   : > { %v2418_v63 = vpop.eup %2417 }
 0x1bc   : > { %v724_v0 = vadd.f32 1.0, %v2418_v63  ;;  %v2420_v2 = vpop.eup %2419 }
 0x1bd   : > { %v774_v5 = vadd.f32 1.0, %v2420_v2  ;;  %v904_v2 = vld [vmem:[#allocation2 + $0x2] ss:$0 sm:$0xff] }
 0x1be   : > { %v725_v1 = vmul.f32 0.5, %v724_v0 }
 0x1bf   : > { %v775_v6 = vmul.f32 0.5, %v774_v5 }
 0x1c0   : > { %v727_v9 = vmul.f32 0.0, %v725_v1 }
 0x1c1   : > { %v777_v12 = vmul.f32 0.0, %v775_v6 }
 0x1c2   : > { %779 = vrot.lane.b32.xlu1 %v2416_v60, %s2625_s23 }
 0x22c   : > { %v730_v3 = vpop.permute.xlu1 %729 }
 0x22d   : > { %v732_v4 = vmul.f32 %v730_v3, %v725_v1 }
 0x22f   : > { %734 = vrot.lane.b32.xlu2 %v732_v4, %s2626_s25 }
 0x234   : > { %v780_v7 = vpop.permute.xlu1 %779 }
 0x235   : > { %v782_v8 = vmul.f32 %v780_v7, %v775_v6 }
 0x237   : > { %784 = vrot.lane.b32.xlu2 %v782_v8, %s2626_s25 }
 0x289   : > { %v735_v10 = vpop.permute.xlu2 %734 }
 0x28a   : > { %v737_v11 = vadd.f32 %v735_v10, %v727_v9 }
 0x28c   : > { %2421 = vtanh.f32 %v737_v11 }
 0x291   : > { %v785_v13 = vpop.permute.xlu2 %784 }
 0x292   : > { %v2422_v14 = vpop.eup %2421  ;;  %v787_v15 = vadd.f32 %v785_v13, %v777_v12 }
 0x293   : > { %740 = vrot.lane.b32.xlu0 %v2422_v14, %s2625_s23 }
 0x294   : > { %2423 = vtanh.f32 %v787_v15 }
 0x29a   : > { %v2424_v16 = vpop.eup %2423 }
 0x29b   : > { %790 = vrot.lane.b32.xlu1 %v2424_v16, %s2625_s23 }
 0x305   : > { %v741_v17 = vpop.permute.xlu0 %740 }
 0x306   : > { %v743_v18 = vmul.f32 %v741_v17, %v725_v1 }
 0x308   : > { %745 = vrot.lane.b32.xlu2 %v743_v18, %s2626_s25 }
 0x30d   : > { %v791_v19 = vpop.permute.xlu1 %790 }
 0x30e   : > { %v2898_v23 = vmul.f32 %v791_v19, %v775_v6 }
 0x310   : > { %852 = vrot.lane.b32.xlu1 %v2898_v23, %s2626_s25 }
 0x362   : > { %v746_v24 = vpop.permute.xlu2 %745 }
 0x363   : > { %749 = vst.msk [vmem:[#allocation3] sm:$0x1] %vm748_vm6, %v746_v24  ;;  %2305 = vmatmul.msk.f32.vlgmr.msrb.gmra.mxu0 %vm643_vm5, %v746_v24 }
 0x364   : > { %1231 = vmatpush.msrb.mxu0 %v2797_v20 }
 0x366   : > { %1232 = vmatpush.msrb.mxu0 %v2807_v22 }
 0x368   : > { %1233 = vmatpush.msrb.mxu0 %v2827_v26 }
 0x36a   : > { %1234 = vmatpush.msrb.mxu0 %v2837_v28 }
 0x382   : > { %v853_v30 = vpop.permute.xlu1 %852 }
 0x383   : > { %2306 = vmatmul.msk.f32.vlgmr.msrb.gmra.mxu1 %vm643_vm5, %v853_v30 }
 0x384   : > { %1284 = vmatpush.msrb.mxu1 %v2802_v21 }
 0x386   : > { %1285 = vmatpush.msrb.mxu1 %v2820_v25 }
 0x388   : > { %1286 = vmatpush.msrb.mxu1 %v2832_v27 }
 0x38a   : > { %1287 = vmatpush.msrb.mxu1 %v2846_v29 }
 0x3e0   : > { %v820_v33 = vpop.f32.mrf.mxu0 }
 0x3e1   : > { %v823_v34 = vadd.f32 %v820_v33, %v800_v31 }
 0x3e3   : > { %2425 = vtanh.f32 %v823_v34  ;;  %v824_v40 = vmul.f32 0.5, %v823_v34 }
 0x3e9   : > { %v2426_v35 = vpop.eup %2425 }
 0x3ea   : > { %831 = vrot.lane.b32.xlu2 %v2426_v35, %s2625_s23 }
 0x400   : > { %v873_v37 = vpop.f32.mrf.mxu1 }
 0x401   : > { %v876_v38 = vadd.f32 %v873_v37, %v851_v36 }
 0x403   : > { %2427 = vtanh.f32 %v876_v38  ;;  %v877_v46 = vmul.f32 0.5, %v876_v38  ;;  %v1008_v38 = vld [vmem:[#allocation2 + $0x3] ss:$0 sm:$0xff] }
 0x404   : > { %2429 = vtanh.f32 %v824_v40 }
 0x405   : > { %2431 = vtanh.f32 %v877_v46 }
 0x409   : > { %v2428_v39 = vpop.eup %2427 }
 0x40a   : > { %884 = vrot.lane.b32.xlu1 %v2428_v39, %s2625_s23  ;;  %v2430_v41 = vpop.eup %2429 }
 0x40b   : > { %v826_v42 = vadd.f32 1.0, %v2430_v41  ;;  %v2432_v47 = vpop.eup %2431 }
 0x40c   : > { %v879_v48 = vadd.f32 1.0, %v2432_v47 }
 0x40d   : > { %v827_v43 = vmul.f32 0.5, %v826_v42  ;;  %v1059_v42 = vld [vmem:[#allocation2 + $0xb] ss:$0 sm:$0xff] }
 0x40e   : > { %v880_v49 = vmul.f32 0.5, %v879_v48 }
 0x40f   : > { %v829_v52 = vmul.f32 %v827_v43, %v737_v11 }
 0x410   : > { %v882_v56 = vmul.f32 %v880_v49, %v787_v15 }
 0x444   : > { %v832_v44 = vpop.permute.xlu2 %831 }
 0x445   : > { %v834_v45 = vmul.f32 %v832_v44, %v827_v43 }
 0x447   : > { %836 = vrot.lane.b32.xlu2 %v834_v45, %s2626_s25 }
 0x47c   : > { %v885_v50 = vpop.permute.xlu1 %884 }
 0x47d   : > { %v887_v51 = vmul.f32 %v885_v50, %v880_v49 }
 0x47f   : > { %889 = vrot.lane.b32.xlu0 %v887_v51, %s2626_s25 }
 0x4a1   : > { %v837_v53 = vpop.permute.xlu2 %836 }
 0x4a2   : > { %v839_v54 = vadd.f32 %v837_v53, %v829_v52 }
 0x4a4   : > { %2433 = vtanh.f32 %v839_v54 }
 0x4aa   : > { %v2434_v55 = vpop.eup %2433 }
 0x4ab   : > { %842 = vrot.lane.b32.xlu1 %v2434_v55, %s2625_s23 }
 0x4f1   : > { %v890_v57 = vpop.permute.xlu0 %889 }
 0x4f2   : > { %v892_v58 = vadd.f32 %v890_v57, %v882_v56 }
 0x4f4   : > { %2435 = vtanh.f32 %v892_v58 }
 0x4fa   : > { %v2436_v59 = vpop.eup %2435 }
 0x4fb   : > { %895 = vrot.lane.b32.xlu2 %v2436_v59, %s2625_s23 }
 0x51d   : > { %v843_v60 = vpop.permute.xlu1 %842 }
 0x51e   : > { %v845_v61 = vmul.f32 %v843_v60, %v827_v43 }
 0x520   : > { %847 = vrot.lane.b32.xlu0 %v845_v61, %s2626_s25 }
 0x555   : > { %v896_v62 = vpop.permute.xlu2 %895 }
 0x556   : > { %v2920_v63 = vmul.f32 %v896_v62, %v880_v49 }
 0x558   : > { %956 = vrot.lane.b32.xlu1 %v2920_v63, %s2626_s25 }
 0x592   : > { %v848_v0 = vpop.permute.xlu0 %847 }
 0x593   : > { %850 = vst.msk [vmem:[#allocation3 + $0x1] sm:$0x1] %vm748_vm6, %v848_v0  ;;  %2307 = vmatmul.msk.f32.vlgmr.msrb.gmra.mxu2 %vm643_vm5, %v848_v0 }
 0x594   : > { %1335 = vmatpush.msrb.mxu2 %v2797_v20 }
 0x596   : > { %1336 = vmatpush.msrb.mxu2 %v2807_v22 }
 0x598   : > { %1337 = vmatpush.msrb.mxu2 %v2827_v26  ;;  %v955_v26 = vld [vmem:[#allocation2 + $0xc] ss:$0 sm:$0xff] }
 0x59a   : > { %1338 = vmatpush.msrb.mxu2 %v2837_v28 }
 0x5ca   : > { %v957_v1 = vpop.permute.xlu1 %956 }
 0x5cb   : > { %2308 = vmatmul.msk.f32.vlgmr.msrb.gmra.mxu3 %vm643_vm5, %v957_v1 }
 0x5cc   : > { %1388 = vmatpush.msrb.mxu3 %v2802_v21 }
 0x5ce   : > { %1389 = vmatpush.msrb.mxu3 %v2820_v25 }
 0x5d0   : > { %1390 = vmatpush.msrb.mxu3 %v2832_v27 }
 0x5d2   : > { %1391 = vmatpush.msrb.mxu3 %v2846_v29 }
 0x616   : > { %v924_v3 = vpop.f32.mrf.mxu2 }
 0x617   : > { %v927_v20 = vadd.f32 %v924_v3, %v904_v2 }
 0x619   : > { %2437 = vtanh.f32 %v927_v20  ;;  %v928_v21 = vmul.f32 0.5, %v927_v20 }
 0x61f   : > { %v2438_v22 = vpop.eup %2437 }
 0x620   : > { %935 = vrot.lane.b32.xlu2 %v2438_v22, %s2625_s23 }
 0x64e   : > { %v977_v28 = vpop.f32.mrf.mxu3 }
 0x64f   : > { %v980_v4 = vadd.f32 %v977_v28, %v955_v26 }
 0x651   : > { %2439 = vtanh.f32 %v980_v4  ;;  %v981_v8 = vmul.f32 0.5, %v980_v4 }
 0x652   : > { %2441 = vtanh.f32 %v928_v21 }
 0x653   : > { %2443 = vtanh.f32 %v981_v8 }
 0x657   : > { %v2440_v5 = vpop.eup %2439 }
 0x658   : > { %988 = vrot.lane.b32.xlu0 %v2440_v5, %s2625_s23  ;;  %v2442_v25 = vpop.eup %2441  ;;  %v1112_v5 = vld [vmem:[#allocation2 + $0x4] ss:$0 sm:$0xff] }
 0x659   : > { %v930_v27 = vadd.f32 1.0, %v2442_v25  ;;  %v2444_v9 = vpop.eup %2443 }
 0x65a   : > { %v983_v10 = vadd.f32 1.0, %v2444_v9 }
 0x65b   : > { %v931_v6 = vmul.f32 0.5, %v930_v27 }
 0x65c   : > { %v984_v11 = vmul.f32 0.5, %v983_v10 }
 0x65d   : > { %v933_v14 = vmul.f32 %v931_v6, %v839_v54 }
 0x65e   : > { %v986_v18 = vmul.f32 %v984_v11, %v892_v58 }
 0x67a   : > { %v936_v29 = vpop.permute.xlu2 %935 }
 0x67b   : > { %v938_v7 = vmul.f32 %v936_v29, %v931_v6 }
 0x67d   : > { %940 = vrot.lane.b32.xlu1 %v938_v7, %s2626_s25 }
 0x6ca   : > { %v989_v12 = vpop.permute.xlu0 %988 }
 0x6cb   : > { %v991_v13 = vmul.f32 %v989_v12, %v984_v11 }
 0x6cd   : > { %993 = vrot.lane.b32.xlu2 %v991_v13, %s2626_s25 }
 0x6ef   : > { %v941_v15 = vpop.permute.xlu1 %940 }
 0x6f0   : > { %v943_v16 = vadd.f32 %v941_v15, %v933_v14 }
 0x6f2   : > { %2445 = vtanh.f32 %v943_v16 }
 0x6f8   : > { %v2446_v17 = vpop.eup %2445 }
 0x6f9   : > { %946 = vrot.lane.b32.xlu0 %v2446_v17, %s2625_s23 }
 0x727   : > { %v994_v19 = vpop.permute.xlu2 %993 }
 0x728   : > { %v996_v24 = vadd.f32 %v994_v19, %v986_v18 }
 0x72a   : > { %2447 = vtanh.f32 %v996_v24 }
 0x730   : > { %v2448_v30 = vpop.eup %2447 }
 0x731   : > { %999 = vrot.lane.b32.xlu1 %v2448_v30, %s2625_s23 }
 0x76b   : > { %v947_v31 = vpop.permute.xlu0 %946 }
 0x76c   : > { %v949_v33 = vmul.f32 %v947_v31, %v931_v6  ;;  %v1163_v6 = vld [vmem:[#allocation2 + $0xa] ss:$0 sm:$0xff] }
 0x76e   : > { %951 = vrot.lane.b32.xlu2 %v949_v33, %s2626_s25 }
 0x7a3   : > { %v1000_v34 = vpop.permute.xlu1 %999 }
 0x7a4   : > { %v2942_v35 = vmul.f32 %v1000_v34, %v984_v11 }
 0x7a6   : > { %1060 = vrot.lane.b32.xlu0 %v2942_v35, %s2626_s25 }
 0x7c8   : > { %v952_v36 = vpop.permute.xlu2 %951 }
 0x7c9   : > { %954 = vst.msk [vmem:[#allocation3 + $0x2] sm:$0x1] %vm748_vm6, %v952_v36  ;;  %2309 = vmatmul.msk.f32.vlgmr.msra.gmra.mxu0 %vm643_vm5, %v952_v36 }
 0x818   : > { %v1061_v37 = vpop.permute.xlu0 %1060 }
 0x819   : > { %2310 = vmatmul.msk.f32.vlgmr.msra.gmra.mxu1 %vm643_vm5, %v1061_v37 }
 0x846   : > { %v1028_v39 = vpop.f32.mrf.mxu0 }
 0x847   : > { %v1031_v40 = vadd.f32 %v1028_v39, %v1008_v38 }
 0x849   : > { %2449 = vtanh.f32 %v1031_v40  ;;  %v1032_v46 = vmul.f32 0.5, %v1031_v40 }
 0x84f   : > { %v2450_v41 = vpop.eup %2449 }
 0x850   : > { %1039 = vrot.lane.b32.xlu1 %v2450_v41, %s2625_s23 }
 0x896   : > { %v1081_v43 = vpop.f32.mrf.mxu1 }
 0x897   : > { %v1084_v44 = vadd.f32 %v1081_v43, %v1059_v42 }
 0x899   : > { %2451 = vtanh.f32 %v1084_v44  ;;  %v1085_v52 = vmul.f32 0.5, %v1084_v44 }
 0x89a   : > { %2453 = vtanh.f32 %v1032_v46  ;;  %v1216_v46 = vld [vmem:[#allocation2 + $0x5] ss:$0 sm:$0xff] }
 0x89b   : > { %2455 = vtanh.f32 %v1085_v52 }
 0x89f   : > { %v2452_v45 = vpop.eup %2451 }
 0x8a0   : > { %1092 = vrot.lane.b32.xlu2 %v2452_v45, %s2625_s23  ;;  %v2454_v47 = vpop.eup %2453 }
 0x8a1   : > { %v1034_v48 = vadd.f32 1.0, %v2454_v47  ;;  %v2456_v53 = vpop.eup %2455 }
 0x8a2   : > { %v1087_v54 = vadd.f32 1.0, %v2456_v53 }
 0x8a3   : > { %v1035_v49 = vmul.f32 0.5, %v1034_v48 }
 0x8a4   : > { %v1088_v55 = vmul.f32 0.5, %v1087_v54 }
 0x8a5   : > { %v1037_v58 = vmul.f32 %v1035_v49, %v943_v16 }
 0x8a6   : > { %v1090_v62 = vmul.f32 %v1088_v55, %v996_v24 }
 0x8c2   : > { %v1040_v50 = vpop.permute.xlu1 %1039 }
 0x8c3   : > { %v1042_v51 = vmul.f32 %v1040_v50, %v1035_v49  ;;  %v1267_v50 = vld [vmem:[#allocation2 + $0x9] ss:$0 sm:$0xff] }
 0x8c5   : > { %1044 = vrot.lane.b32.xlu0 %v1042_v51, %s2626_s25 }
 0x8fa   : > { %v1093_v56 = vpop.permute.xlu2 %1092 }
 0x8fb   : > { %v1095_v57 = vmul.f32 %v1093_v56, %v1088_v55 }
 0x8fd   : > { %1097 = vrot.lane.b32.xlu1 %v1095_v57, %s2626_s25 }
 0x937   : > { %v1045_v59 = vpop.permute.xlu0 %1044 }
 0x938   : > { %v1047_v60 = vadd.f32 %v1045_v59, %v1037_v58 }
 0x93a   : > { %2457 = vtanh.f32 %v1047_v60 }
 0x940   : > { %v2458_v61 = vpop.eup %2457 }
 0x941   : > { %1050 = vrot.lane.b32.xlu2 %v2458_v61, %s2625_s23 }
 0x96f   : > { %v1098_v0 = vpop.permute.xlu1 %1097 }
 0x970   : > { %v1100_v1 = vadd.f32 %v1098_v0, %v1090_v62 }
 0x972   : > { %2459 = vtanh.f32 %v1100_v1 }
 0x978   : > { %v2460_v2 = vpop.eup %2459 }
 0x979   : > { %1103 = vrot.lane.b32.xlu0 %v2460_v2, %s2625_s23 }
 0x99b   : > { %v1051_v3 = vpop.permute.xlu2 %1050 }
 0x99c   : > { %v1053_v20 = vmul.f32 %v1051_v3, %v1035_v49 }
 0x99e   : > { %1055 = vrot.lane.b32.xlu1 %v1053_v20, %s2626_s25 }
 0x9eb   : > { %v1104_v22 = vpop.permute.xlu0 %1103 }
 0x9ec   : > { %v2956_v26 = vmul.f32 %v1104_v22, %v1088_v55 }
 0x9ee   : > { %1164 = vrot.lane.b32.xlu2 %v2956_v26, %s2626_s25 }
 0xa10   : > { %v1056_v28 = vpop.permute.xlu1 %1055 }
 0xa11   : > { %1058 = vst.msk [vmem:[#allocation3 + $0x3] sm:$0x1] %vm748_vm6, %v1056_v28  ;;  %2311 = vmatmul.msk.f32.vlgmr.msra.gmra.mxu2 %vm643_vm5, %v1056_v28 }
 0xa48   : > { %v1165_v4 = vpop.permute.xlu2 %1164 }
 0xa49   : > { %2312 = vmatmul.msk.f32.vlgmr.msra.gmra.mxu3 %vm643_vm5, %v1165_v4 }
 0xa94   : > { %v1132_v21 = vpop.f32.mrf.mxu2 }
 0xa95   : > { %v1135_v25 = vadd.f32 %v1132_v21, %v1112_v5 }
 0xa97   : > { %2461 = vtanh.f32 %v1135_v25  ;;  %v1136_v9 = vmul.f32 0.5, %v1135_v25 }
 0xa9d   : > { %v2462_v27 = vpop.eup %2461 }
 0xa9e   : > { %1143 = vrot.lane.b32.xlu0 %v2462_v27, %s2625_s23 }
 0xacc   : > { %v1185_v29 = vpop.f32.mrf.mxu3 }
 0xacd   : > { %v1188_v7 = vadd.f32 %v1185_v29, %v1163_v6 }
 0xacf   : > { %2463 = vtanh.f32 %v1188_v7  ;;  %v1189_v15 = vmul.f32 0.5, %v1188_v7 }
 0xad0   : > { %2465 = vtanh.f32 %v1136_v9 }
 0xad1   : > { %2467 = vtanh.f32 %v1189_v15 }
 0xad5   : > { %v2464_v8 = vpop.eup %2463 }
 0xad6   : > { %1196 = vrot.lane.b32.xlu1 %v2464_v8, %s2625_s23  ;;  %v2466_v10 = vpop.eup %2465 }
 0xad7   : > { %v1138_v11 = vadd.f32 1.0, %v2466_v10  ;;  %v2468_v16 = vpop.eup %2467  ;;  %v1320_v10 = vld [vmem:[#allocation2 + $0x6] ss:$0 sm:$0xff] }
 0xad8   : > { %v1191_v17 = vadd.f32 1.0, %v2468_v16 }
 0xad9   : > { %v1139_v12 = vmul.f32 0.5, %v1138_v11 }
 0xada   : > { %v1192_v18 = vmul.f32 0.5, %v1191_v17 }
 0xadb   : > { %v1141_v30 = vmul.f32 %v1139_v12, %v1047_v60 }
 0xadc   : > { %v1194_v36 = vmul.f32 %v1192_v18, %v1100_v1 }
 0xb10   : > { %v1144_v13 = vpop.permute.xlu0 %1143 }
 0xb11   : > { %v1146_v14 = vmul.f32 %v1144_v13, %v1139_v12 }
 0xb13   : > { %1148 = vrot.lane.b32.xlu2 %v1146_v14, %s2626_s25  ;;  %v1371_v14 = vld [vmem:[#allocation2 + $0x8] ss:$0 sm:$0xff] }
 0xb48   : > { %v1197_v19 = vpop.permute.xlu1 %1196 }
 0xb49   : > { %v1199_v24 = vmul.f32 %v1197_v19, %v1192_v18 }
 0xb4b   : > { %1201 = vrot.lane.b32.xlu0 %v1199_v24, %s2626_s25 }
 0xb6d   : > { %v1149_v31 = vpop.permute.xlu2 %1148 }
 0xb6e   : > { %v1151_v33 = vadd.f32 %v1149_v31, %v1141_v30 }
 0xb70   : > { %2469 = vtanh.f32 %v1151_v33 }
 0xb76   : > { %v2470_v34 = vpop.eup %2469 }
 0xb77   : > { %1154 = vrot.lane.b32.xlu1 %v2470_v34, %s2625_s23 }
 0xbbd   : > { %v1202_v37 = vpop.permute.xlu0 %1201 }
 0xbbe   : > { %v1204_v38 = vadd.f32 %v1202_v37, %v1194_v36 }
 0xbc0   : > { %2471 = vtanh.f32 %v1204_v38 }
 0xbc6   : > { %v2472_v39 = vpop.eup %2471 }
 0xbc7   : > { %1207 = vrot.lane.b32.xlu2 %v2472_v39, %s2625_s23 }
 0xbe9   : > { %v1155_v40 = vpop.permute.xlu1 %1154 }
 0xbea   : > { %v1157_v41 = vmul.f32 %v1155_v40, %v1139_v12 }
 0xbec   : > { %1159 = vrot.lane.b32.xlu0 %v1157_v41, %s2626_s25 }
 0xc21   : > { %v1208_v42 = vpop.permute.xlu2 %1207 }
 0xc22   : > { %v2970_v43 = vmul.f32 %v1208_v42, %v1192_v18 }
 0xc24   : > { %1268 = vrot.lane.b32.xlu1 %v2970_v43, %s2626_s25 }
 0xc5e   : > { %v2974_v44 = vpop.permute.xlu0 %1159 }
 0xc5f   : > { %2313 = vmatmul.msk.f32.vlgmr.msrb.gmra.mxu0 %vm643_vm5, %v2974_v44 }
 0xc96   : > { %v1269_v45 = vpop.permute.xlu1 %1268 }
 0xc97   : > { %2314 = vmatmul.msk.f32.vlgmr.msrb.gmra.mxu1 %vm643_vm5, %v1269_v45 }
 0xcdc   : > { %v1236_v47 = vpop.f32.mrf.mxu0 }
 0xcdd   : > { %v1239_v48 = vadd.f32 %v1236_v47, %v1216_v46 }
 0xcdf   : > { %2473 = vtanh.f32 %v1239_v48  ;;  %v1240_v54 = vmul.f32 0.5, %v1239_v48 }
 0xce5   : > { %v2474_v49 = vpop.eup %2473 }
 0xce6   : > { %1247 = vrot.lane.b32.xlu2 %v2474_v49, %s2625_s23 }
 0xd14   : > { %v1289_v51 = vpop.f32.mrf.mxu1 }
 0xd15   : > { %v1292_v52 = vadd.f32 %v1289_v51, %v1267_v50 }
 0xd17   : > { %2475 = vtanh.f32 %v1292_v52  ;;  %v1293_v60 = vmul.f32 0.5, %v1292_v52 }
 0xd18   : > { %2477 = vtanh.f32 %v1240_v54 }
 0xd19   : > { %2479 = vtanh.f32 %v1293_v60  ;;  %v1437_v60 = vld [vmem:[%s3368_s7 + $0x60] sm:$0xff] }
 0xd1d   : > { %v2476_v53 = vpop.eup %2475 }
 0xd1e   : > { %1300 = vrot.lane.b32.xlu0 %v2476_v53, %s2625_s23  ;;  %v2478_v55 = vpop.eup %2477 }
 0xd1f   : > { %v1242_v56 = vadd.f32 1.0, %v2478_v55  ;;  %v2480_v61 = vpop.eup %2479  ;;  %v1498_v55 = vld [vmem:[%s3371_s10 + $0x30] sm:$0xff] }
 0xd20   : > { %v1295_v62 = vadd.f32 1.0, %v2480_v61  ;;  %v1438_v61 = vld [vmem:[%s3368_s7 + $0x68] sm:$0xff] }
 0xd21   : > { %v1243_v57 = vmul.f32 0.5, %v1242_v56 }
 0xd22   : > { %v1296_v0 = vmul.f32 0.5, %v1295_v62  ;;  %v1496_v62 = vld [vmem:[%s3371_s10 + $0x20] sm:$0xff] }
 0xd23   : > { %v1245_v3 = vmul.f32 %v1243_v57, %v1151_v33 }
 0xd24   : > { %v1298_v4 = vmul.f32 %v1296_v0, %v1204_v38 }
 0xd40   : > { %v1248_v58 = vpop.permute.xlu2 %1247 }
 0xd41   : > { %v1250_v59 = vmul.f32 %v1248_v58, %v1243_v57  ;;  %v1439_v58 = vld [vmem:[%s3368_s7 + $0x70] sm:$0xff] }
 0xd42   : > { %1459 = vmatpush.msra.mxu0 %v1439_v58 }
 0xd43   : > { %1252 = vrot.lane.b32.xlu1 %v1250_v59, %s2626_s25  ;;  %v1440_v59 = vld [vmem:[%s3368_s7 + $0x78] sm:$0xff] }
 0xd44   : > { %1479 = vmatpush.msra.mxu1 %v1440_v59  ;;  %1460 = vmatpush.msra.mxu0 %v1437_v60 }
 0xd46   : > { %1480 = vmatpush.msra.mxu1 %v1438_v61 }
 0xd90   : > { %v1301_v1 = vpop.permute.xlu0 %1300 }
 0xd91   : > { %v1303_v2 = vmul.f32 %v1301_v1, %v1296_v0  ;;  %v1436_v1 = vld [vmem:[%s3368_s7 + $0x58] sm:$0xff] }
 0xd92   : > { %1481 = vmatpush.msra.mxu1 %v1436_v1 }
 0xd93   : > { %1305 = vrot.lane.b32.xlu2 %v1303_v2, %s2626_s25  ;;  %v1495_v2 = vld [vmem:[%s3371_s10 + $0x18] sm:$0xff] }
 0xdb5   : > { %v1253_v20 = vpop.permute.xlu1 %1252 }
 0xdb6   : > { %v1255_v22 = vadd.f32 %v1253_v20, %v1245_v3  ;;  %v1434_v3 = vld [vmem:[%s3368_s7 + $0x48] sm:$0xff]  ;;  %v1494_v20 = vld [vmem:[%s3371_s10 + $0x10] sm:$0xff] }
 0xdb7   : > { %1482 = vmatpush.msra.mxu1 %v1434_v3 }
 0xdb8   : > { %2481 = vtanh.f32 %v1255_v22 }
 0xdbe   : > { %v2482_v28 = vpop.eup %2481 }
 0xdbf   : > { %1258 = vrot.lane.b32.xlu0 %v2482_v28, %s2625_s23  ;;  %v1493_v28 = vld [vmem:[%s3371_s10 + $0x8] sm:$0xff] }
 0xded   : > { %v1306_v5 = vpop.permute.xlu2 %1305 }
 0xdee   : > { %v1308_v21 = vadd.f32 %v1306_v5, %v1298_v4  ;;  %v1492_v4 = vld [vmem:[%s3371_s10] sm:$0xff] }
 0xdef   : > { %v1491_v5 = vld [vmem:[%s3370_s9] sm:$0x7f] }
 0xdf0   : > { %2483 = vtanh.f32 %v1308_v21 }
 0xdf6   : > { %v2484_v25 = vpop.eup %2483 }
 0xdf7   : > { %1311 = vrot.lane.b32.xlu1 %v2484_v25, %s2625_s23  ;;  %v1431_v25 = vld [vmem:[%s3368_s7 + $0x30] sm:$0xff] }
 0xe31   : > { %v1259_v27 = vpop.permute.xlu0 %1258 }
 0xe32   : > { %v1261_v6 = vmul.f32 %v1259_v27, %v1243_v57  ;;  %v1497_v57 = vld [vmem:[%s3371_s10 + $0x28] sm:$0xff]  ;;  %v1432_v27 = vld [vmem:[%s3368_s7 + $0x38] sm:$0xff] }
 0xe33   : > { %1483 = vmatpush.msra.mxu1 %v1432_v27 }
 0xe34   : > { %1263 = vrot.lane.b32.xlu2 %v1261_v6, %s2626_s25  ;;  %v1429_v6 = vld [vmem:[%s3368_s7 + $0x20] sm:$0xff] }
 0xe69   : > { %v1312_v29 = vpop.permute.xlu1 %1311 }
 0xe6a   : > { %v1314_v7 = vmul.f32 %v1312_v29, %v1296_v0  ;;  %v1435_v0 = vld [vmem:[%s3368_s7 + $0x50] sm:$0xff]  ;;  %v1430_v29 = vld [vmem:[%s3368_s7 + $0x28] sm:$0xff] }
 0xe6b   : > { %1461 = vmatpush.msra.mxu0 %v1435_v0  ;;  %1484 = vmatpush.msra.mxu1 %v1430_v29 }
 0xe6c   : > { %1372 = vrot.lane.b32.xlu0 %v1314_v7, %s2626_s25 }
 0xe8e   : > { %v1264_v8 = vpop.permute.xlu2 %1263 }
 0xe8f   : > { %2315 = vmatmul.msk.f32.vlgmr.msrb.gmra.mxu2 %vm643_vm5, %v1264_v8 }
 0xede   : > { %v1373_v9 = vpop.permute.xlu0 %1372 }
 0xedf   : > { %2316 = vmatmul.msk.f32.vlgmr.msrb.gmra.mxu3 %vm643_vm5, %v1373_v9  ;;  %v1425_v9 = vld [vmem:[%s3368_s7] sm:$0xff] }
 0xf12   : > { %v1340_v11 = vpop.f32.mrf.mxu2 }
 0xf13   : > { %v1343_v12 = vadd.f32 %v1340_v11, %v1320_v10  ;;  %v1426_v10 = vld [vmem:[%s3368_s7 + $0x8] sm:$0xff] }
 0xf15   : > { %2485 = vtanh.f32 %v1343_v12  ;;  %v1344_v18 = vmul.f32 0.5, %v1343_v12 }
 0xf1b   : > { %v2486_v13 = vpop.eup %2485 }
 0xf1c   : > { %1351 = vrot.lane.b32.xlu1 %v2486_v13, %s2625_s23 }
 0xf62   : > { %v1393_v15 = vpop.f32.mrf.mxu3 }
 0xf63   : > { %v1396_v16 = vadd.f32 %v1393_v15, %v1371_v14  ;;  %v1441_v14 = vld [vmem:[%s3369_s8] sm:$0x3] }
 0xf64   : > { %v1443_v15 = vperm.slane %v1441_v14, 0 }
 0xf65   : > { %2487 = vtanh.f32 %v1396_v16  ;;  %v1397_v34 = vmul.f32 0.5, %v1396_v16  ;;  %v1444_v16 = vperm.slane %v1441_v14, 1 }
 0xf66   : > { %2489 = vtanh.f32 %v1344_v18 }
 0xf67   : > { %2491 = vtanh.f32 %v1397_v34 }
 0xf6b   : > { %v2488_v17 = vpop.eup %2487 }
 0xf6c   : > { %1404 = vrot.lane.b32.xlu2 %v2488_v17, %s2625_s23  ;;  %v2490_v19 = vpop.eup %2489  ;;  %v2405_v17 = vld [vmem:[%s3373_s12] ss:$0 sm:$0xff] }
 0xf6d   : > { %v1346_v24 = vadd.f32 1.0, %v2490_v19  ;;  %v2492_v36 = vpop.eup %2491 }
 0xf6e   : > { %v1399_v37 = vadd.f32 1.0, %v2492_v36 }
 0xf6f   : > { %v1347_v30 = vmul.f32 0.5, %v1346_v24 }
 0xf70   : > { %v1400_v38 = vmul.f32 0.5, %v1399_v37 }
 0xf71   : > { %v1349_v41 = vmul.f32 %v1347_v30, %v1255_v22 }
 0xf72   : > { %v1402_v47 = vmul.f32 %v1400_v38, %v1308_v21 }
 0xf8e   : > { %v1352_v31 = vpop.permute.xlu1 %1351 }
 0xf8f   : > { %v1354_v33 = vmul.f32 %v1352_v31, %v1347_v30 }
 0xf91   : > { %1356 = vrot.lane.b32.xlu0 %v1354_v33, %s2626_s25  ;;  %v2406_v33 = vld [vmem:[%s3372_s11] ss:$0 sm:$0xff] }
 0xfc6   : > { %v1405_v39 = vpop.permute.xlu2 %1404 }
 0xfc7   : > { %v1407_v40 = vmul.f32 %v1405_v39, %v1400_v38 }
 0xfc9   : > { %1409 = vrot.lane.b32.xlu1 %v1407_v40, %s2626_s25 }
 0xfd1   : > { %795 = vrot.lane.b32.xlu1 %v2898_v23, %s2625_s23 }
 0xfd9   : > { %1108 = vrot.lane.b32.xlu1 %v2956_v26, %s2625_s23 }
0x1003   : > { %v1357_v42 = vpop.permute.xlu0 %1356 }
0x1004   : > { %v1359_v45 = vadd.f32 %v1357_v42, %v1349_v41 }
0x1006   : > { %2493 = vtanh.f32 %v1359_v45  ;;  %v1533_v45 = vlaneseq }
0x100c   : > { %v2494_v46 = vpop.eup %2493 }
0x100d   : > { %1362 = vrot.lane.b32.xlu2 %v2494_v46, %s2625_s23 }
0x1015   : > { %900 = vrot.lane.b32.xlu2 %v2920_v63, %s2625_s23 }
0x101d   : > { %1212 = vrot.lane.b32.xlu2 %v2970_v43, %s2625_s23 }
0x103b   : > { %v1410_v48 = vpop.permute.xlu1 %1409 }
0x103c   : > { %v1412_v49 = vadd.f32 %v1410_v48, %v1402_v47  ;;  %v3146_v47 = vshrl.u32 %v1533_v45, 7 }
0x103e   : > { %2495 = vtanh.f32 %v1412_v49  ;;  %vm1577_vm14 = vcmp.eq.s32.totalorder %v3146_v47, 5  ;;  %vm1584_vm15 = vcmp.eq.s32.totalorder %v3146_v47, 4  ;;  %vm1591_vm1 = vcmp.eq.s32.totalorder %v3146_v47, 3 }
0x103f   : > { %vm1598_vm2 = vcmp.eq.s32.totalorder %v3146_v47, 2  ;;  %vm1612_vm3 = vcmp.eq.s32.totalorder %v3146_v47, 0  ;;  %vm1605_vm4 = vcmp.eq.s32.totalorder %v3146_v47, 1  ;;  %vm1573_vm5 = vcmp.eq.s32.totalorder %v3146_v47, 6 }
0x1043   : > { %v796_v23 = vpop.permute.xlu1 %795 }
0x1044   : > { %v2496_v26 = vpop.eup %2495  ;;  %799 = vst.msk [vmem:[#allocation3 + $0x6] sm:$0x1] %vm798_vm7, %v796_v23 }
0x1045   : > { %1415 = vrot.lane.b32.xlu0 %v2496_v26, %s2625_s23 }
0x104b   : > { %v1109_v50 = vpop.permute.xlu1 %1108 }
0x104c   : > { %1111 = vst.msk [vmem:[#allocation3 + $0x3] sm:$0x1] %vm798_vm7, %v1109_v50 }
0x104d   : > { %1004 = vrot.lane.b32.xlu0 %v2942_v35, %s2625_s23  ;;  %v1499_v35 = vld [vmem:[%s3371_s10 + $0x38] sm:$0xff] }
0x104e   : > { %1511 = vmatpush.msra.mxu2 %v1499_v35 }
0x1050   : > { %1512 = vmatpush.msra.mxu2 %v1498_v55 }
0x1052   : > { %1513 = vmatpush.msra.mxu2 %v1497_v57 }
0x1054   : > { %1514 = vmatpush.msra.mxu2 %v1496_v62 }
0x1055   : > { %1316 = vrot.lane.b32.xlu0 %v1314_v7, %s2625_s23  ;;  %v1427_v7 = vld [vmem:[%s3368_s7 + $0x10] sm:$0xff] }
0x1056   : > { %1515 = vmatpush.msra.mxu2 %v1495_v2 }
0x1058   : > { %1516 = vmatpush.msra.mxu2 %v1494_v20 }
0x105a   : > { %1517 = vmatpush.msra.mxu2 %v1493_v28 }
0x105c   : > { %1518 = vmatpush.msra.mxu2 %v1492_v4 }
0x105d   : > { %2319 = vmatmul.msk.f32.vlgmr.msra.gmra.mxu2 %vm1447_vm8, %v1491_v5 }
0x1067   : > { %v1363_v63 = vpop.permute.xlu2 %1362 }
0x1068   : > { %v1365_v43 = vmul.f32 %v1363_v63, %v1347_v30 }
0x106a   : > { %1367 = vrot.lane.b32.xlu1 %v1365_v43, %s2626_s25 }
0x106f   : > { %v901_v51 = vpop.permute.xlu2 %900 }
0x1070   : > { %903 = vst.msk [vmem:[#allocation3 + $0x5] sm:$0x1] %vm798_vm7, %v901_v51 }
0x1071   : > { %1266 = vst.msk [vmem:[#allocation3 + $0x5] sm:$0x1] %vm748_vm6, %v1264_v8  ;;  %v1428_v8 = vld [vmem:[%s3368_s7 + $0x18] sm:$0xff] }
0x1072   : > { %1485 = vmatpush.msra.mxu1 %v1428_v8 }
0x1074   : > { %1486 = vmatpush.msra.mxu1 %v1426_v10 }
0x1077   : > { %v1213_v52 = vpop.permute.xlu2 %1212 }
0x1078   : > { %1215 = vst.msk [vmem:[#allocation3 + $0x2] sm:$0x1] %vm798_vm7, %v1213_v52 }
0x10b7   : > { %v1416_v53 = vpop.permute.xlu0 %1415 }
0x10b8   : > { %v1418_v54 = vmul.f32 %v1416_v53, %v1400_v38 }
0x10ba   : > { %1420 = vrot.lane.b32.xlu2 %v1418_v54, %s2625_s23 }
0x10bf   : > { %v1005_v56 = vpop.permute.xlu0 %1004 }
0x10c0   : > { %1007 = vst.msk [vmem:[#allocation3 + $0x4] sm:$0x1] %vm798_vm7, %v1005_v56 }
0x10c1   : > { %1162 = vst.msk [vmem:[#allocation3 + $0x4] sm:$0x1] %vm748_vm6, %v2974_v44  ;;  %v1433_v44 = vld [vmem:[%s3368_s7 + $0x40] sm:$0xff] }
0x10c2   : > { %1462 = vmatpush.msra.mxu0 %v1433_v44 }
0x10c4   : > { %1463 = vmatpush.msra.mxu0 %v1431_v25 }
0x10c6   : > { %1464 = vmatpush.msra.mxu0 %v1429_v6 }
0x10c7   : > { %v1317_v22 = vpop.permute.xlu0 %1316 }
0x10c8   : > { %1319 = vst.msk [vmem:[#allocation3 + $0x1] sm:$0x1] %vm798_vm7, %v1317_v22  ;;  %1465 = vmatpush.msra.mxu0 %v1427_v7 }
0x10ca   : > { %1466 = vmatpush.msra.mxu0 %v1425_v9 }
0x10dc   : > { %v1368_v21 = vpop.permute.xlu1 %1367 }
0x10dd   : > { %1370 = vst.msk [vmem:[#allocation3 + $0x6] sm:$0x1] %vm748_vm6, %v1368_v21  ;;  %vm1659_vm6 = vcmask 56320  }
0x10e0   : > { %v3097_v13 = vpop.f32.mrf.mxu2 }
0x10e1   : > { %1691 = vrot.lane.b32.xlu0 %v3097_v13, %s2627_s26  ;;  %2320 = vmatpush.xpose.msk.msra.mxu3 %vm1535_vm9, %v3097_v13 }
0x1114   : > { %v1421_v11 = vpop.permute.xlu2 %1420 }
0x1115   : > { %1423 = vst.msk [vmem:[#allocation3] sm:$0x1] %vm798_vm7, %v1421_v11  ;;  %vm1687_vm7 = vcmask 129024  }
0x111c   : > { %v1424_v12 = vld [vmem:[#allocation3] sm:$0x7f] }
0x111d   : > { %2317 = vmatmul.msk.f32.vlgmr.msra.gmra.mxu0 %vm1447_vm8, %v1424_v12  ;;  %2318 = vmatmul.msk.f32.vlgmr.msra.gmra.mxu1 %vm1447_vm8, %v1424_v12 }
0x1153   : > { %v1692_v36 = vpop.permute.xlu0 %1691 }
0x1154   : > { %2326 = vmatpush.xpose.msk.msrb.mxu1 %vm1535_vm9, %v1692_v36 }
0x119a   : > { %v1468_v18 = vpop.f32.mrf.mxu0  ;;  %v1488_v19 = vpop.f32.mrf.mxu1 }
0x119b   : > { %v3109_v24 = vadd.f32 %v1468_v18, %v1443_v15  ;;  %v3111_v30 = vadd.f32 %v1488_v19, %v1444_v16 }
0x119d   : > { %2324 = vmatpush.msk.msrb.mxu0 %vm1663_vm10, %v3111_v30  ;;  %1766 = vrot.lane.b32.xlu0 %v3109_v24, %s3380_s1  ;;  %v3118_v31 = vadd.f32 %v2405_v17, %v3109_v24  ;;  %v3130_v34 = vadd.f32 %v2406_v33, %v3109_v24  ;;  %s2638_s1 = smov 16  }
0x119e   : > { %1620 = vrot.lane.b32.xlu2 %v3109_v24, %s2625_s23  ;;  %s2629_s23 = smov 8  }
0x119f   : > { %1689 = vrot.lane.b32.xlu1 %v3118_v31, %s2627_s26  ;;  %2321 = vmatmul.msk.f32.vlgmr.msra.gmra.mxu3 %vm1535_vm9, %v3118_v31 }
0x11a7   : > { %1764 = vrot.lane.b32.xlu1 %v3130_v34, %s2627_s26 }
0x11f8   : > { %v1621_v37 = vpop.permute.xlu2 %1620 }
0x11f9   : > { %2322 = vmatpush.xpose.msk.msrb.mxu3 %vm1535_vm9, %v1621_v37 }
0x11fc   : > { %2323 = vmatmul.msk.f32.vlgmr.msrb.gmra.mxu3 %vm1535_vm9, %v3130_v34 }
0x120f   : > { %v1767_v38 = vpop.permute.xlu0 %1766 }
0x1210   : > { %2328 = vmatpush.xpose.msk.msrb.mxu2 %vm1535_vm9, %v1767_v38 }
0x1211   : > { %v1690_v39 = vpop.permute.xlu1 %1689 }
0x1212   : > { %2327 = vmatmul.msk.f32.vlgmr.msrb.gmra.mxu1 %vm1535_vm9, %v1690_v39 }
0x1219   : > { %v1765_v40 = vpop.permute.xlu1 %1764 }
0x121a   : > { %2329 = vmatmul.msk.f32.vlgmr.msrb.gmra.mxu2 %vm1535_vm9, %v1765_v40 }
0x1222   : > { %v1559_v41 = vpop.f32.mrf.mxu3 }
0x1223   : > { %1565 = vst.msk [vmem:[#allocation4] sm:$0x7f] %vm1564_vm12, %v1559_v41 }
0x122a   : > { %v1566_v42 = vld [vmem:[#allocation4 + $0x1] sm:$0x3f] }
0x122b   : > { %1568 = vrot.lane.b32.xlu2 %v1566_v42, %s2629_s23 }
0x127f   : > { %v1644_v21 = vpop.f32.mrf.mxu3 }
0x1285   : > { %v1569_v46 = vpop.permute.xlu2 %1568 }
0x1286   : > { %1572 = vst.msk [vmem:[#allocation4] sm:$0x3f] %vm1571_vm13, %v1569_v46 }
0x128d   : > { %v1574_v48 = vld [vmem:[#allocation4] sm:$0x7f] }
0x128e   : > { %1717 = vst.msk [vmem:[#allocation4] sm:$0x7f] %vm1562_vm11, %v2624_v32  ;;  %v1578_v49 = vsel %vm1577_vm14, %v1574_v48, 0.0  ;;  %v1585_v23 = vsel %vm1584_vm15, %v1574_v48, 0.0  ;;  %v1592_v50 = vsel %vm1591_vm1, %v1574_v48, 0.0  ;;  %v1599_v63 = vsel %vm1598_vm2, %v1574_v48, 0.0 }
0x128f   : > { %1580 = vrot.lane.b32.xlu0 %v1578_v49, %s2630_s21  ;;  %1587 = vrot.lane.b32.xlu1 %v1585_v23, %s2631_s22  ;;  %v1714_v26 = vpop.f32.mrf.mxu1  ;;  %v1613_v51 = vsel %vm1612_vm3, %v1574_v48, 0.0  ;;  %v1606_v52 = vsel %vm1605_vm4, %v1574_v48, 0.0  ;;  %v1575_v61 = vsel %vm1573_vm5, %v1574_v48, 0.0 }
0x1290   : > { %1718 = vst.msk [vmem:[#allocation4] sm:$0x7f] %vm1564_vm12, %v1714_v26 }
0x1297   : > { %1594 = vrot.lane.b32.xlu0 %v1592_v50, %s2632_s0  ;;  %1601 = vrot.lane.b32.xlu1 %v1599_v63, %s2633_s30  ;;  %v1719_v43 = vld [vmem:[#allocation4 + $0x1] sm:$0x3f] }
0x1298   : > { %1721 = vrot.lane.b32.xlu2 %v1719_v43, %s2629_s23 }
0x129d   : > { %v1789_v19 = vpop.f32.mrf.mxu2 }
0x129f   : > { %1615 = vrot.lane.b32.xlu0 %v1613_v51, %s2634_s18 }
0x12a0   : > { %1608 = vrot.lane.b32.xlu2 %v1606_v52, %s2635_s19 }
0x12f2   : > { %v1722_v53 = vpop.permute.xlu2 %1721 }
0x12f3   : > { %1724 = vst.msk [vmem:[#allocation4] sm:$0x3f] %vm1571_vm13, %v1722_v53 }
0x12fa   : > { %v1725_v54 = vld [vmem:[#allocation4] sm:$0x7f]  ;;  %v1609_v22 = vpop.permute.xlu2 %1608 }
0x12fb   : > { %1865 = vst.msk [vmem:[#allocation4] sm:$0x7f] %vm1562_vm11, %v2624_v32  ;;  %v1740_v35 = vsel %vm1591_vm1, %v1725_v54, 0.0  ;;  %v1734_v55 = vsel %vm1584_vm15, %v1725_v54, 0.0  ;;  %v1728_v56 = vsel %vm1577_vm14, %v1725_v54, 0.0  ;;  %v1752_v58 = vsel %vm1605_vm4, %v1725_v54, 0.0 }
0x12fc   : > { %1742 = vrot.lane.b32.xlu0 %v1740_v35, %s2632_s0  ;;  %1736 = vrot.lane.b32.xlu2 %v1734_v55, %s2631_s22  ;;  %v1746_v59 = vsel %vm1598_vm2, %v1725_v54, 0.0  ;;  %v1758_v0 = vsel %vm1612_vm3, %v1725_v54, 0.0  ;;  %v1726_v10 = vsel %vm1573_vm5, %v1725_v54, 0.0 }
0x12fd   : > { %1730 = vrot.lane.b32.xlu1 %v1728_v56, %s2630_s21 }
0x1301   : > { %v1581_v57 = vpop.permute.xlu0 %1580  ;;  %v1588_v60 = vpop.permute.xlu1 %1587 }
0x1302   : > { %v1583_v62 = vadd.f32 %v1581_v57, %v1575_v61 }
0x1304   : > { %1754 = vrot.lane.b32.xlu0 %v1752_v58, %s2635_s19  ;;  %1748 = vrot.lane.b32.xlu2 %v1746_v59, %s2633_s30  ;;  %v1590_v2 = vadd.f32 %v1588_v60, %v1583_v62 }
0x1309   : > { %v1595_v1 = vpop.permute.xlu0 %1594  ;;  %v1602_v3 = vpop.permute.xlu1 %1601 }
0x130a   : > { %v1597_v44 = vadd.f32 %v1595_v1, %v1590_v2 }
0x130c   : > { %1760 = vrot.lane.b32.xlu2 %v1758_v0, %s2634_s18  ;;  %v1604_v20 = vadd.f32 %v1602_v3, %v1597_v44 }
0x130e   : > { %v1611_v4 = vadd.f32 %v1609_v22, %v1604_v20 }
0x1311   : > { %v1616_v28 = vpop.permute.xlu0 %1615 }
0x1312   : > { %v1618_v5 = vadd.f32 %v1616_v28, %v1611_v4 }
0x1314   : > { %v1645_v25 = vadd.f32 %v1644_v21, %v1618_v5 }
0x1316   : > { %v1647_v27 = vmul.f32 0.125, %v1645_v25 }
0x1318   : > { %v1648_v6 = vsel %vm1564_vm12, %v1647_v27, -inf }
0x1327   : > { %1649 = vmax.xlane.f32.xlu1 %v1648_v6 }
0x1340   : > { %1839 = vrot.lane.b32.xlu1 %v3097_v13, %s2636_s27 }
0x1348   : > { %1987 = vrot.lane.b32.xlu1 %v3097_v13, %s2637_s20 }
0x1350   : > { %1914 = vrot.lane.b32.xlu1 %v3109_v24, %s2626_s25 }
0x1356   : > { %v1737_v29 = vpop.permute.xlu2 %1736 }
0x1358   : > { %2062 = vrot.lane.b32.xlu1 %v3109_v24, %s2638_s1 }
0x135e   : > { %v1749_v8 = vpop.permute.xlu2 %1748 }
0x1366   : > { %v1761_v17 = vpop.permute.xlu2 %1760 }
0x136e   : > { %v1743_v7 = vpop.permute.xlu0 %1742 }
0x136f   : > { %v1731_v9 = vpop.permute.xlu1 %1730 }
0x1370   : > { %v1733_v11 = vadd.f32 %v1731_v9, %v1726_v10 }
0x1372   : > { %v1739_v12 = vadd.f32 %v1737_v29, %v1733_v11 }
0x1374   : > { %v1745_v14 = vadd.f32 %v1743_v7, %v1739_v12 }
0x1376   : > { %v1751_v15 = vadd.f32 %v1749_v8, %v1745_v14  ;;  %v1755_v16 = vpop.permute.xlu0 %1754 }
0x1378   : > { %v1757_v13 = vadd.f32 %v1755_v16, %v1751_v15 }
0x137a   : > { %v1763_v18 = vadd.f32 %v1761_v17, %v1757_v13 }
0x137c   : > { %v1790_v33 = vadd.f32 %v1789_v19, %v1763_v18 }
0x137e   : > { %v1792_v36 = vmul.f32 0.125, %v1790_v33 }
0x1380   : > { %v1793_v24 = vsel %vm1564_vm12, %v1792_v36, -inf }
0x1381   : > { %1794 = vmax.xlane.f32.xlu0 %v1793_v24 }
0x1395   : > { %1837 = vrot.lane.b32.xlu0 %v3118_v31, %s2636_s27 }
0x139a   : > { %v1650_v37 = vpop.xlane.xlu1 %1649 }
0x139b   : > { %v1651_v38 = vsub.f32 %v1647_v27, %v1650_v37 }
0x139d   : > { %v1652_v39 = vmul.f32 1.442695, %v1651_v38  ;;  %1985 = vrot.lane.b32.xlu0 %v3118_v31, %s2637_s20 }
0x139f   : > { %2497 = vpow2.f32 %v1652_v39 }
0x13a5   : > { %v2498_v40 = vpop.eup %2497  ;;  %1912 = vrot.lane.b32.xlu0 %v3130_v34, %s2636_s27 }
0x13a6   : > { %v1654_v41 = vsel %vm1564_vm12, %v2498_v40, 0.0 }
0x13a7   : > { %1655 = vadd.xlane.f32.xlu2 %v1654_v41 }
0x13b2   : > { %v1840_v42 = vpop.permute.xlu1 %1839 }
0x13b3   : > { %2332 = vmatpush.xpose.msk.msra.mxu0 %vm1535_vm9, %v1840_v42 }
0x13ba   : > { %v1988_v45 = vpop.permute.xlu1 %1987 }
0x13c2   : > { %v1915_v46 = vpop.permute.xlu1 %1914 }
0x13c3   : > { %2334 = vmatpush.xpose.msk.msra.mxu1 %vm1535_vm9, %v1915_v46 }
0x13ca   : > { %v2063_v54 = vpop.permute.xlu1 %2062 }
0x13f4   : > { %v1795_v48 = vpop.xlane.xlu0 %1794 }
0x13f5   : > { %v1796_v49 = vsub.f32 %v1792_v36, %v1795_v48 }
0x13f7   : > { %v1797_v23 = vmul.f32 1.442695, %v1796_v49 }
0x13f9   : > { %2499 = vpow2.f32 %v1797_v23 }
0x13ff   : > { %v2500_v31 = vpop.eup %2499 }
0x1400   : > { %v1799_v26 = vsel %vm1564_vm12, %v2500_v31, 0.0 }
0x1401   : > { %1800 = vadd.xlane.f32.xlu2 %v1799_v26 }
0x1407   : > { %v1838_v50 = vpop.permute.xlu0 %1837 }
0x140f   : > { %v1986_v63 = vpop.permute.xlu0 %1985 }
0x1417   : > { %v1913_v43 = vpop.permute.xlu0 %1912 }
0x1418   : > { %2335 = vmatmul.msk.f32.vlgmr.msra.gmra.mxu1 %vm1535_vm9, %v1913_v43 }
0x1419   : > { %1804 = vrot.lane.b32.xlu2 %v3111_v30, %s2627_s26  ;;  %s3386_s26 = smov 48  }
0x141a   : > { %v1656_v51 = vpop.xlane.xlu2 %1655 }
0x141b   : > { %2501 = vrcp.f32 %v1656_v51 }
0x1421   : > { %v2502_v52 = vpop.eup %2501  ;;  %2060 = vrot.lane.b32.xlu2 %v3130_v34, %s2637_s20 }
0x1422   : > { %v1658_v53 = vmul.f32 %v2502_v52, %v2498_v40 }
0x1424   : > { %2325 = vmatmul.msk.f32.vlgmr.msrb.gmra.mxu0 %vm1659_vm6, %v1658_v53 }
0x1425   : > { %2340 = vmatpush.xpose.msk.msrb.mxu0 %vm1535_vm9, %v2063_v54 }
0x142c   : > { %2333 = vmatmul.msk.f32.vlgmr.msra.gmra.mxu0 %vm1535_vm9, %v1838_v50 }
0x1474   : > { %v1801_v35 = vpop.xlane.xlu2 %1800 }
0x1475   : > { %2503 = vrcp.f32 %v1801_v35 }
0x147b   : > { %v2504_v55 = vpop.eup %2503 }
0x147c   : > { %v1803_v56 = vmul.f32 %v2504_v55, %v2500_v31  ;;  %v1805_v57 = vpop.permute.xlu2 %1804 }
0x147d   : > { %2330 = vmatpush.msk.msra.mxu3 %vm1663_vm10, %v1805_v57 }
0x147e   : > { %2331 = vmatmul.msk.f32.vlgmr.msra.gmra.mxu3 %vm1659_vm6, %v1803_v56 }
0x147f   : > { %2338 = vmatpush.xpose.msk.msrb.mxu3 %vm1535_vm9, %v1988_v45 }
0x1484   : > { %v2061_v34 = vpop.permute.xlu2 %2060 }
0x1485   : > { %2341 = vmatmul.msk.f32.vlgmr.msrb.gmra.mxu0 %vm1535_vm9, %v2061_v34 }
0x1486   : > { %2339 = vmatmul.msk.f32.vlgmr.msrb.gmra.mxu3 %vm1535_vm9, %v1986_v63  ;;  %vm1835_vm9 = vcmask 260224  }
0x1495   : > { %v1937_v36 = vpop.f32.mrf.mxu1 }
0x14a1   : > { %v1684_v58 = vpop.f32.mrf.mxu0 }
0x14a2   : > { %1688 = vst.msk [vmem:[#allocation5] sm:$0x7f] %vm1687_vm7, %v1684_v58 }
0x14a9   : > { %v1862_v59 = vpop.f32.mrf.mxu0 }
0x14aa   : > { %1866 = vst.msk [vmem:[#allocation4] sm:$0x7f] %vm1564_vm12, %v1862_v59 }
0x14b1   : > { %v1867_v60 = vld [vmem:[#allocation4 + $0x1] sm:$0x3f] }
0x14b2   : > { %1869 = vrot.lane.b32.xlu0 %v1867_v60, %s2629_s23 }
0x1501   : > { %v3237_v61 = vpop.f32.mrf.mxu3 }
0x1502   : > { %v2085_v43 = vpop.f32.mrf.mxu0 }
0x1509   : > { %v2010_v1 = vpop.f32.mrf.mxu3 }
0x1524   : > { %v1870_v62 = vpop.permute.xlu0 %1869 }
0x1525   : > { %1872 = vst.msk [vmem:[#allocation4] sm:$0x3f] %vm1571_vm13, %v1870_v62 }
0x152c   : > { %v1873_v0 = vld [vmem:[#allocation4] sm:$0x7f] }
0x152d   : > { %v1882_v2 = vsel %vm1584_vm15, %v1873_v0, 0.0  ;;  %2013 = vst.msk [vmem:[#allocation4] sm:$0x7f] %vm1562_vm11, %v2624_v32  ;;  %v1876_v44 = vsel %vm1577_vm14, %v1873_v0, 0.0  ;;  %v1906_v20 = vsel %vm1612_vm3, %v1873_v0, 0.0  ;;  %v1894_v32 = vsel %vm1598_vm2, %v1873_v0, 0.0 }
0x152e   : > { %1884 = vrot.lane.b32.xlu0 %v1882_v2, %s2631_s22  ;;  %2014 = vst.msk [vmem:[#allocation4] sm:$0x7f] %vm1564_vm12, %v2010_v1  ;;  %1878 = vrot.lane.b32.xlu2 %v1876_v44, %s2630_s21  ;;  %v1888_v22 = vsel %vm1591_vm1, %v1873_v0, 0.0  ;;  %v1900_v28 = vsel %vm1605_vm4, %v1873_v0, 0.0  ;;  %v1874_v10 = vsel %vm1573_vm5, %v1873_v0, 0.0  ;;  %vm2131_vm11 = vcmask 522624  }
0x1535   : > { %v2015_v3 = vld [vmem:[#allocation4 + $0x1] sm:$0x3f] }
0x1536   : > { %2017 = vrot.lane.b32.xlu1 %v2015_v3, %s2629_s23  ;;  %1908 = vrot.lane.b32.xlu0 %v1906_v20, %s2634_s18 }
0x1537   : > { %1896 = vrot.lane.b32.xlu2 %v1894_v32, %s2633_s30 }
0x153e   : > { %1890 = vrot.lane.b32.xlu1 %v1888_v22, %s2632_s0 }
0x1546   : > { %1902 = vrot.lane.b32.xlu1 %v1900_v28, %s2635_s19  ;;  %v2141_v28 = vld [vmem:[%s3374_s13 + $0x38] sm:$0xff] }
0x1588   : > { %v1879_v8 = vpop.permute.xlu2 %1878 }
0x1589   : > { %v1881_v12 = vadd.f32 %v1879_v8, %v1874_v10  ;;  %v2176_v8 = vld [vmem:[%s3376_s15 + $0x38] sm:$0xff]  ;;  %v2174_v10 = vld [vmem:[%s3376_s15 + $0x28] sm:$0xff] }
0x158a   : > { %2192 = vmatpush.msra.mxu3 %v2176_v8 }
0x1591   : > { %v1897_v16 = vpop.permute.xlu2 %1896 }
0x15a0   : > { %v1885_v11 = vpop.permute.xlu0 %1884 }
0x15a1   : > { %v1887_v14 = vadd.f32 %v1885_v11, %v1881_v12  ;;  %v2173_v11 = vld [vmem:[%s3376_s15 + $0x20] sm:$0xff]  ;;  %v2172_v12 = vld [vmem:[%s3376_s15 + $0x18] sm:$0xff] }
0x15a8   : > { %v2018_v4 = vpop.permute.xlu1 %2017  ;;  %v1909_v19 = vpop.permute.xlu0 %1908 }
0x15a9   : > { %2020 = vst.msk [vmem:[#allocation4] sm:$0x3f] %vm1571_vm13, %v2018_v4  ;;  %v2140_v4 = vld [vmem:[%s3374_s13 + $0x30] sm:$0xff] }
0x15b0   : > { %v2021_v5 = vld [vmem:[#allocation4] sm:$0x7f]  ;;  %v1891_v9 = vpop.permute.xlu1 %1890 }
0x15b1   : > { %v2036_v21 = vsel %vm1591_vm1, %v2021_v5, 0.0  ;;  %v2024_v25 = vsel %vm1577_vm14, %v2021_v5, 0.0  ;;  %v2030_v27 = vsel %vm1584_vm15, %v2021_v5, 0.0  ;;  %v2054_v6 = vsel %vm1612_vm3, %v2021_v5, 0.0 }
0x15b2   : > { %2038 = vrot.lane.b32.xlu1 %v2036_v21, %s2632_s0  ;;  %2026 = vrot.lane.b32.xlu0 %v2024_v25, %s2630_s21  ;;  %v2048_v29 = vsel %vm1605_vm4, %v2021_v5, 0.0  ;;  %v2042_v7 = vsel %vm1598_vm2, %v2021_v5, 0.0  ;;  %v1893_v15 = vadd.f32 %v1891_v9, %v1887_v14  ;;  %v2022_v41 = vsel %vm1573_vm5, %v2021_v5, 0.0  ;;  %v2139_v5 = vld [vmem:[%s3374_s13 + $0x28] sm:$0xff]  ;;  %v2138_v21 = vld [vmem:[%s3374_s13 + $0x20] sm:$0xff] }
0x15b3   : > { %2032 = vrot.lane.b32.xlu2 %v2030_v27, %s2631_s22  ;;  %v2137_v27 = vld [vmem:[%s3374_s13 + $0x18] sm:$0xff]  ;;  %v2175_v9 = vld [vmem:[%s3376_s15 + $0x30] sm:$0xff] }
0x15b4   : > { %v1899_v17 = vadd.f32 %v1897_v16, %v1893_v15  ;;  %2193 = vmatpush.msra.mxu3 %v2175_v9  ;;  %v2171_v14 = vld [vmem:[%s3376_s15 + $0x10] sm:$0xff] }
0x15b6   : > { %2194 = vmatpush.msra.mxu3 %v2174_v10 }
0x15b8   : > { %v1903_v13 = vpop.permute.xlu1 %1902  ;;  %2195 = vmatpush.msra.mxu3 %v2173_v11 }
0x15b9   : > { %v1905_v18 = vadd.f32 %v1903_v13, %v1899_v17  ;;  %v2170_v13 = vld [vmem:[%s3376_s15 + $0x8] sm:$0xff]  ;;  %v2169_v17 = vld [vmem:[%s3376_s15] sm:$0xff] }
0x15ba   : > { %2056 = vrot.lane.b32.xlu1 %v2054_v6, %s2634_s18  ;;  %2050 = vrot.lane.b32.xlu0 %v2048_v29, %s2635_s19  ;;  %v2136_v6 = vld [vmem:[%s3374_s13 + $0x10] sm:$0xff]  ;;  %v2135_v29 = vld [vmem:[%s3374_s13 + $0x8] sm:$0xff] }
0x15bb   : > { %2044 = vrot.lane.b32.xlu2 %v2042_v7, %s2633_s30  ;;  %v1911_v33 = vadd.f32 %v1909_v19, %v1905_v18  ;;  %v2134_v7 = vld [vmem:[%s3374_s13] sm:$0xff]  ;;  %2196 = vmatpush.msra.mxu3 %v2172_v12  ;;  %v2407_v18 = vld [vmem:[#allocation8] ss:$0 sm:$0xff] }
0x15bd   : > { %v1938_v24 = vadd.f32 %v1937_v36, %v1911_v33  ;;  %2197 = vmatpush.msra.mxu3 %v2171_v14  ;;  %v2408_v36 = vld [vmem:[#allocation10] ss:$0 sm:$0xff] }
0x15bf   : > { %v1940_v37 = vmul.f32 0.125, %v1938_v24  ;;  %2198 = vmatpush.msra.mxu3 %v2170_v13 }
0x15c1   : > { %v1941_v38 = vsel %vm1564_vm12, %v1940_v37, -inf  ;;  %2199 = vmatpush.msra.mxu3 %v2169_v17 }
0x15e4   : > { %1942 = vmax.xlane.f32.xlu2 %v1941_v38  ;;  %v2513_v38 = vld [vmem:[%s2767_s29] sm:$0x7f] }
0x160d   : > { %v2033_v39 = vpop.permute.xlu2 %2032 }
0x1615   : > { %v2045_v49 = vpop.permute.xlu2 %2044 }
0x1624   : > { %v2039_v40 = vpop.permute.xlu1 %2038  ;;  %v2027_v42 = vpop.permute.xlu0 %2026 }
0x1625   : > { %v2029_v45 = vadd.f32 %v2027_v42, %v2022_v41 }
0x1627   : > { %v2035_v46 = vadd.f32 %v2033_v39, %v2029_v45 }
0x1629   : > { %v2041_v48 = vadd.f32 %v2039_v40, %v2035_v46 }
0x162b   : > { %v2047_v23 = vadd.f32 %v2045_v49, %v2041_v48 }
0x162c   : > { %v2051_v31 = vpop.permute.xlu0 %2050  ;;  %v2057_v50 = vpop.permute.xlu1 %2056 }
0x162d   : > { %v2053_v26 = vadd.f32 %v2051_v31, %v2047_v23 }
0x162f   : > { %v2059_v63 = vadd.f32 %v2057_v50, %v2053_v26 }
0x1631   : > { %v2086_v51 = vadd.f32 %v2085_v43, %v2059_v63 }
0x1633   : > { %v2088_v52 = vmul.f32 0.125, %v2086_v51 }
0x1635   : > { %v2089_v53 = vsel %vm1564_vm12, %v2088_v52, -inf }
0x1636   : > { %2090 = vmax.xlane.f32.xlu0 %v2089_v53 }
0x164a   : > { %1952 = vrot.lane.b32.xlu0 %v3111_v30, %s2636_s27 }
0x1657   : > { %v1943_v47 = vpop.xlane.xlu2 %1942 }
0x1658   : > { %v1944_v54 = vsub.f32 %v1940_v37, %v1943_v47 }
0x165a   : > { %v1945_v35 = vmul.f32 1.442695, %v1944_v54 }
0x165c   : > { %2505 = vpow2.f32 %v1945_v35 }
0x1662   : > { %v2506_v55 = vpop.eup %2505 }
0x1663   : > { %v1947_v56 = vsel %vm1564_vm12, %v2506_v55, 0.0 }
0x1664   : > { %1948 = vadd.xlane.f32.xlu1 %v1947_v56 }
0x167d   : > { %2100 = vrot.lane.b32.xlu1 %v3111_v30, %s2637_s20 }
0x16a9   : > { %v2091_v57 = vpop.xlane.xlu0 %2090 }
0x16aa   : > { %v2092_v34 = vsub.f32 %v2088_v52, %v2091_v57 }
0x16ac   : > { %v2093_v58 = vmul.f32 1.442695, %v2092_v34 }
0x16ae   : > { %2507 = vpow2.f32 %v2093_v58 }
0x16b4   : > { %v2508_v59 = vpop.eup %2507 }
0x16b5   : > { %v2095_v60 = vsel %vm1564_vm12, %v2508_v59, 0.0 }
0x16b6   : > { %2096 = vadd.xlane.f32.xlu2 %v2095_v60 }
0x16bc   : > { %v1953_v62 = vpop.permute.xlu0 %1952 }
0x16bd   : > { %2336 = vmatpush.msk.msra.mxu2 %vm1663_vm10, %v1953_v62 }
0x16bf   : > { %2157 = vmatpush.msrb.mxu2 %v2141_v28 }
0x16c1   : > { %2158 = vmatpush.msrb.mxu2 %v2140_v4 }
0x16c3   : > { %2159 = vmatpush.msrb.mxu2 %v2139_v5 }
0x16c5   : > { %2160 = vmatpush.msrb.mxu2 %v2138_v21 }
0x16c7   : > { %2161 = vmatpush.msrb.mxu2 %v2137_v27 }
0x16c9   : > { %2162 = vmatpush.msrb.mxu2 %v2136_v6 }
0x16cb   : > { %2163 = vmatpush.msrb.mxu2 %v2135_v29 }
0x16cd   : > { %2164 = vmatpush.msrb.mxu2 %v2134_v7 }
0x16ce   : > { %1832 = vrot.lane.b32.xlu2 %v3237_v61, %s2638_s1 }
0x16d7   : > { %v1949_v0 = vpop.xlane.xlu1 %1948 }
0x16d8   : > { %2509 = vrcp.f32 %v1949_v0 }
0x16de   : > { %v2510_v1 = vpop.eup %2509 }
0x16df   : > { %v1951_v2 = vmul.f32 %v2510_v1, %v2506_v55 }
0x16e1   : > { %2337 = vmatmul.msk.f32.vlgmr.msra.gmra.mxu2 %vm1659_vm6, %v1951_v2 }
0x16ef   : > { %v2101_v30 = vpop.permute.xlu1 %2100 }
0x16f0   : > { %2342 = vmatpush.msk.msrb.mxu1 %vm1663_vm10, %v2101_v30  ;;  %vm1983_vm10 = vcmask 391424  }
0x1729   : > { %v2097_v44 = vpop.xlane.xlu2 %2096 }
0x172a   : > { %2511 = vrcp.f32 %v2097_v44 }
0x1730   : > { %v2512_v3 = vpop.eup %2511 }
0x1731   : > { %v2099_v20 = vmul.f32 %v2512_v3, %v2508_v59  ;;  %v1833_v32 = vpop.permute.xlu2 %1832 }
0x1732   : > { %1836 = vst.msk [vmem:[#allocation5] sm:$0x7f] %vm1835_vm9, %v1833_v32 }
0x1733   : > { %2343 = vmatmul.msk.f32.vlgmr.msrb.gmra.mxu1 %vm1659_vm6, %v2099_v20 }
0x1764   : > { %v1976_v22 = vpop.f32.mrf.mxu2 }
0x1765   : > { %1980 = vrot.lane.b32.xlu0 %v1976_v22, %s2626_s25  ;;  %s3387_s25 = sshll.u32 %s3389_s28, 3 }
0x17b0   : > { %v2124_v61 = vpop.f32.mrf.mxu1 }
0x17b1   : > { %2128 = vrot.lane.b32.xlu1 %v2124_v61, %s3386_s26  ;;  %s587_s26 = scalar_lea.vmem %s3378_s17, %s3387_s25 }
0x17d7   : > { %v1981_v25 = vpop.permute.xlu0 %1980 }
0x17d8   : > { %1984 = vst.msk [vmem:[#allocation5] sm:$0x7f] %vm1983_vm10, %v1981_v25 }
0x1823   : > { %v2129_v15 = vpop.permute.xlu1 %2128 }
0x1824   : > { %2132 = vst.msk [vmem:[#allocation5] sm:$0x7f] %vm2131_vm11, %v2129_v15 }
0x182b   : > { %v2133_v16 = vld [vmem:[#allocation5] sm:$0x7f] }
0x182c   : > { %2344 = vmatmul.msk.f32.vlgmr.msrb.gmra.mxu2 %vm1447_vm8, %v2133_v16 }
0x18af   : > { %v2166_v19 = vpop.f32.mrf.mxu2 }
0x18b0   : > { %v2167_v33 = vadd.f32 %v2407_v18, %v2166_v19 }
0x18b2   : > { %2345 = vmatmul.msk.f32.vlgmr.msra.gmra.mxu3 %vm1447_vm8, %v2167_v33 }
0x1935   : > { %v2201_v24 = vpop.f32.mrf.mxu3 }
0x1936   : > { %v2202_v37 = vadd.f32 %v2408_v36, %v2201_v24 }
0x1938   : > { %v2204_v39 = vadd.f32 %v2513_v38, %v2202_v37 }
0x193a   : > { %2205 = vst.msk [vmem:[%s587_s26] sm:$0x7f] %vm591_vm0, %v2204_v39 }
0x193b PF: > { %s29_s24 = sadd.s32 1, %s2618_s24  }
0x193c   : > { %p26_p7 = scmp.ge.s32.totalorder %s29_s24, 4  }
0x193e   :  { %28 = sbr.rel (!%p26_p7) target bundleno = 5 (0x5), region = 131 }
0x1943   :  { %2225 = vsyncpa [#allocation7], 1 }
0x1944   :  { %2227 = vsyncpa [#allocation7 + $0x1], 1 }
0x1945   :  { %2228 = vsyncpa [#allocation9], 1 }

</bundles_post_ra>
